<compile_context>
chip_gen: v7x
topology: tpu7x:2x2x1
jax: 0.10.0
libtpu: 0.0.40
codegen_flags: <defaults>
</compile_context>

<pallas_src>
import functools

import jax
import jax.numpy as jnp
import numpy as np
from jax import lax
from jax.experimental import pallas as pl
from jax.experimental.pallas import tpu as pltpu


# ------------------------------ fused kernel ----------------------------------

def _segnet_up3_kernel(xw_ref, code_ref, w_ref, sc_ref, sh_ref, o_ref, fpad_ref,
                       *, H, W, n_layers):
    """Fused segnetUp3 forward for one image.

    Layout: flat unpooled spatial (S = 2H*2W) on sublanes, channels on lanes.
      xw_ref   : (1, H*Wo, C) f32  pooled values, already width-doubled (Wo = 2W)
      code_ref : (1, H*Wo, C) i32  2-bit argmax quadrant code, width-doubled alongside xw
      w_ref    : (n_layers, 9*C, C) bf16  conv weights, rows ordered (ky, kx, cin)
      sc_ref   : (n_layers, 1, C) f32  folded conv-bias + BatchNorm scale
      sh_ref   : (n_layers, 1, C) f32  folded conv-bias + BatchNorm shift
      o_ref    : (1, S, C)
      fpad_ref : (L, C) f32 VMEM scratch: flat activation with zero halo rows
    """
    f32 = jnp.float32
    bf16 = jnp.bfloat16
    C = xw_ref.shape[-1]
    Ho, Wo = 2 * H, 2 * W
    S = Ho * Wo
    base = ((Wo + 1 + 7) // 8) * 8            # 8-aligned top/bottom zero-halo rows

    # Zero ONLY the halo rows.  Done every grid step so each TensorCore's private
    # scratch is initialized even under megacore partitioning of the batch axis;
    # the interior [base, base+S) is fully overwritten below.
    fpad_ref[pl.ds(0, base), :] = jnp.zeros((base, C), f32)
    fpad_ref[pl.ds(base + S, base), :] = jnp.zeros((base, C), f32)

    # ---------------- MaxUnpool2d(2, 2): row doubling + integer parity mask ----------------
    # xw already has columns doubled; each pooled row h expands into output rows 2h / 2h+1,
    # keeping a value only where the recorded argmax quadrant matches the output position.
    xw_full = xw_ref[0]                                              # (H*Wo, C) f32
    code_full = code_ref[0]                                          # (H*Wo, C) i32
    colpar = lax.broadcasted_iota(jnp.int32, (Wo, 1), 0) & 1         # output column parity
    for h in range(H):                                               # aligned (Wo, C) block copies
        xb = xw_full[h * Wo:(h + 1) * Wo, :]
        cb = code_full[h * Wo:(h + 1) * Wo, :]
        for ry in (0, 1):
            keep = cb == (2 * ry + colpar)
            fpad_ref[pl.ds(base + (2 * h + ry) * Wo, Wo), :] = jnp.where(keep, xb, 0.0)

    # Column-border masks: in the flat layout a +/-1 column shift wraps across rows.
    pcol = lax.broadcasted_iota(jnp.int32, (S, 1), 0) % Wo
    not_left = pcol != 0
    not_right = pcol != (Wo - 1)

    # -------------- n_layers x (Conv3x3(pad=1) + BN(eval) + ReLU) --------------
    # K-split by kernel row: 3 partial MXU matmuls of K = 3*C, bf16 operands, f32 accum.
    for l in range(n_layers):
        w_l = w_ref[l]                                               # (9C, C) bf16
        y = jnp.zeros((S, C), f32)
        for g, dy in enumerate((-1, 0, 1)):
            taps = []
            for dx in (-1, 0, 1):
                t = fpad_ref[pl.ds(base + dy * Wo + dx, S), :]       # shifted (S, C) view
                if dx == -1:
                    t = jnp.where(not_left, t, 0.0)
                elif dx == 1:
                    t = jnp.where(not_right, t, 0.0)
                taps.append(t)
            grp = jnp.concatenate(taps, axis=1).astype(bf16)         # (S, 3C), consumed now
            y = y + jnp.dot(grp, w_l[g * 3 * C:(g + 1) * 3 * C, :],
                            preferred_element_type=f32)
        y = jnp.maximum(y * sc_ref[l] + sh_ref[l], 0.0)              # folded bias/BN + ReLU
        if l + 1 < n_layers:
            fpad_ref[pl.ds(base, S), :] = y                          # next layer's input (VMEM resident)
        else:
            o_ref[0] = y.astype(o_ref.dtype)


# ------------------------------- wrapper ---------------------------------------

def segnet_up3(x_nchw, idx_nchw, params):
    """segnetUp3 forward.  x/idx: (N, Cin, H, W) NCHW; returns (N, Cout, 2H, 2W)."""
    N, Cin, H, W = x_nchw.shape
    Cout = params[0][0].shape[-1]
    n_layers = len(params)
    Cp = max(Cin, Cout)                      # common channel width inside the kernel
    Ho, Wo = 2 * H, 2 * W
    S = Ho * Wo
    base = ((Wo + 1 + 7) // 8) * 8
    L = base + S + base

    # Layout plumbing on pooled-size data only: NCHW -> NHWC, width-double, flatten.
    # The raw argmax is pre-reduced to its 2-bit quadrant code (row parity, col parity),
    # so the kernel never touches flat indices (and padded channels are safe: value 0).
    x_nhwc = jnp.transpose(x_nchw, (0, 2, 3, 1))                         # (N, H, W, Cin)
    code = ((idx_nchw // Wo) & 1) * 2 + (idx_nchw & 1)                   # in {0,1,2,3}
    code_nhwc = jnp.transpose(code, (0, 2, 3, 1)).astype(jnp.int32)
    xw = jnp.repeat(x_nhwc, 2, axis=2).reshape(N, H * Wo, Cin)           # width-doubled, flat
    codew = jnp.repeat(code_nhwc, 2, axis=2).reshape(N, H * Wo, Cin)
    if Cp > Cin:
        xw = jnp.pad(xw, ((0, 0), (0, 0), (0, Cp - Cin)))
        codew = jnp.pad(codew, ((0, 0), (0, 0), (0, Cp - Cin)))

    w_list, sc_list, sh_list = [], [], []
    for (w, scale, shift) in params:
        ci, co = w.shape[2], w.shape[3]
        w = jnp.pad(w, ((0, 0), (0, 0), (0, Cp - ci), (0, Cp - co)))
        w_list.append(w.reshape(9 * Cp, Cp).astype(jnp.bfloat16))        # rows (ky, kx, cin)
        sc_list.append(jnp.pad(scale, ((0, 0), (0, Cp - co))))
        sh_list.append(jnp.pad(shift, ((0, 0), (0, Cp - co))))
    w_all = jnp.stack(w_list)                                            # (n_layers, 9Cp, Cp) bf16
    sc_all = jnp.stack(sc_list)                                          # (n_layers, 1, Cp) f32
    sh_all = jnp.stack(sh_list)                                          # (n_layers, 1, Cp) f32

    kernel = functools.partial(_segnet_up3_kernel, H=H, W=W, n_layers=n_layers)
    out = pl.pallas_call(
        kernel,
        out_shape=jax.ShapeDtypeStruct((N, S, Cp), x_nchw.dtype),
        grid=(N,),
        in_specs=[
            pl.BlockSpec((1, H * Wo, Cp), lambda n: (n, 0, 0)),
            pl.BlockSpec((1, H * Wo, Cp), lambda n: (n, 0, 0)),
            pl.BlockSpec((n_layers, 9 * Cp, Cp), lambda n: (0, 0, 0)),
            pl.BlockSpec((n_layers, 1, Cp), lambda n: (0, 0, 0)),
            pl.BlockSpec((n_layers, 1, Cp), lambda n: (0, 0, 0)),
        ],
        out_specs=pl.BlockSpec((1, S, Cp), lambda n: (n, 0, 0)),
        scratch_shapes=[pltpu.VMEM((L, Cp), jnp.float32)],
        compiler_params=pltpu.CompilerParams(
            dimension_semantics=("parallel",),
            vmem_limit_bytes=32 * 1024 * 1024),
    )(xw, codew, w_all, sc_all, sh_all)

    out = out[:, :, :Cout]                                   # drop channel padding
    # TODO(synk): for production-sized images add a spatial row-tile grid axis (with a
    # 3x3 halo) and a lane-dense (C, S) output layout; whole-image residency + (S, C)
    # stores are only appropriate at small/medium H, W.
    return jnp.transpose(out.reshape(N, Ho, Wo, Cout), (0, 3, 1, 2))     # NCHW


# ------------------------------- parameters ------------------------------------

def init_cbr_params(key, cin, cout, eps=1e-5):
    """Deterministic synthetic params for one conv2DBatchNormRelu block.

    Conv weight is HWIO (3, 3, cin, cout). Conv bias + BatchNorm (eval mode) are folded
    into a per-channel (scale, shift).
    """
    kw, kb, kg, kbe, km, kv = jax.random.split(key, 6)
    w = 0.1 * jax.random.normal(kw, (3, 3, cin, cout), jnp.float32)
    b = 0.1 * jax.random.normal(kb, (cout,), jnp.float32)
    gamma = 1.0 + 0.1 * jax.random.normal(kg, (cout,), jnp.float32)
    beta = 0.1 * jax.random.normal(kbe, (cout,), jnp.float32)
    running_mean = 0.1 * jax.random.normal(km, (cout,), jnp.float32)
    running_var = 0.5 + jnp.abs(jax.random.normal(kv, (cout,), jnp.float32))
    # TODO(synk): BatchNorm is reproduced in eval/inference mode (folded affine);
    # training-mode per-batch statistics are not reproduced.
    scale = gamma / jnp.sqrt(running_var + eps)
    shift = beta + (b - running_mean) * scale
    return w, scale.reshape(1, cout), shift.reshape(1, cout)


# ------------------------------ pure-JAX reference ----------------------------

def reference(x_nchw, idx_nchw, params):
    """Unpool + 3x conv/BN/ReLU reference; conv operands cast to bf16 (f32 accum) to
    mirror the kernel's MXU numerics."""
    N, C, H, W = x_nchw.shape
    Ho, Wo = 2 * H, 2 * W
    flat = jnp.zeros((N, C, Ho * Wo), x_nchw.dtype)
    n_i = jnp.arange(N)[:, None, None]
    c_i = jnp.arange(C)[None, :, None]
    flat = flat.at[n_i, c_i, idx_nchw.reshape(N, C, H * W)].set(
        x_nchw.reshape(N, C, H * W))
    y = jnp.transpose(flat.reshape(N, C, Ho, Wo), (0, 2, 3, 1))
    for (w, scale, shift) in params:
        y = jax.lax.conv_general_dilated(
            y.astype(jnp.bfloat16), w.astype(jnp.bfloat16), (1, 1), ((1, 1), (1, 1)),
            dimension_numbers=('NHWC', 'HWIO', 'NHWC'),
            preferred_element_type=jnp.float32)
        y = jnp.maximum(y * scale.reshape(1, 1, 1, -1) + shift.reshape(1, 1, 1, -1), 0.0)
    return jnp.transpose(y, (0, 3, 1, 2))


# ----------------------------------- main -------------------------------------

if __name__ == "__main__":
    N, Cin, Cout, H, W = 2, 4, 8, 8, 8      # unpooled spatial = 16x16

    key = jax.random.PRNGKey(0)
    kx, kr, ks, kp1, kp2, kp3 = jax.random.split(key, 6)

    x = jax.random.normal(kx, (N, Cin, H, W), jnp.float32)

    # Build valid MaxPool2d(2,2) argmax indices: one flat (2H,2W)-plane position
    # per 2x2 output cell.
    r = jax.random.randint(kr, (N, Cin, H, W), 0, 2)
    s = jax.random.randint(ks, (N, Cin, H, W), 0, 2)
    hh = jnp.arange(H)[:, None]
    ww = jnp.arange(W)[None, :]
    indices = ((2 * hh + r) * (2 * W) + (2 * ww + s)).astype(jnp.int32)

    params = [
        init_cbr_params(kp1, Cin, Cout),
        init_cbr_params(kp2, Cout, Cout),
        init_cbr_params(kp3, Cout, Cout),
    ]

    out = jax.block_until_ready(segnet_up3(x, indices, params))
    ref = jax.block_until_ready(reference(x, indices, params))

    assert out.shape == (N, Cout, 2 * H, 2 * W), out.shape
    # bf16 MXU operands on both sides; tolerance covers accumulation-order differences.
    assert np.allclose(np.asarray(out), np.asarray(ref), atol=2e-3, rtol=2e-3), \
        "mismatch vs reference"

    print("KERNEL_OK")
</pallas_src>

<mosaic_0001>
module attributes {stable_mosaic.version = 11 : i64} {
  func.func @_segnet_up3_kernel(%arg0: i32, %arg1: memref<1x128x8xf32, #tpu.memory_space<vmem>>, %arg2: memref<1x128x8xi32, #tpu.memory_space<vmem>>, %arg3: memref<3x72x8xbf16, #tpu.memory_space<vmem>>, %arg4: memref<3x1x8xf32, #tpu.memory_space<vmem>>, %arg5: memref<3x1x8xf32, #tpu.memory_space<vmem>>, %arg6: memref<1x256x8xf32, #tpu.memory_space<vmem>>, %arg7: memref<304x8xf32, #tpu.memory_space<vmem>>) attributes {dimension_semantics = [#tpu.dimension_semantics<parallel>], iteration_bounds = array<i64: 2>, scalar_prefetch = 0 : i64, scratch_operands = 1 : i64, tpu.core_type = #tpu.core_type<tc>, window_params = [{transform_indices = @transform_0, window_bounds = array<i64: 1, 128, 8>}, {transform_indices = @transform_1, window_bounds = array<i64: 1, 128, 8>}, {pipeline_mode = #tpu.pipeline_mode<synchronous>, transform_indices = @transform_2, window_bounds = array<i64: 3, 72, 8>}, {pipeline_mode = #tpu.pipeline_mode<synchronous>, transform_indices = @transform_3, window_bounds = array<i64: 3, 1, 8>}, {pipeline_mode = #tpu.pipeline_mode<synchronous>, transform_indices = @transform_4, window_bounds = array<i64: 3, 1, 8>}, {transform_indices = @transform_5, window_bounds = array<i64: 1, 256, 8>}]} {
    %cst = arith.constant 0.000000e+00 : f32
    %0 = vector.broadcast %cst : f32 to vector<24x8xf32>
    %c0 = arith.constant 0 : index
    %c0_0 = arith.constant 0 : index
    %1 = vector.load %arg7[%c0, %c0_0] : memref<304x8xf32, #tpu.memory_space<vmem>>, vector<24x8xf32>
    tpu.vector_store %arg7[%c0, %c0_0], %0 {strides = array<i32>} : memref<304x8xf32, #tpu.memory_space<vmem>>, vector<24x8xf32>,
    %cst_1 = arith.constant 0.000000e+00 : f32
    %2 = vector.broadcast %cst_1 : f32 to vector<24x8xf32>
    %c280 = arith.constant 280 : index
    %c0_2 = arith.constant 0 : index
    %3 = vector.load %arg7[%c280, %c0_2] : memref<304x8xf32, #tpu.memory_space<vmem>>, vector<24x8xf32>
    tpu.vector_store %arg7[%c280, %c0_2], %2 {strides = array<i32>} : memref<304x8xf32, #tpu.memory_space<vmem>>, vector<24x8xf32>,
    %c0_3 = arith.constant 0 : index
    %c0_4 = arith.constant 0 : index
    %c0_5 = arith.constant 0 : index
    %4 = vector.load %arg1[%c0_3, %c0_4, %c0_5] : memref<1x128x8xf32, #tpu.memory_space<vmem>>, vector<1x128x8xf32>
    %5 = vector.shape_cast %4 : vector<1x128x8xf32> to vector<128x8xf32>
    %c0_6 = arith.constant 0 : index
    %c0_7 = arith.constant 0 : index
    %c0_8 = arith.constant 0 : index
    %6 = vector.load %arg2[%c0_6, %c0_7, %c0_8] : memref<1x128x8xi32, #tpu.memory_space<vmem>>, vector<1x128x8xi32>
    %7 = vector.shape_cast %6 : vector<1x128x8xi32> to vector<128x8xi32>
    %8 = tpu.iota {dimensions = array<i32: 0>} : vector<16x1xi32>
    %c1_i32 = arith.constant 1 : i32
    %9 = vector.broadcast %c1_i32 : i32 to vector<16x1xi32>
    %10 = arith.andi %8, %9 : vector<16x1xi32>
    %11 = vector.extract_strided_slice %5 {offsets = [0, 0], sizes = [16, 8], strides = [1, 1]} : vector<128x8xf32> to vector<16x8xf32>
    %12 = vector.extract_strided_slice %7 {offsets = [0, 0], sizes = [16, 8], strides = [1, 1]} : vector<128x8xi32> to vector<16x8xi32>
    %c0_i32 = arith.constant 0 : i32
    %13 = vector.broadcast %c0_i32 : i32 to vector<16x1xi32>
    %14 = arith.addi %13, %10 : vector<16x1xi32>
    %15 = vector.broadcast %14 : vector<16x1xi32> to vector<16x8xi32>
    %16 = arith.cmpi eq, %12, %15 : vector<16x8xi32>
    %cst_9 = arith.constant 0.000000e+00 : f32
    %17 = vector.broadcast %cst_9 : f32 to vector<16x8xf32>
    %18 = arith.select %16, %11, %17 : vector<16x8xi1>, vector<16x8xf32>
    %c24 = arith.constant 24 : index
    %c0_10 = arith.constant 0 : index
    %19 = vector.load %arg7[%c24, %c0_10] : memref<304x8xf32, #tpu.memory_space<vmem>>, vector<16x8xf32>
    tpu.vector_store %arg7[%c24, %c0_10], %18 {strides = array<i32>} : memref<304x8xf32, #tpu.memory_space<vmem>>, vector<16x8xf32>,
    %c2_i32 = arith.constant 2 : i32
    %20 = vector.broadcast %c2_i32 : i32 to vector<16x1xi32>
    %21 = arith.addi %20, %10 : vector<16x1xi32>
    %22 = vector.broadcast %21 : vector<16x1xi32> to vector<16x8xi32>
    %23 = arith.cmpi eq, %12, %22 : vector<16x8xi32>
    %cst_11 = arith.constant 0.000000e+00 : f32
    %24 = vector.broadcast %cst_11 : f32 to vector<16x8xf32>
    %25 = arith.select %23, %11, %24 : vector<16x8xi1>, vector<16x8xf32>
    %c40 = arith.constant 40 : index
    %c0_12 = arith.constant 0 : index
    %26 = vector.load %arg7[%c40, %c0_12] : memref<304x8xf32, #tpu.memory_space<vmem>>, vector<16x8xf32>
    tpu.vector_store %arg7[%c40, %c0_12], %25 {strides = array<i32>} : memref<304x8xf32, #tpu.memory_space<vmem>>, vector<16x8xf32>,
    %27 = vector.extract_strided_slice %5 {offsets = [16, 0], sizes = [16, 8], strides = [1, 1]} : vector<128x8xf32> to vector<16x8xf32>
    %28 = vector.extract_strided_slice %7 {offsets = [16, 0], sizes = [16, 8], strides = [1, 1]} : vector<128x8xi32> to vector<16x8xi32>
    %c0_i32_13 = arith.constant 0 : i32
    %29 = vector.broadcast %c0_i32_13 : i32 to vector<16x1xi32>
    %30 = arith.addi %29, %10 : vector<16x1xi32>
    %31 = vector.broadcast %30 : vector<16x1xi32> to vector<16x8xi32>
    %32 = arith.cmpi eq, %28, %31 : vector<16x8xi32>
    %cst_14 = arith.constant 0.000000e+00 : f32
    %33 = vector.broadcast %cst_14 : f32 to vector<16x8xf32>
    %34 = arith.select %32, %27, %33 : vector<16x8xi1>, vector<16x8xf32>
    %c56 = arith.constant 56 : index
    %c0_15 = arith.constant 0 : index
    %35 = vector.load %arg7[%c56, %c0_15] : memref<304x8xf32, #tpu.memory_space<vmem>>, vector<16x8xf32>
    tpu.vector_store %arg7[%c56, %c0_15], %34 {strides = array<i32>} : memref<304x8xf32, #tpu.memory_space<vmem>>, vector<16x8xf32>,
    %c2_i32_16 = arith.constant 2 : i32
    %36 = vector.broadcast %c2_i32_16 : i32 to vector<16x1xi32>
    %37 = arith.addi %36, %10 : vector<16x1xi32>
    %38 = vector.broadcast %37 : vector<16x1xi32> to vector<16x8xi32>
    %39 = arith.cmpi eq, %28, %38 : vector<16x8xi32>
    %cst_17 = arith.constant 0.000000e+00 : f32
    %40 = vector.broadcast %cst_17 : f32 to vector<16x8xf32>
    %41 = arith.select %39, %27, %40 : vector<16x8xi1>, vector<16x8xf32>
    %c72 = arith.constant 72 : index
    %c0_18 = arith.constant 0 : index
    %42 = vector.load %arg7[%c72, %c0_18] : memref<304x8xf32, #tpu.memory_space<vmem>>, vector<16x8xf32>
    tpu.vector_store %arg7[%c72, %c0_18], %41 {strides = array<i32>} : memref<304x8xf32, #tpu.memory_space<vmem>>, vector<16x8xf32>,
    %43 = vector.extract_strided_slice %5 {offsets = [32, 0], sizes = [16, 8], strides = [1, 1]} : vector<128x8xf32> to vector<16x8xf32>
    %44 = vector.extract_strided_slice %7 {offsets = [32, 0], sizes = [16, 8], strides = [1, 1]} : vector<128x8xi32> to vector<16x8xi32>
    %c0_i32_19 = arith.constant 0 : i32
    %45 = vector.broadcast %c0_i32_19 : i32 to vector<16x1xi32>
    %46 = arith.addi %45, %10 : vector<16x1xi32>
    %47 = vector.broadcast %46 : vector<16x1xi32> to vector<16x8xi32>
    %48 = arith.cmpi eq, %44, %47 : vector<16x8xi32>
    %cst_20 = arith.constant 0.000000e+00 : f32
    %49 = vector.broadcast %cst_20 : f32 to vector<16x8xf32>
    %50 = arith.select %48, %43, %49 : vector<16x8xi1>, vector<16x8xf32>
    %c88 = arith.constant 88 : index
    %c0_21 = arith.constant 0 : index
    %51 = vector.load %arg7[%c88, %c0_21] : memref<304x8xf32, #tpu.memory_space<vmem>>, vector<16x8xf32>
    tpu.vector_store %arg7[%c88, %c0_21], %50 {strides = array<i32>} : memref<304x8xf32, #tpu.memory_space<vmem>>, vector<16x8xf32>,
    %c2_i32_22 = arith.constant 2 : i32
    %52 = vector.broadcast %c2_i32_22 : i32 to vector<16x1xi32>
    %53 = arith.addi %52, %10 : vector<16x1xi32>
    %54 = vector.broadcast %53 : vector<16x1xi32> to vector<16x8xi32>
    %55 = arith.cmpi eq, %44, %54 : vector<16x8xi32>
    %cst_23 = arith.constant 0.000000e+00 : f32
    %56 = vector.broadcast %cst_23 : f32 to vector<16x8xf32>
    %57 = arith.select %55, %43, %56 : vector<16x8xi1>, vector<16x8xf32>
    %c104 = arith.constant 104 : index
    %c0_24 = arith.constant 0 : index
    %58 = vector.load %arg7[%c104, %c0_24] : memref<304x8xf32, #tpu.memory_space<vmem>>, vector<16x8xf32>
    tpu.vector_store %arg7[%c104, %c0_24], %57 {strides = array<i32>} : memref<304x8xf32, #tpu.memory_space<vmem>>, vector<16x8xf32>,
    %59 = vector.extract_strided_slice %5 {offsets = [48, 0], sizes = [16, 8], strides = [1, 1]} : vector<128x8xf32> to vector<16x8xf32>
    %60 = vector.extract_strided_slice %7 {offsets = [48, 0], sizes = [16, 8], strides = [1, 1]} : vector<128x8xi32> to vector<16x8xi32>
    %c0_i32_25 = arith.constant 0 : i32
    %61 = vector.broadcast %c0_i32_25 : i32 to vector<16x1xi32>
    %62 = arith.addi %61, %10 : vector<16x1xi32>
    %63 = vector.broadcast %62 : vector<16x1xi32> to vector<16x8xi32>
    %64 = arith.cmpi eq, %60, %63 : vector<16x8xi32>
    %cst_26 = arith.constant 0.000000e+00 : f32
    %65 = vector.broadcast %cst_26 : f32 to vector<16x8xf32>
    %66 = arith.select %64, %59, %65 : vector<16x8xi1>, vector<16x8xf32>
    %c120 = arith.constant 120 : index
    %c0_27 = arith.constant 0 : index
    %67 = vector.load %arg7[%c120, %c0_27] : memref<304x8xf32, #tpu.memory_space<vmem>>, vector<16x8xf32>
    tpu.vector_store %arg7[%c120, %c0_27], %66 {strides = array<i32>} : memref<304x8xf32, #tpu.memory_space<vmem>>, vector<16x8xf32>,
    %c2_i32_28 = arith.constant 2 : i32
    %68 = vector.broadcast %c2_i32_28 : i32 to vector<16x1xi32>
    %69 = arith.addi %68, %10 : vector<16x1xi32>
    %70 = vector.broadcast %69 : vector<16x1xi32> to vector<16x8xi32>
    %71 = arith.cmpi eq, %60, %70 : vector<16x8xi32>
    %cst_29 = arith.constant 0.000000e+00 : f32
    %72 = vector.broadcast %cst_29 : f32 to vector<16x8xf32>
    %73 = arith.select %71, %59, %72 : vector<16x8xi1>, vector<16x8xf32>
    %c136 = arith.constant 136 : index
    %c0_30 = arith.constant 0 : index
    %74 = vector.load %arg7[%c136, %c0_30] : memref<304x8xf32, #tpu.memory_space<vmem>>, vector<16x8xf32>
    tpu.vector_store %arg7[%c136, %c0_30], %73 {strides = array<i32>} : memref<304x8xf32, #tpu.memory_space<vmem>>, vector<16x8xf32>,
    %75 = vector.extract_strided_slice %5 {offsets = [64, 0], sizes = [16, 8], strides = [1, 1]} : vector<128x8xf32> to vector<16x8xf32>
    %76 = vector.extract_strided_slice %7 {offsets = [64, 0], sizes = [16, 8], strides = [1, 1]} : vector<128x8xi32> to vector<16x8xi32>
    %c0_i32_31 = arith.constant 0 : i32
    %77 = vector.broadcast %c0_i32_31 : i32 to vector<16x1xi32>
    %78 = arith.addi %77, %10 : vector<16x1xi32>
    %79 = vector.broadcast %78 : vector<16x1xi32> to vector<16x8xi32>
    %80 = arith.cmpi eq, %76, %79 : vector<16x8xi32>
    %cst_32 = arith.constant 0.000000e+00 : f32
    %81 = vector.broadcast %cst_32 : f32 to vector<16x8xf32>
    %82 = arith.select %80, %75, %81 : vector<16x8xi1>, vector<16x8xf32>
    %c152 = arith.constant 152 : index
    %c0_33 = arith.constant 0 : index
    %83 = vector.load %arg7[%c152, %c0_33] : memref<304x8xf32, #tpu.memory_space<vmem>>, vector<16x8xf32>
    tpu.vector_store %arg7[%c152, %c0_33], %82 {strides = array<i32>} : memref<304x8xf32, #tpu.memory_space<vmem>>, vector<16x8xf32>,
    %c2_i32_34 = arith.constant 2 : i32
    %84 = vector.broadcast %c2_i32_34 : i32 to vector<16x1xi32>
    %85 = arith.addi %84, %10 : vector<16x1xi32>
    %86 = vector.broadcast %85 : vector<16x1xi32> to vector<16x8xi32>
    %87 = arith.cmpi eq, %76, %86 : vector<16x8xi32>
    %cst_35 = arith.constant 0.000000e+00 : f32
    %88 = vector.broadcast %cst_35 : f32 to vector<16x8xf32>
    %89 = arith.select %87, %75, %88 : vector<16x8xi1>, vector<16x8xf32>
    %c168 = arith.constant 168 : index
    %c0_36 = arith.constant 0 : index
    %90 = vector.load %arg7[%c168, %c0_36] : memref<304x8xf32, #tpu.memory_space<vmem>>, vector<16x8xf32>
    tpu.vector_store %arg7[%c168, %c0_36], %89 {strides = array<i32>} : memref<304x8xf32, #tpu.memory_space<vmem>>, vector<16x8xf32>,
    %91 = vector.extract_strided_slice %5 {offsets = [80, 0], sizes = [16, 8], strides = [1, 1]} : vector<128x8xf32> to vector<16x8xf32>
    %92 = vector.extract_strided_slice %7 {offsets = [80, 0], sizes = [16, 8], strides = [1, 1]} : vector<128x8xi32> to vector<16x8xi32>
    %c0_i32_37 = arith.constant 0 : i32
    %93 = vector.broadcast %c0_i32_37 : i32 to vector<16x1xi32>
    %94 = arith.addi %93, %10 : vector<16x1xi32>
    %95 = vector.broadcast %94 : vector<16x1xi32> to vector<16x8xi32>
    %96 = arith.cmpi eq, %92, %95 : vector<16x8xi32>
    %cst_38 = arith.constant 0.000000e+00 : f32
    %97 = vector.broadcast %cst_38 : f32 to vector<16x8xf32>
    %98 = arith.select %96, %91, %97 : vector<16x8xi1>, vector<16x8xf32>
    %c184 = arith.constant 184 : index
    %c0_39 = arith.constant 0 : index
    %99 = vector.load %arg7[%c184, %c0_39] : memref<304x8xf32, #tpu.memory_space<vmem>>, vector<16x8xf32>
    tpu.vector_store %arg7[%c184, %c0_39], %98 {strides = array<i32>} : memref<304x8xf32, #tpu.memory_space<vmem>>, vector<16x8xf32>,
    %c2_i32_40 = arith.constant 2 : i32
    %100 = vector.broadcast %c2_i32_40 : i32 to vector<16x1xi32>
    %101 = arith.addi %100, %10 : vector<16x1xi32>
    %102 = vector.broadcast %101 : vector<16x1xi32> to vector<16x8xi32>
    %103 = arith.cmpi eq, %92, %102 : vector<16x8xi32>
    %cst_41 = arith.constant 0.000000e+00 : f32
    %104 = vector.broadcast %cst_41 : f32 to vector<16x8xf32>
    %105 = arith.select %103, %91, %104 : vector<16x8xi1>, vector<16x8xf32>
    %c200 = arith.constant 200 : index
    %c0_42 = arith.constant 0 : index
    %106 = vector.load %arg7[%c200, %c0_42] : memref<304x8xf32, #tpu.memory_space<vmem>>, vector<16x8xf32>
    tpu.vector_store %arg7[%c200, %c0_42], %105 {strides = array<i32>} : memref<304x8xf32, #tpu.memory_space<vmem>>, vector<16x8xf32>,
    %107 = vector.extract_strided_slice %5 {offsets = [96, 0], sizes = [16, 8], strides = [1, 1]} : vector<128x8xf32> to vector<16x8xf32>
    %108 = vector.extract_strided_slice %7 {offsets = [96, 0], sizes = [16, 8], strides = [1, 1]} : vector<128x8xi32> to vector<16x8xi32>
    %c0_i32_43 = arith.constant 0 : i32
    %109 = vector.broadcast %c0_i32_43 : i32 to vector<16x1xi32>
    %110 = arith.addi %109, %10 : vector<16x1xi32>
    %111 = vector.broadcast %110 : vector<16x1xi32> to vector<16x8xi32>
    %112 = arith.cmpi eq, %108, %111 : vector<16x8xi32>
    %cst_44 = arith.constant 0.000000e+00 : f32
    %113 = vector.broadcast %cst_44 : f32 to vector<16x8xf32>
    %114 = arith.select %112, %107, %113 : vector<16x8xi1>, vector<16x8xf32>
    %c216 = arith.constant 216 : index
    %c0_45 = arith.constant 0 : index
    %115 = vector.load %arg7[%c216, %c0_45] : memref<304x8xf32, #tpu.memory_space<vmem>>, vector<16x8xf32>
    tpu.vector_store %arg7[%c216, %c0_45], %114 {strides = array<i32>} : memref<304x8xf32, #tpu.memory_space<vmem>>, vector<16x8xf32>,
    %c2_i32_46 = arith.constant 2 : i32
    %116 = vector.broadcast %c2_i32_46 : i32 to vector<16x1xi32>
    %117 = arith.addi %116, %10 : vector<16x1xi32>
    %118 = vector.broadcast %117 : vector<16x1xi32> to vector<16x8xi32>
    %119 = arith.cmpi eq, %108, %118 : vector<16x8xi32>
    %cst_47 = arith.constant 0.000000e+00 : f32
    %120 = vector.broadcast %cst_47 : f32 to vector<16x8xf32>
    %121 = arith.select %119, %107, %120 : vector<16x8xi1>, vector<16x8xf32>
    %c232 = arith.constant 232 : index
    %c0_48 = arith.constant 0 : index
    %122 = vector.load %arg7[%c232, %c0_48] : memref<304x8xf32, #tpu.memory_space<vmem>>, vector<16x8xf32>
    tpu.vector_store %arg7[%c232, %c0_48], %121 {strides = array<i32>} : memref<304x8xf32, #tpu.memory_space<vmem>>, vector<16x8xf32>,
    %123 = vector.extract_strided_slice %5 {offsets = [112, 0], sizes = [16, 8], strides = [1, 1]} : vector<128x8xf32> to vector<16x8xf32>
    %124 = vector.extract_strided_slice %7 {offsets = [112, 0], sizes = [16, 8], strides = [1, 1]} : vector<128x8xi32> to vector<16x8xi32>
    %c0_i32_49 = arith.constant 0 : i32
    %125 = vector.broadcast %c0_i32_49 : i32 to vector<16x1xi32>
    %126 = arith.addi %125, %10 : vector<16x1xi32>
    %127 = vector.broadcast %126 : vector<16x1xi32> to vector<16x8xi32>
    %128 = arith.cmpi eq, %124, %127 : vector<16x8xi32>
    %cst_50 = arith.constant 0.000000e+00 : f32
    %129 = vector.broadcast %cst_50 : f32 to vector<16x8xf32>
    %130 = arith.select %128, %123, %129 : vector<16x8xi1>, vector<16x8xf32>
    %c248 = arith.constant 248 : index
    %c0_51 = arith.constant 0 : index
    %131 = vector.load %arg7[%c248, %c0_51] : memref<304x8xf32, #tpu.memory_space<vmem>>, vector<16x8xf32>
    tpu.vector_store %arg7[%c248, %c0_51], %130 {strides = array<i32>} : memref<304x8xf32, #tpu.memory_space<vmem>>, vector<16x8xf32>,
    %c2_i32_52 = arith.constant 2 : i32
    %132 = vector.broadcast %c2_i32_52 : i32 to vector<16x1xi32>
    %133 = arith.addi %132, %10 : vector<16x1xi32>
    %134 = vector.broadcast %133 : vector<16x1xi32> to vector<16x8xi32>
    %135 = arith.cmpi eq, %124, %134 : vector<16x8xi32>
    %cst_53 = arith.constant 0.000000e+00 : f32
    %136 = vector.broadcast %cst_53 : f32 to vector<16x8xf32>
    %137 = arith.select %135, %123, %136 : vector<16x8xi1>, vector<16x8xf32>
    %c264 = arith.constant 264 : index
    %c0_54 = arith.constant 0 : index
    %138 = vector.load %arg7[%c264, %c0_54] : memref<304x8xf32, #tpu.memory_space<vmem>>, vector<16x8xf32>
    tpu.vector_store %arg7[%c264, %c0_54], %137 {strides = array<i32>} : memref<304x8xf32, #tpu.memory_space<vmem>>, vector<16x8xf32>,
    %139 = tpu.iota {dimensions = array<i32: 0>} : vector<256x1xi32>
    %c16_i32 = arith.constant 16 : i32
    %c0_i32_55 = arith.constant 0 : i32
    %140 = arith.cmpi eq, %c16_i32, %c0_i32_55 : i32
    %c1_i32_56 = arith.constant 1 : i32
    %141 = arith.select %140, %c1_i32_56, %c16_i32 : i32
    %142 = vector.broadcast %141 : i32 to vector<256x1xi32>
    %143 = arith.remsi %139, %142 : vector<256x1xi32>
    %c0_i32_57 = arith.constant 0 : i32
    %144 = vector.broadcast %c0_i32_57 : i32 to vector<256x1xi32>
    %145 = arith.cmpi ne, %143, %144 : vector<256x1xi32>
    %c0_i32_58 = arith.constant 0 : i32
    %146 = vector.broadcast %c0_i32_58 : i32 to vector<256x1xi32>
    %147 = arith.cmpi slt, %143, %146 : vector<256x1xi32>
    %c0_i32_59 = arith.constant 0 : i32
    %148 = arith.cmpi slt, %141, %c0_i32_59 : i32
    %149 = vector.broadcast %148 : i1 to vector<256x1xi1>
    %150 = vector.broadcast %149 : vector<256x1xi1> to vector<256x1xi1>
    %151 = arith.xori %147, %150 : vector<256x1xi1>
    %152 = arith.andi %151, %145 : vector<256x1xi1>
    %153 = vector.broadcast %141 : i32 to vector<256x1xi32>
    %154 = arith.addi %143, %153 : vector<256x1xi32>
    %155 = arith.select %152, %154, %143 : vector<256x1xi1>, vector<256x1xi32>
    %c0_i32_60 = arith.constant 0 : i32
    %156 = vector.broadcast %c0_i32_60 : i32 to vector<256x1xi32>
    %157 = arith.cmpi ne, %155, %156 : vector<256x1xi32>
    %c15_i32 = arith.constant 15 : i32
    %158 = vector.broadcast %c15_i32 : i32 to vector<256x1xi32>
    %159 = arith.cmpi ne, %155, %158 : vector<256x1xi32>
    %c0_61 = arith.constant 0 : index
    %c0_62 = arith.constant 0 : index
    %c0_63 = arith.constant 0 : index
    %160 = vector.load %arg3[%c0_61, %c0_62, %c0_63] : memref<3x72x8xbf16, #tpu.memory_space<vmem>>, vector<1x72x8xbf16>
    %161 = vector.shape_cast %160 : vector<1x72x8xbf16> to vector<72x8xbf16>
    %cst_64 = arith.constant 0.000000e+00 : f32
    %162 = vector.broadcast %cst_64 : f32 to vector<256x8xf32>
    %c7 = arith.constant 7 : index
    %c0_65 = arith.constant 0 : index
    %163 = vector.load %arg7[%c7, %c0_65] : memref<304x8xf32, #tpu.memory_space<vmem>>, vector<256x8xf32>
    %cst_66 = arith.constant 0.000000e+00 : f32
    %164 = vector.shape_cast %157 : vector<256x1xi1> to vector<256x1xi1>
    %165 = vector.broadcast %164 : vector<256x1xi1> to vector<256x8xi1>
    %166 = vector.broadcast %cst_66 : f32 to vector<256x8xf32>
    %167 = arith.select %165, %163, %166 : vector<256x8xi1>, vector<256x8xf32>
    %c8 = arith.constant 8 : index
    %c0_67 = arith.constant 0 : index
    %168 = vector.load %arg7[%c8, %c0_67] : memref<304x8xf32, #tpu.memory_space<vmem>>, vector<256x8xf32>
    %c9 = arith.constant 9 : index
    %c0_68 = arith.constant 0 : index
    %169 = vector.load %arg7[%c9, %c0_68] : memref<304x8xf32, #tpu.memory_space<vmem>>, vector<256x8xf32>
    %cst_69 = arith.constant 0.000000e+00 : f32
    %170 = vector.shape_cast %159 : vector<256x1xi1> to vector<256x1xi1>
    %171 = vector.broadcast %170 : vector<256x1xi1> to vector<256x8xi1>
    %172 = vector.broadcast %cst_69 : f32 to vector<256x8xf32>
    %173 = arith.select %171, %169, %172 : vector<256x8xi1>, vector<256x8xf32>
    %174 = tpu.concatenate %167, %168, %173 in 1 : vector<256x8xf32>, vector<256x8xf32>, vector<256x8xf32> -> vector<256x24xf32>
    %175 = arith.truncf %174 : vector<256x24xf32> to vector<256x24xbf16>
    %176 = vector.extract_strided_slice %161 {offsets = [0, 0], sizes = [24, 8], strides = [1, 1]} : vector<72x8xbf16> to vector<24x8xbf16>
    %cst_70 = arith.constant dense<0.000000e+00> : vector<256x8xf32>
    %177 = tpu.matmul %175, %176, %cst_70 {dimension_numbers = #tpu.dot_dimension_numbers<[1], [0], [0], [1], [0, 0, 1, 1], [], []>} : vector<256x24xbf16>, vector<24x8xbf16>, vector<256x8xf32> -> vector<256x8xf32>
    %178 = arith.addf %162, %177 : vector<256x8xf32>
    %c23 = arith.constant 23 : index
    %c0_71 = arith.constant 0 : index
    %179 = vector.load %arg7[%c23, %c0_71] : memref<304x8xf32, #tpu.memory_space<vmem>>, vector<256x8xf32>
    %cst_72 = arith.constant 0.000000e+00 : f32
    %180 = vector.shape_cast %157 : vector<256x1xi1> to vector<256x1xi1>
    %181 = vector.broadcast %180 : vector<256x1xi1> to vector<256x8xi1>
    %182 = vector.broadcast %cst_72 : f32 to vector<256x8xf32>
    %183 = arith.select %181, %179, %182 : vector<256x8xi1>, vector<256x8xf32>
    %c24_73 = arith.constant 24 : index
    %c0_74 = arith.constant 0 : index
    %184 = vector.load %arg7[%c24_73, %c0_74] : memref<304x8xf32, #tpu.memory_space<vmem>>, vector<256x8xf32>
    %c25 = arith.constant 25 : index
    %c0_75 = arith.constant 0 : index
    %185 = vector.load %arg7[%c25, %c0_75] : memref<304x8xf32, #tpu.memory_space<vmem>>, vector<256x8xf32>
    %cst_76 = arith.constant 0.000000e+00 : f32
    %186 = vector.shape_cast %159 : vector<256x1xi1> to vector<256x1xi1>
    %187 = vector.broadcast %186 : vector<256x1xi1> to vector<256x8xi1>
    %188 = vector.broadcast %cst_76 : f32 to vector<256x8xf32>
    %189 = arith.select %187, %185, %188 : vector<256x8xi1>, vector<256x8xf32>
    %190 = tpu.concatenate %183, %184, %189 in 1 : vector<256x8xf32>, vector<256x8xf32>, vector<256x8xf32> -> vector<256x24xf32>
    %191 = arith.truncf %190 : vector<256x24xf32> to vector<256x24xbf16>
    %192 = vector.extract_strided_slice %161 {offsets = [24, 0], sizes = [24, 8], strides = [1, 1]} : vector<72x8xbf16> to vector<24x8xbf16>
    %cst_77 = arith.constant dense<0.000000e+00> : vector<256x8xf32>
    %193 = tpu.matmul %191, %192, %cst_77 {dimension_numbers = #tpu.dot_dimension_numbers<[1], [0], [0], [1], [0, 0, 1, 1], [], []>} : vector<256x24xbf16>, vector<24x8xbf16>, vector<256x8xf32> -> vector<256x8xf32>
    %194 = arith.addf %178, %193 : vector<256x8xf32>
    %c39 = arith.constant 39 : index
    %c0_78 = arith.constant 0 : index
    %195 = vector.load %arg7[%c39, %c0_78] : memref<304x8xf32, #tpu.memory_space<vmem>>, vector<256x8xf32>
    %cst_79 = arith.constant 0.000000e+00 : f32
    %196 = vector.shape_cast %157 : vector<256x1xi1> to vector<256x1xi1>
    %197 = vector.broadcast %196 : vector<256x1xi1> to vector<256x8xi1>
    %198 = vector.broadcast %cst_79 : f32 to vector<256x8xf32>
    %199 = arith.select %197, %195, %198 : vector<256x8xi1>, vector<256x8xf32>
    %c40_80 = arith.constant 40 : index
    %c0_81 = arith.constant 0 : index
    %200 = vector.load %arg7[%c40_80, %c0_81] : memref<304x8xf32, #tpu.memory_space<vmem>>, vector<256x8xf32>
    %c41 = arith.constant 41 : index
    %c0_82 = arith.constant 0 : index
    %201 = vector.load %arg7[%c41, %c0_82] : memref<304x8xf32, #tpu.memory_space<vmem>>, vector<256x8xf32>
    %cst_83 = arith.constant 0.000000e+00 : f32
    %202 = vector.shape_cast %159 : vector<256x1xi1> to vector<256x1xi1>
    %203 = vector.broadcast %202 : vector<256x1xi1> to vector<256x8xi1>
    %204 = vector.broadcast %cst_83 : f32 to vector<256x8xf32>
    %205 = arith.select %203, %201, %204 : vector<256x8xi1>, vector<256x8xf32>
    %206 = tpu.concatenate %199, %200, %205 in 1 : vector<256x8xf32>, vector<256x8xf32>, vector<256x8xf32> -> vector<256x24xf32>
    %207 = arith.truncf %206 : vector<256x24xf32> to vector<256x24xbf16>
    %208 = vector.extract_strided_slice %161 {offsets = [48, 0], sizes = [24, 8], strides = [1, 1]} : vector<72x8xbf16> to vector<24x8xbf16>
    %cst_84 = arith.constant dense<0.000000e+00> : vector<256x8xf32>
    %209 = tpu.matmul %207, %208, %cst_84 {dimension_numbers = #tpu.dot_dimension_numbers<[1], [0], [0], [1], [0, 0, 1, 1], [], []>} : vector<256x24xbf16>, vector<24x8xbf16>, vector<256x8xf32> -> vector<256x8xf32>
    %210 = arith.addf %194, %209 : vector<256x8xf32>
    %c0_85 = arith.constant 0 : index
    %c0_86 = arith.constant 0 : index
    %c0_87 = arith.constant 0 : index
    %211 = vector.load %arg4[%c0_85, %c0_86, %c0_87] : memref<3x1x8xf32, #tpu.memory_space<vmem>>, vector<1x1x8xf32>
    %212 = vector.shape_cast %211 : vector<1x1x8xf32> to vector<1x8xf32>
    %213 = vector.broadcast %212 : vector<1x8xf32> to vector<256x8xf32>
    %214 = arith.mulf %210, %213 : vector<256x8xf32>
    %c0_88 = arith.constant 0 : index
    %c0_89 = arith.constant 0 : index
    %c0_90 = arith.constant 0 : index
    %215 = vector.load %arg5[%c0_88, %c0_89, %c0_90] : memref<3x1x8xf32, #tpu.memory_space<vmem>>, vector<1x1x8xf32>
    %216 = vector.shape_cast %215 : vector<1x1x8xf32> to vector<1x8xf32>
    %217 = vector.broadcast %216 : vector<1x8xf32> to vector<256x8xf32>
    %218 = arith.addf %214, %217 : vector<256x8xf32>
    %cst_91 = arith.constant 0.000000e+00 : f32
    %219 = vector.broadcast %cst_91 : f32 to vector<256x8xf32>
    %220 = arith.maximumf %218, %219 : vector<256x8xf32>
    %c24_92 = arith.constant 24 : index
    %c0_93 = arith.constant 0 : index
    %221 = vector.load %arg7[%c24_92, %c0_93] : memref<304x8xf32, #tpu.memory_space<vmem>>, vector<256x8xf32>
    tpu.vector_store %arg7[%c24_92, %c0_93], %220 {strides = array<i32>} : memref<304x8xf32, #tpu.memory_space<vmem>>, vector<256x8xf32>,
    %c1 = arith.constant 1 : index
    %c0_94 = arith.constant 0 : index
    %c0_95 = arith.constant 0 : index
    %222 = vector.load %arg3[%c1, %c0_94, %c0_95] : memref<3x72x8xbf16, #tpu.memory_space<vmem>>, vector<1x72x8xbf16>
    %223 = vector.shape_cast %222 : vector<1x72x8xbf16> to vector<72x8xbf16>
    %cst_96 = arith.constant 0.000000e+00 : f32
    %224 = vector.broadcast %cst_96 : f32 to vector<256x8xf32>
    %c7_97 = arith.constant 7 : index
    %c0_98 = arith.constant 0 : index
    %225 = vector.load %arg7[%c7_97, %c0_98] : memref<304x8xf32, #tpu.memory_space<vmem>>, vector<256x8xf32>
    %cst_99 = arith.constant 0.000000e+00 : f32
    %226 = vector.shape_cast %157 : vector<256x1xi1> to vector<256x1xi1>
    %227 = vector.broadcast %226 : vector<256x1xi1> to vector<256x8xi1>
    %228 = vector.broadcast %cst_99 : f32 to vector<256x8xf32>
    %229 = arith.select %227, %225, %228 : vector<256x8xi1>, vector<256x8xf32>
    %c8_100 = arith.constant 8 : index
    %c0_101 = arith.constant 0 : index
    %230 = vector.load %arg7[%c8_100, %c0_101] : memref<304x8xf32, #tpu.memory_space<vmem>>, vector<256x8xf32>
    %c9_102 = arith.constant 9 : index
    %c0_103 = arith.constant 0 : index
    %231 = vector.load %arg7[%c9_102, %c0_103] : memref<304x8xf32, #tpu.memory_space<vmem>>, vector<256x8xf32>
    %cst_104 = arith.constant 0.000000e+00 : f32
    %232 = vector.shape_cast %159 : vector<256x1xi1> to vector<256x1xi1>
    %233 = vector.broadcast %232 : vector<256x1xi1> to vector<256x8xi1>
    %234 = vector.broadcast %cst_104 : f32 to vector<256x8xf32>
    %235 = arith.select %233, %231, %234 : vector<256x8xi1>, vector<256x8xf32>
    %236 = tpu.concatenate %229, %230, %235 in 1 : vector<256x8xf32>, vector<256x8xf32>, vector<256x8xf32> -> vector<256x24xf32>
    %237 = arith.truncf %236 : vector<256x24xf32> to vector<256x24xbf16>
    %238 = vector.extract_strided_slice %223 {offsets = [0, 0], sizes = [24, 8], strides = [1, 1]} : vector<72x8xbf16> to vector<24x8xbf16>
    %cst_105 = arith.constant dense<0.000000e+00> : vector<256x8xf32>
    %239 = tpu.matmul %237, %238, %cst_105 {dimension_numbers = #tpu.dot_dimension_numbers<[1], [0], [0], [1], [0, 0, 1, 1], [], []>} : vector<256x24xbf16>, vector<24x8xbf16>, vector<256x8xf32> -> vector<256x8xf32>
    %240 = arith.addf %224, %239 : vector<256x8xf32>
    %c23_106 = arith.constant 23 : index
    %c0_107 = arith.constant 0 : index
    %241 = vector.load %arg7[%c23_106, %c0_107] : memref<304x8xf32, #tpu.memory_space<vmem>>, vector<256x8xf32>
    %cst_108 = arith.constant 0.000000e+00 : f32
    %242 = vector.shape_cast %157 : vector<256x1xi1> to vector<256x1xi1>
    %243 = vector.broadcast %242 : vector<256x1xi1> to vector<256x8xi1>
    %244 = vector.broadcast %cst_108 : f32 to vector<256x8xf32>
    %245 = arith.select %243, %241, %244 : vector<256x8xi1>, vector<256x8xf32>
    %c24_109 = arith.constant 24 : index
    %c0_110 = arith.constant 0 : index
    %246 = vector.load %arg7[%c24_109, %c0_110] : memref<304x8xf32, #tpu.memory_space<vmem>>, vector<256x8xf32>
    %c25_111 = arith.constant 25 : index
    %c0_112 = arith.constant 0 : index
    %247 = vector.load %arg7[%c25_111, %c0_112] : memref<304x8xf32, #tpu.memory_space<vmem>>, vector<256x8xf32>
    %cst_113 = arith.constant 0.000000e+00 : f32
    %248 = vector.shape_cast %159 : vector<256x1xi1> to vector<256x1xi1>
    %249 = vector.broadcast %248 : vector<256x1xi1> to vector<256x8xi1>
    %250 = vector.broadcast %cst_113 : f32 to vector<256x8xf32>
    %251 = arith.select %249, %247, %250 : vector<256x8xi1>, vector<256x8xf32>
    %252 = tpu.concatenate %245, %246, %251 in 1 : vector<256x8xf32>, vector<256x8xf32>, vector<256x8xf32> -> vector<256x24xf32>
    %253 = arith.truncf %252 : vector<256x24xf32> to vector<256x24xbf16>
    %254 = vector.extract_strided_slice %223 {offsets = [24, 0], sizes = [24, 8], strides = [1, 1]} : vector<72x8xbf16> to vector<24x8xbf16>
    %cst_114 = arith.constant dense<0.000000e+00> : vector<256x8xf32>
    %255 = tpu.matmul %253, %254, %cst_114 {dimension_numbers = #tpu.dot_dimension_numbers<[1], [0], [0], [1], [0, 0, 1, 1], [], []>} : vector<256x24xbf16>, vector<24x8xbf16>, vector<256x8xf32> -> vector<256x8xf32>
    %256 = arith.addf %240, %255 : vector<256x8xf32>
    %c39_115 = arith.constant 39 : index
    %c0_116 = arith.constant 0 : index
    %257 = vector.load %arg7[%c39_115, %c0_116] : memref<304x8xf32, #tpu.memory_space<vmem>>, vector<256x8xf32>
    %cst_117 = arith.constant 0.000000e+00 : f32
    %258 = vector.shape_cast %157 : vector<256x1xi1> to vector<256x1xi1>
    %259 = vector.broadcast %258 : vector<256x1xi1> to vector<256x8xi1>
    %260 = vector.broadcast %cst_117 : f32 to vector<256x8xf32>
    %261 = arith.select %259, %257, %260 : vector<256x8xi1>, vector<256x8xf32>
    %c40_118 = arith.constant 40 : index
    %c0_119 = arith.constant 0 : index
    %262 = vector.load %arg7[%c40_118, %c0_119] : memref<304x8xf32, #tpu.memory_space<vmem>>, vector<256x8xf32>
    %c41_120 = arith.constant 41 : index
    %c0_121 = arith.constant 0 : index
    %263 = vector.load %arg7[%c41_120, %c0_121] : memref<304x8xf32, #tpu.memory_space<vmem>>, vector<256x8xf32>
    %cst_122 = arith.constant 0.000000e+00 : f32
    %264 = vector.shape_cast %159 : vector<256x1xi1> to vector<256x1xi1>
    %265 = vector.broadcast %264 : vector<256x1xi1> to vector<256x8xi1>
    %266 = vector.broadcast %cst_122 : f32 to vector<256x8xf32>
    %267 = arith.select %265, %263, %266 : vector<256x8xi1>, vector<256x8xf32>
    %268 = tpu.concatenate %261, %262, %267 in 1 : vector<256x8xf32>, vector<256x8xf32>, vector<256x8xf32> -> vector<256x24xf32>
    %269 = arith.truncf %268 : vector<256x24xf32> to vector<256x24xbf16>
    %270 = vector.extract_strided_slice %223 {offsets = [48, 0], sizes = [24, 8], strides = [1, 1]} : vector<72x8xbf16> to vector<24x8xbf16>
    %cst_123 = arith.constant dense<0.000000e+00> : vector<256x8xf32>
    %271 = tpu.matmul %269, %270, %cst_123 {dimension_numbers = #tpu.dot_dimension_numbers<[1], [0], [0], [1], [0, 0, 1, 1], [], []>} : vector<256x24xbf16>, vector<24x8xbf16>, vector<256x8xf32> -> vector<256x8xf32>
    %272 = arith.addf %256, %271 : vector<256x8xf32>
    %c1_124 = arith.constant 1 : index
    %c0_125 = arith.constant 0 : index
    %c0_126 = arith.constant 0 : index
    %273 = vector.load %arg4[%c1_124, %c0_125, %c0_126] : memref<3x1x8xf32, #tpu.memory_space<vmem>>, vector<1x1x8xf32>
    %274 = vector.shape_cast %273 : vector<1x1x8xf32> to vector<1x8xf32>
    %275 = vector.broadcast %274 : vector<1x8xf32> to vector<256x8xf32>
    %276 = arith.mulf %272, %275 : vector<256x8xf32>
    %c1_127 = arith.constant 1 : index
    %c0_128 = arith.constant 0 : index
    %c0_129 = arith.constant 0 : index
    %277 = vector.load %arg5[%c1_127, %c0_128, %c0_129] : memref<3x1x8xf32, #tpu.memory_space<vmem>>, vector<1x1x8xf32>
    %278 = vector.shape_cast %277 : vector<1x1x8xf32> to vector<1x8xf32>
    %279 = vector.broadcast %278 : vector<1x8xf32> to vector<256x8xf32>
    %280 = arith.addf %276, %279 : vector<256x8xf32>
    %cst_130 = arith.constant 0.000000e+00 : f32
    %281 = vector.broadcast %cst_130 : f32 to vector<256x8xf32>
    %282 = arith.maximumf %280, %281 : vector<256x8xf32>
    %c24_131 = arith.constant 24 : index
    %c0_132 = arith.constant 0 : index
    %283 = vector.load %arg7[%c24_131, %c0_132] : memref<304x8xf32, #tpu.memory_space<vmem>>, vector<256x8xf32>
    tpu.vector_store %arg7[%c24_131, %c0_132], %282 {strides = array<i32>} : memref<304x8xf32, #tpu.memory_space<vmem>>, vector<256x8xf32>,
    %c2 = arith.constant 2 : index
    %c0_133 = arith.constant 0 : index
    %c0_134 = arith.constant 0 : index
    %284 = vector.load %arg3[%c2, %c0_133, %c0_134] : memref<3x72x8xbf16, #tpu.memory_space<vmem>>, vector<1x72x8xbf16>
    %285 = vector.shape_cast %284 : vector<1x72x8xbf16> to vector<72x8xbf16>
    %cst_135 = arith.constant 0.000000e+00 : f32
    %286 = vector.broadcast %cst_135 : f32 to vector<256x8xf32>
    %c7_136 = arith.constant 7 : index
    %c0_137 = arith.constant 0 : index
    %287 = vector.load %arg7[%c7_136, %c0_137] : memref<304x8xf32, #tpu.memory_space<vmem>>, vector<256x8xf32>
    %cst_138 = arith.constant 0.000000e+00 : f32
    %288 = vector.shape_cast %157 : vector<256x1xi1> to vector<256x1xi1>
    %289 = vector.broadcast %288 : vector<256x1xi1> to vector<256x8xi1>
    %290 = vector.broadcast %cst_138 : f32 to vector<256x8xf32>
    %291 = arith.select %289, %287, %290 : vector<256x8xi1>, vector<256x8xf32>
    %c8_139 = arith.constant 8 : index
    %c0_140 = arith.constant 0 : index
    %292 = vector.load %arg7[%c8_139, %c0_140] : memref<304x8xf32, #tpu.memory_space<vmem>>, vector<256x8xf32>
    %c9_141 = arith.constant 9 : index
    %c0_142 = arith.constant 0 : index
    %293 = vector.load %arg7[%c9_141, %c0_142] : memref<304x8xf32, #tpu.memory_space<vmem>>, vector<256x8xf32>
    %cst_143 = arith.constant 0.000000e+00 : f32
    %294 = vector.shape_cast %159 : vector<256x1xi1> to vector<256x1xi1>
    %295 = vector.broadcast %294 : vector<256x1xi1> to vector<256x8xi1>
    %296 = vector.broadcast %cst_143 : f32 to vector<256x8xf32>
    %297 = arith.select %295, %293, %296 : vector<256x8xi1>, vector<256x8xf32>
    %298 = tpu.concatenate %291, %292, %297 in 1 : vector<256x8xf32>, vector<256x8xf32>, vector<256x8xf32> -> vector<256x24xf32>
    %299 = arith.truncf %298 : vector<256x24xf32> to vector<256x24xbf16>
    %300 = vector.extract_strided_slice %285 {offsets = [0, 0], sizes = [24, 8], strides = [1, 1]} : vector<72x8xbf16> to vector<24x8xbf16>
    %cst_144 = arith.constant dense<0.000000e+00> : vector<256x8xf32>
    %301 = tpu.matmul %299, %300, %cst_144 {dimension_numbers = #tpu.dot_dimension_numbers<[1], [0], [0], [1], [0, 0, 1, 1], [], []>} : vector<256x24xbf16>, vector<24x8xbf16>, vector<256x8xf32> -> vector<256x8xf32>
    %302 = arith.addf %286, %301 : vector<256x8xf32>
    %c23_145 = arith.constant 23 : index
    %c0_146 = arith.constant 0 : index
    %303 = vector.load %arg7[%c23_145, %c0_146] : memref<304x8xf32, #tpu.memory_space<vmem>>, vector<256x8xf32>
    %cst_147 = arith.constant 0.000000e+00 : f32
    %304 = vector.shape_cast %157 : vector<256x1xi1> to vector<256x1xi1>
    %305 = vector.broadcast %304 : vector<256x1xi1> to vector<256x8xi1>
    %306 = vector.broadcast %cst_147 : f32 to vector<256x8xf32>
    %307 = arith.select %305, %303, %306 : vector<256x8xi1>, vector<256x8xf32>
    %c24_148 = arith.constant 24 : index
    %c0_149 = arith.constant 0 : index
    %308 = vector.load %arg7[%c24_148, %c0_149] : memref<304x8xf32, #tpu.memory_space<vmem>>, vector<256x8xf32>
    %c25_150 = arith.constant 25 : index
    %c0_151 = arith.constant 0 : index
    %309 = vector.load %arg7[%c25_150, %c0_151] : memref<304x8xf32, #tpu.memory_space<vmem>>, vector<256x8xf32>
    %cst_152 = arith.constant 0.000000e+00 : f32
    %310 = vector.shape_cast %159 : vector<256x1xi1> to vector<256x1xi1>
    %311 = vector.broadcast %310 : vector<256x1xi1> to vector<256x8xi1>
    %312 = vector.broadcast %cst_152 : f32 to vector<256x8xf32>
    %313 = arith.select %311, %309, %312 : vector<256x8xi1>, vector<256x8xf32>
    %314 = tpu.concatenate %307, %308, %313 in 1 : vector<256x8xf32>, vector<256x8xf32>, vector<256x8xf32> -> vector<256x24xf32>
    %315 = arith.truncf %314 : vector<256x24xf32> to vector<256x24xbf16>
    %316 = vector.extract_strided_slice %285 {offsets = [24, 0], sizes = [24, 8], strides = [1, 1]} : vector<72x8xbf16> to vector<24x8xbf16>
    %cst_153 = arith.constant dense<0.000000e+00> : vector<256x8xf32>
    %317 = tpu.matmul %315, %316, %cst_153 {dimension_numbers = #tpu.dot_dimension_numbers<[1], [0], [0], [1], [0, 0, 1, 1], [], []>} : vector<256x24xbf16>, vector<24x8xbf16>, vector<256x8xf32> -> vector<256x8xf32>
    %318 = arith.addf %302, %317 : vector<256x8xf32>
    %c39_154 = arith.constant 39 : index
    %c0_155 = arith.constant 0 : index
    %319 = vector.load %arg7[%c39_154, %c0_155] : memref<304x8xf32, #tpu.memory_space<vmem>>, vector<256x8xf32>
    %cst_156 = arith.constant 0.000000e+00 : f32
    %320 = vector.shape_cast %157 : vector<256x1xi1> to vector<256x1xi1>
    %321 = vector.broadcast %320 : vector<256x1xi1> to vector<256x8xi1>
    %322 = vector.broadcast %cst_156 : f32 to vector<256x8xf32>
    %323 = arith.select %321, %319, %322 : vector<256x8xi1>, vector<256x8xf32>
    %c40_157 = arith.constant 40 : index
    %c0_158 = arith.constant 0 : index
    %324 = vector.load %arg7[%c40_157, %c0_158] : memref<304x8xf32, #tpu.memory_space<vmem>>, vector<256x8xf32>
    %c41_159 = arith.constant 41 : index
    %c0_160 = arith.constant 0 : index
    %325 = vector.load %arg7[%c41_159, %c0_160] : memref<304x8xf32, #tpu.memory_space<vmem>>, vector<256x8xf32>
    %cst_161 = arith.constant 0.000000e+00 : f32
    %326 = vector.shape_cast %159 : vector<256x1xi1> to vector<256x1xi1>
    %327 = vector.broadcast %326 : vector<256x1xi1> to vector<256x8xi1>
    %328 = vector.broadcast %cst_161 : f32 to vector<256x8xf32>
    %329 = arith.select %327, %325, %328 : vector<256x8xi1>, vector<256x8xf32>
    %330 = tpu.concatenate %323, %324, %329 in 1 : vector<256x8xf32>, vector<256x8xf32>, vector<256x8xf32> -> vector<256x24xf32>
    %331 = arith.truncf %330 : vector<256x24xf32> to vector<256x24xbf16>
    %332 = vector.extract_strided_slice %285 {offsets = [48, 0], sizes = [24, 8], strides = [1, 1]} : vector<72x8xbf16> to vector<24x8xbf16>
    %cst_162 = arith.constant dense<0.000000e+00> : vector<256x8xf32>
    %333 = tpu.matmul %331, %332, %cst_162 {dimension_numbers = #tpu.dot_dimension_numbers<[1], [0], [0], [1], [0, 0, 1, 1], [], []>} : vector<256x24xbf16>, vector<24x8xbf16>, vector<256x8xf32> -> vector<256x8xf32>
    %334 = arith.addf %318, %333 : vector<256x8xf32>
    %c2_163 = arith.constant 2 : index
    %c0_164 = arith.constant 0 : index
    %c0_165 = arith.constant 0 : index
    %335 = vector.load %arg4[%c2_163, %c0_164, %c0_165] : memref<3x1x8xf32, #tpu.memory_space<vmem>>, vector<1x1x8xf32>
    %336 = vector.shape_cast %335 : vector<1x1x8xf32> to vector<1x8xf32>
    %337 = vector.broadcast %336 : vector<1x8xf32> to vector<256x8xf32>
    %338 = arith.mulf %334, %337 : vector<256x8xf32>
    %c2_166 = arith.constant 2 : index
    %c0_167 = arith.constant 0 : index
    %c0_168 = arith.constant 0 : index
    %339 = vector.load %arg5[%c2_166, %c0_167, %c0_168] : memref<3x1x8xf32, #tpu.memory_space<vmem>>, vector<1x1x8xf32>
    %340 = vector.shape_cast %339 : vector<1x1x8xf32> to vector<1x8xf32>
    %341 = vector.broadcast %340 : vector<1x8xf32> to vector<256x8xf32>
    %342 = arith.addf %338, %341 : vector<256x8xf32>
    %cst_169 = arith.constant 0.000000e+00 : f32
    %343 = vector.broadcast %cst_169 : f32 to vector<256x8xf32>
    %344 = arith.maximumf %342, %343 : vector<256x8xf32>
    %c0_170 = arith.constant 0 : index
    %c0_171 = arith.constant 0 : index
    %c0_172 = arith.constant 0 : index
    %345 = vector.load %arg6[%c0_170, %c0_171, %c0_172] : memref<1x256x8xf32, #tpu.memory_space<vmem>>, vector<1x256x8xf32>
    %346 = vector.shape_cast %345 : vector<1x256x8xf32> to vector<256x8xf32>
    %347 = vector.shape_cast %344 : vector<256x8xf32> to vector<1x256x8xf32>
    tpu.vector_store %arg6[%c0_170, %c0_171, %c0_172], %347 {strides = array<i32>} : memref<1x256x8xf32, #tpu.memory_space<vmem>>, vector<1x256x8xf32>,
    return
  }
  func.func @transform_0(%arg0: i32) -> (i32, i32, i32) {
    %c0_i32 = arith.constant 0 : i32
    %c0_i32_0 = arith.constant 0 : i32
    %c0_i32_1 = arith.constant 0 : i32
    return %arg0, %c0_i32, %c0_i32_0 : i32, i32, i32
  }
  func.func @transform_1(%arg0: i32) -> (i32, i32, i32) {
    %c0_i32 = arith.constant 0 : i32
    %c0_i32_0 = arith.constant 0 : i32
    %c0_i32_1 = arith.constant 0 : i32
    return %arg0, %c0_i32, %c0_i32_0 : i32, i32, i32
  }
  func.func @transform_2(%arg0: i32) -> (i32, i32, i32) {
    %c0_i32 = arith.constant 0 : i32
    %c0_i32_0 = arith.constant 0 : i32
    %c0_i32_1 = arith.constant 0 : i32
    %c0_i32_2 = arith.constant 0 : i32
    return %c0_i32, %c0_i32_0, %c0_i32_1 : i32, i32, i32
  }
  func.func @transform_3(%arg0: i32) -> (i32, i32, i32) {
    %c0_i32 = arith.constant 0 : i32
    %c0_i32_0 = arith.constant 0 : i32
    %c0_i32_1 = arith.constant 0 : i32
    %c0_i32_2 = arith.constant 0 : i32
    return %c0_i32, %c0_i32_0, %c0_i32_1 : i32, i32, i32
  }
  func.func @transform_4(%arg0: i32) -> (i32, i32, i32) {
    %c0_i32 = arith.constant 0 : i32
    %c0_i32_0 = arith.constant 0 : i32
    %c0_i32_1 = arith.constant 0 : i32
    %c0_i32_2 = arith.constant 0 : i32
    return %c0_i32, %c0_i32_0, %c0_i32_1 : i32, i32, i32
  }
  func.func @transform_5(%arg0: i32) -> (i32, i32, i32) {
    %c0_i32 = arith.constant 0 : i32
    %c0_i32_0 = arith.constant 0 : i32
    %c0_i32_1 = arith.constant 0 : i32
    return %arg0, %c0_i32, %c0_i32_0 : i32, i32, i32
  }
}

</mosaic_0001>

<bundles_post_ra>
// kernel: tpu_custom_call.1
= control target key start
LH: loop header
LB: loop body
LE: loop exit
PB: predicated region body
PF: predicated region fallthrough
CT: control target
= control target key end

     0   :  { %s9625_s18 = smov 0   ;;  %s13522_s0 = inlined_call_operand.vmem [shape: f32[2,128,8], index: 0, kind: input, shape index: {}]   ;;  %s13523_s1 = inlined_call_operand.vmem [shape: s32[2,128,8], index: 1, kind: input, shape index: {}]   ;;  %s13524_s2 = inlined_call_operand.vmem [shape: bf16[3,72,8], index: 2, kind: input, shape index: {}]   ;;  %s13525_s3 = inlined_call_operand.vmem [shape: f32[3,1,8], index: 3, kind: input, shape index: {}]   ;;  %s13526_s4 = inlined_call_operand.vmem [shape: f32[3,1,8], index: 4, kind: input, shape index: {}]   ;;  %s13527_s5 = inlined_call_operand.vmem [shape: f32[2,256,8], index: 5, kind: output, shape index: {}]  }
   0x1 LB: > { %s7442_s19 = sadd.s32 4294967295, %s9590_s18   ;;  %p7446_p0 = scmp.ge.s32.totalorder %s9590_s18, 1  ;;  %s9590_s18 = sphi %s9625_s18, %s15_s18  }
   0x2   : > { %p197_p1 = scmp.lt.s32.totalorder %s9590_s18, 3 }
   0x4   : > { %p198_p2 = pnand %p7446_p0, %p197_p1 }
   0x6   : > { %201 = sbr.rel (%p198_p2) target bundleno = 1527 (0x5f7), region = 40 }
   0xd   : > { %vm13529_vm0 = vcmask 64512   ;;  %p230_p3 = scmp.lt.s32.totalorder %s7442_s19, 1  ;;  %v285_v0 = vlaneseq  ;;  %v9592_v1 = vmov 0.0   ;;  %s9593_s27 = smov 8   ;;  %v13831_v40 = vmov 0 }
   0xe   : > { %248 = vst.msk [vmem:[#allocation2 + $0x8] sm:$0xff] %vm13529_vm0, %v9592_v1  ;;  %249 = vst.msk [vmem:[#allocation2 + $0x10] sm:$0xff] %vm13529_vm0, %v9592_v1  ;;  %v13834_v57 = vmov 0  ;;  %s9594_s28 = smov 16  }
   0xf   : > { %247 = vst.msk [vmem:[#allocation2] sm:$0xff] %vm13529_vm0, %v9592_v1  ;;  %250 = vst.msk [vmem:[#allocation2 + $0x118] sm:$0xff] %vm13529_vm0, %v9592_v1  ;;  %s14995_s19 = smov (!%p230_p3, %s7442_s19), 1  ;;  %v9641_v2 = vshrl.u32 %v285_v0, 7  ;;  %v13837_v0 = vmov 0 }
  0x10   : > { %251 = vst.msk [vmem:[#allocation2 + $0x120] sm:$0xff] %vm13529_vm0, %v9592_v1  ;;  %252 = vst.msk [vmem:[#allocation2 + $0x128] sm:$0xff] %vm13529_vm0, %v9592_v1  ;;  %s7645_s20 = sshll.u32 %s14995_s19, 7  ;;  %s7647_s8 = sshll.u32 %s14995_s19, 8 }
  0x11   : > { %v287_v3 = vadd.s32 8, %v9641_v2  ;;  %v9646_v4 = vand.u32 1, %v9641_v2  ;;  %s9651_s23 = scalar_lea.vmem %s13522_s0, %s7645_s20  ;;  %s9656_s26 = scalar_lea.vmem %s13523_s1, %s7645_s20  ;;  %v9670_v12 = vadd.s32 24, %v9641_v2  ;;  %v9678_v18 = vadd.s32 40, %v9641_v2 }
  0x12   : > { %v253_v5 = vld [vmem:[%s9651_s23] sm:$0xff]  ;;  %v254_v9 = vld [vmem:[%s9651_s23 + $0x8] sm:$0xff]  ;;  %v255_v11 = vld [vmem:[%s9651_s23 + $0x10] sm:$0xff]  ;;  %v9694_v31 = vadd.s32 56, %v9641_v2  ;;  %s13393_s11 = scalar_lea.vmem %s13527_s5, %s7647_s8 }
  0x13   : > { %v269_v6 = vld [vmem:[%s9656_s26] sm:$0xff]  ;;  %v9660_v7 = vand.u32 1, %v287_v3  ;;  %v9663_v8 = vadd.s32 2, %v9646_v4  ;;  %v270_v10 = vld [vmem:[%s9656_s26 + $0x8] sm:$0xff]  ;;  %v256_v17 = vld [vmem:[%s9651_s23 + $0x18] sm:$0xff]  ;;  %v429_v21 = vand.u32 15, %v287_v3 }
  0x14   : > { %vm290_vm1 = vcmp.eq.s32.totalorder %v269_v6, %v9646_v4  ;;  %v271_v22 = vld [vmem:[%s9656_s26 + $0x10] sm:$0xff]  ;;  %v272_v23 = vld [vmem:[%s9656_s26 + $0x18] sm:$0xff]  ;;  %v257_v25 = vld [vmem:[%s9651_s23 + $0x20] sm:$0xff]  ;;  %v443_v33 = vand.u32 15, %v9670_v12  ;;  %v457_v44 = vand.u32 15, %v9678_v18  ;;  %v471_v51 = vand.u32 15, %v9694_v31 }
  0x15   : > { %v1003_v13 = vld [vmem:[#allocation2 + $0x8] sm:$0xff]  ;;  %v1004_v14 = vld [vmem:[#allocation2 + $0x10] sm:$0xff]  ;;  %v292_v15 = vsel %vm290_vm1, %v253_v5, 0.0  ;;  %v9673_v16 = vadd.s32 2, %v9660_v7  ;;  %vm298_vm2 = vcmp.eq.s32.totalorder %v269_v6, %v9663_v8  ;;  %vm291_vm3 = vcmp.eq.s32.totalorder %v270_v10, %v9660_v7  ;;  %v273_v26 = vld [vmem:[%s9656_s26 + $0x20] sm:$0xff] }
  0x16   : > { %v8351_v19 = vpack.i.bf16 %v1004_v14, %v1003_v13  ;;  %294 = vst.msk [vmem:[#allocation2 + $0x18] sm:$0xff] %vm13529_vm0, %v292_v15  ;;  %v300_v20 = vsel %vm298_vm2, %v253_v5, 0.0  ;;  %v293_v24 = vsel %vm291_vm3, %v254_v9, 0.0  ;;  %vm304_vm4 = vcmp.eq.s32.totalorder %v271_v22, %v9646_v4  ;;  %v274_v27 = vld [vmem:[%s9656_s26 + $0x28] sm:$0xff]  ;;  %v275_v34 = vld [vmem:[%s9656_s26 + $0x30] sm:$0xff]  ;;  %v276_v39 = vld [vmem:[%s9656_s26 + $0x38] sm:$0xff] }
  0x17   : > { %302 = vst.msk [vmem:[#allocation2 + $0x28] sm:$0xff] %vm13529_vm0, %v300_v20  ;;  %vm305_vm5 = vcmp.eq.s32.totalorder %v272_v23, %v9660_v7  ;;  %vm310_vm6 = vcmp.eq.s32.totalorder %v271_v22, %v9663_v8  ;;  %295 = vst.msk [vmem:[#allocation2 + $0x20] sm:$0xff] %vm13529_vm0, %v293_v24  ;;  %v306_v28 = vsel %vm304_vm4, %v255_v11, 0.0  ;;  %v258_v32 = vld [vmem:[%s9651_s23 + $0x28] sm:$0xff]  ;;  %vm311_vm7 = vcmp.eq.s32.totalorder %v272_v23, %v9673_v16  ;;  %v259_v38 = vld [vmem:[%s9651_s23 + $0x30] sm:$0xff] }
  0x18   : > { %8352 = vrot.lane.b32.xlu0 %v8351_v19, %s9593_s27  ;;  %v307_v29 = vsel %vm305_vm5, %v256_v17, 0.0  ;;  %v312_v30 = vsel %vm310_vm6, %v255_v11, 0.0  ;;  %308 = vst.msk [vmem:[#allocation2 + $0x38] sm:$0xff] %vm13529_vm0, %v306_v28  ;;  %vm299_vm8 = vcmp.eq.s32.totalorder %v270_v10, %v9673_v16  ;;  %vm316_vm9 = vcmp.eq.s32.totalorder %v273_v26, %v9646_v4  ;;  %v260_v42 = vld [vmem:[%s9651_s23 + $0x38] sm:$0xff]  ;;  %v1035_v43 = vld [vmem:[#allocation2 + $0x9] sm:$0xff]  ;;  %v277_v12 = vld [vmem:[%s9656_s26 + $0x40] sm:$0xff] }
  0x19   : > { %309 = vst.msk [vmem:[#allocation2 + $0x40] sm:$0xff] %vm13529_vm0, %v307_v29  ;;  %314 = vst.msk [vmem:[#allocation2 + $0x48] sm:$0xff] %vm13529_vm0, %v312_v30  ;;  %v313_v35 = vsel %vm311_vm7, %v256_v17, 0.0  ;;  %v301_v36 = vsel %vm299_vm8, %v254_v9, 0.0  ;;  %v318_v37 = vsel %vm316_vm9, %v257_v25, 0.0  ;;  %vm317_vm10 = vcmp.eq.s32.totalorder %v274_v27, %v9660_v7  ;;  %v278_v13 = vld [vmem:[%s9656_s26 + $0x48] sm:$0xff] }
  0x1a   : > { %vm9708_vm11 = vcmp.ne.s32.totalorder %v429_v21, 15  ;;  %315 = vst.msk [vmem:[#allocation2 + $0x50] sm:$0xff] %vm13529_vm0, %v313_v35  ;;  %303 = vst.msk [vmem:[#allocation2 + $0x30] sm:$0xff] %vm13529_vm0, %v301_v36  ;;  %v319_v41 = vsel %vm317_vm10, %v258_v32, 0.0  ;;  %vm322_vm12 = vcmp.eq.s32.totalorder %v273_v26, %v9663_v8  ;;  %vm323_vm13 = vcmp.eq.s32.totalorder %v274_v27, %v9673_v16  ;;  %v261_v18 = vld [vmem:[%s9651_s23 + $0x40] sm:$0xff]  ;;  %v262_v21 = vld [vmem:[%s9651_s23 + $0x48] sm:$0xff] }
  0x1b   : > { %v13832_v40 = vsel %vm9708_vm11, 4294967295, %v13831_v40  ;;  %320 = vst.msk [vmem:[#allocation2 + $0x58] sm:$0xff] %vm13529_vm0, %v318_v37  ;;  %321 = vst.msk [vmem:[#allocation2 + $0x60] sm:$0xff] %vm13529_vm0, %v319_v41  ;;  %v324_v45 = vsel %vm322_vm12, %v257_v25, 0.0  ;;  %v325_v46 = vsel %vm323_vm13, %v258_v32, 0.0  ;;  %vm328_vm14 = vcmp.eq.s32.totalorder %v275_v34, %v9646_v4  ;;  %v263_v26 = vld [vmem:[%s9651_s23 + $0x50] sm:$0xff] }
  0x1c   : > { %13833 = vst [vmem:[#allocation3_spill] sm:$0xff] %v13832_v40  ;;  %326 = vst.msk [vmem:[#allocation2 + $0x68] sm:$0xff] %vm13529_vm0, %v324_v45  ;;  %v330_v49 = vsel %vm328_vm14, %v259_v38, 0.0  ;;  %vm329_vm15 = vcmp.eq.s32.totalorder %v276_v39, %v9660_v7  ;;  %vm334_vm1 = vcmp.eq.s32.totalorder %v275_v34, %v9663_v8  ;;  %vm335_vm2 = vcmp.eq.s32.totalorder %v276_v39, %v9673_v16  ;;  %v279_v27 = vld [vmem:[%s9656_s26 + $0x50] sm:$0xff]  ;;  %v9790_v32 = vld [vmem:[%s13524_s2] sm:$0xff]  }
  0x1d   : > { %v1036_v47 = vld [vmem:[#allocation2 + $0x11] sm:$0xff]  ;;  %327 = vst.msk [vmem:[#allocation2 + $0x70] sm:$0xff] %vm13529_vm0, %v325_v46  ;;  %332 = vst.msk [vmem:[#allocation2 + $0x78] sm:$0xff] %vm13529_vm0, %v330_v49  ;;  %v331_v52 = vsel %vm329_vm15, %v260_v42, 0.0  ;;  %vm9730_vm3 = vcmp.ne.s32.totalorder %v443_v33, 15  ;;  %v336_v58 = vsel %vm334_vm1, %v259_v38, 0.0  ;;  %vm340_vm6 = vcmp.eq.s32.totalorder %v277_v12, %v9646_v4  ;;  %7846 = vmatprep.subr.bf16.mxu0 %v9790_v32 }
  0x1e   : > { %v1005_v48 = vld [vmem:[#allocation2 + $0x18] sm:$0xff]  ;;  %v1132_v50 = vsel %vm9708_vm11, %v1036_v47, 0.0  ;;  %v1006_v54 = vld [vmem:[#allocation2 + $0x20] sm:$0xff]  ;;  %v13835_v57 = vsel %vm9730_vm3, 4294967295, %v13834_v57  ;;  %333 = vst.msk [vmem:[#allocation2 + $0x80] sm:$0xff] %vm13529_vm0, %v331_v52  ;;  %v337_v59 = vsel %vm335_vm2, %v260_v42, 0.0  ;;  %vm341_vm7 = vcmp.eq.s32.totalorder %v278_v13, %v9660_v7  ;;  %7847 = vmatpush3.bf16.msra.mxu0 %v9790_v32 }
  0x1f   : > { %v8361_v53 = vpack.i.bf16 %v1132_v50, %v1035_v43  ;;  %v1037_v55 = vld [vmem:[#allocation2 + $0x19] sm:$0xff]  ;;  %v1038_v56 = vld [vmem:[#allocation2 + $0x21] sm:$0xff]  ;;  %13836 = vst [vmem:[#allocation4_spill] sm:$0xff] %v13835_v57  ;;  %v8356_v60 = vpack.i.bf16 %v1006_v54, %v1005_v48  ;;  %vm9737_vm4 = vcmp.ne.s32.totalorder %v457_v44, 15  ;;  %338 = vst.msk [vmem:[#allocation2 + $0x88] sm:$0xff] %vm13529_vm0, %v336_v58  ;;  %vm9756_vm5 = vcmp.ne.s32.totalorder %v471_v51, 15 }
  0x20   : > { %v1009_v61 = vld [vmem:[#allocation2 + $0x38] sm:$0xff]  ;;  %v1010_v62 = vld [vmem:[#allocation2 + $0x40] sm:$0xff]  ;;  %v1539_v63 = vsel %vm9708_vm11, %v1038_v56, 0.0  ;;  %v13838_v0 = vsel %vm9737_vm4, 4294967295, %v13837_v0  ;;  %339 = vst.msk [vmem:[#allocation2 + $0x90] sm:$0xff] %vm13529_vm0, %v337_v59  ;;  %v1134_v6 = vsel %vm9730_vm3, %v1038_v56, 0.0  ;;  %vm346_vm8 = vcmp.eq.s32.totalorder %v277_v12, %v9663_v8 }
  0x21   : > { %13839 = vst [vmem:[#allocation5_spill] sm:$0xff] %v13838_v0  ;;  %8362 = vrot.lane.b32.xlu1 %v8361_v53, %s9594_s28  ;;  %v9744_v1 = vpack.i.bf16 %v1010_v62, %v1009_v61  ;;  %v9746_v3 = vld [vmem:[#allocation2 + $0x41] sm:$0xff]  ;;  %8357 = vrot.lane.b32.xlu0 %v8356_v60, %s9593_s27  ;;  %v8371_v5 = vpack.i.bf16 %v1539_v63, %v1037_v55  ;;  %v9751_v9 = vld [vmem:[#allocation2 + $0x39] sm:$0xff]  ;;  %v13840_v11 = vmov 0  ;;  %v1012_v20 = vld [vmem:[#allocation2 + $0x50] sm:$0xff]  ;;  %v9778_v24 = vadd.s32 72, %v9641_v2 }
  0x22   : > { %v1543_v10 = vsel %vm9737_vm4, %v9746_v3, 0.0  ;;  %v13841_v11 = vsel %vm9756_vm5, 4294967295, %v13840_v11  ;;  %v8376_v14 = vpack.i.bf16 %v1134_v6, %v1037_v55  ;;  %v1138_v17 = vsel %vm9756_vm5, %v9746_v3, 0.0  ;;  %v1011_v19 = vld [vmem:[#allocation2 + $0x48] sm:$0xff]  ;;  %v9773_v22 = vld [vmem:[#allocation2 + $0x31] sm:$0xff]  ;;  %v281_v48 = vld [vmem:[%s9656_s26 + $0x60] sm:$0xff] }
  0x23   : > { %13842 = vst [vmem:[#allocation6_spill] sm:$0xff] %v13841_v11  ;;  %v8381_v15 = vpack.i.bf16 %v1543_v10, %v9751_v9  ;;  %v8386_v23 = vpack.i.bf16 %v1138_v17, %v9751_v9  ;;  %v342_v25 = vsel %vm340_vm6, %v261_v18, 0.0  ;;  %v9783_v28 = vpack.i.bf16 %v1012_v20, %v1011_v19  ;;  %v1007_v29 = vld [vmem:[#allocation2 + $0x28] sm:$0xff]  ;;  %v1008_v30 = vld [vmem:[#allocation2 + $0x30] sm:$0xff]  ;;  %v280_v36 = vld [vmem:[%s9656_s26 + $0x58] sm:$0xff] }
  0x24   : > { %344 = vst.msk [vmem:[#allocation2 + $0x98] sm:$0xff] %vm13529_vm0, %v342_v25  ;;  %v343_v31 = vsel %vm341_vm7, %v262_v21, 0.0  ;;  %v9792_v33 = vld [vmem:[#allocation2 + $0x29] sm:$0xff]  ;;  %v1541_v34 = vsel %vm9730_vm3, %v9773_v22, 0.0  ;;  %vm347_vm9 = vcmp.eq.s32.totalorder %v278_v13, %v9673_v16  ;;  %v348_v35 = vsel %vm346_vm8, %v261_v18, 0.0  ;;  %v9800_v37 = vld [vmem:[#allocation2 + $0x51] sm:$0xff] }
  0x25   : > { %8367 = vrot.lane.b32.xlu1 %v9744_v1, %s9593_s27  ;;  %8372 = vrot.lane.b32.xlu0 %v8371_v5, %s9594_s28  ;;  %345 = vst.msk [vmem:[#allocation2 + $0xa0] sm:$0xff] %vm13529_vm0, %v343_v31  ;;  %v349_v38 = vsel %vm347_vm9, %v262_v21, 0.0  ;;  %350 = vst.msk [vmem:[#allocation2 + $0xa8] sm:$0xff] %vm13529_vm0, %v348_v35  ;;  %vm352_vm10 = vcmp.eq.s32.totalorder %v279_v27, %v9646_v4  ;;  %v264_v39 = vld [vmem:[%s9651_s23 + $0x58] sm:$0xff]  ;;  %v9807_v41 = vpack.i.bf16 %v1008_v30, %v1007_v29  ;;  %v9568_v45 = vld [vmem:[%s13524_s2 + $0xc] sm:$0xff]   ;;  %v13843_v6 = vmov 0 }
  0x26   : > { %v485_v42 = vand.u32 15, %v9778_v24  ;;  %v397_v43 = vadd.s32 88, %v9641_v2  ;;  %351 = vst.msk [vmem:[#allocation2 + $0xb0] sm:$0xff] %vm13529_vm0, %v349_v38  ;;  %v354_v44 = vsel %vm352_vm10, %v263_v26, 0.0  ;;  %v8401_v46 = vpack.i.bf16 %v1541_v34, %v9792_v33  ;;  %v9826_v49 = vld [vmem:[#allocation2 + $0x49] sm:$0xff]  ;;  %v265_v53 = vld [vmem:[%s9651_s23 + $0x60] sm:$0xff]  ;;  %7810 = vmatprep.subr.bf16.mxu1 %v9568_v45 }
  0x27   : > { %v1136_v47 = vsel %vm9737_vm4, %v9773_v22, 0.0  ;;  %356 = vst.msk [vmem:[#allocation2 + $0xb8] sm:$0xff] %vm13529_vm0, %v354_v44  ;;  %vm353_vm12 = vcmp.eq.s32.totalorder %v280_v36, %v9660_v7  ;;  %vm358_vm13 = vcmp.eq.s32.totalorder %v279_v27, %v9663_v8  ;;  %v1545_v50 = vsel %vm9756_vm5, %v9800_v37, 0.0  ;;  %v282_v55 = vld [vmem:[%s9656_s26 + $0x68] sm:$0xff]  ;;  %7811 = vmatpush3.bf16.msra.mxu1 %v9568_v45  ;;  %v1013_v60 = vld [vmem:[#allocation2 + $0x58] sm:$0xff]  ;;  %v1014_v61 = vld [vmem:[#allocation2 + $0x60] sm:$0xff] }
  0x28   : > { %v355_v51 = vsel %vm353_vm12, %v264_v39, 0.0  ;;  %vm359_vm14 = vcmp.eq.s32.totalorder %v280_v36, %v9673_v16  ;;  %v360_v52 = vsel %vm358_vm13, %v263_v26, 0.0  ;;  %v8406_v56 = vpack.i.bf16 %v1136_v47, %v9792_v33  ;;  %v266_v58 = vld [vmem:[%s9651_s23 + $0x68] sm:$0xff]  ;;  %v1016_v5 = vld [vmem:[#allocation2 + $0x70] sm:$0xff]  ;;  %v9867_v24 = vld [vmem:[#allocation2 + $0x59] sm:$0xff] }
  0x29   : > { %8377 = vrot.lane.b32.xlu1 %v8376_v14, %s9594_s28  ;;  %8382 = vrot.lane.b32.xlu0 %v8381_v15, %s9594_s28  ;;  %357 = vst.msk [vmem:[#allocation2 + $0xc0] sm:$0xff] %vm13529_vm0, %v355_v51  ;;  %v361_v54 = vsel %vm359_vm14, %v264_v39, 0.0  ;;  %362 = vst.msk [vmem:[#allocation2 + $0xc8] sm:$0xff] %vm13529_vm0, %v360_v52  ;;  %vm364_vm15 = vcmp.eq.s32.totalorder %v281_v48, %v9646_v4  ;;  %v8411_v59 = vpack.i.bf16 %v1545_v50, %v9826_v49  ;;  %v1015_v63 = vld [vmem:[#allocation2 + $0x68] sm:$0xff]  ;;  %v283_v14 = vld [vmem:[%s9656_s26 + $0x70] sm:$0xff]  ;;  %v13846_v26 = vmov 0 }
  0x2a   : > { %363 = vst.msk [vmem:[#allocation2 + $0xd0] sm:$0xff] %vm13529_vm0, %v361_v54  ;;  %v366_v62 = vsel %vm364_vm15, %v265_v53, 0.0  ;;  %vm9844_vm1 = vcmp.ne.s32.totalorder %v485_v42, 15  ;;  %v499_v10 = vand.u32 15, %v397_v43  ;;  %vm365_vm2 = vcmp.eq.s32.totalorder %v282_v55, %v9660_v7  ;;  %v9850_v12 = vld [vmem:[#allocation2 + $0x61] sm:$0xff]  ;;  %v267_v18 = vld [vmem:[%s9651_s23 + $0x70] sm:$0xff] }
  0x2b   : > { %v13844_v6 = vsel %vm9844_vm1, 4294967295, %v13843_v6  ;;  %368 = vst.msk [vmem:[#allocation2 + $0xd8] sm:$0xff] %vm13529_vm0, %v366_v62  ;;  %v367_v13 = vsel %vm365_vm2, %v266_v58, 0.0  ;;  %vm370_vm6 = vcmp.eq.s32.totalorder %v281_v48, %v9663_v8  ;;  %v9855_v15 = vpack.i.bf16 %v1014_v61, %v1013_v60  ;;  %v284_v27 = vld [vmem:[%s9656_s26 + $0x78] sm:$0xff]  ;;  %v9894_v38 = vld [vmem:[#allocation2 + $0x69] sm:$0xff]  ;;  %v1018_v48 = vld [vmem:[#allocation2 + $0x80] sm:$0xff] }
  0x2c   : > { %13845 = vst [vmem:[#allocation7_spill] sm:$0xff] %v13844_v6  ;;  %v399_v17 = vadd.s32 104, %v9641_v2  ;;  %369 = vst.msk [vmem:[#allocation2 + $0xe0] sm:$0xff] %vm13529_vm0, %v367_v13  ;;  %vm371_vm7 = vcmp.eq.s32.totalorder %v282_v55, %v9673_v16  ;;  %v9862_v19 = vpack.i.bf16 %v1016_v5, %v1015_v63  ;;  %v1140_v20 = vsel %vm9844_vm1, %v9800_v37, 0.0  ;;  %v9880_v29 = vld [vmem:[#allocation2 + $0x71] sm:$0xff]  ;;  %v9913_v52 = vld [vmem:[#allocation2 + $0x81] sm:$0xff] }
  0x2d   : > { %8387 = vrot.lane.b32.xlu1 %v8386_v23, %s9594_s28  ;;  %8397 = vrot.lane.b32.xlu0 %v9783_v28, %s9593_s27  ;;  %v372_v21 = vsel %vm370_vm6, %v265_v53, 0.0  ;;  %v373_v23 = vsel %vm371_vm7, %v266_v58, 0.0  ;;  %v1547_v25 = vsel %vm9844_vm1, %v9850_v12, 0.0  ;;  %vm9872_vm8 = vcmp.ne.s32.totalorder %v499_v10, 15  ;;  %v268_v31 = vld [vmem:[%s9651_s23 + $0x78] sm:$0xff]  ;;  %v1020_v50 = vld [vmem:[#allocation2 + $0x90] sm:$0xff] }
  0x2e   : > { %v13847_v26 = vsel %vm9872_vm8, 4294967295, %v13846_v26  ;;  %374 = vst.msk [vmem:[#allocation2 + $0xe8] sm:$0xff] %vm13529_vm0, %v372_v21  ;;  %375 = vst.msk [vmem:[#allocation2 + $0xf0] sm:$0xff] %vm13529_vm0, %v373_v23  ;;  %vm376_vm9 = vcmp.eq.s32.totalorder %v283_v14, %v9646_v4  ;;  %v8426_v34 = vpack.i.bf16 %v1140_v20, %v9826_v49  ;;  %v8431_v35 = vpack.i.bf16 %v1547_v25, %v9867_v24  ;;  %v1017_v47 = vld [vmem:[#allocation2 + $0x78] sm:$0xff]  ;;  %v9942_v63 = vld [vmem:[%s13524_s2 + $0x8] ss:$0 sps:$4 sm:$0xff]  }
  0x2f   : > { %13848 = vst [vmem:[#allocation8_spill] sm:$0xff] %v13847_v26  ;;  %v378_v30 = vsel %vm376_vm9, %v267_v18, 0.0  ;;  %v1142_v4 = vsel %vm9872_vm8, %v9850_v12, 0.0  ;;  %v513_v36 = vand.u32 15, %v399_v17  ;;  %vm377_vm10 = vcmp.eq.s32.totalorder %v284_v27, %v9660_v7  ;;  %v9933_v60 = vld [vmem:[#allocation2 + $0x91] sm:$0xff]  ;;  %v9950_v13 = vld [vmem:[#allocation2 + $0x89] sm:$0xff] }
  0x30   : > { %380 = vst.msk [vmem:[#allocation2 + $0xf8] sm:$0xff] %vm13529_vm0, %v378_v30  ;;  %v1549_v39 = vsel %vm9872_vm8, %v9880_v29, 0.0  ;;  %v401_v42 = vadd.s32 120, %v9641_v2  ;;  %v379_v43 = vsel %vm377_vm10, %v268_v31, 0.0  ;;  %vm382_vm12 = vcmp.eq.s32.totalorder %v283_v14, %v9663_v8  ;;  %v1019_v8 = vld [vmem:[#allocation2 + $0x88] sm:$0xff]  ;;  %v1021_v25 = vld [vmem:[#allocation2 + $0x98] sm:$0xff] }
  0x31   : > { %8392 = vrot.lane.b32.xlu1 %v9807_v41, %s9593_s27  ;;  %8402 = vrot.lane.b32.xlu0 %v8401_v46, %s9594_s28  ;;  %381 = vst.msk [vmem:[#allocation2 + $0x100] sm:$0xff] %vm13529_vm0, %v379_v43  ;;  %vm383_vm13 = vcmp.eq.s32.totalorder %v284_v27, %v9673_v16  ;;  %v384_v44 = vsel %vm382_vm12, %v267_v18, 0.0  ;;  %v8436_v7 = vpack.i.bf16 %v1142_v4, %v9867_v24  ;;  %vm9909_vm14 = vcmp.ne.s32.totalorder %v513_v36, 15  ;;  %v9569_v17 = vld [vmem:[%s13524_s2 + $0x14] ss:$0 sps:$4 sm:$0xff]   ;;  %v1022_v27 = vld [vmem:[#allocation2 + $0xa0] sm:$0xff] }
  0x32   : > { %v385_v45 = vsel %vm383_vm13, %v268_v31, 0.0  ;;  %386 = vst.msk [vmem:[#allocation2 + $0x108] sm:$0xff] %vm13529_vm0, %v384_v44  ;;  %v8441_v46 = vpack.i.bf16 %v1549_v39, %v9894_v38  ;;  %v13849_v16 = vmov 0  ;;  %v527_v51 = vand.u32 15, %v401_v42  ;;  %v9981_v4 = vld [vmem:[%s13524_s2 + $0x18] sm:$0xff]   ;;  %v1023_v39 = vld [vmem:[#allocation2 + $0xa8] sm:$0xff] }
  0x33   : > { %387 = vst.msk [vmem:[#allocation2 + $0x110] sm:$0xff] %vm13529_vm0, %v385_v45  ;;  %v13850_v16 = vsel %vm9909_vm14, 4294967295, %v13849_v16  ;;  %v9916_v53 = vpack.i.bf16 %v1018_v48, %v1017_v47  ;;  %v9919_v54 = vpack.i.bf16 %v1020_v50, %v1019_v8  ;;  %v1144_v55 = vsel %vm9909_vm14, %v9880_v29, 0.0  ;;  %v1024_v42 = vld [vmem:[#allocation2 + $0xb0] sm:$0xff]  ;;  %v9988_v43 = vld [vmem:[#allocation2 + $0x99] sm:$0xff] }
  0x34   : > { %13851 = vst [vmem:[#allocation9_spill] sm:$0xff] %v13850_v16  ;;  %v1551_v58 = vsel %vm9909_vm14, %v9913_v52, 0.0  ;;  %vm9929_vm15 = vcmp.ne.s32.totalorder %v527_v51, 15  ;;  %v403_v61 = vadd.s32 136, %v9641_v2  ;;  %v8456_v62 = vpack.i.bf16 %v1144_v55, %v9894_v38  ;;  %v10008_v8 = vld [vmem:[#allocation2 + $0xb1] sm:$0xff]  ;;  %v10015_v51 = vld [vmem:[#allocation2 + $0xa9] sm:$0xff] }
  0x35   : > { %8407 = vrot.lane.b32.xlu1 %v8406_v56, %s9594_s28  ;;  %8412 = vrot.lane.b32.xlu0 %v8411_v59, %s9594_s28  ;;  %v9924_v56 = vld [vmem:[#allocation2 + $0x79] sm:$0xff]  ;;  %v13852_v59 = vmov 0  ;;  %v1146_v10 = vsel %vm9929_vm15, %v9913_v52, 0.0  ;;  %v1553_v14 = vsel %vm9929_vm15, %v9933_v60, 0.0  ;;  %vm13528_vm2 = vcmask 1043456   ;;  %v10268_v16 = vld [vmem:[#allocation2 + $0x27] sm:$0xff] }
  0x36   : > { %v13853_v59 = vsel %vm9929_vm15, 4294967295, %v13852_v59  ;;  %v8461_v5 = vpack.i.bf16 %v1551_v58, %v9924_v56  ;;  %v541_v18 = vand.u32 15, %v403_v61  ;;  %v8466_v20 = vpack.i.bf16 %v1146_v10, %v9924_v56  ;;  %8331 = vmatprep.subr.msk.bf16.mxu0 %vm13528_vm2, %v9942_v63  ;;  %8330 = vmatprep.subr.msk.bf16.mxu1 %vm13528_vm2, %v9569_v17 }
  0x37   : > { %13854 = vst [vmem:[#allocation10_spill] sm:$0xff] %v13853_v59  ;;  %v9964_v21 = vsel %vm13528_vm2, %v9942_v63, 0  ;;  %v8471_v23 = vpack.i.bf16 %v1553_v14, %v9950_v13  ;;  %v405_v30 = vadd.s32 152, %v9641_v2  ;;  %v13855_v31 = vmov 0  ;;  %v10266_v59 = vld [vmem:[#allocation2 + $0x47] sm:$0xff] }
  0x38   : > { %7849 = vmatpush3.bf16.msra.mxu0 %v9964_v21  ;;  %vm9971_vm6 = vcmp.ne.s32.totalorder %v541_v18, 15  ;;  %v9984_v36 = vpack.i.bf16 %v1022_v27, %v1021_v25  ;;  %v9996_v45 = vpack.i.bf16 %v1024_v42, %v1023_v39  ;;  %v2359_v47 = vsel %vm9708_vm11, %v9773_v22, 0.0  ;;  %v1028_v18 = vld [vmem:[#allocation2 + $0xd0] sm:$0xff] }
  0x39   : > { %8417 = vrot.lane.b32.xlu1 %v9855_v15, %s9593_s27  ;;  %8422 = vrot.lane.b32.xlu0 %v9862_v19, %s9593_s27  ;;  %v13856_v31 = vsel %vm9971_vm6, 4294967295, %v13855_v31  ;;  %v13858_v48 = vmov 0  ;;  %v407_v50 = vadd.s32 168, %v9641_v2  ;;  %v2361_v55 = vsel %vm9730_vm3, %v9746_v3, 0.0  ;;  %v10058_v39 = vld [vmem:[#allocation2 + $0xd1] sm:$0xff] }
  0x3a   : > { %13857 = vst [vmem:[#allocation11_spill] sm:$0xff] %v13856_v31  ;;  %7882 = vmatprep.subr.bf16.mxu0 %v9981_v4  ;;  %v409_v10 = vadd.s32 184, %v9641_v2  ;;  %v13861_v14 = vmov 0  ;;  %v411_v42 = vadd.s32 200, %v9641_v2  ;;  %v10777_v0 = vld [vmem:[#allocation2 + $0x10f] sm:$0xff] }
  0x3b   : > { %v569_v58 = vand.u32 15, %v407_v50  ;;  %v1029_v50 = vld [vmem:[#allocation2 + $0xd8] sm:$0xff] }
  0x3d   : > { %8427 = vrot.lane.b32.xlu1 %v8426_v34, %s9594_s28  ;;  %8432 = vrot.lane.b32.xlu0 %v8431_v35, %s9594_s28  ;;  %v9975_v34 = vld [vmem:[#allocation2 + $0xa1] sm:$0xff]  ;;  %v1846_v35 = vsel %vm13528_vm2, %v9569_v17, 0  ;;  %vm10029_vm9 = vcmp.ne.s32.totalorder %v569_v58, 15 }
  0x3e   : > { %7813 = vmatpush3.bf16.msra.mxu1 %v1846_v35  ;;  %v1555_v44 = vsel %vm9971_vm6, %v9975_v34, 0.0  ;;  %v13862_v14 = vsel %vm10029_vm9, 4294967295, %v13861_v14  ;;  %v10033_v17 = vld [vmem:[#allocation2 + $0xc1] sm:$0xff]  ;;  %v13864_v35 = vmov 0 }
  0x3f   : > { %8134 = vmatprep.subr.bf16.mxu1 %v9790_v32  ;;  %13863 = vst [vmem:[#allocation13_spill] sm:$0xff] %v13862_v14  ;;  %v10083_v58 = vld [vmem:[#allocation2 + $0xe1] sm:$0xff] }
  0x41   : > { %8437 = vrot.lane.b32.xlu1 %v8436_v7, %s9594_s28  ;;  %8442 = vrot.lane.b32.xlu0 %v8441_v46, %s9594_s28  ;;  %v555_v7 = vand.u32 15, %v405_v30  ;;  %v8491_v46 = vpack.i.bf16 %v1555_v44, %v9988_v43  ;;  %v2363_v30 = vsel %vm9737_vm4, %v9800_v37, 0.0  ;;  %v10065_v44 = vld [vmem:[#allocation2 + $0xc9] sm:$0xff] }
  0x43   : > { %vm10004_vm7 = vcmp.ne.s32.totalorder %v555_v7, 15  ;;  %v2365_v7 = vsel %vm9756_vm5, %v9850_v12, 0.0 }
  0x44   : > { %v13859_v48 = vsel %vm10004_vm7, 4294967295, %v13858_v48  ;;  %v1557_v22 = vsel %vm10004_vm7, %v10008_v8, 0.0 }
  0x45   : > { %8447 = vrot.lane.b32.xlu1 %v9916_v53, %s9593_s27  ;;  %8452 = vrot.lane.b32.xlu0 %v9919_v54, %s9593_s27  ;;  %13860 = vst [vmem:[#allocation12_spill] sm:$0xff] %v13859_v48  ;;  %v8506_v61 = vpack.i.bf16 %v1557_v22, %v10015_v51  ;;  %v413_v22 = vadd.s32 216, %v9641_v2 }
  0x49   : > { %8457 = vrot.lane.b32.xlu1 %v8456_v62, %s9594_s28  ;;  %8462 = vrot.lane.b32.xlu0 %v8461_v5, %s9594_s28  ;;  %v1025_v62 = vld [vmem:[#allocation2 + $0xb8] sm:$0xff]  ;;  %v1026_v5 = vld [vmem:[#allocation2 + $0xc0] sm:$0xff] }
  0x4a   : > { %v10036_v3 = vpack.i.bf16 %v1026_v5, %v1025_v62  ;;  %v611_v62 = vand.u32 15, %v413_v22 }
  0x4c   : > { %vm10104_vm13 = vcmp.ne.s32.totalorder %v611_v62, 15  ;;  %v13876_v62 = vmov 0 }
  0x4d   : > { %8467 = vrot.lane.b32.xlu1 %v8466_v20, %s9594_s28  ;;  %8472 = vrot.lane.b32.xlu0 %v8471_v23, %s9594_s28  ;;  %v10039_v20 = vld [vmem:[#allocation2 + $0xb9] sm:$0xff]  ;;  %v583_v23 = vand.u32 15, %v409_v10 }
  0x4f   : > { %vm10054_vm10 = vcmp.ne.s32.totalorder %v583_v23, 15  ;;  %v415_v23 = vadd.s32 232, %v9641_v2 }
  0x50   : > { %v13865_v35 = vsel %vm10054_vm10, 4294967295, %v13864_v35  ;;  %v1561_v37 = vsel %vm10054_vm10, %v10058_v39, 0.0 }
  0x51   : > { %8477 = vrot.lane.b32.xlu1 %v9984_v36, %s9593_s27  ;;  %8482 = vrot.lane.b32.xlu0 %v9807_v41, %s9593_s27  ;;  %v8501_v41 = vpack.i.bf16 %v2359_v47, %v9792_v33  ;;  %v8511_v33 = vpack.i.bf16 %v2361_v55, %v9751_v9  ;;  %v1559_v9 = vsel %vm10029_vm9, %v10033_v17, 0.0  ;;  %13866 = vst [vmem:[#allocation14_spill] sm:$0xff] %v13865_v35  ;;  %v13867_v55 = vmov 0 }
  0x52   : > { %v8531_v27 = vpack.i.bf16 %v1559_v9, %v10039_v20  ;;  %v8546_v47 = vpack.i.bf16 %v1561_v37, %v10065_v44  ;;  %v10108_v9 = vld [vmem:[#allocation2 + $0xf1] sm:$0xff] }
  0x53   : > { %v1033_v37 = vld [vmem:[#allocation2 + $0xf8] sm:$0xff] }
  0x55   : > { %8487 = vrot.lane.b32.xlu1 %v9996_v45, %s9593_s27  ;;  %8492 = vrot.lane.b32.xlu0 %v8491_v46, %s9594_s28  ;;  %v597_v46 = vand.u32 15, %v411_v42  ;;  %v625_v42 = vand.u32 15, %v415_v23 }
  0x57   : > { %vm10079_vm12 = vcmp.ne.s32.totalorder %v597_v46, 15  ;;  %v417_v46 = vadd.s32 248, %v9641_v2  ;;  %vm10129_vm2 = vcmp.ne.s32.totalorder %v625_v42, 15  ;;  %v1148_v42 = vsel %vm9971_vm6, %v9933_v60, 0.0 }
  0x58   : > { %v13868_v55 = vsel %vm10079_vm12, 4294967295, %v13867_v55 }
  0x59   : > { %8497 = vrot.lane.b32.xlu1 %v9744_v1, %s9593_s27  ;;  %8502 = vrot.lane.b32.xlu0 %v8501_v41, %s9594_s28  ;;  %v1027_v1 = vld [vmem:[#allocation2 + $0xc8] sm:$0xff]  ;;  %v1030_v41 = vld [vmem:[#allocation2 + $0xe0] sm:$0xff]  ;;  %13869 = vst [vmem:[#allocation15_spill] sm:$0xff] %v13868_v55  ;;  %v639_v22 = vand.u32 15, %v417_v46  ;;  %v2375_v46 = vsel %vm9971_vm6, %v10008_v8, 0.0 }
  0x5a   : > { %v10046_v25 = vpack.i.bf16 %v1028_v18, %v1027_v1  ;;  %v10086_v12 = vpack.i.bf16 %v1030_v41, %v1029_v50  ;;  %v2367_v1 = vsel %vm9844_vm1, %v9880_v29, 0.0  ;;  %v13870_v18 = vmov 0  ;;  %v1535_v50 = vld [vmem:[#allocation2 + $0x110] sm:$0xff]  ;;  %v10139_v41 = vld [vmem:[#allocation2 + $0xf9] sm:$0xff] }
  0x5b   : > { %v13871_v18 = vsel %vm10104_vm13, 4294967295, %v13870_v18  ;;  %v1565_v29 = vsel %vm10104_vm13, %v10108_v9, 0.0  ;;  %vm10154_vm0 = vcmp.ne.s32.totalorder %v639_v22, 15  ;;  %vm13549_vm1 = vcmask 195584  }
  0x5c   : > { %13872 = vst [vmem:[#allocation16_spill] sm:$0xff] %v13871_v18  ;;  %v13877_v62 = vsel %vm10154_vm0, 4294967295, %v13876_v62 }
  0x5d   : > { %8507 = vrot.lane.b32.xlu1 %v8506_v61, %s9594_s28  ;;  %8512 = vrot.lane.b32.xlu0 %v8511_v33, %s9594_s28  ;;  %v1032_v61 = vld [vmem:[#allocation2 + $0xf0] sm:$0xff]  ;;  %v10089_v33 = vld [vmem:[#allocation2 + $0xd9] sm:$0xff]  ;;  %13878 = vst [vmem:[#allocation18_spill] sm:$0xff] %v13877_v62 }
  0x61   : > { %8517 = vrot.lane.b32.xlu1 %v10036_v3, %s9593_s27  ;;  %8522 = vrot.lane.b32.xlu0 %v9783_v28, %s9593_s27  ;;  %v8541_v28 = vpack.i.bf16 %v2363_v30, %v9826_v49  ;;  %v8551_v49 = vpack.i.bf16 %v2365_v7, %v9867_v24  ;;  %v1563_v24 = vsel %vm10079_vm12, %v10083_v58, 0.0  ;;  %v2369_v30 = vsel %vm9872_vm8, %v9913_v52, 0.0  ;;  %v1034_v7 = vld [vmem:[#allocation2 + $0x100] sm:$0xff] }
  0x62   : > { %v8571_v10 = vpack.i.bf16 %v1563_v24, %v10089_v33  ;;  %v10136_v52 = vpack.i.bf16 %v1034_v7, %v1033_v37  ;;  %v2371_v24 = vsel %vm9909_vm14, %v9933_v60, 0.0  ;;  %v13879_v60 = vmov 0 }
  0x63   : > { %vm13546_vm14 = vcmask 130048   ;;  %vm13885_vm8 = vcmask 64512  }
  0x65   : > { %8527 = vrot.lane.b32.xlu1 %v10046_v25, %s9593_s27  ;;  %8532 = vrot.lane.b32.xlu0 %v8531_v27, %s9594_s28  ;;  %v10115_v27 = vld [vmem:[#allocation2 + $0xe9] sm:$0xff] }
  0x69   : > { %8537 = vrot.lane.b32.xlu1 %v9855_v15, %s9593_s27  ;;  %8542 = vrot.lane.b32.xlu0 %v8541_v28, %s9594_s28  ;;  %v1031_v15 = vld [vmem:[#allocation2 + $0xe8] sm:$0xff]  ;;  %v8586_v28 = vpack.i.bf16 %v1565_v29, %v10115_v27 }
  0x6a   : > { %v10096_v5 = vpack.i.bf16 %v1032_v61, %v1031_v15 }
  0x6d   : > { %8547 = vrot.lane.b32.xlu1 %v8546_v47, %s9594_s28  ;;  %8552 = vrot.lane.b32.xlu0 %v8551_v49, %s9594_s28  ;;  %v13873_v47 = vmov 0  ;;  %v10133_v49 = vld [vmem:[#allocation2 + $0x101] sm:$0xff] }
  0x6e   : > { %v13874_v47 = vsel %vm10129_vm2, 4294967295, %v13873_v47 }
  0x6f   : > { %13875 = vst [vmem:[#allocation17_spill] sm:$0xff] %v13874_v47 }
  0x71   : > { %8557 = vrot.lane.b32.xlu1 %v10086_v12, %s9593_s27  ;;  %8562 = vrot.lane.b32.xlu0 %v9862_v19, %s9593_s27  ;;  %v8581_v19 = vpack.i.bf16 %v2367_v1, %v9894_v38  ;;  %v8591_v38 = vpack.i.bf16 %v2369_v30, %v9924_v56  ;;  %v1567_v56 = vsel %vm10129_vm2, %v10133_v49, 0.0  ;;  %v8621_v1 = vpack.i.bf16 %v2371_v24, %v9950_v13 }
  0x72   : > { %v8611_v61 = vpack.i.bf16 %v1567_v56, %v10139_v41  ;;  %v392_v56 = vadd.s32 48, %v9641_v2  ;;  %v8651_v24 = vpack.i.bf16 %v2375_v46, %v10015_v51 }
  0x75   : > { %8567 = vrot.lane.b32.xlu1 %v10096_v5, %s9593_s27  ;;  %8572 = vrot.lane.b32.xlu0 %v8571_v10, %s9594_s28  ;;  %v10158_v10 = vld [vmem:[#allocation2 + $0x111] sm:$0xff] }
  0x76   : > { %v1569_v23 = vsel %vm10154_vm0, %v10158_v10, 0.0 }
  0x79   : > { %8577 = vrot.lane.b32.xlu1 %v9916_v53, %s9593_s27  ;;  %8582 = vrot.lane.b32.xlu0 %v8581_v19, %s9594_s28  ;;  %v1534_v53 = vld [vmem:[#allocation2 + $0x108] sm:$0xff]  ;;  %v2373_v19 = vsel %vm9929_vm15, %v9975_v34, 0.0 }
  0x7a   : > { %v10146_v15 = vpack.i.bf16 %v1535_v50, %v1534_v53  ;;  %v8631_v30 = vpack.i.bf16 %v2373_v19, %v9988_v43  ;;  %v390_v53 = vadd.s32 32, %v9641_v2  ;;  %v875_v50 = vld [vmem:[#allocation2 + $0x7] sm:$0xff]  ;;  %v2377_v19 = vsel %vm10004_vm7, %v10033_v17, 0.0 }
  0x7d   : > { %8587 = vrot.lane.b32.xlu1 %v8586_v28, %s9594_s28  ;;  %8592 = vrot.lane.b32.xlu0 %v8591_v38, %s9594_s28  ;;  %v388_v28 = vadd.s32 16, %v9641_v2  ;;  %v422_v38 = vand.u32 15, %v9641_v2 }
  0x7f   : > { %v436_v7 = vand.u32 15, %v388_v28  ;;  %vm10189_vm15 = vcmp.ne.s32.totalorder %v422_v38, 0  ;;  %v877_v38 = vld [vmem:[#allocation2 + $0x17] sm:$0xff] }
  0x80   : > { %v13880_v60 = vsel %vm10189_vm15, 4294967295, %v13879_v60 }
  0x81   : > { %8597 = vrot.lane.b32.xlu1 %v10136_v52, %s9593_s27  ;;  %8602 = vrot.lane.b32.xlu0 %v9919_v54, %s9593_s27  ;;  %v10164_v54 = vld [vmem:[#allocation2 + $0x109] sm:$0xff]  ;;  %13881 = vst [vmem:[#allocation19_spill] sm:$0xff] %v13880_v60  ;;  %vm10206_vm6 = vcmp.ne.s32.totalorder %v436_v7, 0  ;;  %v8661_v7 = vpack.i.bf16 %v2377_v19, %v10039_v20  ;;  %v13890_v19 = vmov 0 }
  0x82   : > { %v8626_v29 = vpack.i.bf16 %v1569_v23, %v10164_v54  ;;  %v971_v23 = vsel %vm10189_vm15, %v875_v50, 0.0 }
  0x85   : > { %8607 = vrot.lane.b32.xlu1 %v10146_v15, %s9593_s27  ;;  %8612 = vrot.lane.b32.xlu0 %v8611_v61, %s9594_s28 }
  0x89   : > { %8617 = vrot.lane.b32.xlu1 %v9984_v36, %s9593_s27  ;;  %8622 = vrot.lane.b32.xlu0 %v8621_v1, %s9594_s28  ;;  %v8641_v36 = vpack.i.bf16 %v1148_v42, %v9950_v13  ;;  %v1150_v13 = vsel %vm10004_vm7, %v9975_v34, 0.0  ;;  %v876_v1 = vld [vmem:[#allocation2 + $0xf] sm:$0xff]  ;;  %vm13886_vm7 = vmmov %vm13885_vm8 }
  0x8a   : > { %v8353_v37 = vpop.permute.xlu0 %8352 }
  0x8b   : > { %v8355_v22 = vunpack.i.h.bf16 %v8353_v37  ;;  %v8354_v61 = vunpack.i.l.bf16 %v8353_v37  ;;  %v464_v37 = vand.u32 15, %v392_v56 }
  0x8d   : > { %8627 = vrot.lane.b32.xlu1 %v8626_v29, %s9594_s28  ;;  %8632 = vrot.lane.b32.xlu0 %v8631_v30, %s9594_s28  ;;  %v13882_v30 = vmov 0  ;;  %v1419_v46 = vsel %vm13885_vm8, %v971_v23, %v8354_v61  ;;  %v1420_v50 = vsel %vm13886_vm7, %v876_v1, %v8355_v22  ;;  %v878_v61 = vld [vmem:[#allocation2 + $0x1f] sm:$0xff]  ;;  %v1502_v22 = vsel %vm10189_vm15, %v877_v38, 0.0 }
  0x8e   : > { %v13883_v30 = vsel %vm10206_vm6, 4294967295, %v13882_v30  ;;  %v10228_v1 = vld [vmem:[#allocation2 + $0x120] sm:$0xff]  ;;  %v13887_v23 = vmov 0  ;;  %vm10236_vm7 = vcmp.ne.s32.totalorder %v464_v37, 0 }
  0x8f   : > { %13884 = vst [vmem:[#allocation20_spill] sm:$0xff] %v13883_v30  ;;  %v13891_v19 = vsel %vm10236_vm7, 4294967295, %v13890_v19 }
  0x90   : > { %13892 = vst [vmem:[#allocation22_spill] sm:$0xff] %v13891_v19 }
  0x91   : > { %8637 = vrot.lane.b32.xlu1 %v9996_v45, %s9593_s27  ;;  %8642 = vrot.lane.b32.xlu0 %v8641_v36, %s9594_s28  ;;  %v450_v45 = vand.u32 15, %v390_v53  ;;  %v8656_v36 = vpack.i.bf16 %v1150_v13, %v9988_v43  ;;  %v10226_v13 = vld [vmem:[#allocation2 + $0x118] sm:$0xff] }
  0x93   : > { %v8363_v29 = vpop.permute.xlu1 %8362  ;;  %v8358_v28 = vpop.permute.xlu0 %8357  ;;  %vm10232_vm8 = vcmp.ne.s32.totalorder %v450_v45, 0  ;;  %v2379_v45 = vsel %vm10029_vm9, %v10058_v39, 0.0 }
  0x94   : > { %v8365_v34 = vunpack.i.h.bf16 %v8363_v29  ;;  %v8364_v42 = vunpack.i.l.bf16 %v8363_v29  ;;  %v8360_v48 = vunpack.i.h.bf16 %v8358_v28  ;;  %v8359_v53 = vunpack.i.l.bf16 %v8358_v28 }
  0x95   : > { %8647 = vrot.lane.b32.xlu1 %v10036_v3, %s9593_s27  ;;  %8652 = vrot.lane.b32.xlu0 %v8651_v24, %s9594_s28  ;;  %v1152_v3 = vsel %vm10029_vm9, %v10008_v8, 0.0  ;;  %v973_v24 = vsel %vm10206_vm6, %v877_v38, 0.0  ;;  %v13888_v23 = vsel %vm10232_vm8, 4294967295, %v13887_v23  ;;  %v10240_v8 = vld [vmem:[#allocation2 + $0x37] sm:$0xff] }
  0x96   : > { %v1452_v29 = vsel %vm13546_vm14, %v1419_v46, %v8364_v42  ;;  %v1453_v56 = vsel %vm13546_vm14, %v1420_v50, %v8365_v34  ;;  %13889 = vst [vmem:[#allocation21_spill] sm:$0xff] %v13888_v23  ;;  %v394_v46 = vadd.s32 64, %v9641_v2  ;;  %v8671_v38 = vpack.i.bf16 %v1152_v3, %v10015_v51 }
  0x97   : > { %v10219_v31 = vpop.permute.xlu1 %8367  ;;  %v1484_v43 = vpack.c.bf16 %v1453_v56, %v1452_v29  ;;  %v8373_v34 = vpop.permute.xlu0 %8372  ;;  %vm13893_vm14 = vcmask 64512   ;;  %v1506_v56 = vsel %vm10232_vm8, %v10240_v8, 0.0 }
  0x98   : > { %v8375_v42 = vunpack.i.h.bf16 %v8373_v34  ;;  %v8374_v28 = vunpack.i.l.bf16 %v8373_v34  ;;  %v1422_v37 = vsel %vm13893_vm14, %v878_v61, %v8360_v48  ;;  %vm13894_vm5 = vmmov %vm13893_vm14  ;;  %v8681_v34 = vpack.i.bf16 %v2379_v45, %v10065_v44 }
  0x99   : > { %8657 = vrot.lane.b32.xlu1 %v8656_v36, %s9594_s28  ;;  %7850 = vmatprep.mubr.msk.bf16.mxu0 %vm13549_vm1, %v1484_v43  ;;  %v1706_v50 = vsel %vm13894_vm5, %v1502_v22, %v8359_v53  ;;  %v977_v36 = vsel %vm10236_vm7, %v10240_v8, 0.0  ;;  %vm13895_vm1 = vcmask 130048   ;;  %v1421_v29 = vsel %vm13894_vm5, %v973_v24, %v8359_v53 }
  0x9a   : > { %8662 = vrot.lane.b32.xlu0 %v8661_v7, %s9594_s28  ;;  %v1738_v7 = vsel %vm13895_vm1, %v1706_v50, %v8374_v28  ;;  %vm13896_vm9 = vmmov %vm13895_vm1  ;;  %v478_v14 = vand.u32 15, %v394_v46  ;;  %v2381_v28 = vsel %vm10054_vm10, %v10083_v58, 0.0  ;;  %v8370_v45 = vunpack.i.h.bf16 %v10219_v31  ;;  %v10282_v46 = vld [vmem:[#allocation2 + $0x3f] sm:$0xff] }
  0x9b   : > { %v8378_v43 = vpop.permute.xlu1 %8377  ;;  %v1739_v51 = vsel %vm13896_vm9, %v1422_v37, %v8375_v42  ;;  %v8383_v61 = vpop.permute.xlu0 %8382  ;;  %v1154_v42 = vsel %vm10054_vm10, %v10033_v17, 0.0  ;;  %v8369_v53 = vunpack.i.l.bf16 %v10219_v31  ;;  %vm13897_vm14 = vmmov %vm13895_vm1  ;;  %vm13898_vm9 = vcmask 195584   ;;  %v9571_v31 = vld [vmem:[%s13524_s2 + $0x20] ss:$0 sps:$4 sm:$0xff]  }
  0x9c   : > { %v8380_v3 = vunpack.i.h.bf16 %v8378_v43  ;;  %v8379_v48 = vunpack.i.l.bf16 %v8378_v43  ;;  %v1770_v22 = vpack.c.bf16 %v1739_v51, %v1738_v7  ;;  %v8385_v50 = vunpack.i.h.bf16 %v8383_v61 }
  0x9d   : > { %8667 = vrot.lane.b32.xlu1 %v10046_v25, %s9593_s27  ;;  %v8384_v17 = vunpack.i.l.bf16 %v8383_v61  ;;  %v1156_v51 = vsel %vm10079_vm12, %v10058_v39, 0.0  ;;  %v8686_v39 = vpack.i.bf16 %v1154_v42, %v10039_v20  ;;  %vm10302_vm5 = vcmp.ne.s32.totalorder %v478_v14, 0 }
  0x9e   : > { %v1454_v24 = vsel %vm13895_vm1, %v1421_v29, %v8379_v48  ;;  %8672 = vrot.lane.b32.xlu0 %v8671_v38, %s9594_s28  ;;  %v1455_v25 = vsel %vm13897_vm14, %v1422_v37, %v8380_v3  ;;  %7814 = vmatprep.mubr.msk.bf16.mxu1 %vm13898_vm9, %v1770_v22  ;;  %v975_v29 = vsel %vm10232_vm8, %v10268_v16, 0.0  ;;  %v1504_v3 = vsel %vm10206_vm6, %v10268_v16, 0.0  ;;  %vm13902_vm1 = vmmov %vm13898_vm9 }
  0x9f   : > { %v8388_v43 = vpop.permute.xlu1 %8387  ;;  %v1485_v7 = vpack.c.bf16 %v1455_v25, %v1454_v24  ;;  %v10293_v37 = vpop.permute.xlu0 %8397  ;;  %v13899_v48 = vmov 0  ;;  %v8691_v61 = vpack.i.bf16 %v2381_v28, %v10089_v33  ;;  %v10311_v22 = vadd.s32 80, %v9641_v2 }
  0xa0   : > { %v13900_v48 = vsel %vm10302_vm5, 4294967295, %v13899_v48  ;;  %v10314_v24 = vadd.s32 96, %v9641_v2  ;;  %vm13903_vm14 = vcmask 64512   ;;  %v8701_v42 = vpack.i.bf16 %v1156_v51, %v10065_v44 }
  0xa1   : > { %13901 = vst [vmem:[#allocation23_spill] sm:$0xff] %v13900_v48  ;;  %8677 = vrot.lane.b32.xlu1 %v10086_v12, %s9593_s27  ;;  %7851 = vmatmul.mubr.msk.bf16.vlgmr.msra.gmra.mrb[0].mxu0 %vm13902_vm1, %v1485_v7  ;;  %v1426_v20 = vsel %vm13903_vm14, %v10282_v46, %v8370_v45  ;;  %vm13904_vm9 = vmmov %vm13903_vm14  ;;  %v2383_v12 = vsel %vm10079_vm12, %v10108_v9, 0.0  ;;  %vm13905_vm1 = vcmask 130048   ;;  %v10327_v7 = vld [vmem:[#allocation2 + $0x2f] sm:$0xff]  ;;  %vm13907_vm14 = vcmask 1043456  }
  0xa2   : > { %v1710_v14 = vsel %vm13904_vm9, %v1506_v56, %v8369_v53  ;;  %8682 = vrot.lane.b32.xlu0 %v8681_v34, %s9594_s28  ;;  %7883 = vmatpush3.bf16.msra.mxu0 %v9981_v4  ;;  %v1743_v28 = vsel %vm13905_vm1, %v1426_v20, %v8385_v50  ;;  %vm13906_vm10 = vmmov %vm13905_vm1  ;;  %v1158_v56 = vsel %vm10104_vm13, %v10083_v58, 0.0  ;;  %v8389_v34 = vunpack.i.l.bf16 %v8388_v43 }
  0xa3   : > { %v1742_v25 = vsel %vm13906_vm10, %v1710_v14, %v8384_v17  ;;  %v8393_v38 = vpop.permute.xlu1 %8392  ;;  %8333 = vmatprep.subr.msk.bf16.mxu0 %vm13907_vm14, %v9571_v31  ;;  %vm13908_vm9 = vmmov %vm13907_vm14  ;;  %v8403_v51 = vpop.permute.xlu0 %8402  ;;  %vm13909_vm10 = vcmask 64512   ;;  %v8390_v14 = vunpack.i.h.bf16 %v8388_v43  ;;  %v492_v26 = vand.u32 15, %v10311_v22 }
  0xa4   : > { %v2784_v44 = vsel %vm13908_vm9, %v9571_v31, 0  ;;  %v8395_v45 = vunpack.i.h.bf16 %v8393_v38  ;;  %v8394_v50 = vunpack.i.l.bf16 %v8393_v38  ;;  %v1425_v17 = vsel %vm13909_vm10, %v977_v36, %v8369_v53  ;;  %vm13910_vm1 = vmmov %vm13909_vm10 }
  0xa5   : > { %v8405_v55 = vunpack.i.h.bf16 %v8403_v51  ;;  %v8404_v35 = vunpack.i.l.bf16 %v8403_v51  ;;  %8687 = vrot.lane.b32.xlu1 %v8686_v39, %s9594_s28  ;;  %vm13911_vm14 = vmmov %vm13910_vm1  ;;  %v1772_v4 = vpack.c.bf16 %v1743_v28, %v1742_v25  ;;  %v8400_v38 = vunpack.i.h.bf16 %v10293_v37  ;;  %v10352_v28 = vld [vmem:[#allocation2 + $0x4f] sm:$0xff] }
  0xa6   : > { %v1424_v58 = vsel %vm13910_vm1, %v10327_v7, %v8395_v45  ;;  %v1708_v31 = vsel %vm13911_vm14, %v1504_v3, %v8394_v50  ;;  %8692 = vrot.lane.b32.xlu0 %v8691_v61, %s9594_s28  ;;  %7885 = vmatpush3.bf16.msra.mxu0 %v2784_v44  ;;  %v8399_v36 = vunpack.i.l.bf16 %v10293_v37  ;;  %vm13912_vm9 = vcmask 130048   ;;  %v10349_v61 = vld [vmem:[#allocation2 + $0x57] sm:$0xff] }
  0xa7   : > { %v1741_v53 = vsel %vm13912_vm9, %v1424_v58, %v8405_v55  ;;  %vm13913_vm10 = vmmov %vm13912_vm9  ;;  %v8408_v39 = vpop.permute.xlu1 %8407  ;;  %v8413_v3 = vpop.permute.xlu0 %8412  ;;  %v1423_v25 = vsel %vm13911_vm14, %v975_v29, %v8394_v50  ;;  %v1510_v29 = vsel %vm10302_vm5, %v10349_v61, 0.0 }
  0xa8   : > { %v1740_v43 = vsel %vm13913_vm10, %v1708_v31, %v8404_v35  ;;  %vm13914_vm12 = vmmov %vm13912_vm9  ;;  %v8410_v45 = vunpack.i.h.bf16 %v8408_v39  ;;  %v8409_v6 = vunpack.i.l.bf16 %v8408_v39  ;;  %v8415_v37 = vunpack.i.h.bf16 %v8413_v3 }
  0xa9   : > { %v1458_v51 = vsel %vm13914_vm12, %v1425_v17, %v8389_v34  ;;  %v1771_v11 = vpack.c.bf16 %v1741_v53, %v1740_v43  ;;  %vm13915_vm1 = vmmov %vm13912_vm9  ;;  %v8414_v44 = vunpack.i.l.bf16 %v8413_v3  ;;  %8697 = vrot.lane.b32.xlu1 %v10096_v5, %s9593_s27  ;;  %vm13918_vm10 = vcmask 195584   ;;  %v10385_v17 = vld [vmem:[#allocation2 + $0x67] sm:$0xff] }
  0xaa   : > { %v1459_v22 = vsel %vm13915_vm1, %v1426_v20, %v8390_v14  ;;  %vm13916_vm9 = vmmov %vm13915_vm1  ;;  %8702 = vrot.lane.b32.xlu0 %v8701_v42, %s9594_s28  ;;  %v506_v34 = vand.u32 15, %v10314_v24  ;;  %v8711_v20 = vpack.i.bf16 %v2383_v12, %v10115_v27  ;;  %v1428_v24 = vsel %vm13911_vm14, %v10352_v28, %v8400_v38  ;;  %v10397_v38 = vld [vmem:[#allocation2 + $0x5f] sm:$0xff] }
  0xab   : > { %v1456_v35 = vsel %vm13916_vm9, %v1423_v25, %v8409_v6  ;;  %vm13917_vm12 = vmmov %vm13915_vm1  ;;  %7815 = vmatmul.mubr.msk.bf16.vlgmr.msra.gmra.mrb[0].mxu1 %vm13918_vm10, %v1771_v11  ;;  %v8418_v50 = vpop.permute.xlu1 %8417  ;;  %v2385_v6 = vsel %vm10104_vm13, %v10133_v49, 0.0  ;;  %v1160_v11 = vsel %vm10129_vm2, %v10108_v9, 0.0  ;;  %v13920_v42 = vsel %vm10236_vm7, %v10266_v59, 0.0  ;;  %v10387_v14 = vpop.permute.xlu0 %8422 }
  0xac   : > { %v1457_v55 = vsel %vm13917_vm12, %v1424_v58, %v8410_v45  ;;  %vm13919_vm1 = vmmov %vm13918_vm10  ;;  %8136 = vmatpush3.bf16.msra.mxu1 %v9790_v32  ;;  %vm10381_vm12 = vcmp.ne.s32.totalorder %v492_v26, 0  ;;  %v1487_v9 = vpack.c.bf16 %v1459_v22, %v1458_v51  ;;  %vm13925_vm10 = vcmask 1043456  }
  0xad   : > { %7818 = vmatprep.mubr.msk.bf16.mxu1 %vm13919_vm1, %v1772_v4  ;;  %v1486_v5 = vpack.c.bf16 %v1457_v55, %v1456_v35  ;;  %vm13921_vm9 = vmmov %vm13911_vm14  ;;  %v13922_v4 = vmov 0  ;;  %8332 = vmatprep.subr.msk.bf16.mxu1 %vm13925_vm10, %v9942_v63  ;;  %vm13926_vm1 = vcmask 130048   ;;  %v8420_v31 = vunpack.i.h.bf16 %v8418_v50 }
  0xae   : > { %v1712_v12 = vsel %vm13921_vm9, %v13920_v42, %v8399_v36  ;;  %v13923_v4 = vsel %vm10381_vm12, 4294967295, %v13922_v4  ;;  %vm13927_vm14 = vmmov %vm13926_vm1  ;;  %8707 = vrot.lane.b32.xlu1 %v10136_v52, %s9593_s27  ;;  %vm13928_vm9 = vcmask 195584   ;;  %v8716_v26 = vpack.i.bf16 %v1158_v56, %v10089_v33  ;;  %8712 = vrot.lane.b32.xlu0 %v8711_v20, %s9594_s28 }
  0xaf   : > { %13924 = vst [vmem:[#allocation24_spill] sm:$0xff] %v13923_v4  ;;  %v1744_v32 = vsel %vm13926_vm1, %v1712_v12, %v8414_v44  ;;  %v1745_v58 = vsel %vm13927_vm14, %v1428_v24, %v8415_v37  ;;  %7854 = vmatprep.mubr.msk.bf16.mxu0 %vm13928_vm9, %v1486_v5  ;;  %v8419_v53 = vunpack.i.l.bf16 %v8418_v50  ;;  %vm10399_vm13 = vcmp.ne.s32.totalorder %v506_v34, 0  ;;  %vm13932_vm10 = vmmov %vm13928_vm9  ;;  %v8428_v56 = vpop.permute.xlu1 %8427  ;;  %v8433_v37 = vpop.permute.xlu0 %8432 }
  0xb0   : > { %v13929_v43 = vmov 0  ;;  %7855 = vmatmul.mubr.msk.bf16.gmra.mrb[4].mxu0 %vm13932_vm10, %v1487_v9  ;;  %v8721_v63 = vpack.i.bf16 %v2385_v6, %v10139_v41  ;;  %v8731_v39 = vpack.i.bf16 %v1160_v11, %v10115_v27  ;;  %v981_v52 = vsel %vm10381_vm12, %v10349_v61, 0.0  ;;  %8137 = vmatpush3.bf16.msra.mxu1 %v9964_v21 }
  0xb1   : > { %v13930_v43 = vsel %vm10399_vm13, 4294967295, %v13929_v43  ;;  %v1512_v33 = vsel %vm10381_vm12, %v10385_v17, 0.0  ;;  %v400_v51 = vadd.s32 112, %v9641_v2  ;;  %v2387_v45 = vsel %vm10129_vm2, %v10158_v10, 0.0  ;;  %v10428_v10 = vld [vmem:[#allocation2 + $0x6f] sm:$0xff] }
  0xb2   : > { %13931 = vst [vmem:[#allocation25_spill] sm:$0xff] %v13930_v43  ;;  %v13933_v27 = vsel %vm10302_vm5, %v10266_v59, 0.0  ;;  %vm13934_vm1 = vcmask 64512   ;;  %v8430_v22 = vunpack.i.h.bf16 %v8428_v56  ;;  %v8429_v25 = vunpack.i.l.bf16 %v8428_v56  ;;  %8717 = vrot.lane.b32.xlu1 %v8716_v26, %s9594_s28  ;;  %8722 = vrot.lane.b32.xlu0 %v8721_v63, %s9594_s28  ;;  %v2357_v26 = vld [vmem:[#allocation2 + $0x121] sm:$0xff] }
  0xb3   : > { %v1427_v3 = vsel %vm13934_vm1, %v13933_v27, %v8399_v36  ;;  %v1773_v44 = vpack.c.bf16 %v1745_v58, %v1744_v32  ;;  %vm13935_vm14 = vmmov %vm13934_vm1  ;;  %v8425_v55 = vunpack.i.h.bf16 %v10387_v14  ;;  %v8435_v34 = vunpack.i.h.bf16 %v8433_v37  ;;  %v8438_v42 = vpop.permute.xlu1 %8437  ;;  %v8443_v58 = vpop.permute.xlu0 %8442 }
  0xb4   : > { %v1430_v35 = vsel %vm13935_vm14, %v10397_v38, %v8420_v31  ;;  %v8434_v20 = vunpack.i.l.bf16 %v8433_v37  ;;  %vm13936_vm9 = vmmov %vm13934_vm1  ;;  %v8424_v50 = vunpack.i.l.bf16 %v10387_v14  ;;  %vm13937_vm10 = vcmask 130048   ;;  %v10456_v37 = vld [vmem:[#allocation2 + $0x77] sm:$0xff] }
  0xb5   : > { %v1714_v21 = vsel %vm13936_vm9, %v1510_v29, %v8419_v53  ;;  %v1460_v36 = vsel %vm13937_vm10, %v1427_v3, %v8429_v25  ;;  %vm13938_vm1 = vmmov %vm13937_vm10  ;;  %vm13939_vm2 = vcmask 195584   ;;  %v520_v9 = vand.u32 15, %v400_v51  ;;  %v2356_v25 = vld [vmem:[#allocation2 + $0x119] sm:$0xff] }
  0xb6   : > { %v1461_v5 = vsel %vm13938_vm1, %v1428_v24, %v8430_v22  ;;  %7819 = vmatmul.mubr.msk.bf16.gmra.mrb[4].mxu1 %vm13939_vm2, %v1773_v44  ;;  %vm13940_vm14 = vmmov %vm13938_vm1  ;;  %v8440_v29 = vunpack.i.h.bf16 %v8438_v42  ;;  %v8439_v32 = vunpack.i.l.bf16 %v8438_v42  ;;  %v8741_v14 = vpack.i.bf16 %v2387_v45, %v10164_v54  ;;  %8727 = vrot.lane.b32.xlu1 %v10146_v15, %s9593_s27  ;;  %v10485_v42 = vld [vmem:[#allocation2 + $0x87] sm:$0xff] }
  0xb7   : > { %v1747_v6 = vsel %vm13940_vm14, %v1430_v35, %v8435_v34  ;;  %vm13941_vm4 = vmmov %vm13938_vm1  ;;  %v1488_v12 = vpack.c.bf16 %v1461_v5, %v1460_v36  ;;  %v1429_v24 = vsel %vm13936_vm9, %v981_v52, %v8419_v53  ;;  %v8445_v56 = vunpack.i.h.bf16 %v8443_v58  ;;  %8732 = vrot.lane.b32.xlu0 %v8731_v39, %s9594_s28  ;;  %v8448_v52 = vpop.permute.xlu1 %8447  ;;  %v10458_v44 = vpop.permute.xlu0 %8452  ;;  %v10475_v5 = vld [vmem:[#allocation2 + $0x7f] sm:$0xff] }
  0xb8   : > { %v1746_v11 = vsel %vm13941_vm4, %v1714_v21, %v8434_v20  ;;  %vm13942_vm10 = vmmov %vm13936_vm9  ;;  %v8444_v27 = vunpack.i.l.bf16 %v8443_v58  ;;  %v1462_v3 = vsel %vm13938_vm1, %v1429_v24, %v8439_v32  ;;  %v1162_v54 = vsel %vm10154_vm0, %v10133_v49, 0.0 }
  0xb9   : > { %v1774_v31 = vpack.c.bf16 %v1747_v6, %v1746_v11  ;;  %v1432_v63 = vsel %vm13942_vm10, %v10428_v10, %v8425_v55  ;;  %vm13943_vm4 = vmmov %vm13939_vm2  ;;  %v13949_v49 = vmov 0  ;;  %v13952_v55 = vpack.i.bf16 %v10228_v1, %v10226_v13 }
  0xba   : > { %7858 = vmatprep.mubr.msk.bf16.mxu0 %vm13943_vm4, %v1488_v12  ;;  %vm13944_vm2 = vmmov %vm13936_vm9  ;;  %v8746_v34 = vpack.i.bf16 %v1162_v54, %v10139_v41  ;;  %v8450_v20 = vunpack.i.h.bf16 %v8448_v52  ;;  %v8449_v21 = vunpack.i.l.bf16 %v8448_v52  ;;  %v1514_v6 = vsel %vm10399_vm13, %v10456_v37, 0.0 }
  0xbb   : > { %v1716_v51 = vsel %vm13944_vm2, %v1512_v33, %v8424_v50  ;;  %vm13945_vm14 = vmmov %vm13938_vm1  ;;  %v2389_v33 = vsel %vm10154_vm0, %v2357_v26, 0.0  ;;  %8737 = vrot.lane.b32.xlu1 %v13952_v55, %s9593_s27  ;;  %8742 = vrot.lane.b32.xlu0 %v8741_v14, %s9594_s28  ;;  %v402_v13 = vadd.s32 128, %v9641_v2  ;;  %v8458_v1 = vpop.permute.xlu1 %8457  ;;  %v8455_v32 = vunpack.i.h.bf16 %v10458_v44 }
  0xbc   : > { %v1463_v22 = vsel %vm13945_vm14, %v1430_v35, %v8440_v29  ;;  %vm13946_vm3 = vmmov %vm13943_vm4  ;;  %v983_v35 = vsel %vm10399_vm13, %v10385_v17, 0.0  ;;  %v8751_v36 = vpack.i.bf16 %v2389_v33, %v2356_v25  ;;  %v8460_v12 = vunpack.i.h.bf16 %v8458_v1  ;;  %v8463_v29 = vpop.permute.xlu0 %8462 }
  0xbd   : > { %7822 = vmatprep.mubr.msk.bf16.mxu1 %vm13946_vm3, %v1774_v31  ;;  %vm13947_vm9 = vmmov %vm13938_vm1  ;;  %v1489_v45 = vpack.c.bf16 %v1463_v22, %v1462_v3  ;;  %vm10463_vm3 = vcmp.ne.s32.totalorder %v520_v9, 0  ;;  %v8459_v9 = vunpack.i.l.bf16 %v8458_v1  ;;  %v13591_v58 = vunpack.i.l.bf16 %v10458_v44 }
  0xbe   : > { %v1748_v53 = vsel %vm13947_vm9, %v1716_v51, %v8444_v27  ;;  %vm13948_vm10 = vmmov %vm13938_vm1  ;;  %v13950_v49 = vsel %vm10463_vm3, 4294967295, %v13949_v49  ;;  %vm13954_vm1 = vcmask 64512   ;;  %v985_v41 = vsel %vm10463_vm3, %v10456_v37, 0.0  ;;  %v10496_v27 = vld [vmem:[#allocation2 + $0x8f] sm:$0xff] }
  0xbf   : > { %v1749_v15 = vsel %vm13948_vm10, %v1432_v63, %v8445_v56  ;;  %13951 = vst [vmem:[#allocation26_spill] sm:$0xff] %v13950_v49  ;;  %7859 = vmatmul.mubr.msk.bf16.gmra.mrb[8].mxu0 %vm13943_vm4, %v1489_v45  ;;  %vm13953_vm2 = vmmov %vm13943_vm4  ;;  %v1431_v11 = vsel %vm13954_vm1, %v983_v35, %v8424_v50  ;;  %v8465_v31 = vunpack.i.h.bf16 %v8463_v29  ;;  %v8464_v14 = vunpack.i.l.bf16 %v8463_v29  ;;  %8747 = vrot.lane.b32.xlu1 %v8746_v34, %s9594_s28  ;;  %v8468_v54 = vpop.permute.xlu1 %8467 }
  0xc0   : > { %v1775_v39 = vpack.c.bf16 %v1749_v15, %v1748_v53  ;;  %vm13955_vm14 = vmmov %vm13954_vm1  ;;  %v1464_v24 = vsel %vm13948_vm10, %v1431_v11, %v8459_v9  ;;  %8752 = vrot.lane.b32.xlu0 %v8751_v36, %s9594_s28  ;;  %v1516_v51 = vsel %vm10463_vm3, %v10485_v42, 0.0  ;;  %v8470_v15 = vunpack.i.h.bf16 %v8468_v54  ;;  %v8473_v45 = vpop.permute.xlu0 %8472 }
  0xc1   : > { %v1434_v50 = vsel %vm13955_vm14, %v10475_v5, %v8450_v20  ;;  %vm13956_vm9 = vmmov %vm13954_vm1  ;;  %v8469_v52 = vunpack.i.l.bf16 %v8468_v54  ;;  %v534_v33 = vand.u32 15, %v402_v13  ;;  %v8474_v35 = vunpack.i.l.bf16 %v8473_v45 }
  0xc2   : > { %7823 = vmatmul.mubr.msk.bf16.gmra.mrb[8].mxu1 %vm13953_vm2, %v1775_v39  ;;  %v1718_v26 = vsel %vm13956_vm9, %v1514_v6, %v8449_v21  ;;  %vm13957_vm4 = vmmov %vm13948_vm10  ;;  %v8475_v39 = vunpack.i.h.bf16 %v8473_v45  ;;  %v404_v13 = vadd.s32 144, %v9641_v2  ;;  %v13969_v29 = vmov 0 }
  0xc3   : > { %v1465_v56 = vsel %vm13957_vm4, %v1432_v63, %v8460_v12  ;;  %vm13958_vm2 = vmmov %vm13957_vm4  ;;  %v10519_v1 = vpop.permute.xlu1 %8477  ;;  %v13973_v45 = vmov 0 }
  0xc4   : > { %v1751_v3 = vsel %vm13958_vm2, %v1434_v50, %v8465_v31  ;;  %vm13959_vm1 = vmmov %vm13958_vm2  ;;  %v1490_v53 = vpack.c.bf16 %v1465_v56, %v1464_v24  ;;  %v8483_v12 = vpop.permute.xlu0 %8482  ;;  %v13590_v31 = vunpack.i.l.bf16 %v10519_v1 }
  0xc5   : > { %v1750_v22 = vsel %vm13959_vm1, %v1718_v26, %v8464_v14  ;;  %vm13960_vm14 = vmmov %vm13956_vm9  ;;  %vm13961_vm9 = vcmask 195584   ;;  %v1467_v36 = vsel %vm13959_vm1, %v1434_v50, %v8470_v15  ;;  %v548_v14 = vand.u32 15, %v404_v13  ;;  %v10531_v50 = vld [vmem:[#allocation2 + $0x9f] sm:$0xff] }
  0xc6   : > { %v1776_v25 = vpack.c.bf16 %v1751_v3, %v1750_v22  ;;  %v1433_v63 = vsel %vm13960_vm14, %v985_v41, %v8449_v21  ;;  %7862 = vmatprep.mubr.msk.bf16.mxu0 %vm13961_vm9, %v1490_v53  ;;  %vm13962_vm10 = vmmov %vm13960_vm14  ;;  %v10521_v41 = vld [vmem:[#allocation2 + $0x97] sm:$0xff]  ;;  %v8485_v15 = vunpack.i.h.bf16 %v8483_v12 }
  0xc7   : > { %v10507_v55 = vsel %vm13962_vm10, %v10496_v27, %v8455_v32  ;;  %vm13963_vm4 = vmmov %vm13962_vm10  ;;  %vm10524_vm10 = vcmp.ne.s32.totalorder %v534_v33, 0  ;;  %v8480_v32 = vunpack.i.h.bf16 %v10519_v1  ;;  %v10536_v24 = vpop.permute.xlu1 %8487 }
  0xc8   : > { %v1720_v34 = vsel %vm13963_vm4, %v1516_v51, %v13591_v58  ;;  %vm13964_vm2 = vmmov %vm13959_vm1  ;;  %v13970_v29 = vsel %vm10524_vm10, 4294967295, %v13969_v29  ;;  %v1518_v26 = vsel %vm10524_vm10, %v10521_v41, 0.0  ;;  %v8493_v56 = vpop.permute.xlu0 %8492  ;;  %v10538_v51 = vld [vmem:[#allocation2 + $0xa7] sm:$0xff] }
  0xc9   : > { %v1466_v20 = vsel %vm13964_vm2, %v1433_v63, %v8469_v52  ;;  %vm13965_vm0 = vmmov %vm13961_vm9  ;;  %13971 = vst [vmem:[#allocation27_spill] sm:$0xff] %v13970_v29  ;;  %v8495_v3 = vunpack.i.h.bf16 %v8493_v56  ;;  %v8494_v22 = vunpack.i.l.bf16 %v8493_v56  ;;  %v1722_v53 = vsel %vm13963_vm4, %v1518_v26, %v13590_v31 }
  0xca   : > { %7826 = vmatprep.mubr.msk.bf16.mxu1 %vm13965_vm0, %v1776_v25  ;;  %vm13966_vm14 = vmmov %vm13959_vm1  ;;  %v1491_v11 = vpack.c.bf16 %v1467_v36, %v1466_v20  ;;  %v8484_v52 = vunpack.i.l.bf16 %v8483_v12  ;;  %vm10547_vm2 = vcmp.ne.s32.totalorder %v548_v14, 0  ;;  %v2262_v25 = vsel %vm10189_vm15, %v10268_v16, 0.0 }
  0xcb   : > { %v1752_v21 = vsel %vm13966_vm14, %v1720_v34, %v8474_v35  ;;  %vm13967_vm11 = vmmov %vm13959_vm1  ;;  %v13974_v45 = vsel %vm10547_vm2, 4294967295, %v13973_v45  ;;  %v406_v35 = vadd.s32 160, %v9641_v2  ;;  %v1520_v34 = vsel %vm10547_vm2, %v10538_v51, 0.0 }
  0xcc   : > { %v1753_v6 = vsel %vm13967_vm11, %v10507_v55, %v8475_v39  ;;  %vm13968_vm9 = vmmov %vm13965_vm0  ;;  %13975 = vst [vmem:[#allocation28_spill] sm:$0xff] %v13974_v45  ;;  %v8498_v39 = vpop.permute.xlu1 %8497  ;;  %v8503_v20 = vpop.permute.xlu0 %8502  ;;  %v2264_v26 = vsel %vm10206_vm6, %v10240_v8, 0.0  ;;  %vm13985_vm6 = vcmask 195584  }
  0xcd   : > { %v1777_v9 = vpack.c.bf16 %v1753_v6, %v1752_v21  ;;  %7863 = vmatmul.mubr.msk.bf16.gmra.mrb[12].mxu0 %vm13968_vm9, %v1491_v11  ;;  %vm13972_vm11 = vmmov %vm13963_vm4  ;;  %v8490_v21 = vunpack.i.h.bf16 %v10536_v24  ;;  %v13589_v6 = vunpack.i.l.bf16 %v10536_v24  ;;  %v8505_v13 = vunpack.i.h.bf16 %v8503_v20 }
  0xce   : > { %v10542_v54 = vsel %vm13972_vm11, %v10531_v50, %v8480_v32  ;;  %vm13976_vm14 = vmmov %vm13959_vm1  ;;  %v8504_v16 = vunpack.i.l.bf16 %v8503_v20  ;;  %v8500_v32 = vunpack.i.h.bf16 %v8498_v39  ;;  %v8499_v14 = vunpack.i.l.bf16 %v8498_v39 }
  0xcf   : > { %7827 = vmatmul.mubr.msk.bf16.gmra.mrb[12].mxu1 %vm13965_vm0, %v1777_v9  ;;  %v1755_v63 = vsel %vm13959_vm1, %v10542_v54, %v8495_v3  ;;  %v1754_v33 = vsel %vm13976_vm14, %v1722_v53, %v8494_v22  ;;  %vm13977_vm9 = vmmov %vm13963_vm4  ;;  %v10566_v9 = vld [vmem:[#allocation2 + $0xaf] sm:$0xff]  ;;  %vm13979_vm11 = vcmask 195584   ;;  %v562_v53 = vand.u32 15, %v406_v35 }
  0xd0   : > { %v1778_v36 = vpack.c.bf16 %v1755_v63, %v1754_v33  ;;  %v2647_v11 = vsel %vm13977_vm9, %v10327_v7, %v8485_v15  ;;  %vm13978_vm0 = vmmov %vm13963_vm4  ;;  %v8508_v22 = vpop.permute.xlu1 %8507  ;;  %v8513_v15 = vpop.permute.xlu0 %8512 }
  0xd1   : > { %v2646_v12 = vsel %vm13978_vm0, %v2262_v25, %v8484_v52  ;;  %vm13980_vm4 = vmmov %vm13959_vm1  ;;  %v2679_v3 = vsel %vm13959_vm1, %v2647_v11, %v8505_v13  ;;  %v8510_v63 = vunpack.i.h.bf16 %v8508_v22  ;;  %v8509_v7 = vunpack.i.l.bf16 %v8508_v22 }
  0xd2   : > { %7830 = vmatprep.mubr.msk.bf16.mxu1 %vm13979_vm11, %v1778_v36  ;;  %v2678_v56 = vsel %vm13980_vm4, %v2646_v12, %v8504_v16  ;;  %vm13981_vm14 = vmmov %vm13978_vm0  ;;  %v8515_v39 = vunpack.i.h.bf16 %v8513_v15  ;;  %v8514_v8 = vunpack.i.l.bf16 %v8513_v15  ;;  %v2649_v20 = vsel %vm13978_vm0, %v10282_v46, %v8500_v32  ;;  %v10593_v46 = vld [vmem:[#allocation2 + $0xb7] sm:$0xff] }
  0xd3   : > { %v2710_v52 = vpack.c.bf16 %v2679_v3, %v2678_v56  ;;  %v10576_v25 = vsel %vm13981_vm14, %v10566_v9, %v8490_v21  ;;  %vm13982_vm9 = vmmov %vm13978_vm0 }
  0xd4   : > { %v1724_v33 = vsel %vm13982_vm9, %v1520_v34, %v13589_v6  ;;  %vm13983_vm11 = vmmov %vm13978_vm0  ;;  %v1757_v13 = vsel %vm13959_vm1, %v10576_v25, %v8510_v63  ;;  %v408_v34 = vadd.s32 176, %v9641_v2  ;;  %v10591_v11 = vpop.permute.xlu1 %8517  ;;  %v8523_v32 = vpop.permute.xlu0 %8522  ;;  %vm10596_vm0 = vcmp.ne.s32.totalorder %v562_v53, 0  ;;  %v10603_v63 = vld [vmem:[#allocation2 + $0xbf] sm:$0xff]  ;;  %v10610_v53 = vld [vmem:[#allocation2 + $0xc7] sm:$0xff] }
  0xd5   : > { %v2648_v36 = vsel %vm13983_vm11, %v2264_v26, %v8499_v14  ;;  %vm13984_vm4 = vmmov %vm13959_vm1  ;;  %7886 = vmatprep.mubr.msk.bf16.mxu0 %vm13985_vm6, %v2710_v52  ;;  %v13989_v14 = vmov 0  ;;  %v8520_v26 = vunpack.i.h.bf16 %v10591_v11  ;;  %v13588_v3 = vunpack.i.l.bf16 %v10591_v11 }
  0xd6   : > { %v1756_v35 = vsel %vm13984_vm4, %v1724_v33, %v8509_v7  ;;  %vm13986_vm14 = vmmov %vm13959_vm1  ;;  %v13990_v14 = vsel %vm10596_vm0, 4294967295, %v13989_v14  ;;  %v576_v22 = vand.u32 15, %v408_v34  ;;  %v1522_v7 = vsel %vm10596_vm0, %v10593_v46, 0.0 }
  0xd7   : > { %v2681_v21 = vsel %vm13986_vm14, %v2649_v20, %v8515_v39  ;;  %vm13987_vm15 = vmmov %vm13959_vm1  ;;  %v1779_v12 = vpack.c.bf16 %v1757_v13, %v1756_v35  ;;  %13991 = vst [vmem:[#allocation29_spill] sm:$0xff] %v13990_v14  ;;  %v8524_v35 = vunpack.i.l.bf16 %v8523_v32  ;;  %v13995_v13 = vmov 0 }
  0xd8   : > { %v2680_v16 = vsel %vm13987_vm15, %v2648_v36, %v8514_v8  ;;  %vm13988_vm9 = vmmov %vm13985_vm6  ;;  %v10608_v15 = vpop.permute.xlu1 %8527  ;;  %v8533_v52 = vpop.permute.xlu0 %8532  ;;  %v8525_v36 = vunpack.i.h.bf16 %v8523_v32  ;;  %vm10619_vm4 = vcmp.ne.s32.totalorder %v576_v22, 0 }
  0xd9   : > { %v2711_v56 = vpack.c.bf16 %v2681_v21, %v2680_v16  ;;  %7831 = vmatmul.mubr.msk.bf16.gmra.mrb[16].mxu1 %vm13988_vm9, %v1779_v12  ;;  %vm13992_vm15 = vmmov %vm13985_vm6  ;;  %v8535_v33 = vunpack.i.h.bf16 %v8533_v52  ;;  %v8534_v39 = vunpack.i.l.bf16 %v8533_v52  ;;  %v13996_v13 = vsel %vm10619_vm4, 4294967295, %v13995_v13 }
  0xda   : > { %vm13993_vm6 = vmmov %vm13983_vm11  ;;  %13997 = vst [vmem:[#allocation30_spill] sm:$0xff] %v13996_v13  ;;  %v2266_v21 = vsel %vm10232_vm8, %v10266_v59, 0.0  ;;  %v1524_v32 = vsel %vm10619_vm4, %v10610_v53, 0.0 }
  0xdb   : > { %7887 = vmatmul.mubr.msk.bf16.vlgmr.msra.gmra.mrb[0].mxu0 %vm13992_vm15, %v2711_v56  ;;  %v10614_v8 = vsel %vm13993_vm6, %v10603_v63, %v8520_v26  ;;  %vm13994_vm11 = vmmov %vm13993_vm6  ;;  %v410_v56 = vadd.s32 192, %v9641_v2 }
  0xdc   : > { %v1726_v20 = vsel %vm13994_vm11, %v1522_v7, %v13588_v3  ;;  %v1759_v16 = vsel %vm13959_vm1, %v10614_v8, %v8535_v33  ;;  %vm13998_vm14 = vmmov %vm13959_vm1  ;;  %v8538_v12 = vpop.permute.xlu1 %8537  ;;  %v8543_v26 = vpop.permute.xlu0 %8542  ;;  %v8530_v7 = vunpack.i.h.bf16 %v10608_v15 }
  0xdd   : > { %v1758_v34 = vsel %vm13998_vm14, %v1726_v20, %v8534_v39  ;;  %v8545_v3 = vunpack.i.h.bf16 %v8543_v26  ;;  %v8544_v59 = vunpack.i.l.bf16 %v8543_v26  ;;  %vm13999_vm9 = vmmov %vm13993_vm6  ;;  %v10638_v20 = vld [vmem:[#allocation2 + $0xcf] sm:$0xff]  ;;  %v8540_v6 = vunpack.i.h.bf16 %v8538_v12 }
  0xde   : > { %v1780_v22 = vpack.c.bf16 %v1759_v16, %v1758_v34  ;;  %v2651_v33 = vsel %vm13999_vm9, %v10352_v28, %v8525_v36  ;;  %vm14000_vm15 = vmmov %vm13993_vm6  ;;  %v8539_v31 = vunpack.i.l.bf16 %v8538_v12  ;;  %vm14001_vm6 = vcmask 195584  }
  0xdf   : > { %v2650_v39 = vsel %vm14000_vm15, %v2266_v21, %v8524_v35  ;;  %v2268_v16 = vsel %vm10236_vm7, %v10349_v61, 0.0  ;;  %vm14002_vm11 = vmmov %vm13959_vm1  ;;  %v2683_v58 = vsel %vm13959_vm1, %v2651_v33, %v8545_v3  ;;  %v590_v52 = vand.u32 15, %v410_v56 }
  0xe0   : > { %7834 = vmatprep.mubr.msk.bf16.mxu1 %vm14001_vm6, %v1780_v22  ;;  %v2682_v34 = vsel %vm14002_vm11, %v2650_v39, %v8544_v59  ;;  %v8548_v26 = vpop.permute.xlu1 %8547  ;;  %v8553_v36 = vpop.permute.xlu0 %8552  ;;  %vm14003_vm14 = vmmov %vm13999_vm9  ;;  %v14004_v12 = vunpack.i.l.bf16 %v10608_v15  ;;  %vm14008_vm7 = vcmask 195584  }
  0xe1   : > { %v8550_v23 = vunpack.i.h.bf16 %v8548_v26  ;;  %v8549_v28 = vunpack.i.l.bf16 %v8548_v26  ;;  %v2712_v35 = vpack.c.bf16 %v2683_v58, %v2682_v34  ;;  %v10648_v21 = vsel %vm14003_vm14, %v10638_v20, %v8530_v7  ;;  %vm14005_vm15 = vmmov %vm13999_vm9  ;;  %v10665_v26 = vld [vmem:[#allocation2 + $0xd7] sm:$0xff] }
  0xe2   : > { %v1728_v22 = vsel %vm13999_vm9, %v1524_v32, %v14004_v12  ;;  %v8555_v19 = vunpack.i.h.bf16 %v8553_v36  ;;  %v8554_v61 = vunpack.i.l.bf16 %v8553_v36  ;;  %v2653_v59 = vsel %vm14005_vm15, %v10397_v38, %v8540_v6  ;;  %vm14006_vm6 = vmmov %vm13999_vm9 }
  0xe3   : > { %v2652_v3 = vsel %vm14006_vm6, %v2268_v16, %v8539_v31  ;;  %vm14007_vm11 = vmmov %vm13959_vm1  ;;  %v1761_v58 = vsel %vm13959_vm1, %v10648_v21, %v8550_v23  ;;  %7890 = vmatprep.mubr.msk.bf16.mxu0 %vm14008_vm7, %v2712_v35  ;;  %v412_v32 = vadd.s32 208, %v9641_v2  ;;  %vm10668_vm15 = vcmp.ne.s32.totalorder %v590_v52, 0  ;;  %v10682_v52 = vld [vmem:[#allocation2 + $0xe7] sm:$0xff] }
  0xe4   : > { %v1760_v56 = vsel %vm14007_vm11, %v1728_v22, %v8549_v28  ;;  %vm14009_vm14 = vmmov %vm13959_vm1  ;;  %v10663_v39 = vpop.permute.xlu1 %8557  ;;  %v8563_v38 = vpop.permute.xlu0 %8562  ;;  %v14012_v6 = vmov 0  ;;  %v10675_v28 = vld [vmem:[#allocation2 + $0xdf] sm:$0xff]  ;;  %v1526_v36 = vsel %vm10668_vm15, %v10665_v26, 0.0 }
  0xe5   : > { %v2685_v7 = vsel %vm14009_vm14, %v2653_v59, %v8555_v19  ;;  %vm14010_vm8 = vmmov %vm13959_vm1  ;;  %v1781_v34 = vpack.c.bf16 %v1761_v58, %v1760_v56  ;;  %v14013_v6 = vsel %vm10668_vm15, 4294967295, %v14012_v6  ;;  %v8560_v23 = vunpack.i.h.bf16 %v10663_v39 }
  0xe6   : > { %v2684_v33 = vsel %vm14010_vm8, %v2652_v3, %v8554_v61  ;;  %vm14011_vm9 = vmmov %vm14008_vm7  ;;  %14014 = vst [vmem:[#allocation31_spill] sm:$0xff] %v14013_v6  ;;  %v13600_v19 = vunpack.i.l.bf16 %v10663_v39  ;;  %v604_v16 = vand.u32 15, %v412_v32  ;;  %v8565_v56 = vunpack.i.h.bf16 %v8563_v38 }
  0xe7   : > { %v2713_v31 = vpack.c.bf16 %v2685_v7, %v2684_v33  ;;  %7835 = vmatmul.mubr.msk.bf16.gmra.mrb[20].mxu1 %vm14011_vm9, %v1781_v34  ;;  %vm14015_vm8 = vmmov %vm14008_vm7  ;;  %v8564_v58 = vunpack.i.l.bf16 %v8563_v38  ;;  %v14017_v7 = vmov 0  ;;  %v2270_v33 = vsel %vm10302_vm5, %v10385_v17, 0.0 }
  0xe8   : > { %v10680_v35 = vpop.permute.xlu1 %8567  ;;  %v8573_v12 = vpop.permute.xlu0 %8572  ;;  %vm14016_vm7 = vmmov %vm14006_vm6  ;;  %v1730_v3 = vsel %vm14006_vm6, %v1526_v36, %v13600_v19  ;;  %vm10691_vm11 = vcmp.ne.s32.totalorder %v604_v16, 0 }
  0xe9   : > { %7891 = vmatmul.mubr.msk.bf16.gmra.mrb[4].mxu0 %vm14015_vm8, %v2713_v31  ;;  %v8575_v22 = vunpack.i.h.bf16 %v8573_v12  ;;  %v8574_v61 = vunpack.i.l.bf16 %v8573_v12  ;;  %v10686_v59 = vsel %vm14016_vm7, %v10675_v28, %v8560_v23  ;;  %v14018_v7 = vsel %vm10691_vm11, 4294967295, %v14017_v7  ;;  %vm14020_vm14 = vmmov %vm13959_vm1 }
  0xea   : > { %14019 = vst [vmem:[#allocation32_spill] sm:$0xff] %v14018_v7  ;;  %v414_v23 = vadd.s32 224, %v9641_v2  ;;  %v1528_v38 = vsel %vm10691_vm11, %v10682_v52, 0.0  ;;  %v8570_v12 = vunpack.i.h.bf16 %v10680_v35  ;;  %vm14021_vm9 = vmmov %vm14006_vm6  ;;  %vm14023_vm7 = vcmask 195584  }
  0xeb   : > { %v1763_v32 = vsel %vm13959_vm1, %v10686_v59, %v8575_v22  ;;  %v1762_v34 = vsel %vm14020_vm14, %v1730_v3, %v8574_v61  ;;  %v2655_v22 = vsel %vm14021_vm9, %v10428_v10, %v8565_v56  ;;  %vm14022_vm8 = vmmov %vm14006_vm6  ;;  %v10710_v3 = vld [vmem:[#allocation2 + $0xef] sm:$0xff] }
  0xec   : > { %v8578_v31 = vpop.permute.xlu1 %8577  ;;  %v8583_v16 = vpop.permute.xlu0 %8582  ;;  %v1782_v36 = vpack.c.bf16 %v1763_v32, %v1762_v34  ;;  %v2654_v61 = vsel %vm14022_vm8, %v2270_v33, %v8564_v58  ;;  %v2272_v32 = vsel %vm10381_vm12, %v10456_v37, 0.0  ;;  %vm14024_vm6 = vmmov %vm13959_vm1  ;;  %v618_v62 = vand.u32 15, %v414_v23 }
  0xed   : > { %v8585_v48 = vunpack.i.h.bf16 %v8583_v16  ;;  %v8584_v17 = vunpack.i.l.bf16 %v8583_v16  ;;  %v8580_v30 = vunpack.i.h.bf16 %v8578_v31  ;;  %v8579_v60 = vunpack.i.l.bf16 %v8578_v31  ;;  %vm14025_vm14 = vmmov %vm14022_vm8 }
  0xee   : > { %7838 = vmatprep.mubr.msk.bf16.mxu1 %vm14023_vm7, %v1782_v36  ;;  %v10720_v33 = vsel %vm14025_vm14, %v10710_v3, %v8570_v12  ;;  %v14026_v31 = vunpack.i.l.bf16 %v10680_v35  ;;  %vm14027_vm9 = vmmov %vm14022_vm8  ;;  %vm14030_vm12 = vcmask 195584  }
  0xef   : > { %v2686_v34 = vsel %vm14024_vm6, %v2654_v61, %v8584_v17  ;;  %v2687_v19 = vsel %vm13959_vm1, %v2655_v22, %v8585_v48  ;;  %v2657_v17 = vsel %vm14022_vm8, %v10475_v5, %v8580_v30  ;;  %vm14028_vm7 = vmmov %vm14022_vm8  ;;  %vm10740_vm8 = vcmp.ne.s32.totalorder %v618_v62, 0 }
  0xf0   : > { %v8588_v16 = vpop.permute.xlu1 %8587  ;;  %v8593_v56 = vpop.permute.xlu0 %8592  ;;  %v2714_v58 = vpack.c.bf16 %v2687_v19, %v2686_v34  ;;  %v1732_v36 = vsel %vm14027_vm9, %v1528_v38, %v14026_v31  ;;  %v2656_v48 = vsel %vm14028_vm7, %v2272_v32, %v8579_v60  ;;  %vm14029_vm6 = vmmov %vm13959_vm1  ;;  %v416_v38 = vadd.s32 240, %v9641_v2  ;;  %v10747_v32 = vld [vmem:[#allocation2 + $0xff] sm:$0xff]  ;;  %v10752_v31 = vld [vmem:[#allocation2 + $0x107] sm:$0xff] }
  0xf1   : > { %v8590_v47 = vunpack.i.h.bf16 %v8588_v16  ;;  %v8589_v10 = vunpack.i.l.bf16 %v8588_v16  ;;  %v8595_v4 = vunpack.i.h.bf16 %v8593_v56  ;;  %v8594_v37 = vunpack.i.l.bf16 %v8593_v56  ;;  %vm14031_vm14 = vmmov %vm13959_vm1  ;;  %v10737_v16 = vld [vmem:[#allocation2 + $0xf7] sm:$0xff] }
  0xf2   : > { %7894 = vmatprep.mubr.msk.bf16.mxu0 %vm14030_vm12, %v2714_v58  ;;  %vm14032_vm5 = vmmov %vm13959_vm1  ;;  %v14034_v5 = vmov 0  ;;  %v632_v2 = vand.u32 15, %v416_v38 }
  0xf3   : > { %v1764_v23 = vsel %vm14029_vm6, %v1732_v36, %v8589_v10  ;;  %v1765_v19 = vsel %vm13959_vm1, %v10720_v33, %v8590_v47  ;;  %v2689_v12 = vsel %vm14031_vm14, %v2657_v17, %v8595_v4  ;;  %v2688_v22 = vsel %vm14032_vm5, %v2656_v48, %v8594_v37  ;;  %vm14033_vm9 = vmmov %vm14030_vm12 }
  0xf4   : > { %v10735_v61 = vpop.permute.xlu1 %8597  ;;  %v1783_v34 = vpack.c.bf16 %v1765_v19, %v1764_v23  ;;  %v8603_v30 = vpop.permute.xlu0 %8602  ;;  %v2715_v60 = vpack.c.bf16 %v2689_v12, %v2688_v22  ;;  %v14035_v5 = vsel %vm10740_vm8, 4294967295, %v14034_v5  ;;  %vm14037_vm5 = vmmov %vm14033_vm9  ;;  %v1530_v10 = vsel %vm10740_vm8, %v10737_v16, 0.0 }
  0xf5   : > { %14036 = vst [vmem:[#allocation33_spill] sm:$0xff] %v14035_v5  ;;  %v8600_v47 = vunpack.i.h.bf16 %v10735_v61  ;;  %v13617_v4 = vunpack.i.l.bf16 %v10735_v61  ;;  %vm14038_vm12 = vmmov %vm14028_vm7  ;;  %v8605_v48 = vunpack.i.h.bf16 %v8603_v30  ;;  %v8604_v23 = vunpack.i.l.bf16 %v8603_v30 }
  0xf6   : > { %7839 = vmatmul.mubr.msk.bf16.gmra.mrb[24].mxu1 %vm14033_vm9, %v1783_v34  ;;  %7895 = vmatmul.mubr.msk.bf16.gmra.mrb[8].mxu0 %vm14037_vm5, %v2715_v60  ;;  %vm10761_vm6 = vcmp.ne.s32.totalorder %v632_v2, 0  ;;  %v14039_v19 = vmov 0  ;;  %v2274_v12 = vsel %vm10399_vm13, %v10485_v42, 0.0  ;;  %vm14042_vm14 = vmmov %vm13959_vm1 }
  0xf7   : > { %v10756_v37 = vsel %vm14038_vm12, %v10747_v32, %v8600_v47  ;;  %v1734_v17 = vsel %vm14028_vm7, %v1530_v10, %v13617_v4  ;;  %v14040_v19 = vsel %vm10761_vm6, 4294967295, %v14039_v19  ;;  %v1532_v60 = vsel %vm10761_vm6, %v10752_v31, 0.0  ;;  %vm14043_vm9 = vmmov %vm14028_vm7 }
  0xf8   : > { %v8608_v56 = vpop.permute.xlu1 %8607  ;;  %v8613_v58 = vpop.permute.xlu0 %8612  ;;  %14041 = vst [vmem:[#allocation34_spill] sm:$0xff] %v14040_v19  ;;  %v2659_v43 = vsel %vm14043_vm9, %v10496_v27, %v8605_v48  ;;  %vm14044_vm5 = vmmov %vm14028_vm7  ;;  %vm14045_vm12 = vcmask 195584  }
  0xf9   : > { %v8615_v62 = vunpack.i.h.bf16 %v8613_v58  ;;  %v8614_v36 = vunpack.i.l.bf16 %v8613_v58  ;;  %v8610_v2 = vunpack.i.h.bf16 %v8608_v56  ;;  %v8609_v10 = vunpack.i.l.bf16 %v8608_v56  ;;  %vm14046_vm7 = vmmov %vm13959_vm1 }
  0xfa   : > { %v2658_v18 = vsel %vm14044_vm5, %v2274_v12, %v8604_v23  ;;  %vm14048_vm9 = vmmov %vm14044_vm5 }
  0xfb   : > { %v1767_v22 = vsel %vm13959_vm1, %v10756_v37, %v8615_v62  ;;  %v1766_v38 = vsel %vm14042_vm14, %v1734_v17, %v8614_v36  ;;  %v2276_v17 = vsel %vm10463_vm3, %v10521_v41, 0.0  ;;  %vm14047_vm14 = vmmov %vm14044_vm5  ;;  %v1736_v12 = vsel %vm14048_vm9, %v1532_v60, %v8609_v10 }
  0xfc   : > { %v8618_v34 = vpop.permute.xlu1 %8617  ;;  %v8623_v47 = vpop.permute.xlu0 %8622  ;;  %v1784_v30 = vpack.c.bf16 %v1767_v22, %v1766_v38  ;;  %v1737_v23 = vsel %vm14047_vm14, %v10777_v0, %v8610_v2  ;;  %vm14051_vm3 = vcmask 195584   ;;  %vm14052_vm14 = vmmov %vm13959_vm1 }
  0xfd   : > { %v8625_v58 = vunpack.i.h.bf16 %v8623_v47  ;;  %v8624_v4 = vunpack.i.l.bf16 %v8623_v47  ;;  %v8620_v62 = vunpack.i.h.bf16 %v8618_v34  ;;  %v8619_v36 = vunpack.i.l.bf16 %v8618_v34  ;;  %vm14053_vm9 = vmmov %vm13959_vm1 }
  0xfe   : > { %7842 = vmatprep.mubr.msk.bf16.mxu1 %vm14045_vm12, %v1784_v30  ;;  %vm14049_vm12 = vmmov %vm14044_vm5 }
  0xff   : > { %v2690_v22 = vsel %vm14046_vm7, %v2658_v18, %v8624_v4  ;;  %v2691_v56 = vsel %vm13959_vm1, %v2659_v43, %v8625_v58  ;;  %v2661_v49 = vsel %vm14044_vm5, %v10531_v50, %v8620_v62  ;;  %v2660_v40 = vsel %vm14049_vm12, %v2276_v17, %v8619_v36  ;;  %vm14050_vm7 = vmmov %vm13959_vm1 }
 0x100   : > { %v8628_v38 = vpop.permute.xlu1 %8627  ;;  %v8633_v27 = vpop.permute.xlu0 %8632  ;;  %v2716_v48 = vpack.c.bf16 %v2691_v56, %v2690_v22  ;;  %v987_v4 = vsel %vm10524_vm10, %v10485_v42, 0.0  ;;  %vm14054_vm5 = vmmov %vm14051_vm3 }
 0x101   : > { %v8630_v47 = vunpack.i.h.bf16 %v8628_v38  ;;  %v8629_v57 = vunpack.i.l.bf16 %v8628_v38  ;;  %v8635_v34 = vunpack.i.h.bf16 %v8633_v27  ;;  %v8634_v30 = vunpack.i.l.bf16 %v8633_v27 }
 0x102   : > { %7898 = vmatprep.mubr.msk.bf16.mxu0 %vm14051_vm3, %v2716_v48 }
 0x103   : > { %v1768_v18 = vsel %vm14050_vm7, %v1736_v12, %v8629_v57  ;;  %v1769_v43 = vsel %vm13959_vm1, %v1737_v23, %v8630_v47  ;;  %v2693_v2 = vsel %vm14052_vm14, %v2661_v49, %v8635_v34  ;;  %v2692_v60 = vsel %vm14053_vm9, %v2660_v40, %v8634_v30  ;;  %vm14056_vm7 = vmmov %vm13959_vm1 }
 0x104   : > { %v8638_v10 = vpop.permute.xlu1 %8637  ;;  %v1785_v58 = vpack.c.bf16 %v1769_v43, %v1768_v18  ;;  %v8643_v22 = vpop.permute.xlu0 %8642  ;;  %v2717_v50 = vpack.c.bf16 %v2693_v2, %v2692_v60  ;;  %v14055_v57 = vunpack.i.l.bf16 %v10458_v44  ;;  %v2278_v40 = vsel %vm10524_vm10, %v10538_v51, 0.0  ;;  %vm14057_vm14 = vmmov %vm14049_vm12 }
 0x105   : > { %v8645_v62 = vunpack.i.h.bf16 %v8643_v22  ;;  %v8644_v36 = vunpack.i.l.bf16 %v8643_v22  ;;  %v8640_v56 = vunpack.i.h.bf16 %v8638_v10  ;;  %v8639_v38 = vunpack.i.l.bf16 %v8638_v10  ;;  %vm14058_vm9 = vmmov %vm14049_vm12 }
 0x106   : > { %7843 = vmatmul.mubr.msk.bf16.gmra.mrb[28].mxu1 %vm14054_vm5, %v1785_v58  ;;  %v1435_v17 = vsel %vm14049_vm12, %v987_v4, %v14055_v57  ;;  %7899 = vmatmul.mubr.msk.bf16.gmra.mrb[12].mxu0 %vm14051_vm3, %v2717_v50  ;;  %v989_v44 = vsel %vm10547_vm2, %v10521_v41, 0.0  ;;  %vm14059_vm5 = vmmov %vm14051_vm3 }
 0x107   : > { %v1468_v49 = vsel %vm14056_vm7, %v1435_v17, %v8644_v36  ;;  %v1469_v42 = vsel %vm13959_vm1, %v10507_v55, %v8645_v62  ;;  %v2663_v34 = vsel %vm14057_vm14, %v10566_v9, %v8640_v56  ;;  %v2662_v30 = vsel %vm14058_vm9, %v2278_v40, %v8639_v38  ;;  %vm14060_vm12 = vmmov %vm13959_vm1 }
 0x108   : > { %v8648_v47 = vpop.permute.xlu1 %8647  ;;  %v8653_v27 = vpop.permute.xlu0 %8652  ;;  %v1492_v48 = vpack.c.bf16 %v1469_v42, %v1468_v49  ;;  %v2280_v55 = vsel %vm10547_vm2, %v10593_v46, 0.0  ;;  %vm14061_vm3 = vmmov %vm13959_vm1  ;;  %v14062_v9 = vunpack.i.l.bf16 %v10519_v1  ;;  %v991_v1 = vsel %vm10596_vm0, %v10538_v51, 0.0 }
 0x109   : > { %v8655_v23 = vunpack.i.h.bf16 %v8653_v27  ;;  %v8654_v12 = vunpack.i.l.bf16 %v8653_v27  ;;  %v8650_v18 = vunpack.i.h.bf16 %v8648_v47  ;;  %v8649_v43 = vunpack.i.l.bf16 %v8648_v47  ;;  %vm14063_vm7 = vmmov %vm14058_vm9 }
 0x10a   : > { %7866 = vmatprep.mubr.msk.bf16.mxu1 %vm14059_vm5, %v1492_v48  ;;  %v1437_v50 = vsel %vm14063_vm7, %v989_v44, %v14062_v9  ;;  %vm14064_vm1 = vmmov %vm14063_vm7  ;;  %v2282_v51 = vsel %vm10596_vm0, %v10610_v53, 0.0 }
 0x10b   : > { %v2695_v4 = vsel %vm14060_vm12, %v2663_v34, %v8655_v23  ;;  %v2694_v2 = vsel %vm14061_vm3, %v2662_v30, %v8654_v12  ;;  %v2665_v57 = vsel %vm14064_vm1, %v10603_v63, %v8650_v18  ;;  %vm14065_vm14 = vmmov %vm14064_vm1  ;;  %vm14068_vm12 = vcmask 195584  }
 0x10c   : > { %v8658_v41 = vpop.permute.xlu1 %8657  ;;  %v8663_v58 = vpop.permute.xlu0 %8662  ;;  %v2718_v22 = vpack.c.bf16 %v2695_v4, %v2694_v2  ;;  %v2664_v17 = vsel %vm14065_vm14, %v2280_v55, %v8649_v43  ;;  %vm14066_vm9 = vmmov %vm14061_vm3 }
 0x10d   : > { %v8660_v60 = vunpack.i.h.bf16 %v8658_v41  ;;  %v8659_v10 = vunpack.i.l.bf16 %v8658_v41  ;;  %v8665_v62 = vunpack.i.h.bf16 %v8663_v58  ;;  %v8664_v36 = vunpack.i.l.bf16 %v8663_v58  ;;  %vm14067_vm5 = vmmov %vm14061_vm3 }
 0x10e   : > { %7902 = vmatprep.mubr.msk.bf16.mxu0 %vm14068_vm12, %v2718_v22  ;;  %vm14069_vm7 = vmmov %vm14061_vm3 }
 0x10f   : > { %v1470_v56 = vsel %vm14066_vm9, %v1437_v50, %v8659_v10  ;;  %v1471_v38 = vsel %vm14067_vm5, %v10542_v54, %v8660_v60  ;;  %v2697_v49 = vsel %vm14061_vm3, %v2665_v57, %v8665_v62  ;;  %v2696_v42 = vsel %vm14069_vm7, %v2664_v17, %v8664_v36  ;;  %vm14070_vm1 = vmmov %vm14068_vm12 }
 0x110   : > { %v1493_v40 = vpack.c.bf16 %v1471_v38, %v1470_v56  ;;  %v8668_v47 = vpop.permute.xlu1 %8667  ;;  %v8673_v63 = vpop.permute.xlu0 %8672  ;;  %v2719_v27 = vpack.c.bf16 %v2697_v49, %v2696_v42  ;;  %v14071_v54 = vunpack.i.l.bf16 %v10536_v24  ;;  %vm14072_vm9 = vmmov %vm14070_vm1  ;;  %v993_v24 = vsel %vm10619_vm4, %v10593_v46, 0.0 }
 0x111   : > { %v8675_v48 = vunpack.i.h.bf16 %v8673_v63  ;;  %v8674_v44 = vunpack.i.l.bf16 %v8673_v63  ;;  %v8670_v12 = vunpack.i.h.bf16 %v8668_v47  ;;  %v8669_v34 = vunpack.i.l.bf16 %v8668_v47  ;;  %vm14073_vm5 = vmmov %vm14061_vm3 }
 0x112   : > { %7867 = vmatmul.mubr.msk.bf16.vlgmr.msra.gmra.mrb[16].mxu1 %vm14070_vm1, %v1493_v40  ;;  %v1439_v23 = vsel %vm14065_vm14, %v991_v1, %v14071_v54  ;;  %7903 = vmatmul.mubr.msk.bf16.gmra.mrb[16].mxu0 %vm14072_vm9, %v2719_v27  ;;  %vm14074_vm12 = vmmov %vm14061_vm3 }
 0x113   : > { %v1473_v30 = vsel %vm14073_vm5, %v10576_v25, %v8675_v48  ;;  %v1472_v18 = vsel %vm14074_vm12, %v1439_v23, %v8674_v44  ;;  %vm14075_vm3 = vmmov %vm14065_vm14  ;;  %v2284_v25 = vsel %vm10619_vm4, %v10665_v26, 0.0 }
 0x114   : > { %v8678_v43 = vpop.permute.xlu1 %8677  ;;  %v8683_v55 = vpop.permute.xlu0 %8682  ;;  %v1494_v4 = vpack.c.bf16 %v1473_v30, %v1472_v18  ;;  %v2667_v60 = vsel %vm14075_vm3, %v10638_v20, %v8670_v12  ;;  %vm14076_vm7 = vmmov %vm14075_vm3  ;;  %v14079_v20 = vunpack.i.l.bf16 %v10591_v11  ;;  %v995_v11 = vsel %vm10668_vm15, %v10610_v53, 0.0 }
 0x115   : > { %v8685_v2 = vunpack.i.h.bf16 %v8683_v55  ;;  %v8684_v41 = vunpack.i.l.bf16 %v8683_v55  ;;  %v2666_v10 = vsel %vm14076_vm7, %v2282_v51, %v8669_v34  ;;  %v8680_v58 = vunpack.i.h.bf16 %v8678_v43  ;;  %vm14077_vm14 = vmmov %vm14073_vm5 }
 0x116   : > { %v8679_v22 = vunpack.i.l.bf16 %v8678_v43  ;;  %7870 = vmatprep.mubr.msk.bf16.mxu1 %vm14070_vm1, %v1494_v4  ;;  %vm14078_vm9 = vmmov %vm14073_vm5  ;;  %v2286_v53 = vsel %vm10668_vm15, %v10682_v52, 0.0 }
 0x117   : > { %v2699_v9 = vsel %vm14077_vm14, %v2667_v60, %v8685_v2  ;;  %v2698_v50 = vsel %vm14078_vm9, %v2666_v10, %v8684_v41  ;;  %vm14080_vm5 = vmmov %vm14075_vm3  ;;  %vm14084_vm14 = vcmask 195584  }
 0x118   : > { %v8688_v46 = vpop.permute.xlu1 %8687  ;;  %v8693_v57 = vpop.permute.xlu0 %8692  ;;  %v2720_v17 = vpack.c.bf16 %v2699_v9, %v2698_v50  ;;  %v1441_v56 = vsel %vm14080_vm5, %v993_v24, %v14079_v20  ;;  %vm14081_vm12 = vmmov %vm14075_vm3  ;;  %v2668_v49 = vsel %vm14075_vm3, %v2284_v25, %v8679_v22 }
 0x119   : > { %v8690_v62 = vunpack.i.h.bf16 %v8688_v46  ;;  %v8689_v36 = vunpack.i.l.bf16 %v8688_v46  ;;  %v8695_v38 = vunpack.i.h.bf16 %v8693_v57  ;;  %v8694_v1 = vunpack.i.l.bf16 %v8693_v57  ;;  %vm14082_vm7 = vmmov %vm14078_vm9 }
 0x11a   : > { %v2669_v40 = vsel %vm14081_vm12, %v10675_v28, %v8680_v58  ;;  %vm14083_vm1 = vmmov %vm14082_vm7  ;;  %7906 = vmatprep.mubr.msk.bf16.mxu0 %vm14084_vm14, %v2720_v17 }
 0x11b   : > { %v1474_v42 = vsel %vm14082_vm7, %v1441_v56, %v8689_v36  ;;  %v1475_v47 = vsel %vm14083_vm1, %v10614_v8, %v8690_v62  ;;  %vm14085_vm9 = vmmov %vm14083_vm1  ;;  %v14088_v8 = vunpack.i.l.bf16 %v10608_v15  ;;  %v997_v15 = vsel %vm10691_vm11, %v10665_v26, 0.0 }
 0x11c   : > { %v2701_v63 = vsel %vm14085_vm9, %v2669_v40, %v8695_v38  ;;  %vm14086_vm5 = vmmov %vm14083_vm1  ;;  %v8698_v48 = vpop.permute.xlu1 %8697  ;;  %v1495_v44 = vpack.c.bf16 %v1475_v47, %v1474_v42  ;;  %v8703_v28 = vpop.permute.xlu0 %8702 }
 0x11d   : > { %v2700_v27 = vsel %vm14086_vm5, %v2668_v49, %v8694_v1  ;;  %v8705_v23 = vunpack.i.h.bf16 %v8703_v28  ;;  %v8704_v12 = vunpack.i.l.bf16 %v8703_v28  ;;  %vm14087_vm12 = vmmov %vm14084_vm14  ;;  %v1443_v34 = vsel %vm14075_vm3, %v995_v11, %v14088_v8 }
 0x11e   : > { %v2721_v54 = vpack.c.bf16 %v2701_v63, %v2700_v27  ;;  %7871 = vmatmul.mubr.msk.bf16.gmra.mrb[20].mxu1 %vm14087_vm12, %v1495_v44  ;;  %v8700_v51 = vunpack.i.h.bf16 %v8698_v48  ;;  %v8699_v30 = vunpack.i.l.bf16 %v8698_v48  ;;  %vm14089_vm7 = vmmov %vm14087_vm12 }
 0x11f   : > { %v1477_v18 = vsel %vm14083_vm1, %v10648_v21, %v8705_v23  ;;  %vm14090_vm14 = vmmov %vm14083_vm1  ;;  %v2288_v21 = vsel %vm10691_vm11, %v10737_v16, 0.0 }
 0x120   : > { %7907 = vmatmul.mubr.msk.bf16.gmra.mrb[20].mxu0 %vm14089_vm7, %v2721_v54  ;;  %v1476_v43 = vsel %vm14090_vm14, %v1443_v34, %v8704_v12  ;;  %v8708_v55 = vpop.permute.xlu1 %8707  ;;  %v8713_v4 = vpop.permute.xlu0 %8712  ;;  %vm14091_vm9 = vmmov %vm14075_vm3  ;;  %v2260_v34 = vld [vmem:[#allocation2 + $0x117] sm:$0xff] }
 0x121   : > { %v1496_v24 = vpack.c.bf16 %v1477_v18, %v1476_v43  ;;  %v8715_v2 = vunpack.i.h.bf16 %v8713_v4  ;;  %v8714_v41 = vunpack.i.l.bf16 %v8713_v4  ;;  %v2671_v60 = vsel %vm14091_vm9, %v10710_v3, %v8700_v51  ;;  %vm14092_vm5 = vmmov %vm14075_vm3 }
 0x122   : > { %v2670_v10 = vsel %vm14092_vm5, %v2286_v53, %v8699_v30  ;;  %v8710_v58 = vunpack.i.h.bf16 %v8708_v55  ;;  %v8709_v22 = vunpack.i.l.bf16 %v8708_v55  ;;  %vm14093_vm12 = vmmov %vm14089_vm7  ;;  %v14096_v3 = vunpack.i.l.bf16 %v10663_v39 }
 0x123   : > { %7874 = vmatprep.mubr.msk.bf16.mxu1 %vm14093_vm12, %v1496_v24  ;;  %vm14094_vm3 = vmmov %vm14083_vm1  ;;  %v999_v39 = vsel %vm10740_vm8, %v10682_v52, 0.0  ;;  %v2290_v52 = vsel %vm10740_vm8, %v10752_v31, 0.0  ;;  %v2292_v24 = vsel %vm10761_vm6, %v2260_v34, 0.0 }
 0x124   : > { %v2703_v25 = vsel %vm14094_vm3, %v2671_v60, %v8715_v2  ;;  %vm14095_vm7 = vmmov %vm14083_vm1  ;;  %v8718_v26 = vpop.permute.xlu1 %8717  ;;  %v8723_v62 = vpop.permute.xlu0 %8722 }
 0x125   : > { %v2702_v9 = vsel %vm14095_vm7, %v2670_v10, %v8714_v41  ;;  %v8720_v50 = vunpack.i.h.bf16 %v8718_v26  ;;  %v8719_v46 = vunpack.i.l.bf16 %v8718_v26  ;;  %vm14097_vm1 = vmmov %vm14092_vm5  ;;  %v8725_v17 = vunpack.i.h.bf16 %v8723_v62 }
 0x126   : > { %v2722_v36 = vpack.c.bf16 %v2703_v25, %v2702_v9  ;;  %v1445_v57 = vsel %vm14097_vm1, %v997_v15, %v14096_v3  ;;  %v8724_v20 = vunpack.i.l.bf16 %v8723_v62  ;;  %vm14098_vm14 = vmmov %vm14097_vm1 }
 0x127   : > { %v2673_v56 = vsel %vm14098_vm14, %v10747_v32, %v8710_v58  ;;  %vm14099_vm9 = vmmov %vm14097_vm1 }
 0x128   : > { %v2672_v38 = vsel %vm14099_vm9, %v2288_v21, %v8709_v22  ;;  %vm14100_vm5 = vmmov %vm14094_vm3  ;;  %v8728_v47 = vpop.permute.xlu1 %8727 }
 0x129   : > { %v1478_v1 = vsel %vm14100_vm5, %v1445_v57, %v8719_v46  ;;  %vm14101_vm12 = vmmov %vm14094_vm3  ;;  %vm14102_vm3 = vcmask 195584   ;;  %v8733_v32 = vpop.permute.xlu0 %8732  ;;  %v8730_v28 = vunpack.i.h.bf16 %v8728_v47  ;;  %v8729_v54 = vunpack.i.l.bf16 %v8728_v47 }
 0x12a   : > { %v1479_v40 = vsel %vm14101_vm12, %v10686_v59, %v8720_v50  ;;  %7910 = vmatprep.mubr.msk.bf16.mxu0 %vm14102_vm3, %v2722_v36  ;;  %vm14103_vm7 = vmmov %vm14100_vm5  ;;  %v8735_v27 = vunpack.i.h.bf16 %v8733_v32  ;;  %v8734_v48 = vunpack.i.l.bf16 %v8733_v32  ;;  %v14106_v59 = vunpack.i.l.bf16 %v10680_v35 }
 0x12b   : > { %v2705_v49 = vsel %vm14103_vm7, %v2673_v56, %v8725_v17  ;;  %vm14104_vm1 = vmmov %vm14100_vm5  ;;  %v1497_v11 = vpack.c.bf16 %v1479_v40, %v1478_v1  ;;  %v1001_v35 = vsel %vm10761_vm6, %v10737_v16, 0.0 }
 0x12c   : > { %v2704_v42 = vsel %vm14104_vm1, %v2672_v38, %v8724_v20  ;;  %vm14105_vm14 = vmmov %vm14102_vm3  ;;  %v1447_v44 = vsel %vm14099_vm9, %v999_v39, %v14106_v59  ;;  %v10967_v59 = vld [vmem:[%s13525_s3] ss:$0 sm:$0xff] }
 0x12d   : > { %v2723_v63 = vpack.c.bf16 %v2705_v49, %v2704_v42  ;;  %7875 = vmatmul.mubr.msk.bf16.gmra.mrb[24].mxu1 %vm14105_vm14, %v1497_v11  ;;  %vm14107_vm5 = vmmov %vm14102_vm3  ;;  %v8738_v8 = vpop.permute.xlu1 %8737  ;;  %v8743_v51 = vpop.permute.xlu0 %8742 }
 0x12e   : > { %vm14108_vm12 = vmmov %vm14104_vm1  ;;  %v8745_v53 = vunpack.i.h.bf16 %v8743_v51  ;;  %v8744_v18 = vunpack.i.l.bf16 %v8743_v51  ;;  %v8740_v55 = vunpack.i.h.bf16 %v8738_v8  ;;  %v8739_v4 = vunpack.i.l.bf16 %v8738_v8 }
 0x12f   : > { %7911 = vmatmul.mubr.msk.bf16.gmra.mrb[24].mxu0 %vm14107_vm5, %v2723_v63  ;;  %v1481_v23 = vsel %vm14108_vm12, %v10720_v33, %v8735_v27  ;;  %vm14109_vm3 = vmmov %vm14104_vm1  ;;  %v2261_v33 = vld [vmem:[#allocation2 + $0x11f] sm:$0xff] }
 0x130   : > { %v1480_v12 = vsel %vm14109_vm3, %v1447_v44, %v8734_v48  ;;  %vm14110_vm7 = vmmov %vm14099_vm9 }
 0x131   : > { %v1498_v30 = vpack.c.bf16 %v1481_v23, %v1480_v12  ;;  %v2675_v43 = vsel %vm14110_vm7, %v10777_v0, %v8730_v28  ;;  %vm14111_vm1 = vmmov %vm14110_vm7  ;;  %v8748_v16 = vpop.permute.xlu1 %8747  ;;  %v14115_v0 = vunpack.i.l.bf16 %v10735_v61 }
 0x132   : > { %v2674_v31 = vsel %vm14111_vm1, %v2290_v52, %v8729_v54  ;;  %vm14112_vm14 = vmmov %vm14107_vm5  ;;  %v8750_v41 = vunpack.i.h.bf16 %v8748_v16  ;;  %v8749_v60 = vunpack.i.l.bf16 %v8748_v16  ;;  %v8753_v10 = vpop.permute.xlu0 %8752  ;;  %v10972_v54 = vld [vmem:[%s13526_s4] ss:$0 sm:$0xff] }
 0x133   : > { %7878 = vmatprep.mubr.msk.bf16.mxu1 %vm14112_vm14, %v1498_v30  ;;  %vm14113_vm9 = vmmov %vm14109_vm3  ;;  %v8755_v21 = vunpack.i.h.bf16 %v8753_v10  ;;  %v8754_v25 = vunpack.i.l.bf16 %v8753_v10 }
 0x134   : > { %v2707_v15 = vsel %vm14113_vm9, %v2675_v43, %v8745_v53  ;;  %vm14114_vm5 = vmmov %vm14109_vm3  ;;  %vm14121_vm9 = vcmask 195584  }
 0x135   : > { %v2706_v2 = vsel %vm14114_vm5, %v2674_v31, %v8744_v18  ;;  %vm14116_vm12 = vmmov %vm14111_vm1 }
 0x136   : > { %v2724_v58 = vpack.c.bf16 %v2707_v15, %v2706_v2  ;;  %v1449_v22 = vsel %vm14116_vm12, %v1001_v35, %v14115_v0  ;;  %vm14117_vm3 = vmmov %vm14111_vm1 }
 0x137   : > { %v2677_v9 = vsel %vm14117_vm3, %v2261_v33, %v8740_v55  ;;  %vm14118_vm7 = vmmov %vm14111_vm1 }
 0x138   : > { %v2676_v26 = vsel %vm14118_vm7, %v2292_v24, %v8739_v4  ;;  %vm14119_vm1 = vmmov %vm14114_vm5  ;;  %7914 = vmatprep.mubr.msk.bf16.mxu0 %vm14121_vm9, %v2724_v58 }
 0x139   : > { %v1482_v50 = vsel %vm14119_vm1, %v1449_v22, %v8749_v60  ;;  %vm14120_vm14 = vmmov %vm14119_vm1 }
 0x13a   : > { %v1483_v46 = vsel %vm14120_vm14, %v10756_v37, %v8750_v41  ;;  %vm14122_vm5 = vmmov %vm14119_vm1 }
 0x13b   : > { %v2709_v62 = vsel %vm14122_vm5, %v2677_v9, %v8755_v21  ;;  %vm14123_vm6 = vmmov %vm14119_vm1  ;;  %v1499_v61 = vpack.c.bf16 %v1483_v46, %v1482_v50 }
 0x13c   : > { %v2708_v36 = vsel %vm14123_vm6, %v2676_v26, %v8754_v25  ;;  %vm14124_vm12 = vmmov %vm14121_vm9 }
 0x13d   : > { %v2725_v3 = vpack.c.bf16 %v2709_v62, %v2708_v36  ;;  %7879 = vmatmul.mubr.msk.bf16.gmra.mrb[28].mxu1 %vm14124_vm12, %v1499_v61  ;;  %vm14125_vm8 = vmmov %vm14121_vm9 }
 0x13e   : > { %vm14127_vm6 = vmmov %vm14117_vm3 }
 0x13f   : > { %7915 = vmatmul.mubr.msk.bf16.gmra.mrb[28].mxu0 %vm14125_vm8, %v2725_v3  ;;  %vm14126_vm8 = vmmov %vm14117_vm3  ;;  %v9572_v3 = vld [vmem:[%s13524_s2 + $0x30] sm:$0xff]  }
 0x140   : > { %vm14128_vm7 = vmmov %vm14117_vm3  ;;  %7918 = vmatprep.subr.bf16.mxu1 %v9572_v3 }
 0x141   : > { %7919 = vmatpush3.bf16.msra.mxu1 %v9572_v3  ;;  %vm14131_vm14 = vmmov %vm14117_vm3 }
 0x142   : > { %vm14132_vm9 = vmmov %vm14117_vm3 }
 0x143   : > { %vm14133_vm5 = vmmov %vm14117_vm3 }
 0x144   : > { %vm14134_vm12 = vmmov %vm14117_vm3 }
 0x17e   : > { %v7816_v57 = vpop.f32.mrb[0].mxu1 }
 0x17f   : > { %v1882_v17 = vpop.f32.mrb[1].mxu1 }
 0x180   : > { %v7817_v20 = vpop.f32.mrb[2].mxu1 }
 0x181   : > { %v1885_v56 = vpop.f32.mrb[3].mxu1 }
 0x189   : > { %v7820_v38 = vpop.f32.mrb[4].mxu1 }
 0x18a   : > { %v1898_v1 = vpop.f32.mrb[5].mxu1 }
 0x18b   : > { %v7821_v40 = vpop.f32.mrb[6].mxu1 }
 0x18c   : > { %v1901_v37 = vpop.f32.mrb[7].mxu1 }
 0x195   : > { %v10948_v39 = vpop.f32.mrb[8].mxu1 }
 0x196   : > { %v10950_v49 = vpop.f32.mrb[9].mxu1 }
 0x197   : > { %v10952_v42 = vpop.f32.mrb[10].mxu1 }
 0x198   : > { %v10954_v47 = vpop.f32.mrb[11].mxu1 }
 0x1a2   : > { %v10956_v11 = vpop.f32.mrb[12].mxu1 }
 0x1a3   : > { %v10958_v32 = vpop.f32.mrb[13].mxu1 }
 0x1a4   : > { %v10960_v63 = vpop.f32.mrb[14].mxu1 }
 0x1a5   : > { %v10962_v27 = vpop.f32.mrb[15].mxu1 }
 0x1ae   : > { %v7888_v48 = vpop.f32.mrb[0].mxu0 }
 0x1af   : > { %v8138_v44 = vadd.f32 %v7888_v48, %v7816_v57  ;;  %v2820_v28 = vpop.f32.mrb[1].mxu0 }
 0x1b0   : > { %v8139_v52 = vadd.f32 %v2820_v28, %v1882_v17  ;;  %v7889_v23 = vpop.f32.mrb[2].mxu0 }
 0x1b1   : > { %v2988_v12 = vmul.f32 %v8138_v44, %v10967_v59  ;;  %v8140_v8 = vadd.f32 %v7889_v23, %v7817_v20  ;;  %v2823_v34 = vpop.f32.mrb[3].mxu0 }
 0x1b2   : > { %v2986_v51 = vmul.f32 %v8139_v52, %v10967_v59  ;;  %v8141_v30 = vadd.f32 %v2823_v34, %v1885_v56  ;;  %v14129_v56 = vld [vmem:[#allocation3_spill] sm:$0xff] }
 0x1b3   : > { %v3027_v35 = vadd.f32 %v10972_v54, %v2988_v12  ;;  %v2989_v53 = vmul.f32 %v8140_v8, %v10967_v59  ;;  %vm14130_vm1 = vnez %v14129_v56  ;;  %v9573_v8 = vld [vmem:[%s13524_s2 + $0x38] ss:$0 sps:$4 sm:$0xff]   ;;  %v14307_v56 = vld [vmem:[#allocation17_spill] sm:$0xff] }
 0x1b4   : > { %v3025_v18 = vadd.f32 %v10972_v54, %v2986_v51  ;;  %v2987_v43 = vmul.f32 %v8141_v30, %v10967_v59 }
 0x1b5   : > { %v3059_v31 = vmax.f32 %v3027_v35, 0.0  ;;  %v3028_v55 = vadd.f32 %v10972_v54, %v2989_v53 }
 0x1b6   : > { %v3057_v4 = vmax.f32 %v3025_v18, 0.0  ;;  %v3026_v33 = vadd.f32 %v10972_v54, %v2987_v43 }
 0x1b7   : > { %3091 = vst.msk [vmem:[#allocation2 + $0x28] sm:$0xff] %vm14126_vm8, %v3059_v31  ;;  %v3060_v24 = vmax.f32 %v3028_v55, 0.0  ;;  %vm14135_vm8 = vcmask 1043456   ;;  %v14137_v55 = vld [vmem:[#allocation4_spill] sm:$0xff] }
 0x1b8   : > { %3089 = vst.msk [vmem:[#allocation2 + $0x18] sm:$0xff] %vm14127_vm6, %v3057_v4  ;;  %v3058_v15 = vmax.f32 %v3026_v33, 0.0  ;;  %8334 = vmatprep.subr.msk.bf16.mxu1 %vm14135_vm8, %v9573_v8  ;;  %vm14136_vm6 = vmmov %vm14135_vm8 }
 0x1b9   : > { %3092 = vst.msk [vmem:[#allocation2 + $0x30] sm:$0xff] %vm14117_vm3, %v3060_v24  ;;  %v3971_v34 = vsel %vm14136_vm6, %v9573_v8, 0  ;;  %vm14138_vm3 = vnez %v14137_v55 }
 0x1ba   : > { %3090 = vst.msk [vmem:[#allocation2 + $0x20] sm:$0xff] %vm14128_vm7, %v3058_v15  ;;  %7921 = vmatpush3.bf16.msra.mxu1 %v3971_v34 }
 0x1bc   : > { %v7892_v2 = vpop.f32.mrb[4].mxu0 }
 0x1bd   : > { %v8142_v16 = vadd.f32 %v7892_v2, %v7820_v38  ;;  %v2836_v41 = vpop.f32.mrb[5].mxu0 }
 0x1be   : > { %v8143_v60 = vadd.f32 %v2836_v41, %v1898_v1  ;;  %v7893_v10 = vpop.f32.mrb[6].mxu0  ;;  %v3199_v58 = vld [vmem:[#allocation2 + $0x28] sm:$0xff] }
 0x1bf   : > { %v2992_v22 = vmul.f32 %v8142_v16, %v10967_v59  ;;  %v8144_v21 = vadd.f32 %v7893_v10, %v7821_v40  ;;  %v2839_v25 = vpop.f32.mrb[7].mxu0  ;;  %v3197_v26 = vld [vmem:[#allocation2 + $0x18] sm:$0xff] }
 0x1c0   : > { %v3200_v0 = vld [vmem:[#allocation2 + $0x30] sm:$0xff]  ;;  %v2990_v62 = vmul.f32 %v8143_v60, %v10967_v59  ;;  %v8145_v36 = vadd.f32 %v2839_v25, %v1901_v37 }
 0x1c1   : > { %v10987_v9 = vpack.i.bf16 %v3200_v0, %v3199_v58  ;;  %v3198_v50 = vld [vmem:[#allocation2 + $0x20] sm:$0xff]  ;;  %v3031_v57 = vadd.f32 %v10972_v54, %v2992_v22  ;;  %v2993_v17 = vmul.f32 %v8144_v21, %v10967_v59  ;;  %v11024_v31 = vld [vmem:[#allocation2 + $0x29] sm:$0xff] }
 0x1c2   : > { %v10989_v46 = vld [vmem:[#allocation2 + $0x21] sm:$0xff]  ;;  %v8761_v61 = vpack.i.bf16 %v3198_v50, %v3197_v26  ;;  %v10999_v20 = vld [vmem:[#allocation2 + $0x19] sm:$0xff]  ;;  %v3029_v1 = vadd.f32 %v10972_v54, %v2990_v62  ;;  %v2991_v40 = vmul.f32 %v8145_v36, %v10967_v59 }
 0x1c3   : > { %8757 = vrot.lane.b32.xlu0 %v10987_v9, %s9593_s27  ;;  %v3666_v38 = vsel %vm14130_vm1, %v10989_v46, 0.0  ;;  %v3063_v37 = vmax.f32 %v3031_v57, 0.0  ;;  %v3032_v48 = vadd.f32 %v10972_v54, %v2993_v17  ;;  %v14139_v21 = vld [vmem:[#allocation5_spill] sm:$0xff] }
 0x1c4   : > { %8762 = vrot.lane.b32.xlu1 %v8761_v61, %s9593_s27  ;;  %v3061_v44 = vmax.f32 %v3029_v1, 0.0  ;;  %v3030_v28 = vadd.f32 %v10972_v54, %v2991_v40  ;;  %v8766_v52 = vpack.i.bf16 %v3666_v38, %v10999_v20  ;;  %vm14140_vm7 = vnez %v14139_v21 }
 0x1c5   : > { %3095 = vst.msk [vmem:[#allocation2 + $0x48] sm:$0xff] %vm14131_vm14, %v3063_v37  ;;  %v3064_v23 = vmax.f32 %v3032_v48, 0.0  ;;  %vm14141_vm14 = vmmov %vm14133_vm5 }
 0x1c6   : > { %3093 = vst.msk [vmem:[#allocation2 + $0x38] sm:$0xff] %vm14132_vm9, %v3061_v44  ;;  %v3062_v12 = vmax.f32 %v3030_v28, 0.0  ;;  %vm14142_vm9 = vmmov %vm14133_vm5 }
 0x1c7   : > { %3096 = vst.msk [vmem:[#allocation2 + $0x50] sm:$0xff] %vm14133_vm5, %v3064_v23 }
 0x1c8   : > { %8767 = vrot.lane.b32.xlu1 %v8766_v52, %s9594_s28  ;;  %3094 = vst.msk [vmem:[#allocation2 + $0x40] sm:$0xff] %vm14134_vm12, %v3062_v12  ;;  %vm14143_vm12 = vmmov %vm14133_vm5  ;;  %v14144_v12 = vld [vmem:[#allocation6_spill] sm:$0xff] }
 0x1c9   : > { %v7896_v51 = vpop.f32.mrb[8].mxu0  ;;  %vm14145_vm8 = vnez %v14144_v12 }
 0x1ca   : > { %v8146_v30 = vadd.f32 %v7896_v51, %v10948_v39  ;;  %v2852_v35 = vpop.f32.mrb[9].mxu0 }
 0x1cb   : > { %v8147_v18 = vadd.f32 %v2852_v35, %v10950_v49  ;;  %v7897_v43 = vpop.f32.mrb[10].mxu0 }
 0x1cc   : > { %v2996_v33 = vmul.f32 %v8146_v30, %v10967_v59  ;;  %v8148_v24 = vadd.f32 %v7897_v43, %v10952_v42  ;;  %v2855_v15 = vpop.f32.mrb[11].mxu0 }
 0x1cd   : > { %v11021_v53 = vld [vmem:[#allocation2 + $0x31] sm:$0xff]  ;;  %v2994_v49 = vmul.f32 %v8147_v18, %v10967_v59  ;;  %v8149_v60 = vadd.f32 %v2855_v15, %v10954_v47  ;;  %v3203_v47 = vld [vmem:[#allocation2 + $0x48] sm:$0xff] }
 0x1ce   : > { %v3668_v4 = vsel %vm14138_vm3, %v11021_v53, 0.0  ;;  %v3201_v39 = vld [vmem:[#allocation2 + $0x38] sm:$0xff]  ;;  %v3204_v58 = vld [vmem:[#allocation2 + $0x50] sm:$0xff]  ;;  %v3035_v0 = vadd.f32 %v10972_v54, %v2996_v33  ;;  %v2997_v22 = vmul.f32 %v8148_v24, %v10967_v59 }
 0x1cf   : > { %v8771_v2 = vpack.i.bf16 %v3668_v4, %v11024_v31  ;;  %v3202_v16 = vld [vmem:[#allocation2 + $0x40] sm:$0xff]  ;;  %v3033_v26 = vadd.f32 %v10972_v54, %v2994_v49  ;;  %v2995_v50 = vmul.f32 %v8149_v60, %v10967_v59  ;;  %v11051_v61 = vpack.i.bf16 %v3204_v58, %v3203_v47  ;;  %v11066_v23 = vld [vmem:[#allocation2 + $0x49] sm:$0xff] }
 0x1d0   : > { %v11032_v41 = vld [vmem:[#allocation2 + $0x41] sm:$0xff]  ;;  %v11036_v10 = vpack.i.bf16 %v3202_v16, %v3201_v39  ;;  %v11041_v42 = vld [vmem:[#allocation2 + $0x39] sm:$0xff]  ;;  %v3067_v62 = vmax.f32 %v3035_v0, 0.0  ;;  %v3036_v36 = vadd.f32 %v10972_v54, %v2997_v22  ;;  %v14146_v39 = vld [vmem:[#allocation7_spill] sm:$0xff] }
 0x1d1   : > { %8772 = vrot.lane.b32.xlu0 %v8771_v2, %s9594_s28  ;;  %v3670_v25 = vsel %vm14140_vm7, %v11032_v41, 0.0  ;;  %v3065_v3 = vmax.f32 %v3033_v26, 0.0  ;;  %v3034_v57 = vadd.f32 %v10972_v54, %v2995_v50  ;;  %vm14147_vm6 = vnez %v14146_v39 }
 0x1d2   : > { %8782 = vrot.lane.b32.xlu1 %v11036_v10, %s9593_s27  ;;  %v8786_v17 = vpack.i.bf16 %v3670_v25, %v11041_v42  ;;  %3099 = vst.msk [vmem:[#allocation2 + $0x68] sm:$0xff] %vm14141_vm14, %v3067_v62  ;;  %v3068_v38 = vmax.f32 %v3036_v36, 0.0  ;;  %vm14149_vm14 = vmmov %vm14133_vm5 }
 0x1d3   : > { %3097 = vst.msk [vmem:[#allocation2 + $0x58] sm:$0xff] %vm14142_vm9, %v3065_v3  ;;  %v3066_v1 = vmax.f32 %v3034_v57, 0.0  ;;  %vm14150_vm9 = vmmov %vm14133_vm5 }
 0x1d4   : > { %3100 = vst.msk [vmem:[#allocation2 + $0x70] sm:$0xff] %vm14133_vm5, %v3068_v38 }
 0x1d5   : > { %8777 = vrot.lane.b32.xlu0 %v11051_v61, %s9593_s27  ;;  %3098 = vst.msk [vmem:[#allocation2 + $0x60] sm:$0xff] %vm14143_vm12, %v3066_v1  ;;  %vm14151_vm12 = vmmov %vm14133_vm5 }
 0x1d6   : > { %8787 = vrot.lane.b32.xlu1 %v8786_v17, %s9594_s28 }
 0x1d9   : > { %v7900_v40 = vpop.f32.mrb[12].mxu0 }
 0x1da   : > { %v8150_v37 = vadd.f32 %v7900_v40, %v10956_v11  ;;  %v2868_v48 = vpop.f32.mrb[13].mxu0  ;;  %v11063_v44 = vld [vmem:[#allocation2 + $0x51] sm:$0xff] }
 0x1db   : > { %v8151_v28 = vadd.f32 %v2868_v48, %v10958_v32  ;;  %v7901_v52 = vpop.f32.mrb[14].mxu0  ;;  %v3672_v8 = vsel %vm14145_vm8, %v11063_v44, 0.0  ;;  %v3205_v11 = vld [vmem:[#allocation2 + $0x58] sm:$0xff]  ;;  %v3208_v24 = vld [vmem:[#allocation2 + $0x70] sm:$0xff] }
 0x1dc   : > { %v3000_v34 = vmul.f32 %v8150_v37, %v10967_v59  ;;  %v8152_v51 = vadd.f32 %v7901_v52, %v10960_v63  ;;  %v2871_v30 = vpop.f32.mrb[15].mxu0  ;;  %v8791_v35 = vpack.i.bf16 %v3672_v8, %v11066_v23  ;;  %v3206_v18 = vld [vmem:[#allocation2 + $0x60] sm:$0xff] }
 0x1dd   : > { %v11074_v43 = vld [vmem:[#allocation2 + $0x61] sm:$0xff]  ;;  %v2998_v32 = vmul.f32 %v8151_v28, %v10967_v59  ;;  %v8153_v4 = vadd.f32 %v2871_v30, %v10962_v27  ;;  %v11078_v33 = vpack.i.bf16 %v3206_v18, %v3205_v11  ;;  %v11083_v63 = vld [vmem:[#allocation2 + $0x59] sm:$0xff] }
 0x1de   : > { %v3039_v15 = vadd.f32 %v10972_v54, %v3000_v34  ;;  %v3001_v2 = vmul.f32 %v8152_v51, %v10967_v59  ;;  %8792 = vrot.lane.b32.xlu0 %v8791_v35, %s9594_s28  ;;  %v3674_v16 = vsel %vm14147_vm6, %v11074_v43, 0.0  ;;  %v3207_v27 = vld [vmem:[#allocation2 + $0x68] sm:$0xff] }
 0x1df   : > { %v3037_v49 = vadd.f32 %v10972_v54, %v2998_v32  ;;  %v2999_v60 = vmul.f32 %v8153_v4, %v10967_v59  ;;  %8802 = vrot.lane.b32.xlu1 %v11078_v33, %s9593_s27  ;;  %v11093_v22 = vpack.i.bf16 %v3208_v24, %v3207_v27  ;;  %v8806_v50 = vpack.i.bf16 %v3674_v16, %v11083_v63  ;;  %v11107_v28 = vld [vmem:[%s13524_s2 + $0x24] sm:$0xff]  }
 0x1e0   : > { %v3071_v58 = vmax.f32 %v3039_v15, 0.0  ;;  %v3040_v0 = vadd.f32 %v10972_v54, %v3001_v2  ;;  %7954 = vmatprep.subr.bf16.mxu1 %v11107_v28  ;;  %v11118_v24 = vld [vmem:[#allocation2 + $0x69] sm:$0xff]  ;;  %v14152_v15 = vld [vmem:[#allocation8_spill] sm:$0xff] }
 0x1e1   : > { %14148 = vst [vmem:[#allocation35_spill] sm:$0xff] %v11093_v22  ;;  %v3069_v25 = vmax.f32 %v3037_v49, 0.0  ;;  %v3038_v26 = vadd.f32 %v10972_v54, %v2999_v60 }
 0x1e2   : > { %3103 = vst.msk [vmem:[#allocation2 + $0x88] sm:$0xff] %vm14149_vm14, %v3071_v58  ;;  %v3072_v47 = vmax.f32 %v3040_v0, 0.0  ;;  %8797 = vrot.lane.b32.xlu0 %v11093_v22, %s9593_s27  ;;  %vm14153_vm14 = vnez %v14152_v15 }
 0x1e3   : > { %3101 = vst.msk [vmem:[#allocation2 + $0x78] sm:$0xff] %vm14150_vm9, %v3069_v25  ;;  %v3070_v62 = vmax.f32 %v3038_v26, 0.0  ;;  %8807 = vrot.lane.b32.xlu1 %v8806_v50, %s9594_s28  ;;  %vm14155_vm9 = vmmov %vm14133_vm5 }
 0x1e4   : > { %3104 = vst.msk [vmem:[#allocation2 + $0x90] sm:$0xff] %vm14133_vm5, %v3072_v47  ;;  %vm14159_vm11 = vmmov %vm14155_vm9 }
 0x1e5   : > { %v7868_v36 = vpop.f32.mrb[16].mxu1  ;;  %3102 = vst.msk [vmem:[#allocation2 + $0x80] sm:$0xff] %vm14151_vm12, %v3070_v62  ;;  %v7904_v3 = vpop.f32.mrb[16].mxu0  ;;  %vm14158_vm12 = vmmov %vm14155_vm9 }
 0x1e6   : > { %v2167_v57 = vpop.f32.mrb[17].mxu1  ;;  %v8154_v17 = vadd.f32 %v7904_v3, %v7868_v36  ;;  %v2884_v38 = vpop.f32.mrb[17].mxu0  ;;  %v14156_v3 = vld [vmem:[#allocation9_spill] sm:$0xff] }
 0x1e7   : > { %v7869_v1 = vpop.f32.mrb[18].mxu1  ;;  %v8155_v40 = vadd.f32 %v2884_v38, %v2167_v57  ;;  %v7905_v37 = vpop.f32.mrb[18].mxu0  ;;  %vm14157_vm5 = vnez %v14156_v3 }
 0x1e8   : > { %v2170_v48 = vpop.f32.mrb[19].mxu1  ;;  %v3004_v52 = vmul.f32 %v8154_v17, %v10967_v59  ;;  %v8156_v8 = vadd.f32 %v7905_v37, %v7869_v1  ;;  %v2887_v34 = vpop.f32.mrb[19].mxu0 }
 0x1e9   : > { %v3002_v51 = vmul.f32 %v8155_v40, %v10967_v59  ;;  %v8157_v30 = vadd.f32 %v2887_v34, %v2170_v48  ;;  %v3211_v38 = vld [vmem:[#allocation2 + $0x88] sm:$0xff] }
 0x1ea   : > { %v3043_v35 = vadd.f32 %v10972_v54, %v3004_v52  ;;  %v3005_v11 = vmul.f32 %v8156_v8, %v10967_v59  ;;  %v11114_v18 = vld [vmem:[#allocation2 + $0x71] sm:$0xff] }
 0x1eb   : > { %v3041_v32 = vadd.f32 %v10972_v54, %v3002_v51  ;;  %v3003_v4 = vmul.f32 %v8157_v30, %v10967_v59  ;;  %v3676_v2 = vsel %vm14153_vm14, %v11114_v18, 0.0  ;;  %v3209_v27 = vld [vmem:[#allocation2 + $0x78] sm:$0xff]  ;;  %v3212_v47 = vld [vmem:[#allocation2 + $0x90] sm:$0xff] }
 0x1ec   : > { %v3075_v16 = vmax.f32 %v3043_v35, 0.0  ;;  %v3044_v49 = vadd.f32 %v10972_v54, %v3005_v11  ;;  %v8811_v60 = vpack.i.bf16 %v3676_v2, %v11118_v24  ;;  %v3210_v58 = vld [vmem:[#allocation2 + $0x80] sm:$0xff]  ;;  %v11141_v40 = vpack.i.bf16 %v3212_v47, %v3211_v38  ;;  %v11156_v47 = vld [vmem:[#allocation2 + $0x89] sm:$0xff] }
 0x1ed   : > { %v11125_v0 = vld [vmem:[#allocation2 + $0x81] sm:$0xff]  ;;  %v3073_v25 = vmax.f32 %v3041_v32, 0.0  ;;  %v3042_v26 = vadd.f32 %v10972_v54, %v3003_v4  ;;  %v11128_v50 = vpack.i.bf16 %v3210_v58, %v3209_v27  ;;  %v11132_v36 = vld [vmem:[#allocation2 + $0x79] sm:$0xff] }
 0x1ee   : > { %3107 = vst.msk [vmem:[#allocation2 + $0xa8] sm:$0xff] %vm14155_vm9, %v3075_v16  ;;  %v3076_v62 = vmax.f32 %v3044_v49, 0.0  ;;  %8812 = vrot.lane.b32.xlu0 %v8811_v60, %s9594_s28  ;;  %v3678_v57 = vsel %vm14157_vm5, %v11125_v0, 0.0  ;;  %14160 = vst [vmem:[#allocation37_spill] sm:$0xff] %v11141_v40 }
 0x1ef   : > { %14154 = vst [vmem:[#allocation36_spill] sm:$0xff] %v11128_v50  ;;  %3105 = vst.msk [vmem:[#allocation2 + $0x98] sm:$0xff] %vm14158_vm12, %v3073_v25  ;;  %v3074_v17 = vmax.f32 %v3042_v26, 0.0  ;;  %8822 = vrot.lane.b32.xlu1 %v11128_v50, %s9593_s27  ;;  %v8826_v52 = vpack.i.bf16 %v3678_v57, %v11132_v36  ;;  %v3228_v50 = vld [vmem:[#allocation2 + $0x11] sm:$0xff] }
 0x1f0   : > { %3108 = vst.msk [vmem:[#allocation2 + $0xb0] sm:$0xff] %vm14159_vm11, %v3076_v62  ;;  %v14161_v62 = vld [vmem:[#allocation10_spill] sm:$0xff]  ;;  %vm14164_vm12 = vmmov %vm14155_vm9  ;;  %v3260_v22 = vsel %vm14130_vm1, %v3228_v50, 0.0  ;;  %v3266_v50 = vsel %vm14145_vm8, %v11032_v41, 0.0 }
 0x1f1   : > { %v7872_v1 = vpop.f32.mrb[20].mxu1  ;;  %3106 = vst.msk [vmem:[#allocation2 + $0xa0] sm:$0xff] %vm14155_vm9, %v3074_v17  ;;  %vm14162_vm11 = vnez %v14161_v62  ;;  %vm14167_vm15 = vmmov %vm14164_vm12 }
 0x1f2   : > { %v2183_v48 = vpop.f32.mrb[21].mxu1  ;;  %8817 = vrot.lane.b32.xlu0 %v11141_v40, %s9593_s27  ;;  %vm14168_vm4 = vmmov %vm14164_vm12 }
 0x1f3   : > { %v7908_v37 = vpop.f32.mrb[20].mxu0  ;;  %v7873_v51 = vpop.f32.mrb[22].mxu1  ;;  %8827 = vrot.lane.b32.xlu1 %v8826_v52, %s9594_s28 }
 0x1f4   : > { %v8158_v8 = vadd.f32 %v7908_v37, %v7872_v1  ;;  %v2900_v34 = vpop.f32.mrb[21].mxu0  ;;  %v2186_v11 = vpop.f32.mrb[23].mxu1 }
 0x1f5   : > { %v8159_v30 = vadd.f32 %v2900_v34, %v2183_v48  ;;  %v7909_v35 = vpop.f32.mrb[22].mxu0 }
 0x1f6   : > { %v3008_v32 = vmul.f32 %v8158_v8, %v10967_v59  ;;  %v8160_v4 = vadd.f32 %v7909_v35, %v7873_v51  ;;  %v2903_v2 = vpop.f32.mrb[23].mxu0  ;;  %v11152_v58 = vld [vmem:[#allocation2 + $0x91] sm:$0xff] }
 0x1f7   : > { %v3006_v16 = vmul.f32 %v8159_v30, %v10967_v59  ;;  %v8161_v49 = vadd.f32 %v2903_v2, %v2186_v11  ;;  %v3680_v57 = vsel %vm14162_vm11, %v11152_v58, 0.0  ;;  %v3213_v37 = vld [vmem:[#allocation2 + $0x98] sm:$0xff]  ;;  %v3216_v30 = vld [vmem:[#allocation2 + $0xb0] sm:$0xff] }
 0x1f8   : > { %v3047_v60 = vadd.f32 %v10972_v54, %v3008_v32  ;;  %v3009_v27 = vmul.f32 %v8160_v4, %v10967_v59  ;;  %v8831_v1 = vpack.i.bf16 %v3680_v57, %v11156_v47  ;;  %v3214_v48 = vld [vmem:[#allocation2 + $0xa0] sm:$0xff]  ;;  %v14165_v32 = vld [vmem:[#allocation11_spill] sm:$0xff] }
 0x1f9   : > { %v3045_v25 = vadd.f32 %v10972_v54, %v3006_v16  ;;  %v3007_v26 = vmul.f32 %v8161_v49, %v10967_v59  ;;  %v11163_v52 = vld [vmem:[#allocation2 + $0xa1] sm:$0xff]  ;;  %v11166_v51 = vpack.i.bf16 %v3214_v48, %v3213_v37  ;;  %v11170_v11 = vld [vmem:[#allocation2 + $0x99] sm:$0xff]  ;;  %vm14166_vm9 = vnez %v14165_v32 }
 0x1fa   : > { %v3079_v17 = vmax.f32 %v3047_v60, 0.0  ;;  %v3048_v38 = vadd.f32 %v10972_v54, %v3009_v27  ;;  %8832 = vrot.lane.b32.xlu0 %v8831_v1, %s9594_s28  ;;  %v3682_v4 = vsel %vm14166_vm9, %v11163_v52, 0.0  ;;  %v3215_v16 = vld [vmem:[#allocation2 + $0xa8] sm:$0xff] }
 0x1fb   : > { %v3077_v8 = vmax.f32 %v3045_v25, 0.0  ;;  %v3046_v34 = vadd.f32 %v10972_v54, %v3007_v26  ;;  %14163 = vst [vmem:[#allocation38_spill] sm:$0xff] %v11166_v51  ;;  %8842 = vrot.lane.b32.xlu1 %v11166_v51, %s9593_s27  ;;  %v11179_v60 = vpack.i.bf16 %v3216_v30, %v3215_v16  ;;  %v8846_v26 = vpack.i.bf16 %v3682_v4, %v11170_v11 }
 0x1fc   : > { %3111 = vst.msk [vmem:[#allocation2 + $0xc8] sm:$0xff] %vm14164_vm12, %v3079_v17  ;;  %v3080_v35 = vmax.f32 %v3048_v38, 0.0  ;;  %vm14170_vm12 = vmmov %vm14168_vm4 }
 0x1fd   : > { %3109 = vst.msk [vmem:[#allocation2 + $0xb8] sm:$0xff] %vm14167_vm15, %v3077_v8  ;;  %v3078_v2 = vmax.f32 %v3046_v34, 0.0  ;;  %14169 = vst [vmem:[#allocation39_spill] sm:$0xff] %v11179_v60 }
 0x1fe   : > { %3112 = vst.msk [vmem:[#allocation2 + $0xd0] sm:$0xff] %vm14168_vm4, %v3080_v35  ;;  %8837 = vrot.lane.b32.xlu0 %v11179_v60, %s9593_s27  ;;  %vm14174_vm15 = vmmov %vm14170_vm12  ;;  %v3195_v60 = vld [vmem:[#allocation2 + $0x8] sm:$0xff] }
 0x1ff   : > { %3110 = vst.msk [vmem:[#allocation2 + $0xc0] sm:$0xff] %vm14170_vm12, %v3078_v2  ;;  %8847 = vrot.lane.b32.xlu1 %v8846_v26, %s9594_s28  ;;  %v11194_v26 = vld [vmem:[#allocation2 + $0xa9] sm:$0xff]  ;;  %vm14177_vm0 = vmmov %vm14174_vm15 }
 0x200   : > { %v7876_v49 = vpop.f32.mrb[24].mxu1  ;;  %vm14178_vm2 = vmmov %vm14177_vm0 }
 0x201   : > { %v2199_v25 = vpop.f32.mrb[25].mxu1  ;;  %vm14186_vm10 = vmmov %vm14177_vm0 }
 0x202   : > { %v7912_v27 = vpop.f32.mrb[24].mxu0  ;;  %v7877_v38 = vpop.f32.mrb[26].mxu1  ;;  %vm14187_vm13 = vmmov %vm14177_vm0 }
 0x203   : > { %v8162_v57 = vadd.f32 %v7912_v27, %v7876_v49  ;;  %v2916_v17 = vpop.f32.mrb[25].mxu0  ;;  %v2202_v48 = vpop.f32.mrb[27].mxu1 }
 0x204   : > { %v8163_v1 = vadd.f32 %v2916_v17, %v2199_v25  ;;  %v7913_v37 = vpop.f32.mrb[26].mxu0  ;;  %v11190_v49 = vld [vmem:[#allocation2 + $0xb1] sm:$0xff] }
 0x205   : > { %v3012_v8 = vmul.f32 %v8162_v57, %v10967_v59  ;;  %v8164_v34 = vadd.f32 %v7913_v37, %v7877_v38  ;;  %v2919_v30 = vpop.f32.mrb[27].mxu0  ;;  %v14171_v17 = vld [vmem:[#allocation12_spill] sm:$0xff] }
 0x206   : > { %v3010_v35 = vmul.f32 %v8163_v1, %v10967_v59  ;;  %v8165_v2 = vadd.f32 %v2919_v30, %v2202_v48  ;;  %vm14172_vm4 = vnez %v14171_v17  ;;  %v3217_v48 = vld [vmem:[#allocation2 + $0xb8] sm:$0xff] }
 0x207   : > { %v3051_v4 = vadd.f32 %v10972_v54, %v3012_v8  ;;  %v3013_v16 = vmul.f32 %v8164_v34, %v10967_v59  ;;  %v3684_v57 = vsel %vm14172_vm4, %v11190_v49, 0.0  ;;  %v3218_v8 = vld [vmem:[#allocation2 + $0xc0] sm:$0xff] }
 0x208   : > { %v3049_v27 = vadd.f32 %v10972_v54, %v3010_v35  ;;  %v3011_v25 = vmul.f32 %v8165_v2, %v10967_v59  ;;  %v8851_v37 = vpack.i.bf16 %v3684_v57, %v11194_v26  ;;  %v11201_v34 = vld [vmem:[#allocation2 + $0xc1] sm:$0xff]  ;;  %v11204_v19 = vpack.i.bf16 %v3218_v8, %v3217_v48  ;;  %v3220_v2 = vld [vmem:[#allocation2 + $0xd0] sm:$0xff] }
 0x209   : > { %v3083_v38 = vmax.f32 %v3051_v4, 0.0  ;;  %v3052_v1 = vadd.f32 %v10972_v54, %v3013_v16  ;;  %v11208_v4 = vld [vmem:[#allocation2 + $0xb9] sm:$0xff] }
 0x20a   : > { %v3081_v30 = vmax.f32 %v3049_v27, 0.0  ;;  %v3050_v35 = vadd.f32 %v10972_v54, %v3011_v25  ;;  %14173 = vst [vmem:[#allocation40_spill] sm:$0xff] %v11204_v19  ;;  %8852 = vrot.lane.b32.xlu0 %v8851_v37, %s9594_s28  ;;  %v14175_v16 = vld [vmem:[#allocation13_spill] sm:$0xff]  ;;  %8862 = vrot.lane.b32.xlu1 %v11204_v19, %s9593_s27  ;;  %v3219_v27 = vld [vmem:[#allocation2 + $0xc8] sm:$0xff] }
 0x20b   : > { %3115 = vst.msk [vmem:[#allocation2 + $0xe8] sm:$0xff] %vm14174_vm15, %v3083_v38  ;;  %v3084_v5 = vmax.f32 %v3052_v1, 0.0  ;;  %vm14176_vm12 = vnez %v14175_v16  ;;  %v11217_v38 = vpack.i.bf16 %v3220_v2, %v3219_v27  ;;  %vm14180_vm15 = vmmov %vm14177_vm0  ;;  %v11700_v39 = vld [vmem:[#allocation2 + $0xbf] sm:$0xff] }
 0x20c   : > { %v3686_v57 = vsel %vm14176_vm12, %v11201_v34, 0.0  ;;  %3113 = vst.msk [vmem:[#allocation2 + $0xd8] sm:$0xff] %vm14177_vm0, %v3081_v30  ;;  %v3082_v7 = vmax.f32 %v3050_v35, 0.0 }
 0x20d   : > { %3116 = vst.msk [vmem:[#allocation2 + $0xf0] sm:$0xff] %vm14178_vm2, %v3084_v5  ;;  %14179 = vst [vmem:[#allocation41_spill] sm:$0xff] %v11217_v38  ;;  %v8866_v48 = vpack.i.bf16 %v3686_v57, %v11208_v4 }
 0x20e   : > { %3114 = vst.msk [vmem:[#allocation2 + $0xe0] sm:$0xff] %vm14180_vm15, %v3082_v7  ;;  %8857 = vrot.lane.b32.xlu0 %v11217_v38, %s9593_s27 }
 0x20f   : > { %8867 = vrot.lane.b32.xlu1 %v8866_v48, %s9594_s28  ;;  %v11232_v48 = vld [vmem:[#allocation2 + $0xc9] sm:$0xff] }
 0x210   : > { %v7880_v25 = vpop.f32.mrb[28].mxu1 }
 0x211   : > { %v2215_v37 = vpop.f32.mrb[29].mxu1 }
 0x212   : > { %v7916_v1 = vpop.f32.mrb[28].mxu0  ;;  %v7881_v35 = vpop.f32.mrb[30].mxu1 }
 0x213   : > { %v8166_v8 = vadd.f32 %v7916_v1, %v7880_v25  ;;  %v2932_v30 = vpop.f32.mrb[29].mxu0  ;;  %v2218_v5 = vpop.f32.mrb[31].mxu1  ;;  %v11228_v1 = vld [vmem:[#allocation2 + $0xd1] sm:$0xff] }
 0x214   : > { %v8167_v6 = vadd.f32 %v2932_v30, %v2215_v37  ;;  %v7917_v13 = vpop.f32.mrb[30].mxu0  ;;  %v14181_v30 = vld [vmem:[#allocation14_spill] sm:$0xff] }
 0x215   : > { %v3016_v2 = vmul.f32 %v8166_v8, %v10967_v59  ;;  %v8168_v27 = vadd.f32 %v7917_v13, %v7881_v35  ;;  %v2935_v14 = vpop.f32.mrb[31].mxu0  ;;  %vm14182_vm2 = vnez %v14181_v30  ;;  %v3221_v35 = vld [vmem:[#allocation2 + $0xd8] sm:$0xff] }
 0x216   : > { %v3014_v7 = vmul.f32 %v8167_v6, %v10967_v59  ;;  %v8169_v45 = vadd.f32 %v2935_v14, %v2218_v5  ;;  %v3688_v13 = vsel %vm14182_vm2, %v11228_v1, 0.0  ;;  %v3222_v5 = vld [vmem:[#allocation2 + $0xe0] sm:$0xff] }
 0x217   : > { %v3055_v57 = vadd.f32 %v10972_v54, %v3016_v2  ;;  %v3017_v25 = vmul.f32 %v8168_v27, %v10967_v59  ;;  %v8871_v14 = vpack.i.bf16 %v3688_v13, %v11232_v48  ;;  %v11239_v2 = vld [vmem:[#allocation2 + $0xe1] sm:$0xff]  ;;  %v11242_v29 = vpack.i.bf16 %v3222_v5, %v3221_v35 }
 0x218   : > { %v3053_v38 = vadd.f32 %v10972_v54, %v3014_v7  ;;  %v3015_v37 = vmul.f32 %v8169_v45, %v10967_v59  ;;  %v3224_v45 = vld [vmem:[#allocation2 + $0xf0] sm:$0xff] }
 0x219   : > { %v3087_v8 = vmax.f32 %v3055_v57, 0.0  ;;  %v3056_v6 = vadd.f32 %v10972_v54, %v3017_v25  ;;  %14183 = vst [vmem:[#allocation42_spill] sm:$0xff] %v11242_v29  ;;  %8872 = vrot.lane.b32.xlu0 %v8871_v14, %s9594_s28  ;;  %v11246_v57 = vld [vmem:[#allocation2 + $0xd9] sm:$0xff]  ;;  %v14184_v25 = vld [vmem:[#allocation15_spill] sm:$0xff]  ;;  %8882 = vrot.lane.b32.xlu1 %v11242_v29, %s9593_s27 }
 0x21a   : > { %v3085_v27 = vmax.f32 %v3053_v38, 0.0  ;;  %v3054_v7 = vadd.f32 %v10972_v54, %v3015_v37  ;;  %vm14185_vm15 = vnez %v14184_v25  ;;  %v3223_v54 = vld [vmem:[#allocation2 + $0xe8] sm:$0xff]  ;;  %v14189_v14 = vld [vmem:[#allocation16_spill] sm:$0xff] }
 0x21b   : > { %3119 = vst.msk [vmem:[#allocation2 + $0x108] sm:$0xff] %vm14177_vm0, %v3087_v8  ;;  %v3088_v59 = vmax.f32 %v3056_v6, 0.0  ;;  %v3690_v13 = vsel %vm14185_vm15, %v11239_v2, 0.0  ;;  %v11255_v38 = vpack.i.bf16 %v3224_v45, %v3223_v54  ;;  %v11264_v6 = vld [vmem:[#allocation2 + $0xe9] sm:$0xff]  ;;  %v14192_v54 = vld [vmem:[#allocation17_spill] sm:$0xff]  ;;  %v4449_v25 = vld [vmem:[#allocation2 + $0x118] sm:$0xff] }
 0x21c   : > { %3117 = vst.msk [vmem:[#allocation2 + $0xf8] sm:$0xff] %vm14186_vm10, %v3085_v27  ;;  %v3086_v19 = vmax.f32 %v3054_v7, 0.0  ;;  %v8886_v37 = vpack.i.bf16 %v3690_v13, %v11246_v57  ;;  %vm14190_vm10 = vnez %v14189_v14  ;;  %v4450_v14 = vld [vmem:[#allocation2 + $0x120] sm:$0xff] }
 0x21d   : > { %3120 = vst.msk [vmem:[#allocation2 + $0x110] sm:$0xff] %vm14187_vm13, %v3088_v59  ;;  %14188 = vst [vmem:[#allocation43_spill] sm:$0xff] %v11255_v38  ;;  %8877 = vrot.lane.b32.xlu0 %v11255_v38, %s9593_s27  ;;  %vm14193_vm13 = vnez %v14192_v54 }
 0x21e   : > { %3118 = vst.msk [vmem:[#allocation2 + $0x100] sm:$0xff] %vm14177_vm0, %v3086_v19  ;;  %8887 = vrot.lane.b32.xlu1 %v8886_v37, %s9594_s28 }
 0x223   : > { %v11262_v8 = vld [vmem:[#allocation2 + $0xf1] sm:$0xff] }
 0x224   : > { %v3692_v35 = vsel %vm14190_vm10, %v11262_v8, 0.0  ;;  %v3225_v27 = vld [vmem:[#allocation2 + $0xf8] sm:$0xff]  ;;  %v3662_v59 = vld [vmem:[#allocation2 + $0x110] sm:$0xff] }
 0x225   : > { %v8891_v5 = vpack.i.bf16 %v3692_v35, %v11264_v6  ;;  %v3226_v7 = vld [vmem:[#allocation2 + $0x100] sm:$0xff]  ;;  %v11280_v38 = vld [vmem:[#allocation2 + $0x111] sm:$0xff]  ;;  %v3661_v35 = vld [vmem:[#allocation2 + $0x108] sm:$0xff] }
 0x226   : > { %v11270_v19 = vld [vmem:[#allocation2 + $0x101] sm:$0xff]  ;;  %v11272_v45 = vpack.i.bf16 %v3226_v7, %v3225_v27  ;;  %v11275_v13 = vld [vmem:[#allocation2 + $0xf9] sm:$0xff]  ;;  %14194 = vst [vmem:[#allocation45_spill] sm:$0xff] %v11280_v38  ;;  %v11284_v29 = vpack.i.bf16 %v3662_v59, %v3661_v35  ;;  %v3196_v27 = vld [vmem:[#allocation2 + $0x10] sm:$0xff] }
 0x227   : > { %8892 = vrot.lane.b32.xlu0 %v8891_v5, %s9594_s28  ;;  %v3694_v37 = vsel %vm14193_vm13, %v11270_v19, 0.0  ;;  %v11287_v51 = vld [vmem:[#allocation2 + $0x109] sm:$0xff] }
 0x228   : > { %14191 = vst [vmem:[#allocation44_spill] sm:$0xff] %v11272_v45  ;;  %8902 = vrot.lane.b32.xlu1 %v11272_v45, %s9593_s27  ;;  %14195 = vst [vmem:[#allocation46_spill] sm:$0xff] %v11284_v29  ;;  %v8906_v7 = vpack.i.bf16 %v3694_v37, %v11275_v13  ;;  %v14197_v5 = vld [vmem:[#allocation18_spill] sm:$0xff]  ;;  %v8916_v45 = vpack.i.bf16 %v3196_v27, %v3195_v60  ;;  %v3262_v37 = vsel %vm14138_vm3, %v10989_v46, 0.0  ;;  %v3264_v60 = vsel %vm14140_vm7, %v11021_v53, 0.0 }
 0x229   : > { %14196 = vst [vmem:[#allocation47_spill] sm:$0xff] %v11287_v51  ;;  %vm14198_vm0 = vnez %v14197_v5  ;;  %v3227_v35 = vld [vmem:[#allocation2 + $0x9] sm:$0xff]  ;;  %v8936_v46 = vpack.i.bf16 %v3266_v50, %v11041_v42  ;;  %v3272_v27 = vsel %vm14157_vm5, %v11114_v18, 0.0  ;;  %vm14203_vm5 = vcmask 64512  }
 0x22a   : > { %v3696_v40 = vsel %vm14198_vm0, %v11280_v38, 0.0  ;;  %v8921_v38 = vpack.i.bf16 %v3260_v22, %v3227_v35  ;;  %v3270_v22 = vsel %vm14153_vm14, %v11074_v43, 0.0  ;;  %vm14205_vm14 = vmmov %vm14203_vm5 }
 0x22b   : > { %8897 = vrot.lane.b32.xlu0 %v11284_v29, %s9593_s27  ;;  %v8911_v59 = vpack.i.bf16 %v3696_v40, %v11287_v51  ;;  %v8926_v29 = vpack.i.bf16 %v3262_v37, %v10999_v20  ;;  %v8931_v40 = vpack.i.bf16 %v3264_v60, %v11024_v31  ;;  %v3268_v20 = vsel %vm14147_vm6, %v11063_v44, 0.0 }
 0x22c   : > { %8907 = vrot.lane.b32.xlu1 %v8906_v7, %s9594_s28  ;;  %v3274_v7 = vsel %vm14162_vm11, %v11125_v0, 0.0  ;;  %v8951_v60 = vpack.i.bf16 %v3272_v27, %v11118_v24 }
 0x22d   : > { %v14306_v21 = vld [vmem:[#allocation45_spill] sm:$0xff] }
 0x22f   : > { %8912 = vrot.lane.b32.xlu0 %v8911_v59, %s9594_s28  ;;  %v11333_v59 = vld [vmem:[#allocation2 + $0x17] sm:$0xff] }
 0x230   : > { %8917 = vrot.lane.b32.xlu1 %v8916_v45, %s9593_s27  ;;  %14200 = vst [vmem:[#allocation49_spill] sm:$0xff] %v11333_v59 }
 0x233   : > { %8922 = vrot.lane.b32.xlu0 %v8921_v38, %s9594_s28  ;;  %v8941_v38 = vpack.i.bf16 %v3268_v20, %v11066_v23  ;;  %v14201_v20 = vld [vmem:[#allocation19_spill] sm:$0xff] }
 0x234   : > { %8927 = vrot.lane.b32.xlu1 %v8926_v29, %s9594_s28  ;;  %v8946_v29 = vpack.i.bf16 %v3270_v22, %v11083_v63  ;;  %vm14202_vm11 = vnez %v14201_v20 }
 0x235   : > { %v3629_v22 = vsel %vm14202_vm11, %v11333_v59, 0.0 }
 0x236   : > { %v11323_v45 = vpop.permute.xlu1 %8762 }
 0x237   : > { %8932 = vrot.lane.b32.xlu0 %v8931_v40, %s9594_s28  ;;  %14199 = vst [vmem:[#allocation48_spill] sm:$0xff] %v11323_v45  ;;  %v8765_v35 = vunpack.i.h.bf16 %v11323_v45  ;;  %v13686_v37 = vunpack.i.l.bf16 %v11323_v45  ;;  %v8956_v40 = vpack.i.bf16 %v3274_v7, %v11132_v36 }
 0x238   : > { %8937 = vrot.lane.b32.xlu1 %v8936_v46, %s9594_s28  ;;  %v3276_v46 = vsel %vm14166_vm9, %v11152_v58, 0.0  ;;  %vm14206_vm9 = vcmask 130048  }
 0x239   : > { %v3833_v7 = vsel %vm14205_vm14, %v3629_v22, %v13686_v37  ;;  %vm14207_vm11 = vmmov %vm14206_vm9  ;;  %v11369_v22 = vpop.permute.xlu0 %8757  ;;  %vm14209_vm14 = vcmask 195584  }
 0x23a   : > { %v8768_v50 = vpop.permute.xlu1 %8767  ;;  %14208 = vst [vmem:[#allocation51_spill] sm:$0xff] %v11369_v22  ;;  %v14215_v45 = vunpack.i.l.bf16 %v11369_v22 }
 0x23b   : > { %8942 = vrot.lane.b32.xlu0 %v8941_v38, %s9594_s28  ;;  %v3134_v38 = vld [vmem:[#allocation2 + $0x1f] sm:$0xff]  ;;  %v8770_v51 = vunpack.i.h.bf16 %v8768_v50  ;;  %v8769_v62 = vunpack.i.l.bf16 %v8768_v50 }
 0x23c   : > { %8947 = vrot.lane.b32.xlu1 %v8946_v29, %s9594_s28  ;;  %v3278_v29 = vsel %vm14172_vm4, %v11163_v52, 0.0  ;;  %v11351_v27 = vsel %vm14203_vm5, %v3134_v38, %v8765_v35  ;;  %v3280_v35 = vsel %vm14176_vm12, %v11190_v49, 0.0  ;;  %v8760_v38 = vunpack.i.h.bf16 %v11369_v22 }
 0x23d   : > { %14204 = vst [vmem:[#allocation50_spill] sm:$0xff] %v11351_v27  ;;  %v3865_v59 = vsel %vm14206_vm9, %v3833_v7, %v8769_v62  ;;  %v3866_v50 = vsel %vm14207_vm11, %v11351_v27, %v8770_v51  ;;  %v8966_v17 = vpack.i.bf16 %v3278_v29, %v11170_v11  ;;  %v8971_v62 = vpack.i.bf16 %v3280_v35, %v11194_v26  ;;  %v11374_v51 = vld [vmem:[#allocation2 + $0x27] sm:$0xff]  ;;  %v3136_v35 = vld [vmem:[#allocation2 + $0x2f] sm:$0xff] }
 0x23e   : > { %v3897_v20 = vpack.c.bf16 %v3866_v50, %v3865_v59  ;;  %14210 = vst [vmem:[#allocation52_spill] sm:$0xff] %v11374_v51  ;;  %v3288_v29 = vsel %vm14193_vm13, %v11262_v8, 0.0  ;;  %vm14213_vm11 = vcmask 64512   ;;  %vm14223_vm13 = vcmask 130048  }
 0x23f   : > { %8952 = vrot.lane.b32.xlu0 %v8951_v60, %s9594_s28  ;;  %v8961_v60 = vpack.i.bf16 %v3276_v46, %v11156_v47  ;;  %v3284_v46 = vsel %vm14185_vm15, %v11228_v1, 0.0  ;;  %vm14216_vm9 = vmmov %vm14213_vm11 }
 0x240   : > { %8957 = vrot.lane.b32.xlu1 %v8956_v40, %s9594_s28  ;;  %v3282_v40 = vsel %vm14182_vm2, %v11201_v34, 0.0  ;;  %7922 = vmatprep.mubr.msk.bf16.mxu1 %vm14209_vm14, %v3897_v20  ;;  %v14211_v20 = vld [vmem:[#allocation20_spill] sm:$0xff]  ;;  %vm14217_vm14 = vcmask 130048  }
 0x241   : > { %v8976_v59 = vpack.i.bf16 %v3282_v40, %v11208_v4  ;;  %vm14212_vm5 = vnez %v14211_v20  ;;  %v11410_v20 = vld [vmem:[#allocation2 + $0x37] sm:$0xff] }
 0x242   : > { %v3631_v7 = vsel %vm14212_vm5, %v11374_v51, 0.0  ;;  %vm14218_vm5 = vmmov %vm14217_vm14 }
 0x243   : > { %8962 = vrot.lane.b32.xlu0 %v8961_v60, %s9594_s28  ;;  %v8773_v50 = vpop.permute.xlu0 %8772  ;;  %v8981_v60 = vpack.i.bf16 %v3284_v46, %v11232_v48  ;;  %v3835_v51 = vsel %vm14216_vm9, %v3631_v7, %v14215_v45  ;;  %v3290_v46 = vsel %vm14198_vm0, %v11270_v19, 0.0  ;;  %v8991_v7 = vpack.i.bf16 %v3288_v29, %v11264_v6 }
 0x244   : > { %8967 = vrot.lane.b32.xlu1 %v8966_v17, %s9594_s28  ;;  %v3286_v17 = vsel %vm14190_vm10, %v11239_v2, 0.0  ;;  %v8775_v40 = vunpack.i.h.bf16 %v8773_v50  ;;  %v8774_v37 = vunpack.i.l.bf16 %v8773_v50  ;;  %v11391_v27 = vpop.permute.xlu1 %8782  ;;  %vm14225_vm0 = vcmask 1043456  }
 0x246   : > { %v3867_v50 = vsel %vm14218_vm5, %v3835_v51, %v8774_v37  ;;  %v14219_v37 = vld [vmem:[#allocation21_spill] sm:$0xff] }
 0x247   : > { %8972 = vrot.lane.b32.xlu0 %v8971_v62, %s9594_s28  ;;  %v8986_v62 = vpack.i.bf16 %v3286_v17, %v11246_v57  ;;  %vm14220_vm5 = vnez %v14219_v37 }
 0x248   : > { %8977 = vrot.lane.b32.xlu1 %v8976_v59, %s9594_s28  ;;  %v11398_v59 = vsel %vm14213_vm11, %v3136_v35, %v8760_v38  ;;  %v8785_v38 = vunpack.i.h.bf16 %v11391_v27  ;;  %v13702_v35 = vunpack.i.l.bf16 %v11391_v27  ;;  %v8788_v22 = vpop.permute.xlu1 %8787  ;;  %v3633_v51 = vsel %vm14220_vm5, %v11410_v20, 0.0  ;;  %vm14224_vm5 = vmmov %vm14223_vm13 }
 0x249   : > { %14214 = vst [vmem:[#allocation53_spill] sm:$0xff] %v11398_v59  ;;  %v3868_v17 = vsel %vm14217_vm14, %v11398_v59, %v8775_v40  ;;  %v9001_v40 = vpack.i.bf16 %v3290_v46, %v11275_v13  ;;  %v3138_v59 = vld [vmem:[#allocation2 + $0x3f] sm:$0xff]  ;;  %v8790_v54 = vunpack.i.h.bf16 %v8788_v22  ;;  %v8789_v5 = vunpack.i.l.bf16 %v8788_v22  ;;  %vm14222_vm14 = vmmov %vm14216_vm9 }
 0x24a   : > { %v3898_v45 = vpack.c.bf16 %v3868_v17, %v3867_v50  ;;  %vm14221_vm11 = vcmask 195584   ;;  %v11426_v29 = vsel %vm14216_vm9, %v3138_v59, %v8785_v38  ;;  %v4484_v59 = vsel %vm14130_vm1, %v11021_v53, 0.0  ;;  %v11444_v38 = vld [vmem:[%s13524_s2 + $0x3c] sm:$0xff]  }
 0x24b   : > { %8982 = vrot.lane.b32.xlu0 %v8981_v60, %s9594_s28  ;;  %v9575_v60 = vld [vmem:[%s13524_s2 + $0x2c] ss:$0 sps:$4 sm:$0xff]   ;;  %v3870_v22 = vsel %vm14224_vm5, %v11426_v29, %v8790_v54  ;;  %v11451_v54 = vpop.permute.xlu0 %8777  ;;  %v9011_v53 = vpack.i.bf16 %v4484_v59, %v11024_v31  ;;  %vm14230_vm5 = vmmov %vm14216_vm9 }
 0x24c   : > { %8987 = vrot.lane.b32.xlu1 %v8986_v62, %s9594_s28  ;;  %7923 = vmatmul.mubr.msk.bf16.vlgmr.msra.gmra.mrb[32].mxu1 %vm14221_vm11, %v3898_v45  ;;  %v3837_v62 = vsel %vm14222_vm14, %v3633_v51, %v13702_v35  ;;  %vm14226_vm11 = vmmov %vm14225_vm0  ;;  %v13701_v45 = vunpack.i.l.bf16 %v11451_v54  ;;  %vm14232_vm14 = vcmask 130048  }
 0x24d   : > { %7955 = vmatpush3.bf16.msra.mxu1 %v11107_v28  ;;  %v3869_v46 = vsel %vm14223_vm13, %v3837_v62, %v8789_v5  ;;  %v4192_v50 = vsel %vm14226_vm11, %v9575_v60, 0  ;;  %v4486_v28 = vsel %vm14138_vm3, %v11032_v41, 0.0  ;;  %vm14227_vm13 = vcmask 195584   ;;  %vm14231_vm9 = vmmov %vm14230_vm5 }
 0x24e   : > { %8335 = vmatprep.subr.msk.bf16.mxu1 %vm14225_vm0, %v9575_v60  ;;  %v3899_v17 = vpack.c.bf16 %v3870_v22, %v3869_v46  ;;  %v9016_v5 = vpack.i.bf16 %v4486_v28, %v11041_v42  ;;  %v3140_v60 = vld [vmem:[#allocation2 + $0x4f] sm:$0xff]  ;;  %v4488_v62 = vsel %vm14140_vm7, %v11063_v44, 0.0  ;;  %vm14233_vm11 = vmmov %vm14232_vm14  ;;  %v11487_v44 = vld [vmem:[#allocation2 + $0x57] sm:$0xff] }
 0x24f   : > { %8992 = vrot.lane.b32.xlu0 %v8991_v7, %s9594_s28  ;;  %v11461_v7 = vld [vmem:[#allocation2 + $0x47] sm:$0xff] }
 0x250   : > { %9002 = vrot.lane.b32.xlu1 %v9001_v40, %s9594_s28  ;;  %7926 = vmatprep.mubr.msk.bf16.mxu1 %vm14227_vm13, %v3899_v17  ;;  %v8793_v41 = vpop.permute.xlu0 %8792  ;;  %v4490_v17 = vsel %vm14145_vm8, %v11074_v43, 0.0  ;;  %vm14239_vm8 = vmmov %vm14233_vm11 }
 0x251   : > { %7957 = vmatpush3.bf16.msra.mxu1 %v4192_v50  ;;  %v8795_v40 = vunpack.i.h.bf16 %v8793_v41  ;;  %v8794_v42 = vunpack.i.l.bf16 %v8793_v41  ;;  %v11468_v51 = vpop.permute.xlu1 %8802  ;;  %v9036_v43 = vpack.i.bf16 %v4490_v17, %v11083_v63  ;;  %v14234_v41 = vld [vmem:[#allocation23_spill] sm:$0xff]  ;;  %v4492_v17 = vsel %vm14147_vm6, %v11114_v18, 0.0 }
 0x252   : > { %7990 = vmatprep.subr.bf16.mxu1 %v11444_v38  ;;  %v8805_v28 = vunpack.i.h.bf16 %v11468_v51  ;;  %vm14235_vm13 = vnez %v14234_v41  ;;  %vm14254_vm6 = vcmask 130048   ;;  %v14616_v41 = vld [vmem:[#allocation13_spill] sm:$0xff] }
 0x253   : > { %8997 = vrot.lane.b32.xlu0 %v10987_v9, %s9593_s27  ;;  %v8780_v9 = vunpack.i.h.bf16 %v11451_v54  ;;  %vm14255_vm7 = vmmov %vm14254_vm6 }
 0x254   : > { %9007 = vrot.lane.b32.xlu1 %v11036_v10, %s9593_s27  ;;  %v14228_v10 = vld [vmem:[#allocation22_spill] sm:$0xff] }
 0x255   : > { %vm14229_vm0 = vnez %v14228_v10  ;;  %v11474_v46 = vsel %vm14230_vm5, %v3140_v60, %v8780_v9  ;;  %v8808_v9 = vpop.permute.xlu1 %8807  ;;  %v3637_v60 = vsel %vm14235_vm13, %v11487_v44, 0.0  ;;  %vm14237_vm5 = vcmask 195584  }
 0x256   : > { %v3635_v31 = vsel %vm14229_vm0, %v11461_v7, 0.0  ;;  %v3872_v59 = vsel %vm14232_vm14, %v11474_v46, %v8795_v40  ;;  %v8810_v40 = vunpack.i.h.bf16 %v8808_v9  ;;  %vm14238_vm14 = vmmov %vm14231_vm9 }
 0x257   : > { %9012 = vrot.lane.b32.xlu0 %v9011_v53, %s9594_s28  ;;  %v3839_v22 = vsel %vm14231_vm9, %v3635_v31, %v13701_v45  ;;  %v13700_v53 = vunpack.i.l.bf16 %v11468_v51  ;;  %v11498_v31 = vld [vmem:[#allocation2 + $0x5f] sm:$0xff] }
 0x258   : > { %9017 = vrot.lane.b32.xlu1 %v9016_v5, %s9594_s28  ;;  %v3871_v50 = vsel %vm14233_vm11, %v3839_v22, %v8794_v42  ;;  %14236 = vst [vmem:[#allocation54_spill] sm:$0xff] %v11498_v31  ;;  %v8809_v42 = vunpack.i.l.bf16 %v8808_v9  ;;  %v14257_v45 = vld [vmem:[#allocation25_spill] sm:$0xff] }
 0x259   : > { %v3900_v5 = vpack.c.bf16 %v3872_v59, %v3871_v50  ;;  %v14240_v59 = vld [vmem:[#allocation35_spill] sm:$0xff] }
 0x25b   : > { %9022 = vrot.lane.b32.xlu0 %v11051_v61, %s9593_s27  ;;  %v9031_v61 = vpack.i.bf16 %v4488_v62, %v11066_v23  ;;  %7927 = vmatmul.mubr.msk.bf16.gmra.mrb[36].mxu1 %vm14237_vm5, %v3900_v5  ;;  %v3841_v23 = vsel %vm14238_vm14, %v3637_v60, %v13700_v53  ;;  %vm14241_vm5 = vnez %v14152_v15  ;;  %v14243_v5 = vld [vmem:[#allocation36_spill] sm:$0xff]  ;;  %v11530_v60 = vld [vmem:[#allocation2 + $0x67] sm:$0xff]  ;;  %vm14248_vm14 = vnez %v14156_v3 }
 0x25c   : > { %9027 = vrot.lane.b32.xlu1 %v11078_v33, %s9593_s27  ;;  %v11504_v33 = vsel %vm14231_vm9, %v11498_v31, %v8805_v28  ;;  %v3873_v63 = vsel %vm14233_vm11, %v3841_v23, %v8809_v42  ;;  %v4494_v50 = vsel %vm14241_vm5, %v11125_v0, 0.0  ;;  %v11521_v28 = vpop.permute.xlu0 %8797  ;;  %vm14242_vm9 = vcmask 195584   ;;  %v14245_v42 = vld [vmem:[#allocation24_spill] sm:$0xff] }
 0x25d   : > { %v3874_v62 = vsel %vm14239_vm8, %v11504_v33, %v8810_v40  ;;  %v9056_v9 = vpack.i.bf16 %v4494_v50, %v11132_v36  ;;  %v8800_v18 = vunpack.i.h.bf16 %v11521_v28  ;;  %v11534_v40 = vld [vmem:[#allocation2 + $0x6f] sm:$0xff]  ;;  %vm14246_vm8 = vnez %v14245_v42 }
 0x25e   : > { %v3901_v22 = vpack.c.bf16 %v3874_v62, %v3873_v63  ;;  %14244 = vst [vmem:[#allocation35_spill] sm:$0xff] %v11534_v40  ;;  %v3639_v23 = vsel %vm14246_vm8, %v11530_v60, 0.0  ;;  %v4496_v62 = vsel %vm14248_vm14, %v11152_v58, 0.0  ;;  %vm14249_vm11 = vcmask 64512   ;;  %v14252_v50 = vld [vmem:[#allocation10_spill] sm:$0xff] }
 0x25f   : > { %9032 = vrot.lane.b32.xlu0 %v9031_v61, %s9594_s28  ;;  %v9051_v61 = vpack.i.bf16 %v4492_v17, %v11118_v24  ;;  %vm14253_vm5 = vnez %v14252_v50 }
 0x260   : > { %9037 = vrot.lane.b32.xlu1 %v9036_v43, %s9594_s28  ;;  %7930 = vmatprep.mubr.msk.bf16.mxu1 %vm14242_vm9, %v3901_v22  ;;  %v13699_v43 = vunpack.i.l.bf16 %v11521_v28  ;;  %v8813_v0 = vpop.permute.xlu0 %8812  ;;  %v11546_v22 = vsel %vm14249_vm11, %v11534_v40, %v8800_v18  ;;  %vm14250_vm9 = vmmov %vm14249_vm11 }
 0x261   : > { %v8815_v24 = vunpack.i.h.bf16 %v8813_v0  ;;  %v8814_v63 = vunpack.i.l.bf16 %v8813_v0  ;;  %v11539_v36 = vpop.permute.xlu1 %8822  ;;  %vm14261_vm11 = vmmov %vm14250_vm9 }
 0x262   : > { %14247 = vst [vmem:[#allocation36_spill] sm:$0xff] %v11539_v36  ;;  %v3843_v17 = vsel %vm14250_vm9, %v3639_v23, %v13699_v43  ;;  %v8825_v18 = vunpack.i.h.bf16 %v11539_v36  ;;  %v13703_v0 = vunpack.i.l.bf16 %v11539_v36  ;;  %v14256_v23 = vld [vmem:[#allocation38_spill] sm:$0xff] }
 0x263   : > { %9042 = vrot.lane.b32.xlu0 %v14240_v59, %s9593_s27  ;;  %v14251_v59 = vld [vmem:[#allocation37_spill] sm:$0xff]  ;;  %v3875_v58 = vsel %vm14255_vm7, %v3843_v17, %v8814_v63  ;;  %vm14260_vm7 = vcmask 195584  }
 0x264   : > { %9047 = vrot.lane.b32.xlu1 %v14243_v5, %s9593_s27  ;;  %v4498_v5 = vsel %vm14253_vm5, %v11163_v52, 0.0  ;;  %v11570_v63 = vld [vmem:[#allocation2 + $0x7f] sm:$0xff]  ;;  %vm14263_vm5 = vcmask 130048  }
 0x265   : > { %v8828_v53 = vpop.permute.xlu1 %8827  ;;  %v9076_v52 = vpack.i.bf16 %v4498_v5, %v11170_v11  ;;  %14259 = vst [vmem:[#allocation37_spill] sm:$0xff] %v11570_v63  ;;  %v11581_v11 = vpop.permute.xlu0 %8817  ;;  %vm14264_vm14 = vmmov %vm14263_vm5 }
 0x266   : > { %v8830_v17 = vunpack.i.h.bf16 %v8828_v53  ;;  %v8829_v35 = vunpack.i.l.bf16 %v8828_v53 }
 0x267   : > { %9052 = vrot.lane.b32.xlu0 %v9051_v61, %s9594_s28  ;;  %v3876_v61 = vsel %vm14254_vm6, %v11546_v22, %v8815_v24  ;;  %vm14258_vm6 = vnez %v14257_v45 }
 0x268   : > { %9057 = vrot.lane.b32.xlu1 %v9056_v9, %s9594_s28  ;;  %v11559_v9 = vld [vmem:[#allocation2 + $0x77] sm:$0xff]  ;;  %v3902_v43 = vpack.c.bf16 %v3876_v61, %v3875_v58  ;;  %v11576_v61 = vsel %vm14261_vm11, %v11570_v63, %v8825_v18  ;;  %v8820_v58 = vunpack.i.h.bf16 %v11581_v11  ;;  %vm14273_vm11 = vmmov %vm14250_vm9 }
 0x269   : > { %v3641_v24 = vsel %vm14258_vm6, %v11559_v9, 0.0  ;;  %14262 = vst [vmem:[#allocation38_spill] sm:$0xff] %v11576_v61  ;;  %v3878_v53 = vsel %vm14264_vm14, %v11576_v61, %v8830_v17 }
 0x26a   : > { %7931 = vmatmul.mubr.msk.bf16.gmra.mrb[40].mxu1 %vm14260_vm7, %v3902_v43  ;;  %vm14265_vm7 = vnez %v14165_v32 }
 0x26b   : > { %9062 = vrot.lane.b32.xlu0 %v14251_v59, %s9593_s27  ;;  %v9071_v59 = vpack.i.bf16 %v4496_v62, %v11156_v47  ;;  %v3845_v47 = vsel %vm14250_vm9, %v3641_v24, %v13703_v0  ;;  %v4500_v5 = vsel %vm14265_vm7, %v11190_v49, 0.0  ;;  %v14269_v24 = vld [vmem:[#allocation40_spill] sm:$0xff]  ;;  %vm14329_vm7 = vcmask 130048  }
 0x26c   : > { %9067 = vrot.lane.b32.xlu1 %v14256_v23, %s9593_s27  ;;  %v3877_v62 = vsel %vm14263_vm5, %v3845_v47, %v8829_v35  ;;  %v11592_v23 = vld [vmem:[#allocation2 + $0x87] sm:$0xff]  ;;  %v4502_v35 = vsel %vm14172_vm4, %v11201_v34, 0.0  ;;  %vm14268_vm5 = vcmask 195584   ;;  %v8833_v17 = vpop.permute.xlu0 %8832  ;;  %v9091_v49 = vpack.i.bf16 %v4500_v5, %v11194_v26  ;;  %v11603_v47 = vld [vmem:[#allocation2 + $0x8f] sm:$0xff]  ;;  %vm14330_vm1 = vmmov %vm14329_vm7 }
 0x26d   : > { %v3903_v43 = vpack.c.bf16 %v3878_v53, %v3877_v62  ;;  %v14271_v62 = vld [vmem:[#allocation26_spill] sm:$0xff]  ;;  %v8835_v0 = vunpack.i.h.bf16 %v8833_v17  ;;  %v11608_v18 = vpop.permute.xlu1 %8842  ;;  %v9096_v34 = vpack.i.bf16 %v4502_v35, %v11208_v4  ;;  %v14281_v4 = vld [vmem:[#allocation41_spill] sm:$0xff] }
 0x26e   : > { %vm14272_vm14 = vnez %v14271_v62  ;;  %v8845_v32 = vunpack.i.h.bf16 %v11608_v18 }
 0x26f   : > { %9072 = vrot.lane.b32.xlu0 %v9071_v59, %s9594_s28  ;;  %v14266_v59 = vld [vmem:[#allocation39_spill] sm:$0xff]  ;;  %7934 = vmatprep.mubr.msk.bf16.mxu1 %vm14268_vm5, %v3903_v43  ;;  %v3643_v53 = vsel %vm14272_vm14, %v11592_v23, 0.0  ;;  %v11613_v43 = vsel %vm14273_vm11, %v11603_v47, %v8820_v58  ;;  %vm14275_vm5 = vcmask 130048  }
 0x270   : > { %9077 = vrot.lane.b32.xlu1 %v9076_v52, %s9594_s28  ;;  %14270 = vst [vmem:[#allocation39_spill] sm:$0xff] %v11603_v47  ;;  %v3880_v5 = vsel %vm14275_vm5, %v11613_v43, %v8835_v0  ;;  %vm14276_vm4 = vmmov %vm14275_vm5  ;;  %v11648_v16 = vpop.permute.xlu0 %8837 }
 0x271   : > { %v8848_v35 = vpop.permute.xlu1 %8847  ;;  %vm14283_vm5 = vmmov %vm14250_vm9  ;;  %v8840_v50 = vunpack.i.h.bf16 %v11648_v16  ;;  %v13711_v3 = vunpack.i.l.bf16 %v11648_v16 }
 0x273   : > { %9082 = vrot.lane.b32.xlu0 %v14266_v59, %s9593_s27  ;;  %v8834_v59 = vunpack.i.l.bf16 %v8833_v17  ;;  %v11622_v17 = vld [vmem:[#allocation2 + $0x97] sm:$0xff] }
 0x274   : > { %9087 = vrot.lane.b32.xlu1 %v14269_v24, %s9593_s27  ;;  %v14274_v24 = vunpack.i.l.bf16 %v11581_v11 }
 0x276   : > { %v3847_v26 = vsel %vm14250_vm9, %v3643_v53, %v14274_v24  ;;  %v4504_v53 = vsel %vm14176_vm12, %v11228_v1, 0.0  ;;  %v11633_v24 = vld [vmem:[#allocation2 + $0x9f] sm:$0xff] }
 0x277   : > { %9092 = vrot.lane.b32.xlu0 %v9091_v49, %s9594_s28  ;;  %v3879_v52 = vsel %vm14276_vm4, %v3847_v26, %v8834_v59  ;;  %v14277_v49 = vld [vmem:[#allocation27_spill] sm:$0xff]  ;;  %14279 = vst [vmem:[#allocation40_spill] sm:$0xff] %v11633_v24  ;;  %v8850_v59 = vunpack.i.h.bf16 %v8848_v35  ;;  %v8849_v26 = vunpack.i.l.bf16 %v8848_v35  ;;  %vm14280_vm4 = vcmask 195584   ;;  %v14284_v35 = vld [vmem:[#allocation42_spill] sm:$0xff] }
 0x278   : > { %9097 = vrot.lane.b32.xlu1 %v9096_v34, %s9594_s28  ;;  %v3904_v58 = vpack.c.bf16 %v3880_v5, %v3879_v52  ;;  %vm14278_vm11 = vnez %v14277_v49  ;;  %v4506_v52 = vsel %vm14182_vm2, %v11239_v2, 0.0  ;;  %v11643_v1 = vsel %vm14250_vm9, %v11633_v24, %v8845_v32  ;;  %14298 = vst [vmem:[#allocation42_spill] sm:$0xff] %v11700_v39 }
 0x279   : > { %v3645_v0 = vsel %vm14278_vm11, %v11622_v17, 0.0  ;;  %v14282_v34 = vunpack.i.l.bf16 %v11608_v18  ;;  %v9111_v2 = vpack.i.bf16 %v4504_v53, %v11232_v48  ;;  %v9116_v32 = vpack.i.bf16 %v4506_v52, %v11246_v57  ;;  %v14289_v48 = vld [vmem:[#allocation28_spill] sm:$0xff] }
 0x27a   : > { %7935 = vmatmul.mubr.msk.bf16.gmra.mrb[44].mxu1 %vm14280_vm4, %v3904_v58  ;;  %vm14285_vm4 = vcmask 130048   ;;  %vm14287_vm9 = vcmask 195584  }
 0x27b   : > { %9102 = vrot.lane.b32.xlu0 %v14281_v4, %s9593_s27  ;;  %v3849_v5 = vsel %vm14283_vm5, %v3645_v0, %v14282_v34  ;;  %vm14286_vm12 = vmmov %vm14285_vm4  ;;  %v11659_v0 = vld [vmem:[#allocation2 + $0xa7] sm:$0xff]  ;;  %v11664_v34 = vld [vmem:[#allocation2 + $0xaf] sm:$0xff] }
 0x27c   : > { %9107 = vrot.lane.b32.xlu1 %v14284_v35, %s9593_s27  ;;  %v3881_v58 = vsel %vm14285_vm4, %v3849_v5, %v8849_v26  ;;  %v3882_v4 = vsel %vm14286_vm12, %v11643_v1, %v8850_v59  ;;  %v8853_v26 = vpop.permute.xlu0 %8852  ;;  %14288 = vst [vmem:[#allocation41_spill] sm:$0xff] %v11664_v34  ;;  %vm14290_vm12 = vnez %v14289_v48  ;;  %v11669_v52 = vpop.permute.xlu1 %8862  ;;  %v4508_v5 = vsel %vm14185_vm15, %v11262_v8, 0.0  ;;  %vm14291_vm4 = vmmov %vm14283_vm5 }
 0x27d   : > { %v3905_v30 = vpack.c.bf16 %v3882_v4, %v3881_v58  ;;  %v3647_v53 = vsel %vm14290_vm12, %v11659_v0, 0.0  ;;  %v8855_v57 = vunpack.i.h.bf16 %v8853_v26  ;;  %v8854_v59 = vunpack.i.l.bf16 %v8853_v26  ;;  %v14292_v58 = vld [vmem:[#allocation43_spill] sm:$0xff] }
 0x27e   : > { %v3851_v35 = vsel %vm14291_vm4, %v3647_v53, %v13711_v3  ;;  %v4510_v4 = vsel %vm14190_vm10, %v11270_v19, 0.0  ;;  %v14295_v53 = vld [vmem:[#allocation44_spill] sm:$0xff]  ;;  %vm14302_vm10 = vcmask 130048  }
 0x27f   : > { %9112 = vrot.lane.b32.xlu0 %v9111_v2, %s9594_s28  ;;  %7938 = vmatprep.mubr.msk.bf16.mxu1 %vm14287_vm9, %v3905_v30  ;;  %v11676_v30 = vsel %vm14283_vm5, %v11664_v34, %v8840_v50  ;;  %vm14293_vm9 = vcmask 130048   ;;  %v8865_v50 = vunpack.i.h.bf16 %v11669_v52  ;;  %v9141_v15 = vpack.i.bf16 %v4510_v4, %v11275_v13  ;;  %vm14303_vm15 = vmmov %vm14302_vm10  ;;  %v11774_v34 = vld [vmem:[#allocation2 + $0xe7] sm:$0xff] }
 0x280   : > { %9117 = vrot.lane.b32.xlu1 %v9116_v32, %s9594_s28  ;;  %v3884_v2 = vsel %vm14293_vm9, %v11676_v30, %v8855_v57  ;;  %vm14294_vm2 = vmmov %vm14293_vm9  ;;  %v11689_v32 = vld [vmem:[#allocation2 + $0xb7] sm:$0xff]  ;;  %v4482_v57 = vld [vmem:[#allocation2 + $0x121] sm:$0xff]  ;;  %vm14299_vm5 = vcmask 195584   ;;  %v11711_v4 = vpop.permute.xlu0 %8857  ;;  %14331 = vst [vmem:[#allocation56_spill] sm:$0xff] %v11774_v34 }
 0x281   : > { %v3883_v8 = vsel %vm14294_vm2, %v3851_v35, %v8854_v59  ;;  %v8868_v19 = vpop.permute.xlu1 %8867  ;;  %v14296_v59 = vld [vmem:[#allocation29_spill] sm:$0xff]  ;;  %vm14301_vm9 = vmmov %vm14291_vm4 }
 0x282   : > { %v3906_v3 = vpack.c.bf16 %v3884_v2, %v3883_v8  ;;  %vm14297_vm2 = vnez %v14296_v59  ;;  %v8870_v12 = vunpack.i.h.bf16 %v8868_v19  ;;  %v8869_v26 = vunpack.i.l.bf16 %v8868_v19 }
 0x283   : > { %9122 = vrot.lane.b32.xlu0 %v14292_v58, %s9593_s27  ;;  %v9131_v58 = vpack.i.bf16 %v4508_v5, %v11264_v6  ;;  %v3649_v35 = vsel %vm14297_vm2, %v11689_v32, 0.0  ;;  %v11706_v6 = vsel %vm14291_vm4, %v11700_v39, %v8865_v50  ;;  %v14300_v5 = vunpack.i.l.bf16 %v11669_v52 }
 0x284   : > { %9127 = vrot.lane.b32.xlu1 %v14295_v53, %s9593_s27  ;;  %7939 = vmatmul.mubr.msk.bf16.gmra.mrb[48].mxu1 %vm14299_vm5, %v3906_v3  ;;  %v9146_v2 = vpack.i.bf16 %v4450_v14, %v4449_v25  ;;  %v3886_v3 = vsel %vm14303_vm15, %v11706_v6, %v8870_v12  ;;  %v4481_v53 = vld [vmem:[#allocation2 + $0x119] sm:$0xff]  ;;  %vm14308_vm4 = vnez %v14307_v56  ;;  %v14309_v25 = vld [vmem:[#allocation46_spill] sm:$0xff] }
 0x285   : > { %v3853_v13 = vsel %vm14301_vm9, %v3649_v35, %v14300_v5  ;;  %v4512_v55 = vsel %vm14308_vm4, %v14306_v21, 0.0  ;;  %v8860_v35 = vunpack.i.h.bf16 %v11711_v4  ;;  %v14313_v21 = vld [vmem:[#allocation30_spill] sm:$0xff] }
 0x286   : > { %v3885_v8 = vsel %vm14302_vm10, %v3853_v13, %v8869_v26  ;;  %vm14310_vm10 = vcmask 195584   ;;  %v14311_v26 = vld [vmem:[#allocation47_spill] sm:$0xff]  ;;  %vm14314_vm15 = vnez %v14313_v21 }
 0x287   : > { %9132 = vrot.lane.b32.xlu0 %v9131_v58, %s9594_s28  ;;  %v14304_v58 = vld [vmem:[#allocation18_spill] sm:$0xff]  ;;  %v3907_v50 = vpack.c.bf16 %v3886_v3, %v3885_v8 }
 0x288   : > { %9142 = vrot.lane.b32.xlu1 %v9141_v15, %s9594_s28  ;;  %vm14305_vm5 = vnez %v14304_v58  ;;  %v11724_v15 = vld [vmem:[#allocation2 + $0xc7] sm:$0xff]  ;;  %v11731_v13 = vld [vmem:[#allocation2 + $0xcf] sm:$0xff] }
 0x289   : > { %v4514_v19 = vsel %vm14305_vm5, %v4482_v57, 0.0  ;;  %7942 = vmatprep.mubr.msk.bf16.mxu1 %vm14310_vm10, %v3907_v50  ;;  %v9151_v57 = vpack.i.bf16 %v4512_v55, %v14311_v26  ;;  %14312 = vst [vmem:[#allocation43_spill] sm:$0xff] %v11731_v13  ;;  %v3651_v8 = vsel %vm14314_vm15, %v11724_v15, 0.0  ;;  %vm14318_vm10 = vmmov %vm14301_vm9  ;;  %vm14319_vm5 = vcmask 130048   ;;  %v11749_v50 = vld [vmem:[#allocation2 + $0xd7] sm:$0xff] }
 0x28a   : > { %v9156_v12 = vpack.i.bf16 %v4514_v19, %v4481_v53  ;;  %vm14320_vm4 = vmmov %vm14319_vm5 }
 0x28b   : > { %9137 = vrot.lane.b32.xlu0 %v14309_v25, %s9593_s27  ;;  %v8873_v14 = vpop.permute.xlu0 %8872  ;;  %v11736_v58 = vpop.permute.xlu1 %8882  ;;  %v11740_v25 = vsel %vm14301_vm9, %v11731_v13, %v8860_v35  ;;  %v14321_v13 = vld [vmem:[#allocation31_spill] sm:$0xff] }
 0x28c   : > { %9147 = vrot.lane.b32.xlu1 %v9146_v2, %s9593_s27  ;;  %v8875_v3 = vunpack.i.h.bf16 %v8873_v14  ;;  %v8874_v5 = vunpack.i.l.bf16 %v8873_v14  ;;  %14315 = vst [vmem:[#allocation44_spill] sm:$0xff] %v11736_v58  ;;  %14316 = vst [vmem:[#allocation45_spill] sm:$0xff] %v11740_v25  ;;  %v14317_v2 = vunpack.i.l.bf16 %v11711_v4  ;;  %v8885_v14 = vunpack.i.h.bf16 %v11736_v58 }
 0x28d   : > { %v13727_v26 = vunpack.i.l.bf16 %v11736_v58  ;;  %vm14322_vm9 = vnez %v14321_v13 }
 0x28e   : > { %v3855_v53 = vsel %vm14318_vm10, %v3651_v8, %v14317_v2  ;;  %v3888_v55 = vsel %vm14319_vm5, %v11740_v25, %v8875_v3  ;;  %v3653_v8 = vsel %vm14322_vm9, %v11749_v50, 0.0  ;;  %vm14324_vm5 = vcmask 195584  }
 0x28f   : > { %9152 = vrot.lane.b32.xlu0 %v9151_v57, %s9594_s28  ;;  %v3887_v19 = vsel %vm14320_vm4, %v3855_v53, %v8874_v5  ;;  %v11757_v57 = vld [vmem:[#allocation2 + $0xdf] sm:$0xff]  ;;  %vm14325_vm4 = vmmov %vm14318_vm10  ;;  %v11767_v53 = vpop.permute.xlu0 %8877 }
 0x290   : > { %9157 = vrot.lane.b32.xlu1 %v9156_v12, %s9594_s28  ;;  %v3908_v35 = vpack.c.bf16 %v3888_v55, %v3887_v19  ;;  %v8888_v56 = vpop.permute.xlu1 %8887  ;;  %14323 = vst [vmem:[#allocation46_spill] sm:$0xff] %v11757_v57  ;;  %v11762_v5 = vsel %vm14325_vm4, %v11757_v57, %v8885_v14  ;;  %vm14327_vm10 = vmmov %vm14325_vm4  ;;  %v11777_v57 = vld [vmem:[#allocation2 + $0xef] sm:$0xff] }
 0x291   : > { %v8890_v2 = vunpack.i.h.bf16 %v8888_v56  ;;  %v8889_v3 = vunpack.i.l.bf16 %v8888_v56  ;;  %14326 = vst [vmem:[#allocation47_spill] sm:$0xff] %v11762_v5  ;;  %v3857_v12 = vsel %vm14327_vm10, %v3653_v8, %v13727_v26  ;;  %14328 = vst [vmem:[#allocation55_spill] sm:$0xff] %v11767_v53  ;;  %v8880_v56 = vunpack.i.h.bf16 %v11767_v53  ;;  %v14333_v8 = vld [vmem:[#allocation32_spill] sm:$0xff] }
 0x292   : > { %7943 = vmatmul.mubr.msk.bf16.gmra.mrb[52].mxu1 %vm14324_vm5, %v3908_v35  ;;  %v13735_v35 = vunpack.i.l.bf16 %v11767_v53  ;;  %14332 = vst [vmem:[#allocation57_spill] sm:$0xff] %v11777_v57  ;;  %vm14334_vm4 = vnez %v14333_v8  ;;  %v11801_v53 = vld [vmem:[#allocation2 + $0x107] sm:$0xff] }
 0x293   : > { %v3889_v55 = vsel %vm14329_vm7, %v3857_v12, %v8889_v3  ;;  %v3890_v19 = vsel %vm14330_vm1, %v11762_v5, %v8890_v2  ;;  %v3655_v26 = vsel %vm14334_vm4, %v11774_v34, 0.0  ;;  %vm14336_vm1 = vmmov %vm14327_vm10  ;;  %vm14340_vm10 = vcmask 130048   ;;  %14344 = vst [vmem:[#allocation61_spill] sm:$0xff] %v11801_v53 }
 0x294   : > { %v3909_v39 = vpack.c.bf16 %v3890_v19, %v3889_v55  ;;  %v11786_v2 = vsel %vm14336_vm1, %v11777_v57, %v8880_v56  ;;  %vm14338_vm7 = vmmov %vm14336_vm1  ;;  %v14342_v56 = vld [vmem:[#allocation33_spill] sm:$0xff] }
 0x295   : > { %14337 = vst [vmem:[#allocation59_spill] sm:$0xff] %v11786_v2  ;;  %v3859_v55 = vsel %vm14338_vm7, %v3655_v26, %v13735_v35  ;;  %vm14343_vm1 = vnez %v14342_v56  ;;  %v11803_v35 = vld [vmem:[#allocation2 + $0xff] sm:$0xff]  ;;  %vm14346_vm7 = vcmask 195584  }
 0x296   : > { %7946 = vmatprep.mubr.msk.bf16.mxu1 %vm14324_vm5, %v3909_v39  ;;  %v11791_v39 = vld [vmem:[#allocation2 + $0xf7] sm:$0xff]  ;;  %vm14341_vm5 = vmmov %vm14340_vm10  ;;  %14345 = vst [vmem:[#allocation62_spill] sm:$0xff] %v11803_v35 }
 0x297   : > { %14339 = vst [vmem:[#allocation60_spill] sm:$0xff] %v11791_v39  ;;  %v3657_v57 = vsel %vm14343_vm1, %v11791_v39, 0.0  ;;  %vm14352_vm1 = vcmask 130048  }
 0x298   : > { %vm14353_vm4 = vmmov %vm14352_vm1 }
 0x299   : > { %v8893_v14 = vpop.permute.xlu0 %8892 }
 0x29a   : > { %v8895_v3 = vunpack.i.h.bf16 %v8893_v14  ;;  %v8894_v12 = vunpack.i.l.bf16 %v8893_v14  ;;  %v11782_v24 = vpop.permute.xlu1 %8902 }
 0x29b   : > { %14335 = vst [vmem:[#allocation58_spill] sm:$0xff] %v11782_v24  ;;  %v8905_v63 = vunpack.i.h.bf16 %v11782_v24  ;;  %v13747_v14 = vunpack.i.l.bf16 %v11782_v24 }
 0x29c   : > { %v3892_v19 = vsel %vm14340_vm10, %v11786_v2, %v8895_v3  ;;  %v3891_v47 = vsel %vm14341_vm5, %v3859_v55, %v8894_v12  ;;  %v3131_v12 = vld [vmem:[#allocation2 + $0x7] sm:$0xff]  ;;  %vm14347_vm10 = vcmask 64512  }
 0x29d   : > { %v8898_v40 = vpop.permute.xlu0 %8897  ;;  %v3910_v31 = vpack.c.bf16 %v3892_v19, %v3891_v47  ;;  %v11808_v55 = vsel %vm14347_vm10, %v11803_v35, %v8905_v63  ;;  %vm14349_vm5 = vmmov %vm14347_vm10  ;;  %v14350_v19 = vld [vmem:[#allocation34_spill] sm:$0xff]  ;;  %v14355_v35 = vld [vmem:[#allocation19_spill] sm:$0xff] }
 0x29e   : > { %v8908_v26 = vpop.permute.xlu1 %8907  ;;  %v8900_v5 = vunpack.i.h.bf16 %v8898_v40  ;;  %v8899_v61 = vunpack.i.l.bf16 %v8898_v40  ;;  %14348 = vst [vmem:[#allocation63_spill] sm:$0xff] %v11808_v55  ;;  %v3861_v47 = vsel %vm14349_vm5, %v3657_v57, %v13747_v14  ;;  %vm14351_vm3 = vnez %v14350_v19  ;;  %v3132_v63 = vld [vmem:[#allocation2 + $0xf] sm:$0xff]  ;;  %vm14357_vm10 = vmmov %vm14349_vm5 }
 0x29f   : > { %v8910_v3 = vunpack.i.h.bf16 %v8908_v26  ;;  %v8909_v2 = vunpack.i.l.bf16 %v8908_v26  ;;  %7947 = vmatmul.mubr.msk.bf16.gmra.mrb[56].mxu1 %vm14346_vm7, %v3910_v31  ;;  %v3659_v39 = vsel %vm14351_vm3, %v11801_v53, 0.0  ;;  %v11819_v31 = vld [vmem:[#allocation2 + $0x10f] sm:$0xff]  ;;  %vm14356_vm7 = vnez %v14355_v35  ;;  %vm14360_vm9 = vmmov %vm14349_vm5 }
 0x2a0   : > { %14354 = vst [vmem:[#allocation64_spill] sm:$0xff] %v11819_v31  ;;  %v3163_v24 = vsel %vm14356_vm7, %v3131_v12, 0.0  ;;  %v3863_v14 = vsel %vm14357_vm10, %v3659_v39, %v8899_v61  ;;  %v3864_v53 = vsel %vm14349_vm5, %v11819_v31, %v8900_v5  ;;  %vm14359_vm3 = vcmask 195584   ;;  %vm14361_vm15 = vmmov %vm14349_vm5  ;;  %v14363_v5 = vld [vmem:[#allocation49_spill] sm:$0xff] }
 0x2a1   : > { %v3893_v25 = vsel %vm14352_vm1, %v3861_v47, %v8909_v2  ;;  %v3894_v40 = vsel %vm14353_vm4, %v11808_v55, %v8910_v3  ;;  %v8913_v26 = vpop.permute.xlu0 %8912  ;;  %vm14358_vm4 = vmmov %vm14352_vm1 }
 0x2a2   : > { %v8915_v58 = vunpack.i.h.bf16 %v8913_v26  ;;  %v8914_v36 = vunpack.i.l.bf16 %v8913_v26  ;;  %v8918_v56 = vpop.permute.xlu1 %8917  ;;  %v3911_v57 = vpack.c.bf16 %v3894_v40, %v3893_v25  ;;  %vm14362_vm10 = vmmov %vm14359_vm3 }
 0x2a3   : > { %v8920_v2 = vunpack.i.h.bf16 %v8918_v56  ;;  %v8919_v47 = vunpack.i.l.bf16 %v8918_v56  ;;  %v14364_v56 = vld [vmem:[#allocation20_spill] sm:$0xff] }
 0x2a4   : > { %v3895_v3 = vsel %vm14352_vm1, %v3863_v14, %v8914_v36  ;;  %v3896_v55 = vsel %vm14358_vm4, %v3864_v53, %v8915_v58  ;;  %7950 = vmatprep.mubr.msk.bf16.mxu1 %vm14359_vm3, %v3911_v57  ;;  %vm14365_vm5 = vnez %v14364_v56  ;;  %vm14366_vm3 = vmmov %vm14352_vm1  ;;  %v14367_v14 = vld [vmem:[#allocation52_spill] sm:$0xff]  ;;  %v5322_v56 = vld [vmem:[#allocation2 + $0x8] sm:$0xff] }
 0x2a5   : > { %v3548_v26 = vsel %vm14360_vm9, %v3132_v63, %v8920_v2  ;;  %v3547_v35 = vsel %vm14361_vm15, %v3163_v24, %v8919_v47  ;;  %v8923_v12 = vpop.permute.xlu0 %8922  ;;  %v3912_v19 = vpack.c.bf16 %v3896_v55, %v3895_v3  ;;  %v3165_v36 = vsel %vm14365_vm5, %v14363_v5, 0.0  ;;  %v14369_v55 = vld [vmem:[#allocation48_spill] sm:$0xff]  ;;  %v14371_v3 = vld [vmem:[#allocation50_spill] sm:$0xff]  ;;  %vm14372_vm4 = vmmov %vm14352_vm1 }
 0x2a6   : > { %v8925_v25 = vunpack.i.h.bf16 %v8923_v12  ;;  %v8924_v40 = vunpack.i.l.bf16 %v8923_v12  ;;  %v8928_v61 = vpop.permute.xlu1 %8927  ;;  %vm14368_vm15 = vnez %v14219_v37  ;;  %v14370_v63 = vunpack.i.l.bf16 %v14369_v55 }
 0x2a7   : > { %v8930_v39 = vunpack.i.h.bf16 %v8928_v61  ;;  %v8929_v34 = vunpack.i.l.bf16 %v8928_v61  ;;  %7951 = vmatmul.mubr.msk.bf16.gmra.mrb[60].mxu1 %vm14362_vm10, %v3912_v19  ;;  %v3167_v24 = vsel %vm14368_vm15, %v14367_v14, 0.0  ;;  %vm14373_vm10 = vmmov %vm14352_vm1  ;;  %v14378_v14 = vld [vmem:[#allocation53_spill] sm:$0xff] }
 0x2a8   : > { %v3579_v58 = vsel %vm14352_vm1, %v3547_v35, %v8924_v40  ;;  %v3580_v53 = vsel %vm14366_vm3, %v3548_v26, %v8925_v25  ;;  %v3549_v57 = vsel %vm14360_vm9, %v3165_v36, %v14370_v63  ;;  %v14374_v40 = vld [vmem:[#allocation51_spill] sm:$0xff]  ;;  %vm14376_vm1 = vmmov %vm14360_vm9  ;;  %vm14377_vm3 = vcmask 195584  }
 0x2a9   : > { %v8933_v2 = vpop.permute.xlu0 %8932  ;;  %v3611_v47 = vpack.c.bf16 %v3580_v53, %v3579_v58  ;;  %v3582_v19 = vsel %vm14372_vm4, %v14371_v3, %v8930_v39  ;;  %v3581_v12 = vsel %vm14373_vm10, %v3549_v57, %v8929_v34  ;;  %v14375_v26 = vunpack.i.l.bf16 %v14374_v40  ;;  %vm14379_vm15 = vmmov %vm14372_vm4  ;;  %v9577_v34 = vld [vmem:[%s13524_s2 + $0x44] ss:$0 sps:$4 sm:$0xff]  }
 0x2aa   : > { %v8935_v61 = vunpack.i.h.bf16 %v8933_v2  ;;  %v8934_v5 = vunpack.i.l.bf16 %v8933_v2  ;;  %v8938_v35 = vpop.permute.xlu1 %8937  ;;  %vm14380_vm9 = vmmov %vm14372_vm4  ;;  %v3612_v58 = vpack.c.bf16 %v3582_v19, %v3581_v12  ;;  %v3173_v19 = vsel %vm14246_vm8, %v11487_v44, 0.0 }
 0x2ab   : > { %v3551_v25 = vsel %vm14376_vm1, %v3167_v24, %v14375_v26  ;;  %7958 = vmatprep.mubr.msk.bf16.mxu1 %vm14377_vm3, %v3611_v47  ;;  %v8940_v39 = vunpack.i.h.bf16 %v8938_v35  ;;  %v8939_v57 = vunpack.i.l.bf16 %v8938_v35  ;;  %vm14381_vm4 = vmmov %vm14377_vm3  ;;  %v3169_v24 = vsel %vm14229_vm0, %v11410_v20, 0.0 }
 0x2ac   : > { %v3584_v55 = vsel %vm14379_vm15, %v14378_v14, %v8935_v61  ;;  %v3583_v36 = vsel %vm14380_vm9, %v3551_v25, %v8934_v5  ;;  %v3171_v47 = vsel %vm14235_vm13, %v11461_v7, 0.0  ;;  %v3175_v12 = vsel %vm14258_vm6, %v11530_v60, 0.0  ;;  %vm14382_vm15 = vmmov %vm14377_vm3 }
 0x2ad   : > { %v8943_v53 = vpop.permute.xlu0 %8942  ;;  %v3613_v63 = vpack.c.bf16 %v3584_v55, %v3583_v36  ;;  %v14383_v61 = vunpack.i.l.bf16 %v11391_v27  ;;  %vm14384_vm10 = vmmov %vm14376_vm1  ;;  %v3179_v5 = vsel %vm14278_vm11, %v11592_v23, 0.0  ;;  %vm14385_vm1 = vcmask 1043456  }
 0x2ae   : > { %v8948_v2 = vpop.permute.xlu1 %8947  ;;  %v8945_v3 = vunpack.i.h.bf16 %v8943_v53  ;;  %v8944_v40 = vunpack.i.l.bf16 %v8943_v53  ;;  %vm14386_vm3 = vmmov %vm14385_vm1  ;;  %v3181_v27 = vsel %vm14290_vm12, %v11622_v17, 0.0 }
 0x2af   : > { %7959 = vmatmul.mubr.msk.bf16.vlgmr.msra.gmra.mrb[32].mxu1 %vm14381_vm4, %v3612_v58  ;;  %v3553_v20 = vsel %vm14384_vm10, %v3169_v24, %v14383_v61  ;;  %v4909_v26 = vsel %vm14386_vm3, %v9577_v34, 0  ;;  %vm14388_vm9 = vmmov %vm14384_vm10  ;;  %vm14389_vm4 = vcmask 130048   ;;  %v3183_v58 = vsel %vm14297_vm2, %v11659_v0, 0.0 }
 0x2b0   : > { %7991 = vmatpush3.bf16.msra.mxu1 %v11444_v38  ;;  %7962 = vmatprep.mubr.msk.bf16.mxu1 %vm14382_vm15, %v3613_v63  ;;  %v14387_v38 = vunpack.i.l.bf16 %v11451_v54  ;;  %v3586_v14 = vsel %vm14389_vm4, %v11426_v29, %v8940_v39  ;;  %vm14390_vm15 = vmmov %vm14389_vm4  ;;  %vm14391_vm10 = vnez %v14313_v21  ;;  %v8950_v24 = vunpack.i.h.bf16 %v8948_v2 }
 0x2b1   : > { %v8953_v35 = vpop.permute.xlu0 %8952  ;;  %8336 = vmatprep.subr.msk.bf16.mxu1 %vm14385_vm1, %v9577_v34  ;;  %v3585_v55 = vsel %vm14390_vm15, %v3553_v20, %v8939_v57  ;;  %v3185_v54 = vsel %vm14391_vm10, %v11689_v32, 0.0  ;;  %vm14392_vm1 = vmmov %vm14389_vm4  ;;  %v14394_v34 = vunpack.i.l.bf16 %v11468_v51  ;;  %vm14395_vm4 = vnez %v14321_v13 }
 0x2b2   : > { %v3555_v25 = vsel %vm14388_vm9, %v3171_v47, %v14387_v38  ;;  %v11891_v36 = vpop.permute.xlu1 %8957  ;;  %v3588_v53 = vsel %vm14392_vm1, %v11474_v46, %v8945_v3  ;;  %vm14393_vm3 = vmmov %vm14392_vm1  ;;  %v3187_v39 = vsel %vm14395_vm4, %v11724_v15, 0.0  ;;  %vm14396_vm15 = vnez %v14333_v8 }
 0x2b3   : > { %v3587_v63 = vsel %vm14393_vm3, %v3555_v25, %v8944_v40  ;;  %v3557_v29 = vsel %vm14388_vm9, %v3173_v19, %v14394_v34  ;;  %v3189_v57 = vsel %vm14396_vm15, %v11749_v50, 0.0  ;;  %v14397_v47 = vunpack.i.l.bf16 %v11521_v28  ;;  %vm14398_vm10 = vmmov %vm14388_vm9 }
 0x2b4   : > { %7993 = vmatpush3.bf16.msra.mxu1 %v4909_v26  ;;  %v14399_v3 = vunpack.i.l.bf16 %v11581_v11  ;;  %vm14400_vm1 = vmmov %vm14388_vm9  ;;  %v8949_v40 = vunpack.i.l.bf16 %v8948_v2  ;;  %v3614_v61 = vpack.c.bf16 %v3586_v14, %v3585_v55  ;;  %v14401_v20 = vunpack.i.l.bf16 %v11608_v18 }
 0x2b5   : > { %v3559_v46 = vsel %vm14398_vm10, %v3175_v12, %v14397_v47  ;;  %v8963_v19 = vpop.permute.xlu0 %8962  ;;  %vm14402_vm3 = vmmov %vm14400_vm1  ;;  %v3615_v31 = vpack.c.bf16 %v3588_v53, %v3587_v63  ;;  %v8955_v26 = vunpack.i.h.bf16 %v8953_v35  ;;  %v8954_v8 = vunpack.i.l.bf16 %v8953_v35 }
 0x2b6   : > { %v3563_v51 = vsel %vm14400_vm1, %v3179_v5, %v14399_v3  ;;  %v3565_v38 = vsel %vm14402_vm3, %v3181_v27, %v14401_v20  ;;  %v8965_v25 = vunpack.i.h.bf16 %v8963_v19  ;;  %v8964_v34 = vunpack.i.l.bf16 %v8963_v19  ;;  %v8968_v7 = vpop.permute.xlu1 %8967  ;;  %vm14405_vm9 = vmmov %vm14400_vm1 }
 0x2b7   : > { %v8970_v28 = vunpack.i.h.bf16 %v8968_v7  ;;  %v8969_v13 = vunpack.i.l.bf16 %v8968_v7  ;;  %vm14403_vm10 = vcmask 195584   ;;  %v14404_v11 = vunpack.i.l.bf16 %v11648_v16 }
 0x2b8   : > { %7963 = vmatmul.mubr.msk.bf16.gmra.mrb[36].mxu1 %vm14403_vm10, %v3614_v61  ;;  %vm14406_vm1 = vcmask 130048   ;;  %vm14409_vm4 = vmmov %vm14403_vm10  ;;  %v8959_v3 = vunpack.i.l.bf16 %v11891_v36 }
 0x2b9   : > { %v3567_v2 = vsel %vm14405_vm9, %v3183_v58, %v14404_v11  ;;  %v3590_v12 = vsel %vm14406_vm1, %v11504_v33, %v8950_v24  ;;  %vm14407_vm15 = vmmov %vm14406_vm1  ;;  %7966 = vmatprep.mubr.msk.bf16.mxu1 %vm14409_vm4, %v3615_v31  ;;  %v8973_v27 = vpop.permute.xlu0 %8972  ;;  %v8960_v24 = vunpack.i.h.bf16 %v11891_v36 }
 0x2ba   : > { %v11928_v18 = vsel %vm14407_vm15, %v11613_v43, %v8965_v25  ;;  %vm14408_vm3 = vmmov %vm14406_vm1  ;;  %v14413_v43 = vunpack.i.l.bf16 %v11669_v52  ;;  %v8975_v55 = vunpack.i.h.bf16 %v8973_v27  ;;  %v8974_v58 = vunpack.i.l.bf16 %v8973_v27  ;;  %v8978_v31 = vpop.permute.xlu1 %8977  ;;  %v14436_v27 = vld [vmem:[#allocation38_spill] sm:$0xff] }
 0x2bb   : > { %v11931_v5 = vsel %vm14408_vm3, %v3563_v51, %v8964_v34  ;;  %vm14410_vm2 = vmmov %vm14406_vm1  ;;  %v8980_v63 = vunpack.i.h.bf16 %v8978_v31  ;;  %v14420_v25 = vunpack.i.l.bf16 %v11711_v4  ;;  %v14422_v34 = vld [vmem:[#allocation56_spill] sm:$0xff] }
 0x2bc   : > { %v3589_v7 = vsel %vm14410_vm2, %v3557_v29, %v8949_v40  ;;  %vm14411_vm10 = vmmov %vm14406_vm1  ;;  %v3619_v33 = vpack.c.bf16 %v11928_v18, %v11931_v5  ;;  %v8979_v29 = vunpack.i.l.bf16 %v8978_v31  ;;  %v14430_v5 = vld [vmem:[#allocation44_spill] sm:$0xff] }
 0x2bd   : > { %v11937_v35 = vsel %vm14411_vm10, %v11643_v1, %v8970_v28  ;;  %vm14412_vm12 = vmmov %vm14406_vm1  ;;  %v3616_v47 = vpack.c.bf16 %v3590_v12, %v3589_v7  ;;  %v3602_v51 = vsel %vm14406_vm1, %v11706_v6, %v8980_v63  ;;  %v14426_v6 = vld [vmem:[#allocation36_spill] sm:$0xff]  ;;  %v14428_v12 = vsel %vm14272_vm14, %v11559_v9, 0.0  ;;  %v14433_v7 = vld [vmem:[#allocation45_spill] sm:$0xff] }
 0x2be   : > { %v11940_v16 = vsel %vm14412_vm12, %v3565_v38, %v8969_v13  ;;  %vm14414_vm15 = vmmov %vm14405_vm9  ;;  %v8988_v61 = vpop.permute.xlu1 %8987  ;;  %v14431_v4 = vunpack.i.l.bf16 %v14430_v5 }
 0x2bf   : > { %v3569_v14 = vsel %vm14414_vm15, %v3185_v54, %v14413_v43  ;;  %v3620_v53 = vpack.c.bf16 %v11937_v35, %v11940_v16  ;;  %vm14415_vm2 = vmmov %vm14406_vm1  ;;  %v8990_v28 = vunpack.i.h.bf16 %v8988_v61  ;;  %v8989_v11 = vunpack.i.l.bf16 %v8988_v61  ;;  %v14447_v61 = vld [vmem:[#allocation58_spill] sm:$0xff] }
 0x2c0   : > { %v3592_v1 = vsel %vm14415_vm2, %v11546_v22, %v8955_v26  ;;  %vm14416_vm4 = vmmov %vm14406_vm1  ;;  %v8983_v22 = vpop.permute.xlu0 %8982  ;;  %v14423_v26 = vld [vmem:[#allocation33_spill] sm:$0xff]  ;;  %vm14425_vm2 = vcmask 195584  }
 0x2c1   : > { %v3591_v13 = vsel %vm14416_vm4, %v3559_v46, %v8954_v8  ;;  %vm14417_vm12 = vmmov %vm14406_vm1  ;;  %v8985_v8 = vunpack.i.h.bf16 %v8983_v22  ;;  %v8984_v46 = vunpack.i.l.bf16 %v8983_v22  ;;  %7967 = vmatmul.mubr.msk.bf16.gmra.mrb[40].mxu1 %vm14425_vm2, %v3616_v47  ;;  %v14445_v22 = vld [vmem:[#allocation34_spill] sm:$0xff] }
 0x2c2   : > { %v3600_v52 = vsel %vm14417_vm12, %v11676_v30, %v8975_v55  ;;  %vm14418_vm9 = vmmov %vm14406_vm1  ;;  %v3617_v20 = vpack.c.bf16 %v3592_v1, %v3591_v13 }
 0x2c3   : > { %v3599_v54 = vsel %vm14418_vm9, %v3567_v2, %v8974_v58  ;;  %vm14419_vm3 = vmmov %vm14406_vm1  ;;  %v14427_v2 = vunpack.i.l.bf16 %v14426_v6  ;;  %v14453_v6 = vld [vmem:[#allocation63_spill] sm:$0xff] }
 0x2c4   : > { %v3601_v40 = vsel %vm14419_vm3, %v3569_v14, %v8979_v29  ;;  %v3621_v19 = vpack.c.bf16 %v3600_v52, %v3599_v54  ;;  %vm14421_vm10 = vmmov %vm14414_vm15  ;;  %vm14424_vm15 = vnez %v14423_v26  ;;  %v14438_v14 = vld [vmem:[#allocation47_spill] sm:$0xff]  ;;  %v8993_v31 = vpop.permute.xlu0 %8992  ;;  %v9003_v29 = vpop.permute.xlu1 %9002 }
 0x2c5   : > { %v3622_v38 = vpack.c.bf16 %v3602_v51, %v3601_v40  ;;  %v3571_v30 = vsel %vm14421_vm10, %v3187_v39, %v14420_v25  ;;  %v3191_v36 = vsel %vm14424_vm15, %v14422_v34, 0.0  ;;  %vm14429_vm4 = vmmov %vm14421_vm10  ;;  %v8994_v63 = vunpack.i.l.bf16 %v8993_v31  ;;  %v14442_v54 = vld [vmem:[#allocation55_spill] sm:$0xff]  ;;  %v14444_v40 = vld [vmem:[#allocation60_spill] sm:$0xff] }
 0x2c6   : > { %v3561_v18 = vsel %vm14429_vm4, %v14428_v12, %v14427_v2  ;;  %vm14432_vm12 = vmmov %vm14429_vm4  ;;  %v3603_v16 = vsel %vm14406_vm1, %v3571_v30, %v8984_v46  ;;  %v14443_v47 = vunpack.i.l.bf16 %v14442_v54  ;;  %v9004_v46 = vunpack.i.l.bf16 %v9003_v29  ;;  %v14450_v30 = vld [vmem:[#allocation59_spill] sm:$0xff] }
 0x2c7   : > { %v3573_v39 = vsel %vm14432_vm12, %v3189_v57, %v14431_v4  ;;  %vm14434_vm9 = vmmov %vm14406_vm1  ;;  %v8995_v57 = vunpack.i.h.bf16 %v8993_v31 }
 0x2c8   : > { %v3604_v35 = vsel %vm14434_vm9, %v14433_v7, %v8985_v8  ;;  %vm14435_vm3 = vmmov %vm14425_vm2  ;;  %v3575_v51 = vsel %vm14432_vm12, %v3191_v36, %v14443_v47  ;;  %vm14446_vm9 = vnez %v14445_v22  ;;  %v9005_v8 = vunpack.i.h.bf16 %v9003_v29  ;;  %v8998_v2 = vpop.permute.xlu0 %8997  ;;  %v9008_v5 = vpop.permute.xlu1 %9007 }
 0x2c9   : > { %7970 = vmatprep.mubr.msk.bf16.mxu1 %vm14435_vm3, %v3617_v20  ;;  %vm14437_vm10 = vmmov %vm14406_vm1  ;;  %v3623_v1 = vpack.c.bf16 %v3604_v35, %v3603_v16  ;;  %v14448_v20 = vunpack.i.l.bf16 %v14447_v61  ;;  %v9000_v31 = vunpack.i.h.bf16 %v8998_v2  ;;  %v9010_v61 = vunpack.i.h.bf16 %v9008_v5 }
 0x2ca   : > { %v3594_v43 = vsel %vm14437_vm10, %v14436_v27, %v8960_v24  ;;  %vm14439_vm2 = vmmov %vm14406_vm1  ;;  %v3193_v24 = vsel %vm14446_vm9, %v14444_v40, 0.0 }
 0x2cb   : > { %v3606_v55 = vsel %vm14439_vm2, %v14438_v14, %v8990_v28  ;;  %vm14440_vm15 = vmmov %vm14406_vm1 }
 0x2cc   : > { %v3605_v58 = vsel %vm14440_vm15, %v3573_v39, %v8989_v11  ;;  %vm14441_vm4 = vmmov %vm14406_vm1  ;;  %v9013_v39 = vpop.permute.xlu0 %9012  ;;  %v9018_v7 = vpop.permute.xlu1 %9017 }
 0x2cd   : > { %v3593_v13 = vsel %vm14441_vm4, %v3561_v18, %v8959_v3  ;;  %v3624_v52 = vpack.c.bf16 %v3606_v55, %v3605_v58  ;;  %vm14449_vm15 = vmmov %vm14432_vm12  ;;  %v3608_v3 = vsel %vm14406_vm1, %v14450_v30, %v8995_v57  ;;  %vm14455_vm4 = vcmask 195584   ;;  %v4355_v58 = vld [vmem:[#allocation2 + $0x27] sm:$0xff] }
 0x2ce   : > { %v3577_v25 = vsel %vm14449_vm15, %v3193_v24, %v14448_v20  ;;  %vm14451_vm3 = vmmov %vm14406_vm1  ;;  %v3618_v12 = vpack.c.bf16 %v3594_v43, %v3593_v13  ;;  %v8999_v13 = vunpack.i.l.bf16 %v8998_v2  ;;  %v9009_v20 = vunpack.i.l.bf16 %v9008_v5 }
 0x2cf   : > { %v3607_v28 = vsel %vm14451_vm3, %v3575_v51, %v8994_v63  ;;  %vm14452_vm10 = vmmov %vm14406_vm1  ;;  %v9019_v30 = vunpack.i.l.bf16 %v9018_v7 }
 0x2d0   : > { %v3609_v11 = vsel %vm14452_vm10, %v3577_v25, %v9004_v46  ;;  %vm14454_vm2 = vmmov %vm14406_vm1  ;;  %v3625_v18 = vpack.c.bf16 %v3608_v3, %v3607_v28  ;;  %7971 = vmatmul.mubr.msk.bf16.gmra.mrb[44].mxu1 %vm14455_vm4, %v3618_v12  ;;  %v9023_v35 = vpop.permute.xlu0 %9022  ;;  %v12004_v16 = vpop.permute.xlu1 %9027  ;;  %v4357_v46 = vld [vmem:[#allocation2 + $0x37] sm:$0xff]  ;;  %v4359_v3 = vld [vmem:[#allocation2 + $0x47] sm:$0xff] }
 0x2d1   : > { %v3610_v36 = vsel %vm14454_vm2, %v14453_v6, %v9005_v8  ;;  %vm14456_vm12 = vmmov %vm14455_vm4  ;;  %v9025_v28 = vunpack.i.h.bf16 %v9023_v35  ;;  %v4358_v12 = vld [vmem:[#allocation2 + $0x3f] sm:$0xff] }
 0x2d2   : > { %v3626_v4 = vpack.c.bf16 %v3610_v36, %v3609_v11  ;;  %7974 = vmatprep.mubr.msk.bf16.mxu1 %vm14456_vm12, %v3619_v33  ;;  %vm14457_vm15 = vmmov %vm14455_vm4  ;;  %vm14464_vm12 = vcmask 64512   ;;  %v9024_v11 = vunpack.i.l.bf16 %v9023_v35 }
 0x2d3   : > { %vm14458_vm1 = vmmov %vm14455_vm4 }
 0x2d4   : > { %v9033_v27 = vpop.permute.xlu0 %9032  ;;  %v12008_v14 = vpop.permute.xlu1 %9037  ;;  %vm14459_vm3 = vmmov %vm14458_vm1 }
 0x2d5   : > { %vm14460_vm10 = vmmov %vm14458_vm1  ;;  %v9035_v36 = vunpack.i.h.bf16 %v9033_v27  ;;  %v9034_v2 = vunpack.i.l.bf16 %v9033_v27 }
 0x2d6   : > { %vm14461_vm2 = vmmov %vm14458_vm1 }
 0x2d7   : > { %vm14462_vm4 = vmmov %vm14458_vm1 }
 0x2d8   : > { %7975 = vmatmul.mubr.msk.bf16.gmra.mrb[48].mxu1 %vm14457_vm15, %v3620_v53  ;;  %v12010_v43 = vpop.permute.xlu0 %9042  ;;  %v12014_v55 = vpop.permute.xlu1 %9047  ;;  %v9015_v53 = vunpack.i.h.bf16 %v9013_v39  ;;  %vm14465_vm15 = vmmov %vm14464_vm12 }
 0x2d9   : > { %7978 = vmatprep.mubr.msk.bf16.mxu1 %vm14458_vm1, %v3621_v19  ;;  %v9014_v19 = vunpack.i.l.bf16 %v9013_v39  ;;  %vm14466_vm1 = vcmask 130048  }
 0x2dc   : > { %v12016_v33 = vpop.permute.xlu0 %9052  ;;  %v12020_v63 = vpop.permute.xlu1 %9057 }
 0x2e0   : > { %7979 = vmatmul.mubr.msk.bf16.gmra.mrb[52].mxu1 %vm14459_vm3, %v3622_v38  ;;  %v12018_v57 = vpop.permute.xlu0 %9062  ;;  %v4356_v38 = vld [vmem:[#allocation2 + $0x2f] sm:$0xff]  ;;  %vm14467_vm3 = vmmov %vm14466_vm1  ;;  %v12032_v25 = vpop.permute.xlu1 %9067 }
 0x2e1   : > { %7982 = vmatprep.mubr.msk.bf16.mxu1 %vm14460_vm10, %v3623_v1  ;;  %v4387_v1 = vsel %vm14356_vm7, %v4355_v58, 0.0  ;;  %v4772_v54 = vsel %vm14464_vm12, %v4356_v38, %v9000_v31  ;;  %vm14468_vm10 = vmmov %vm14461_vm2  ;;  %v4360_v58 = vld [vmem:[#allocation2 + $0x4f] sm:$0xff] }
 0x2e2   : > { %v4771_v47 = vsel %vm14465_vm15, %v4387_v1, %v8999_v13  ;;  %v4804_v24 = vsel %vm14467_vm3, %v4772_v54, %v9015_v53  ;;  %vm14471_vm15 = vnez %v14219_v37  ;;  %vm14472_vm3 = vmmov %vm14466_vm1  ;;  %v9030_v54 = vunpack.i.h.bf16 %v12004_v16  ;;  %v14637_v37 = vld [vmem:[#allocation18_spill] sm:$0xff] }
 0x2e3   : > { %v4803_v51 = vsel %vm14466_vm1, %v4771_v47, %v9014_v19  ;;  %v9029_v47 = vunpack.i.l.bf16 %v12004_v16 }
 0x2e4   : > { %v12030_v8 = vpop.permute.xlu0 %9072  ;;  %v4835_v6 = vpack.c.bf16 %v4804_v24, %v4803_v51  ;;  %v12050_v38 = vpop.permute.xlu1 %9077  ;;  %v9040_v51 = vunpack.i.h.bf16 %v12008_v14  ;;  %v9039_v24 = vunpack.i.l.bf16 %v12008_v14 }
 0x2e8   : > { %7983 = vmatmul.mubr.msk.bf16.gmra.mrb[56].mxu1 %vm14461_vm2, %v3624_v52  ;;  %v9020_v52 = vunpack.i.h.bf16 %v9018_v7  ;;  %v4391_v7 = vsel %vm14471_vm15, %v4359_v3, 0.0  ;;  %v12046_v13 = vpop.permute.xlu0 %9082  ;;  %v4393_v3 = vsel %vm14229_vm0, %v11487_v44, 0.0 }
 0x2e9   : > { %7986 = vmatprep.mubr.msk.bf16.mxu1 %vm14462_vm4, %v3625_v18  ;;  %v4389_v18 = vsel %vm14365_vm5, %v4357_v46, 0.0  ;;  %vm14469_vm4 = vmmov %vm14464_vm12  ;;  %v9045_v46 = vunpack.i.h.bf16 %v12010_v43 }
 0x2ea   : > { %v4774_v5 = vsel %vm14469_vm4, %v4358_v12, %v9010_v61  ;;  %vm14470_vm12 = vmmov %vm14469_vm4  ;;  %v9044_v61 = vunpack.i.l.bf16 %v12010_v43  ;;  %v4395_v43 = vsel %vm14235_vm13, %v11530_v60, 0.0  ;;  %v9060_v60 = vunpack.i.h.bf16 %v12020_v63 }
 0x2eb   : > { %v4773_v39 = vsel %vm14470_vm12, %v4389_v18, %v9009_v20  ;;  %v4806_v27 = vsel %vm14472_vm3, %v4774_v5, %v9020_v52  ;;  %vm14473_vm7 = vmmov %vm14469_vm4  ;;  %v9055_v52 = vunpack.i.h.bf16 %v12016_v33  ;;  %vm14638_vm13 = vnez %v14637_v37 }
 0x2ec   : > { %v4805_v35 = vsel %vm14466_vm1, %v4773_v39, %v9019_v30  ;;  %vm14475_vm5 = vmmov %vm14466_vm1  ;;  %v9054_v30 = vunpack.i.l.bf16 %v12016_v33  ;;  %v9093_v16 = vpop.permute.xlu0 %9092  ;;  %v9050_v39 = vunpack.i.h.bf16 %v12014_v55 }
 0x2ed   : > { %v4836_v1 = vpack.c.bf16 %v4806_v27, %v4805_v35  ;;  %vm14480_vm12 = vmmov %vm14469_vm4  ;;  %v9059_v35 = vunpack.i.l.bf16 %v12020_v63  ;;  %v9065_v27 = vunpack.i.h.bf16 %v12018_v57  ;;  %v14489_v63 = vld [vmem:[#allocation37_spill] sm:$0xff] }
 0x2ee   : > { %vm14481_vm3 = vmmov %vm14466_vm1 }
 0x2f0   : > { %7987 = vmatmul.mubr.msk.bf16.gmra.mrb[60].mxu1 %vm14468_vm10, %v3626_v4  ;;  %v4776_v4 = vsel %vm14473_vm7, %v4360_v58, %v9025_v28  ;;  %vm14474_vm10 = vmmov %vm14469_vm4  ;;  %vm14477_vm7 = vcmask 195584   ;;  %v14479_v28 = vld [vmem:[#allocation54_spill] sm:$0xff]  ;;  %v9049_v58 = vunpack.i.l.bf16 %v12014_v55  ;;  %v4397_v55 = vsel %vm14246_vm8, %v11559_v9, 0.0 }
 0x2f1   : > { %7994 = vmatprep.mubr.msk.bf16.mxu1 %vm14461_vm2, %v4835_v6  ;;  %v4775_v31 = vsel %vm14474_vm10, %v4391_v7, %v9024_v11  ;;  %vm14476_vm2 = vmmov %vm14466_vm1  ;;  %v4778_v14 = vsel %vm14469_vm4, %v14479_v28, %v9030_v54  ;;  %v4777_v11 = vsel %vm14480_vm12, %v4393_v3, %v9029_v47  ;;  %v12071_v6 = vpop.permute.xlu1 %9087  ;;  %v9070_v3 = vunpack.i.h.bf16 %v12032_v25 }
 0x2f2   : > { %v4807_v53 = vsel %vm14475_vm5, %v4775_v31, %v9034_v2  ;;  %v4808_v19 = vsel %vm14476_vm2, %v4776_v4, %v9035_v36  ;;  %vm14478_vm5 = vmmov %vm14477_vm7  ;;  %v4809_v33 = vsel %vm14466_vm1, %v4777_v11, %v9039_v24  ;;  %v4810_v36 = vsel %vm14481_vm3, %v4778_v14, %v9040_v51  ;;  %v14482_v2 = vld [vmem:[#allocation35_spill] sm:$0xff]  ;;  %v12086_v31 = vpop.permute.xlu0 %9102 }
 0x2f3   : > { %v4837_v20 = vpack.c.bf16 %v4808_v19, %v4807_v53  ;;  %vm14483_vm10 = vmmov %vm14469_vm4  ;;  %v4838_v7 = vpack.c.bf16 %v4810_v36, %v4809_v33  ;;  %v9064_v4 = vunpack.i.l.bf16 %v12018_v57  ;;  %v9075_v19 = vunpack.i.h.bf16 %v12030_v8 }
 0x2f4   : > { %v4780_v44 = vsel %vm14483_vm10, %v14482_v2, %v9045_v46  ;;  %vm14484_vm2 = vmmov %vm14469_vm4  ;;  %vm14487_vm4 = vcmask 195584   ;;  %v4399_v51 = vsel %vm14258_vm6, %v11592_v23, 0.0  ;;  %v14494_v46 = vld [vmem:[#allocation39_spill] sm:$0xff]  ;;  %v9069_v28 = vunpack.i.l.bf16 %v12032_v25 }
 0x2f5   : > { %v4779_v12 = vsel %vm14484_vm2, %v4395_v43, %v9044_v61  ;;  %v9098_v54 = vpop.permute.xlu1 %9097  ;;  %vm14488_vm12 = vmmov %vm14487_vm4  ;;  %v9080_v23 = vunpack.i.h.bf16 %v12050_v38  ;;  %v9079_v43 = vunpack.i.l.bf16 %v12050_v38  ;;  %v9085_v33 = vunpack.i.h.bf16 %v12046_v13 }
 0x2f6   : > { %v9084_v36 = vunpack.i.l.bf16 %v12046_v13  ;;  %v4401_v25 = vsel %vm14272_vm14, %v11622_v17, 0.0  ;;  %v4403_v13 = vsel %vm14278_vm11, %v11659_v0, 0.0  ;;  %v9089_v0 = vunpack.i.l.bf16 %v12071_v6 }
 0x2f8   : > { %7995 = vmatmul.mubr.msk.bf16.vlgmr.msra.gmra.mrb[32].mxu1 %vm14477_vm7, %v4836_v1  ;;  %vm14485_vm7 = vmmov %vm14466_vm1  ;;  %v9074_v1 = vunpack.i.l.bf16 %v12030_v8 }
 0x2f9   : > { %7998 = vmatprep.mubr.msk.bf16.mxu1 %vm14478_vm5, %v4837_v20  ;;  %v4811_v18 = vsel %vm14485_vm7, %v4779_v12, %v9054_v30  ;;  %vm14486_vm5 = vmmov %vm14466_vm1  ;;  %v9113_v30 = vpop.permute.xlu0 %9112  ;;  %v12111_v14 = vpop.permute.xlu1 %9107  ;;  %v9094_v12 = vunpack.i.l.bf16 %v9093_v16 }
 0x2fa   : > { %v4812_v5 = vsel %vm14486_vm5, %v4780_v44, %v9055_v52  ;;  %vm14490_vm1 = vmmov %vm14484_vm2  ;;  %v9095_v44 = vunpack.i.h.bf16 %v9093_v16 }
 0x2fb   : > { %v4839_v53 = vpack.c.bf16 %v4812_v5, %v4811_v18  ;;  %v4782_v47 = vsel %vm14490_vm1, %v14489_v63, %v9050_v39  ;;  %vm14491_vm3 = vmmov %vm14490_vm1  ;;  %v14501_v18 = vld [vmem:[#allocation40_spill] sm:$0xff]  ;;  %v9099_v63 = vunpack.i.l.bf16 %v9098_v54 }
 0x2fc   : > { %v4781_v57 = vsel %vm14491_vm3, %v4397_v55, %v9049_v58  ;;  %vm14492_vm10 = vmmov %vm14486_vm5  ;;  %v14506_v58 = vld [vmem:[#allocation41_spill] sm:$0xff] }
 0x2fd   : > { %v4813_v8 = vsel %vm14492_vm10, %v4781_v57, %v9059_v35  ;;  %vm14493_vm2 = vmmov %vm14486_vm5  ;;  %v9104_v57 = vunpack.i.l.bf16 %v12086_v31 }
 0x2fe   : > { %v4814_v24 = vsel %vm14493_vm2, %v4782_v47, %v9060_v60  ;;  %vm14495_vm7 = vmmov %vm14490_vm1  ;;  %v9105_v47 = vunpack.i.h.bf16 %v12086_v31 }
 0x2ff   : > { %v4784_v61 = vsel %vm14495_vm7, %v14494_v46, %v9065_v27  ;;  %vm14496_vm5 = vmmov %vm14490_vm1  ;;  %v4840_v11 = vpack.c.bf16 %v4814_v24, %v4813_v8  ;;  %vm14499_vm1 = vcmask 195584   ;;  %v9114_v8 = vunpack.i.l.bf16 %v9113_v30 }
 0x300   : > { %7999 = vmatmul.mubr.msk.bf16.gmra.mrb[36].mxu1 %vm14487_vm4, %v4838_v7  ;;  %v4783_v9 = vsel %vm14496_vm5, %v4399_v51, %v9064_v4  ;;  %vm14497_vm4 = vmmov %vm14493_vm2  ;;  %v9123_v7 = vpop.permute.xlu0 %9122  ;;  %v9118_v4 = vpop.permute.xlu1 %9117  ;;  %v9115_v51 = vunpack.i.h.bf16 %v9113_v30  ;;  %v14518_v30 = vld [vmem:[#allocation43_spill] sm:$0xff] }
 0x301   : > { %8002 = vmatprep.mubr.msk.bf16.mxu1 %vm14488_vm12, %v4839_v53  ;;  %v4815_v20 = vsel %vm14497_vm4, %v4783_v9, %v9074_v1  ;;  %vm14498_vm12 = vmmov %vm14493_vm2  ;;  %v9100_v1 = vunpack.i.h.bf16 %v9098_v54 }
 0x302   : > { %v4816_v52 = vsel %vm14498_vm12, %v4784_v61, %v9075_v19  ;;  %vm14500_vm3 = vmmov %vm14499_vm1  ;;  %v9090_v19 = vunpack.i.h.bf16 %v12071_v6  ;;  %v14514_v61 = vld [vmem:[#allocation42_spill] sm:$0xff] }
 0x303   : > { %v4841_v2 = vpack.c.bf16 %v4816_v52, %v4815_v20  ;;  %vm14502_vm10 = vmmov %vm14496_vm5 }
 0x304   : > { %v4786_v5 = vsel %vm14502_vm10, %v14501_v18, %v9070_v3  ;;  %vm14503_vm2 = vmmov %vm14496_vm5  ;;  %vm14511_vm10 = vcmask 195584   ;;  %v9133_v46 = vpop.permute.xlu0 %9132  ;;  %v9128_v9 = vpop.permute.xlu1 %9127 }
 0x305   : > { %v4785_v38 = vsel %vm14503_vm2, %v4401_v25, %v9069_v28  ;;  %vm14504_vm7 = vmmov %vm14497_vm4  ;;  %v9135_v18 = vunpack.i.h.bf16 %v9133_v46 }
 0x306   : > { %v4817_v39 = vsel %vm14504_vm7, %v4785_v38, %v9079_v43  ;;  %vm14505_vm5 = vmmov %vm14497_vm4  ;;  %v9110_v43 = vunpack.i.h.bf16 %v12111_v14 }
 0x307   : > { %v4818_v16 = vsel %vm14505_vm5, %v4786_v5, %v9080_v23  ;;  %vm14507_vm4 = vmmov %vm14503_vm2  ;;  %v9134_v5 = vunpack.i.l.bf16 %v9133_v46 }
 0x308   : > { %8003 = vmatmul.mubr.msk.bf16.gmra.mrb[40].mxu1 %vm14499_vm1, %v4840_v11  ;;  %v4788_v60 = vsel %vm14507_vm4, %v14506_v58, %v9085_v33  ;;  %vm14508_vm12 = vmmov %vm14503_vm2  ;;  %v4842_v53 = vpack.c.bf16 %v4818_v16, %v4817_v39  ;;  %vm14512_vm2 = vnez %v14289_v48  ;;  %v9109_v33 = vunpack.i.l.bf16 %v12111_v14  ;;  %v9138_v25 = vpop.permute.xlu0 %9137  ;;  %v9143_v38 = vpop.permute.xlu1 %9142  ;;  %v14526_v39 = vld [vmem:[#allocation46_spill] sm:$0xff]  ;;  %v14528_v58 = vld [vmem:[#allocation31_spill] sm:$0xff] }
 0x309   : > { %8006 = vmatprep.mubr.msk.bf16.mxu1 %vm14500_vm3, %v4841_v2  ;;  %v4787_v17 = vsel %vm14508_vm12, %v4403_v13, %v9084_v36  ;;  %vm14509_vm1 = vmmov %vm14505_vm5  ;;  %v4405_v24 = vsel %vm14512_vm2, %v11689_v32, 0.0  ;;  %vm14516_vm12 = vnez %v14296_v59  ;;  %v9119_v2 = vunpack.i.l.bf16 %v9118_v4  ;;  %v14606_v59 = vld [vmem:[#allocation11_spill] sm:$0xff] }
 0x30a   : > { %v4819_v35 = vsel %vm14509_vm1, %v4787_v17, %v9094_v12  ;;  %vm14510_vm3 = vmmov %vm14509_vm1  ;;  %v4789_v54 = vsel %vm14507_vm4, %v4405_v24, %v9089_v0  ;;  %v4407_v31 = vsel %vm14516_vm12, %v11724_v15, 0.0  ;;  %v9120_v15 = vunpack.i.h.bf16 %v9118_v4 }
 0x30b   : > { %v4820_v27 = vsel %vm14510_vm3, %v4788_v60, %v9095_v44  ;;  %vm14513_vm7 = vmmov %vm14511_vm10  ;;  %v4821_v20 = vsel %vm14509_vm1, %v4789_v54, %v9099_v63  ;;  %v9125_v44 = vunpack.i.h.bf16 %v9123_v7  ;;  %v9124_v12 = vunpack.i.l.bf16 %v9123_v7  ;;  %v14540_v54 = vld [vmem:[#allocation62_spill] sm:$0xff] }
 0x30c   : > { %v4843_v55 = vpack.c.bf16 %v4820_v27, %v4819_v35  ;;  %vm14515_vm5 = vmmov %vm14507_vm4  ;;  %v4794_v14 = vsel %vm14507_vm4, %v14526_v39, %v9110_v43  ;;  %v14531_v35 = vld [vmem:[#allocation57_spill] sm:$0xff]  ;;  %v9145_v63 = vunpack.i.h.bf16 %v9143_v38 }
 0x30d   : > { %v4790_v6 = vsel %vm14515_vm5, %v14514_v61, %v9090_v19  ;;  %vm14517_vm3 = vmmov %vm14509_vm1  ;;  %vm14523_vm5 = vcmask 195584   ;;  %v9153_v19 = vpop.permute.xlu0 %9152  ;;  %v14537_v61 = vld [vmem:[#allocation32_spill] sm:$0xff] }
 0x30e   : > { %v4822_v52 = vsel %vm14517_vm3, %v4790_v6, %v9100_v1  ;;  %vm14520_vm2 = vmmov %vm14507_vm4  ;;  %vm14529_vm3 = vnez %v14528_v58  ;;  %v9130_v1 = vunpack.i.h.bf16 %v9128_v9  ;;  %v9155_v24 = vunpack.i.h.bf16 %v9153_v19 }
 0x30f   : > { %v4791_v3 = vsel %vm14520_vm2, %v4407_v31, %v9104_v57  ;;  %vm14522_vm11 = vmmov %vm14509_vm1  ;;  %v4844_v11 = vpack.c.bf16 %v4822_v52, %v4821_v20  ;;  %vm14524_vm2 = vnez %v14313_v21  ;;  %v4411_v60 = vsel %vm14529_vm3, %v14422_v34, 0.0  ;;  %v14542_v20 = vld [vmem:[#allocation61_spill] sm:$0xff] }
 0x310   : > { %8007 = vmatmul.mubr.msk.bf16.gmra.mrb[44].mxu1 %vm14511_vm10, %v4842_v53  ;;  %vm14519_vm10 = vmmov %vm14507_vm4  ;;  %v4409_v13 = vsel %vm14524_vm2, %v11749_v50, 0.0  ;;  %v9144_v57 = vunpack.i.l.bf16 %v9143_v38  ;;  %v9154_v46 = vunpack.i.l.bf16 %v9153_v19 }
 0x311   : > { %8010 = vmatprep.mubr.msk.bf16.mxu1 %vm14513_vm7, %v4843_v55  ;;  %v4792_v32 = vsel %vm14519_vm10, %v14518_v30, %v9105_v47  ;;  %vm14521_vm7 = vmmov %vm14509_vm1  ;;  %v9129_v55 = vunpack.i.l.bf16 %v9128_v9  ;;  %v9148_v47 = vpop.permute.xlu1 %9147 }
 0x312   : > { %v4823_v28 = vsel %vm14521_vm7, %v4791_v3, %v9114_v8  ;;  %v4824_v23 = vsel %vm14522_vm11, %v4792_v32, %v9115_v51  ;;  %vm14525_vm11 = vmmov %vm14523_vm5  ;;  %v4826_v7 = vsel %vm14521_vm7, %v4794_v14, %v9120_v15  ;;  %v9140_v51 = vunpack.i.h.bf16 %v9138_v25  ;;  %v14546_v3 = vld [vmem:[#allocation64_spill] sm:$0xff] }
 0x313   : > { %v4845_v36 = vpack.c.bf16 %v4824_v23, %v4823_v28  ;;  %vm14527_vm1 = vmmov %vm14507_vm4  ;;  %v9139_v8 = vunpack.i.l.bf16 %v9138_v25  ;;  %vm14536_vm4 = vcmask 195584   ;;  %v9150_v23 = vunpack.i.h.bf16 %v9148_v47  ;;  %v4386_v15 = vld [vmem:[#allocation2 + $0x11f] sm:$0xff] }
 0x314   : > { %v4793_v16 = vsel %vm14527_vm1, %v4409_v13, %v9109_v33  ;;  %vm14530_vm10 = vmmov %vm14521_vm7  ;;  %v4798_v31 = vsel %vm14527_vm1, %v14540_v54, %v9130_v1 }
 0x315   : > { %v4825_v17 = vsel %vm14530_vm10, %v4793_v16, %v9119_v2  ;;  %vm14533_vm12 = vmmov %vm14527_vm1  ;;  %v9158_v33 = vpop.permute.xlu1 %9157  ;;  %v4385_v2 = vld [vmem:[#allocation2 + $0x117] sm:$0xff] }
 0x316   : > { %v4795_v50 = vsel %vm14533_vm12, %v4411_v60, %v9124_v12  ;;  %vm14534_vm2 = vmmov %vm14521_vm7  ;;  %v4846_v0 = vpack.c.bf16 %v4826_v7, %v4825_v17  ;;  %vm14538_vm12 = vnez %v14537_v61  ;;  %vm14543_vm7 = vnez %v14423_v26  ;;  %v9578_v60 = vld [vmem:[%s13524_s2 + $0x54] sm:$0xff]   ;;  %v9579_v17 = vld [vmem:[%s13524_s2 + $0x5c] ss:$0 sps:$4 sm:$0xff]  }
 0x317   : > { %v4827_v4 = vsel %vm14534_vm2, %v4795_v50, %v9134_v5  ;;  %v4413_v6 = vsel %vm14538_vm12, %v14444_v40, 0.0  ;;  %vm14541_vm10 = vmmov %vm14527_vm1  ;;  %v4415_v52 = vsel %vm14543_vm7, %v14542_v20, 0.0  ;;  %v9160_v25 = vunpack.i.h.bf16 %v9158_v33  ;;  %8026 = vmatprep.subr.bf16.mxu0 %v9578_v60  ;;  %v12219_v50 = vld [vmem:[%s13526_s4 + $0x1] ss:$0 sm:$0xff] }
 0x318   : > { %8011 = vmatmul.mubr.msk.bf16.gmra.mrb[48].mxu1 %vm14523_vm5, %v4844_v11  ;;  %vm14532_vm5 = vmmov %vm14527_vm1  ;;  %v4797_v9 = vsel %vm14541_vm10, %v4413_v6, %v9129_v55  ;;  %v4802_v5 = vsel %vm14527_vm1, %v4386_v15, %v9150_v23  ;;  %vm14551_vm10 = vcmask 195584   ;;  %v4417_v38 = vsel %vm14446_vm9, %v4385_v2, 0.0  ;;  %8027 = vmatpush3.bf16.msra.mxu0 %v9578_v60 }
 0x319   : > { %8014 = vmatprep.mubr.msk.bf16.mxu1 %vm14525_vm11, %v4845_v36  ;;  %v4796_v27 = vsel %vm14532_vm5, %v14531_v35, %v9125_v44  ;;  %vm14535_vm11 = vmmov %vm14534_vm2  ;;  %v9149_v44 = vunpack.i.l.bf16 %v9148_v47  ;;  %v12214_v35 = vld [vmem:[%s13525_s3 + $0x1] ss:$0 sm:$0xff] }
 0x31a   : > { %v4828_v53 = vsel %vm14535_vm11, %v4796_v27, %v9135_v18  ;;  %vm14539_vm2 = vmmov %vm14536_vm4  ;;  %v9159_v18 = vunpack.i.l.bf16 %v9158_v33 }
 0x31b   : > { %v4847_v34 = vpack.c.bf16 %v4828_v53, %v4827_v4  ;;  %vm14544_vm5 = vmmov %vm14535_vm11 }
 0x31c   : > { %v4829_v30 = vsel %vm14544_vm5, %v4797_v9, %v9144_v57  ;;  %vm14545_vm11 = vmmov %vm14544_vm5 }
 0x31d   : > { %v4830_v32 = vsel %vm14545_vm11, %v4798_v31, %v9145_v63  ;;  %vm14548_vm3 = vmmov %vm14527_vm1 }
 0x31e   : > { %v4799_v40 = vsel %vm14548_vm3, %v4415_v52, %v9139_v8  ;;  %v4848_v36 = vpack.c.bf16 %v4830_v32, %v4829_v30  ;;  %vm14552_vm3 = vmmov %vm14551_vm10 }
 0x320   : > { %8015 = vmatmul.mubr.msk.bf16.gmra.mrb[52].mxu1 %vm14536_vm4, %v4846_v0  ;;  %vm14547_vm4 = vmmov %vm14527_vm1 }
 0x321   : > { %8018 = vmatprep.mubr.msk.bf16.mxu1 %vm14539_vm2, %v4847_v34  ;;  %v4800_v28 = vsel %vm14547_vm4, %v14546_v3, %v9140_v51  ;;  %vm14549_vm2 = vmmov %vm14544_vm5 }
 0x322   : > { %v4831_v11 = vsel %vm14549_vm2, %v4799_v40, %v9154_v46  ;;  %vm14550_vm12 = vmmov %vm14549_vm2 }
 0x323   : > { %v4832_v43 = vsel %vm14550_vm12, %v4800_v28, %v9155_v24  ;;  %vm14553_vm5 = vmmov %vm14527_vm1 }
 0x324   : > { %v4849_v12 = vpack.c.bf16 %v4832_v43, %v4831_v11  ;;  %v4801_v13 = vsel %vm14553_vm5, %v4417_v38, %v9149_v44  ;;  %vm14554_vm12 = vmmov %vm14549_vm2 }
 0x325   : > { %v4833_v39 = vsel %vm14554_vm12, %v4801_v13, %v9159_v18  ;;  %vm14555_vm11 = vmmov %vm14549_vm2  ;;  %vm14557_vm2 = vcmask 1043456  }
 0x326   : > { %v4834_v14 = vsel %vm14555_vm11, %v4802_v5, %v9160_v25  ;;  %vm14556_vm4 = vmmov %vm14552_vm3  ;;  %8337 = vmatprep.subr.msk.bf16.mxu0 %vm14557_vm2, %v9579_v17 }
 0x327   : > { %v4850_v16 = vpack.c.bf16 %v4834_v14, %v4833_v39  ;;  %vm14558_vm1 = vmmov %vm14557_vm2 }
 0x328   : > { %8019 = vmatmul.mubr.msk.bf16.gmra.mrb[56].mxu1 %vm14551_vm10, %v4848_v36  ;;  %v6098_v7 = vsel %vm14558_vm1, %v9579_v17, 0  ;;  %vm14559_vm10 = vmmov %vm14553_vm5 }
 0x329   : > { %8022 = vmatprep.mubr.msk.bf16.mxu1 %vm14552_vm3, %v4849_v12  ;;  %8029 = vmatpush3.bf16.msra.mxu0 %v6098_v7  ;;  %vm14560_vm3 = vmmov %vm14553_vm5  ;;  %v14567_v7 = vld [vmem:[#allocation4_spill] sm:$0xff] }
 0x32a   : > { %vm14561_vm5 = vmmov %vm14560_vm3 }
 0x32b   : > { %vm14562_vm12 = vmmov %vm14560_vm3 }
 0x32c   : > { %vm14563_vm11 = vmmov %vm14560_vm3 }
 0x32d   : > { %vm14565_vm2 = vmmov %vm14560_vm3 }
 0x32e   : > { %vm14566_vm1 = vmmov %vm14565_vm2 }
 0x330   : > { %8023 = vmatmul.mubr.msk.bf16.gmra.mrb[60].mxu1 %vm14556_vm4, %v4850_v16  ;;  %vm14564_vm4 = vmmov %vm14560_vm3 }
 0x3cb   : > { %v7996_v27 = vpop.f32.mrb[32].mxu1 }
 0x3cc   : > { %v5114_v4 = vmul.f32 %v7996_v27, %v12214_v35  ;;  %v4945_v53 = vpop.f32.mrb[33].mxu1 }
 0x3cd   : > { %v5112_v19 = vmul.f32 %v12214_v35, %v4945_v53  ;;  %v7997_v0 = vpop.f32.mrb[34].mxu1 }
 0x3ce   : > { %v5154_v1 = vadd.f32 %v12219_v50, %v5114_v4  ;;  %v5115_v55 = vmul.f32 %v7997_v0, %v12214_v35  ;;  %v4948_v63 = vpop.f32.mrb[35].mxu1  ;;  %v14569_v0 = vld [vmem:[#allocation3_spill] sm:$0xff] }
 0x3cf   : > { %v5152_v47 = vadd.f32 %v12219_v50, %v5112_v19  ;;  %v5113_v34 = vmul.f32 %v12214_v35, %v4948_v63 }
 0x3d0   : > { %v5186_v57 = vmax.f32 %v5154_v1, 0.0  ;;  %v5155_v51 = vadd.f32 %v12219_v50, %v5115_v55 }
 0x3d1   : > { %v5184_v8 = vmax.f32 %v5152_v47, 0.0  ;;  %v5153_v24 = vadd.f32 %v12219_v50, %v5113_v34  ;;  %v12265_v34 = vld [vmem:[%s13524_s2 + $0x48] sm:$0xff]  }
 0x3d2   : > { %5218 = vst.msk [vmem:[#allocation2 + $0x28] sm:$0xff] %vm14559_vm10, %v5186_v57  ;;  %v5187_v46 = vmax.f32 %v5155_v51, 0.0  ;;  %vm14568_vm10 = vnez %v14567_v7  ;;  %14571 = vst [vmem:[#allocation49_spill] sm:$0xff] %v12265_v34  ;;  %8062 = vmatprep.subr.bf16.mxu0 %v12265_v34 }
 0x3d3   : > { %5216 = vst.msk [vmem:[#allocation2 + $0x18] sm:$0xff] %vm14560_vm3, %v5184_v8  ;;  %v5185_v6 = vmax.f32 %v5153_v24, 0.0  ;;  %v8000_v54 = vpop.f32.mrb[36].mxu1  ;;  %vm14570_vm3 = vnez %v14569_v0 }
 0x3d4   : > { %5219 = vst.msk [vmem:[#allocation2 + $0x30] sm:$0xff] %vm14561_vm5, %v5187_v46  ;;  %v5118_v31 = vmul.f32 %v8000_v54, %v12214_v35  ;;  %v4961_v9 = vpop.f32.mrb[37].mxu1  ;;  %vm14572_vm5 = vmmov %vm14566_vm1 }
 0x3d5   : > { %5217 = vst.msk [vmem:[#allocation2 + $0x20] sm:$0xff] %vm14562_vm12, %v5185_v6  ;;  %v5116_v20 = vmul.f32 %v12214_v35, %v4961_v9  ;;  %v8001_v52 = vpop.f32.mrb[38].mxu1  ;;  %vm14573_vm12 = vmmov %vm14566_vm1 }
 0x3d6   : > { %v5158_v30 = vadd.f32 %v12219_v50, %v5118_v31  ;;  %v5119_v32 = vmul.f32 %v8001_v52, %v12214_v35  ;;  %v4964_v3 = vpop.f32.mrb[39].mxu1 }
 0x3d7   : > { %v5156_v28 = vadd.f32 %v12219_v50, %v5116_v20  ;;  %v5117_v40 = vmul.f32 %v12214_v35, %v4964_v3 }
 0x3d8   : > { %v5190_v23 = vmax.f32 %v5158_v30, 0.0  ;;  %v5159_v11 = vadd.f32 %v12219_v50, %v5119_v32  ;;  %v14574_v32 = vld [vmem:[#allocation5_spill] sm:$0xff] }
 0x3d9   : > { %v5188_v43 = vmax.f32 %v5156_v28, 0.0  ;;  %v5157_v33 = vadd.f32 %v12219_v50, %v5117_v40  ;;  %v5326_v44 = vld [vmem:[#allocation2 + $0x28] sm:$0xff] }
 0x3da   : > { %5222 = vst.msk [vmem:[#allocation2 + $0x48] sm:$0xff] %vm14563_vm11, %v5190_v23  ;;  %v5191_v15 = vmax.f32 %v5159_v11, 0.0  ;;  %v5324_v25 = vld [vmem:[#allocation2 + $0x18] sm:$0xff]  ;;  %vm14575_vm11 = vnez %v14574_v32 }
 0x3db   : > { %5220 = vst.msk [vmem:[#allocation2 + $0x38] sm:$0xff] %vm14564_vm4, %v5188_v43  ;;  %v5189_v36 = vmax.f32 %v5157_v33, 0.0  ;;  %v8004_v2 = vpop.f32.mrb[40].mxu1  ;;  %v5327_v12 = vld [vmem:[#allocation2 + $0x30] sm:$0xff]  ;;  %vm14576_vm4 = vmmov %vm14566_vm1 }
 0x3dc   : > { %5223 = vst.msk [vmem:[#allocation2 + $0x50] sm:$0xff] %vm14565_vm2, %v5191_v15  ;;  %v5122_v18 = vmul.f32 %v8004_v2, %v12214_v35  ;;  %v4977_v5 = vpop.f32.mrb[41].mxu1  ;;  %v12245_v38 = vpack.i.bf16 %v5327_v12, %v5326_v44  ;;  %v5325_v13 = vld [vmem:[#allocation2 + $0x20] sm:$0xff]  ;;  %v5358_v20 = vld [vmem:[#allocation2 + $0x29] sm:$0xff]  ;;  %vm14577_vm2 = vmmov %vm14566_vm1 }
 0x3dd   : > { %v5356_v39 = vld [vmem:[#allocation2 + $0x19] sm:$0xff]  ;;  %v5357_v14 = vld [vmem:[#allocation2 + $0x21] sm:$0xff]  ;;  %5221 = vst.msk [vmem:[#allocation2 + $0x40] sm:$0xff] %vm14566_vm1, %v5189_v36  ;;  %v5120_v16 = vmul.f32 %v12214_v35, %v4977_v5  ;;  %v8005_v60 = vpop.f32.mrb[42].mxu1  ;;  %v9166_v17 = vpack.i.bf16 %v5325_v13, %v5324_v25 }
 0x3de   : > { %v5389_v27 = vsel %vm14568_vm10, %v5357_v14, 0.0  ;;  %v5162_v4 = vadd.f32 %v12219_v50, %v5122_v18  ;;  %v5123_v53 = vmul.f32 %v8005_v60, %v12214_v35  ;;  %9162 = vrot.lane.b32.xlu1 %v12245_v38, %s9593_s27  ;;  %v4980_v19 = vpop.f32.mrb[43].mxu1  ;;  %v5793_v1 = vsel %vm14570_vm3, %v5357_v14, 0.0 }
 0x3df   : > { %v12257_v55 = vpack.i.bf16 %v5389_v27, %v5356_v39  ;;  %v5160_v63 = vadd.f32 %v12219_v50, %v5120_v16  ;;  %v5121_v47 = vmul.f32 %v12214_v35, %v4980_v19  ;;  %9167 = vrot.lane.b32.xlu0 %v9166_v17, %s9593_s27  ;;  %v9171_v46 = vpack.i.bf16 %v5793_v1, %v5356_v39 }
 0x3e0   : > { %v5194_v57 = vmax.f32 %v5162_v4, 0.0  ;;  %v5163_v51 = vadd.f32 %v12219_v50, %v5123_v53 }
 0x3e1   : > { %v5192_v8 = vmax.f32 %v5160_v63, 0.0  ;;  %v5161_v24 = vadd.f32 %v12219_v50, %v5121_v47  ;;  %v5330_v12 = vld [vmem:[#allocation2 + $0x48] sm:$0xff] }
 0x3e2   : > { %5226 = vst.msk [vmem:[#allocation2 + $0x68] sm:$0xff] %vm14572_vm5, %v5194_v57  ;;  %v5195_v6 = vmax.f32 %v5163_v51, 0.0  ;;  %v5359_v54 = vld [vmem:[#allocation2 + $0x31] sm:$0xff] }
 0x3e3   : > { %5224 = vst.msk [vmem:[#allocation2 + $0x58] sm:$0xff] %vm14573_vm12, %v5192_v8  ;;  %v5193_v31 = vmax.f32 %v5161_v24, 0.0  ;;  %9172 = vrot.lane.b32.xlu0 %v9171_v46, %s9594_s28  ;;  %v8008_v9 = vpop.f32.mrb[44].mxu1  ;;  %v5795_v52 = vsel %vm14568_vm10, %v5359_v54, 0.0  ;;  %v5331_v30 = vld [vmem:[#allocation2 + $0x50] sm:$0xff]  ;;  %v5391_v3 = vsel %vm14575_vm11, %v5359_v54, 0.0  ;;  %vm14581_vm12 = vmmov %vm14566_vm1 }
 0x3e4   : > { %5227 = vst.msk [vmem:[#allocation2 + $0x70] sm:$0xff] %vm14576_vm4, %v5195_v6  ;;  %v5126_v28 = vmul.f32 %v8008_v9, %v12214_v35  ;;  %v4993_v40 = vpop.f32.mrb[45].mxu1  ;;  %v9176_v23 = vpack.i.bf16 %v5795_v52, %v5358_v20  ;;  %v5328_v11 = vld [vmem:[#allocation2 + $0x38] sm:$0xff]  ;;  %v5329_v43 = vld [vmem:[#allocation2 + $0x40] sm:$0xff]  ;;  %v12281_v15 = vpack.i.bf16 %v5391_v3, %v5358_v20  ;;  %v12292_v39 = vpack.i.bf16 %v5331_v30, %v5330_v12  ;;  %v12321_v46 = vld [vmem:[#allocation2 + $0x49] sm:$0xff] }
 0x3e5   : > { %v12279_v33 = vld [vmem:[#allocation2 + $0x41] sm:$0xff]  ;;  %5225 = vst.msk [vmem:[#allocation2 + $0x60] sm:$0xff] %vm14577_vm2, %v5193_v31  ;;  %v5124_v36 = vmul.f32 %v12214_v35, %v4993_v40  ;;  %v8009_v2 = vpop.f32.mrb[46].mxu1  ;;  %v12285_v44 = vpack.i.bf16 %v5329_v43, %v5328_v11  ;;  %v12287_v25 = vld [vmem:[#allocation2 + $0x39] sm:$0xff]  ;;  %v6611_v17 = vsel %vm14570_vm3, %v5359_v54, 0.0  ;;  %vm14582_vm4 = vmmov %vm14566_vm1 }
 0x3e6   : > { %v5166_v18 = vadd.f32 %v12219_v50, %v5126_v28  ;;  %v5127_v5 = vmul.f32 %v8009_v2, %v12214_v35  ;;  %9177 = vrot.lane.b32.xlu1 %v9176_v23, %s9594_s28  ;;  %v4996_v13 = vpop.f32.mrb[47].mxu1  ;;  %v5797_v14 = vsel %vm14575_vm11, %v12279_v33, 0.0  ;;  %v6613_v27 = vsel %vm14568_vm10, %v12279_v33, 0.0  ;;  %vm14578_vm10 = vmmov %vm14566_vm1  ;;  %v14579_v6 = vld [vmem:[#allocation6_spill] sm:$0xff] }
 0x3e7   : > { %v5164_v16 = vadd.f32 %v12219_v50, %v5124_v36  ;;  %v5125_v60 = vmul.f32 %v12214_v35, %v4996_v13  ;;  %9187 = vrot.lane.b32.xlu0 %v12285_v44, %s9593_s27  ;;  %v12307_v19 = vpack.i.bf16 %v6611_v17, %v5358_v20  ;;  %v12310_v1 = vpack.i.bf16 %v6613_v27, %v12287_v25  ;;  %v14584_v13 = vld [vmem:[#allocation7_spill] sm:$0xff] }
 0x3e8   : > { %v5198_v4 = vmax.f32 %v5166_v18, 0.0  ;;  %v5167_v53 = vadd.f32 %v12219_v50, %v5127_v5  ;;  %v9191_v57 = vpack.i.bf16 %v5797_v14, %v12287_v25  ;;  %vm14580_vm5 = vnez %v14579_v6 }
 0x3e9   : > { %v5196_v63 = vmax.f32 %v5164_v16, 0.0  ;;  %v5165_v47 = vadd.f32 %v12219_v50, %v5125_v60  ;;  %v5334_v43 = vld [vmem:[#allocation2 + $0x68] sm:$0xff]  ;;  %vm14585_vm2 = vnez %v14584_v13 }
 0x3ea   : > { %5230 = vst.msk [vmem:[#allocation2 + $0x88] sm:$0xff] %vm14566_vm1, %v5198_v4  ;;  %v5199_v51 = vmax.f32 %v5167_v53, 0.0  ;;  %9182 = vrot.lane.b32.xlu1 %v12292_v39, %s9593_s27  ;;  %v12317_v7 = vld [vmem:[#allocation2 + $0x51] sm:$0xff] }
 0x3eb   : > { %5228 = vst.msk [vmem:[#allocation2 + $0x78] sm:$0xff] %vm14578_vm10, %v5196_v63  ;;  %v5197_v8 = vmax.f32 %v5165_v47, 0.0  ;;  %9192 = vrot.lane.b32.xlu0 %v9191_v57, %s9594_s28  ;;  %v8012_v24 = vpop.f32.mrb[48].mxu1  ;;  %v5799_v54 = vsel %vm14580_vm5, %v12317_v7, 0.0  ;;  %v5335_v31 = vld [vmem:[#allocation2 + $0x70] sm:$0xff]  ;;  %v5332_v30 = vld [vmem:[#allocation2 + $0x58] sm:$0xff] }
 0x3ec   : > { %5231 = vst.msk [vmem:[#allocation2 + $0x90] sm:$0xff] %vm14581_vm12, %v5199_v51  ;;  %v5130_v9 = vmul.f32 %v8012_v24, %v12214_v35  ;;  %v5009_v20 = vpop.f32.mrb[49].mxu1  ;;  %v9196_v52 = vpack.i.bf16 %v5799_v54, %v12321_v46  ;;  %v5333_v3 = vld [vmem:[#allocation2 + $0x60] sm:$0xff]  ;;  %v12340_v5 = vpack.i.bf16 %v5335_v31, %v5334_v43  ;;  %v6615_v17 = vsel %vm14575_vm11, %v12317_v7, 0.0  ;;  %vm14588_vm11 = vmmov %vm14566_vm1 }
 0x3ed   : > { %v12329_v28 = vld [vmem:[#allocation2 + $0x61] sm:$0xff]  ;;  %5229 = vst.msk [vmem:[#allocation2 + $0x80] sm:$0xff] %vm14582_vm4, %v5197_v8  ;;  %v5128_v40 = vmul.f32 %v12214_v35, %v5009_v20  ;;  %v8013_v23 = vpop.f32.mrb[50].mxu1  ;;  %v12333_v11 = vpack.i.bf16 %v5333_v3, %v5332_v30  ;;  %v12335_v36 = vld [vmem:[#allocation2 + $0x59] sm:$0xff]  ;;  %v12357_v63 = vpack.i.bf16 %v6615_v17, %v12321_v46  ;;  %vm14591_vm12 = vmmov %vm14566_vm1 }
 0x3ee   : > { %v5170_v2 = vadd.f32 %v12219_v50, %v5130_v9  ;;  %v5131_v12 = vmul.f32 %v8013_v23, %v12214_v35  ;;  %9197 = vrot.lane.b32.xlu1 %v9196_v52, %s9594_s28  ;;  %v5012_v18 = vpop.f32.mrb[51].mxu1  ;;  %14583 = vst [vmem:[#allocation52_spill] sm:$0xff] %v12340_v5  ;;  %v5801_v14 = vsel %vm14585_vm2, %v12329_v28, 0.0  ;;  %v6617_v27 = vsel %vm14580_vm5, %v12329_v28, 0.0  ;;  %v12371_v9 = vld [vmem:[#allocation2 + $0x69] sm:$0xff]  ;;  %v14589_v20 = vld [vmem:[#allocation8_spill] sm:$0xff]  ;;  %vm14592_vm4 = vmmov %vm14566_vm1 }
 0x3ef   : > { %v5168_v16 = vadd.f32 %v12219_v50, %v5128_v40  ;;  %v5129_v60 = vmul.f32 %v12214_v35, %v5012_v18  ;;  %9207 = vrot.lane.b32.xlu0 %v12333_v11, %s9593_s27  ;;  %14586 = vst [vmem:[#allocation48_spill] sm:$0xff] %v12357_v63  ;;  %v12360_v47 = vpack.i.bf16 %v6617_v27, %v12335_v36  ;;  %v5354_v63 = vld [vmem:[#allocation2 + $0x9] sm:$0xff] }
 0x3f0   : > { %v5202_v4 = vmax.f32 %v5170_v2, 0.0  ;;  %v5171_v53 = vadd.f32 %v12219_v50, %v5131_v12  ;;  %v9211_v8 = vpack.i.bf16 %v5801_v14, %v12335_v36  ;;  %vm14590_vm10 = vnez %v14589_v20 }
 0x3f1   : > { %14587 = vst [vmem:[#allocation50_spill] sm:$0xff] %v12360_v47  ;;  %v5200_v57 = vmax.f32 %v5168_v16, 0.0  ;;  %v5169_v51 = vadd.f32 %v12219_v50, %v5129_v60  ;;  %v5338_v60 = vld [vmem:[#allocation2 + $0x88] sm:$0xff]  ;;  %v5397_v0 = vsel %vm14590_vm10, %v12329_v28, 0.0 }
 0x3f2   : > { %5234 = vst.msk [vmem:[#allocation2 + $0xa8] sm:$0xff] %vm14566_vm1, %v5202_v4  ;;  %v5203_v32 = vmax.f32 %v5171_v53, 0.0  ;;  %9202 = vrot.lane.b32.xlu1 %v12340_v5, %s9593_s27  ;;  %v12367_v24 = vld [vmem:[#allocation2 + $0x71] sm:$0xff]  ;;  %v9351_v6 = vpack.i.bf16 %v5397_v0, %v12335_v36 }
 0x3f3   : > { %5232 = vst.msk [vmem:[#allocation2 + $0x98] sm:$0xff] %vm14588_vm11, %v5200_v57  ;;  %v5201_v54 = vmax.f32 %v5169_v51, 0.0  ;;  %9212 = vrot.lane.b32.xlu0 %v9211_v8, %s9594_s28  ;;  %v8016_v31 = vpop.f32.mrb[52].mxu1  ;;  %v5803_v52 = vsel %vm14590_vm10, %v12367_v24, 0.0  ;;  %v5339_v30 = vld [vmem:[#allocation2 + $0x90] sm:$0xff]  ;;  %v5336_v43 = vld [vmem:[#allocation2 + $0x78] sm:$0xff]  ;;  %vm14599_vm11 = vmmov %vm14592_vm4 }
 0x3f4   : > { %5235 = vst.msk [vmem:[#allocation2 + $0xb0] sm:$0xff] %vm14591_vm12, %v5203_v32  ;;  %v5134_v3 = vmul.f32 %v8016_v31, %v12214_v35  ;;  %v5025_v40 = vpop.f32.mrb[53].mxu1  ;;  %v9216_v23 = vpack.i.bf16 %v5803_v52, %v12371_v9  ;;  %v5337_v2 = vld [vmem:[#allocation2 + $0x80] sm:$0xff]  ;;  %v12390_v57 = vpack.i.bf16 %v5339_v30, %v5338_v60  ;;  %v6619_v31 = vsel %vm14585_vm2, %v12367_v24, 0.0  ;;  %vm14600_vm12 = vmmov %vm14592_vm4  ;;  %v5323_v5 = vld [vmem:[#allocation2 + $0x10] sm:$0xff] }
 0x3f5   : > { %v12379_v12 = vld [vmem:[#allocation2 + $0x81] sm:$0xff]  ;;  %5233 = vst.msk [vmem:[#allocation2 + $0xa0] sm:$0xff] %vm14592_vm4, %v5201_v54  ;;  %v5132_v18 = vmul.f32 %v12214_v35, %v5025_v40  ;;  %v8017_v14 = vpop.f32.mrb[54].mxu1  ;;  %v12383_v16 = vpack.i.bf16 %v5337_v2, %v5336_v43  ;;  %v12385_v17 = vld [vmem:[#allocation2 + $0x79] sm:$0xff]  ;;  %v12407_v40 = vpack.i.bf16 %v6619_v31, %v12371_v9 }
 0x3f6   : > { %v5174_v27 = vadd.f32 %v12219_v50, %v5134_v3  ;;  %v5135_v4 = vmul.f32 %v8017_v14, %v12214_v35  ;;  %9217 = vrot.lane.b32.xlu1 %v9216_v23, %s9594_s28  ;;  %v5028_v53 = vpop.f32.mrb[55].mxu1  ;;  %14594 = vst [vmem:[#allocation53_spill] sm:$0xff] %v12390_v57  ;;  %v14595_v51 = vld [vmem:[#allocation9_spill] sm:$0xff]  ;;  %v6621_v52 = vsel %vm14590_vm10, %v12379_v12, 0.0  ;;  %vm14654_vm10 = vcmask 130048  }
 0x3f7   : > { %14593 = vst [vmem:[#allocation51_spill] sm:$0xff] %v12383_v16  ;;  %vm14596_vm1 = vnez %v14595_v51  ;;  %v5172_v32 = vadd.f32 %v12219_v50, %v5132_v18  ;;  %v5133_v54 = vmul.f32 %v12214_v35, %v5028_v53  ;;  %9227 = vrot.lane.b32.xlu0 %v12383_v16, %s9593_s27  ;;  %14597 = vst [vmem:[#allocation56_spill] sm:$0xff] %v12407_v40  ;;  %v12421_v53 = vld [vmem:[#allocation2 + $0x89] sm:$0xff]  ;;  %v5260_v51 = vld [vmem:[#allocation2 + $0x17] sm:$0xff] }
 0x3f8   : > { %v5805_v8 = vsel %vm14596_vm1, %v12379_v12, 0.0  ;;  %v5206_v30 = vmax.f32 %v5174_v27, 0.0  ;;  %v5175_v3 = vadd.f32 %v12219_v50, %v5135_v4  ;;  %v12410_v23 = vpack.i.bf16 %v6621_v52, %v12385_v17 }
 0x3f9   : > { %v5204_v43 = vmax.f32 %v5172_v32, 0.0  ;;  %v5173_v2 = vadd.f32 %v12219_v50, %v5133_v54  ;;  %v9231_v18 = vpack.i.bf16 %v5805_v8, %v12385_v17  ;;  %v14601_v32 = vld [vmem:[#allocation10_spill] sm:$0xff] }
 0x3fa   : > { %14598 = vst [vmem:[#allocation36_spill] sm:$0xff] %v12410_v23  ;;  %5238 = vst.msk [vmem:[#allocation2 + $0xc8] sm:$0xff] %vm14599_vm11, %v5206_v30  ;;  %v5207_v14 = vmax.f32 %v5175_v3, 0.0  ;;  %9222 = vrot.lane.b32.xlu1 %v12390_v57, %s9593_s27  ;;  %v12417_v60 = vld [vmem:[#allocation2 + $0x91] sm:$0xff]  ;;  %vm14602_vm4 = vnez %v14601_v32  ;;  %v5342_v61 = vld [vmem:[#allocation2 + $0xa8] sm:$0xff] }
 0x3fb   : > { %5236 = vst.msk [vmem:[#allocation2 + $0xb8] sm:$0xff] %vm14600_vm12, %v5204_v43  ;;  %v5205_v27 = vmax.f32 %v5173_v2, 0.0  ;;  %9232 = vrot.lane.b32.xlu0 %v9231_v18, %s9594_s28  ;;  %v8020_v4 = vpop.f32.mrb[56].mxu1  ;;  %v5807_v8 = vsel %vm14602_vm4, %v12417_v60, 0.0  ;;  %v5343_v54 = vld [vmem:[#allocation2 + $0xb0] sm:$0xff]  ;;  %v5340_v3 = vld [vmem:[#allocation2 + $0x98] sm:$0xff]  ;;  %vm14603_vm12 = vmmov %vm14599_vm11 }
 0x3fc   : > { %5239 = vst.msk [vmem:[#allocation2 + $0xd0] sm:$0xff] %vm14599_vm11, %v5207_v14  ;;  %v5138_v31 = vmul.f32 %v8020_v4, %v12214_v35  ;;  %v5041_v52 = vpop.f32.mrb[57].mxu1  ;;  %v9236_v30 = vpack.i.bf16 %v5807_v8, %v12421_v53  ;;  %v5341_v43 = vld [vmem:[#allocation2 + $0xa0] sm:$0xff]  ;;  %v12440_v21 = vpack.i.bf16 %v5343_v54, %v5342_v61  ;;  %vm14607_vm11 = vnez %v14606_v59  ;;  %vm14610_vm9 = vmmov %vm14603_vm12  ;;  %v14644_v32 = vld [vmem:[#allocation20_spill] sm:$0xff] }
 0x3fd   : > { %v12429_v2 = vld [vmem:[#allocation2 + $0xa1] sm:$0xff]  ;;  %5237 = vst.msk [vmem:[#allocation2 + $0xc0] sm:$0xff] %vm14603_vm12, %v5205_v27  ;;  %v5136_v18 = vmul.f32 %v12214_v35, %v5041_v52  ;;  %v8021_v22 = vpop.f32.mrb[58].mxu1  ;;  %v12433_v26 = vpack.i.bf16 %v5341_v43, %v5340_v3  ;;  %v12435_v58 = vld [vmem:[#allocation2 + $0x99] sm:$0xff]  ;;  %vm14620_vm14 = vmmov %vm14610_vm9 }
 0x3fe   : > { %v5178_v14 = vadd.f32 %v12219_v50, %v5138_v31  ;;  %v5139_v4 = vmul.f32 %v8021_v22, %v12214_v35  ;;  %9237 = vrot.lane.b32.xlu1 %v9236_v30, %s9594_s28  ;;  %v5044_v8 = vpop.f32.mrb[59].mxu1  ;;  %14605 = vst [vmem:[#allocation45_spill] sm:$0xff] %v12440_v21  ;;  %v5809_v27 = vsel %vm14607_vm11, %v12429_v2, 0.0  ;;  %v6623_v22 = vsel %vm14596_vm1, %v12417_v60, 0.0  ;;  %v14633_v23 = vld [vmem:[#allocation17_spill] sm:$0xff] }
 0x3ff   : > { %14604 = vst [vmem:[#allocation44_spill] sm:$0xff] %v12433_v26  ;;  %v5176_v52 = vadd.f32 %v12219_v50, %v5136_v18  ;;  %v5137_v3 = vmul.f32 %v12214_v35, %v5044_v8  ;;  %9247 = vrot.lane.b32.xlu0 %v12433_v26, %s9593_s27  ;;  %v6625_v61 = vsel %vm14602_vm4, %v12429_v2, 0.0  ;;  %v12457_v30 = vpack.i.bf16 %v6623_v22, %v12421_v53 }
 0x400   : > { %v5210_v54 = vmax.f32 %v5178_v14, 0.0  ;;  %v5179_v31 = vadd.f32 %v12219_v50, %v5139_v4  ;;  %v12460_v43 = vpack.i.bf16 %v6625_v61, %v12435_v58  ;;  %v9251_v48 = vpack.i.bf16 %v5809_v27, %v12435_v58  ;;  %v12471_v61 = vld [vmem:[#allocation2 + $0xa9] sm:$0xff] }
 0x401   : > { %14608 = vst [vmem:[#allocation38_spill] sm:$0xff] %v12457_v30  ;;  %v5208_v18 = vmax.f32 %v5176_v52, 0.0  ;;  %v5177_v8 = vadd.f32 %v12219_v50, %v5137_v3  ;;  %v14611_v52 = vld [vmem:[#allocation12_spill] sm:$0xff]  ;;  %vm14634_vm8 = vnez %v14633_v23 }
 0x402   : > { %14609 = vst [vmem:[#allocation47_spill] sm:$0xff] %v12460_v43  ;;  %5242 = vst.msk [vmem:[#allocation2 + $0xe8] sm:$0xff] %vm14603_vm12, %v5210_v54  ;;  %v5211_v49 = vmax.f32 %v5179_v31, 0.0  ;;  %9242 = vrot.lane.b32.xlu1 %v12440_v21, %s9593_s27  ;;  %v12467_v14 = vld [vmem:[#allocation2 + $0xb1] sm:$0xff]  ;;  %vm14612_vm7 = vnez %v14611_v52  ;;  %v5346_v43 = vld [vmem:[#allocation2 + $0xc8] sm:$0xff] }
 0x403   : > { %5240 = vst.msk [vmem:[#allocation2 + $0xd8] sm:$0xff] %vm14610_vm9, %v5208_v18  ;;  %v5209_v4 = vmax.f32 %v5177_v8, 0.0  ;;  %9252 = vrot.lane.b32.xlu0 %v9251_v48, %s9594_s28  ;;  %v8024_v22 = vpop.f32.mrb[60].mxu1  ;;  %v5811_v27 = vsel %vm14612_vm7, %v12467_v14, 0.0  ;;  %v5347_v3 = vld [vmem:[#allocation2 + $0xd0] sm:$0xff]  ;;  %vm14613_vm12 = vmmov %vm14610_vm9  ;;  %v5344_v45 = vld [vmem:[#allocation2 + $0xb8] sm:$0xff] }
 0x404   : > { %5243 = vst.msk [vmem:[#allocation2 + $0xf0] sm:$0xff] %vm14613_vm12, %v5211_v49  ;;  %v5142_v54 = vmul.f32 %v8024_v22, %v12214_v35  ;;  %v5057_v31 = vpop.f32.mrb[61].mxu1  ;;  %v9256_v62 = vpack.i.bf16 %v5811_v27, %v12471_v61  ;;  %v5345_v18 = vld [vmem:[#allocation2 + $0xc0] sm:$0xff]  ;;  %v12490_v30 = vpack.i.bf16 %v5347_v3, %v5346_v43  ;;  %vm14617_vm12 = vnez %v14616_v41 }
 0x405   : > { %v12479_v8 = vld [vmem:[#allocation2 + $0xc1] sm:$0xff]  ;;  %5241 = vst.msk [vmem:[#allocation2 + $0xe0] sm:$0xff] %vm14610_vm9, %v5209_v4  ;;  %v5140_v48 = vmul.f32 %v12214_v35, %v5057_v31  ;;  %v8025_v42 = vpop.f32.mrb[62].mxu1  ;;  %v12483_v21 = vpack.i.bf16 %v5345_v18, %v5344_v45  ;;  %v12485_v34 = vld [vmem:[#allocation2 + $0xb9] sm:$0xff]  ;;  %v5405_v28 = vsel %vm14612_vm7, %v12429_v2, 0.0  ;;  %v5407_v13 = vsel %vm14617_vm12, %v12467_v14, 0.0 }
 0x406   : > { %v5182_v49 = vadd.f32 %v12219_v50, %v5142_v54  ;;  %v5143_v22 = vmul.f32 %v8025_v42, %v12214_v35  ;;  %9257 = vrot.lane.b32.xlu1 %v9256_v62, %s9594_s28  ;;  %v5060_v27 = vpop.f32.mrb[63].mxu1  ;;  %14615 = vst [vmem:[#allocation60_spill] sm:$0xff] %v12490_v30  ;;  %v5813_v4 = vsel %vm14617_vm12, %v12479_v8, 0.0  ;;  %v6627_v42 = vsel %vm14607_vm11, %v12467_v14, 0.0 }
 0x407   : > { %14614 = vst [vmem:[#allocation55_spill] sm:$0xff] %v12483_v21  ;;  %v5180_v31 = vadd.f32 %v12219_v50, %v5140_v48  ;;  %v5141_v45 = vmul.f32 %v12214_v35, %v5060_v27  ;;  %9267 = vrot.lane.b32.xlu0 %v12483_v21, %s9593_s27  ;;  %v6629_v62 = vsel %vm14612_vm7, %v12479_v8, 0.0  ;;  %v12507_v54 = vpack.i.bf16 %v6627_v42, %v12471_v61  ;;  %v12521_v42 = vld [vmem:[#allocation2 + $0xc9] sm:$0xff] }
 0x408   : > { %v5214_v43 = vmax.f32 %v5182_v49, 0.0  ;;  %v5183_v3 = vadd.f32 %v12219_v50, %v5143_v22  ;;  %v12510_v18 = vpack.i.bf16 %v6629_v62, %v12485_v34  ;;  %v9271_v27 = vpack.i.bf16 %v5813_v4, %v12485_v34 }
 0x409   : > { %14618 = vst [vmem:[#allocation58_spill] sm:$0xff] %v12507_v54  ;;  %v5212_v35 = vmax.f32 %v5180_v31, 0.0  ;;  %v5181_v48 = vadd.f32 %v12219_v50, %v5141_v45  ;;  %v14621_v31 = vld [vmem:[#allocation14_spill] sm:$0xff] }
 0x40a   : > { %14619 = vst [vmem:[#allocation59_spill] sm:$0xff] %v12510_v18  ;;  %5246 = vst.msk [vmem:[#allocation2 + $0x108] sm:$0xff] %vm14610_vm9, %v5214_v43  ;;  %v5215_v21 = vmax.f32 %v5183_v3, 0.0  ;;  %9262 = vrot.lane.b32.xlu1 %v12490_v30, %s9593_s27  ;;  %v12517_v49 = vld [vmem:[#allocation2 + $0xd1] sm:$0xff]  ;;  %vm14622_vm6 = vnez %v14621_v31 }
 0x40b   : > { %5244 = vst.msk [vmem:[#allocation2 + $0xf8] sm:$0xff] %vm14620_vm14, %v5212_v35  ;;  %v5213_v22 = vmax.f32 %v5181_v48, 0.0  ;;  %9272 = vrot.lane.b32.xlu0 %v9271_v27, %s9594_s28  ;;  %v5815_v50 = vsel %vm14622_vm6, %v12517_v49, 0.0  ;;  %v5348_v4 = vld [vmem:[#allocation2 + $0xd8] sm:$0xff]  ;;  %v6631_v45 = vsel %vm14617_vm12, %v12517_v49, 0.0  ;;  %vm14624_vm14 = vmmov %vm14610_vm9  ;;  %v5351_v30 = vld [vmem:[#allocation2 + $0xf0] sm:$0xff] }
 0x40c   : > { %5247 = vst.msk [vmem:[#allocation2 + $0x110] sm:$0xff] %vm14610_vm9, %v5215_v21  ;;  %v9276_v62 = vpack.i.bf16 %v5815_v50, %v12521_v42  ;;  %v5349_v43 = vld [vmem:[#allocation2 + $0xe0] sm:$0xff]  ;;  %v12536_v48 = vpack.i.bf16 %v6631_v45, %v12521_v42  ;;  %v14626_v21 = vld [vmem:[#allocation15_spill] sm:$0xff]  ;;  %v5409_v59 = vsel %vm14622_vm6, %v12479_v8, 0.0 }
 0x40d   : > { %v12531_v3 = vld [vmem:[#allocation2 + $0xd9] sm:$0xff]  ;;  %v12533_v35 = vld [vmem:[#allocation2 + $0xe1] sm:$0xff]  ;;  %5245 = vst.msk [vmem:[#allocation2 + $0x100] sm:$0xff] %vm14624_vm14, %v5213_v22  ;;  %v12539_v27 = vpack.i.bf16 %v5349_v43, %v5348_v4  ;;  %vm14627_vm9 = vnez %v14626_v21 }
 0x40e   : > { %14623 = vst [vmem:[#allocation63_spill] sm:$0xff] %v12536_v48  ;;  %v6633_v18 = vsel %vm14622_vm6, %v12533_v35, 0.0  ;;  %9277 = vrot.lane.b32.xlu1 %v9276_v62, %s9594_s28  ;;  %v5817_v50 = vsel %vm14627_vm9, %v12533_v35, 0.0  ;;  %v5350_v22 = vld [vmem:[#allocation2 + $0xe8] sm:$0xff]  ;;  %vm14645_vm6 = vnez %v14644_v32 }
 0x40f   : > { %14625 = vst [vmem:[#allocation54_spill] sm:$0xff] %v12539_v27  ;;  %v12549_v54 = vpack.i.bf16 %v6633_v18, %v12531_v3  ;;  %9287 = vrot.lane.b32.xlu0 %v12539_v27, %s9593_s27  ;;  %v12553_v4 = vpack.i.bf16 %v5351_v30, %v5350_v22  ;;  %v9291_v45 = vpack.i.bf16 %v5817_v50, %v12531_v3  ;;  %v12561_v62 = vld [vmem:[#allocation2 + $0xe9] sm:$0xff]  ;;  %v14630_v18 = vld [vmem:[#allocation16_spill] sm:$0xff]  ;;  %v5292_v2 = vsel %vm14645_vm6, %v5260_v51, 0.0 }
 0x410   : > { %vm14631_vm14 = vnez %v14630_v18  ;;  %v14653_v18 = vld [vmem:[#allocation36_spill] sm:$0xff] }
 0x411   : > { %14628 = vst [vmem:[#allocation35_spill] sm:$0xff] %v12549_v54  ;;  %14629 = vst [vmem:[#allocation37_spill] sm:$0xff] %v12553_v4  ;;  %v5413_v41 = vsel %vm14631_vm14, %v12533_v35, 0.0 }
 0x412   : > { %9282 = vrot.lane.b32.xlu1 %v12553_v4, %s9593_s27  ;;  %v12558_v43 = vld [vmem:[#allocation2 + $0xf1] sm:$0xff] }
 0x413   : > { %9292 = vrot.lane.b32.xlu0 %v9291_v45, %s9594_s28  ;;  %v5819_v54 = vsel %vm14631_vm14, %v12558_v43, 0.0  ;;  %v5352_v48 = vld [vmem:[#allocation2 + $0xf8] sm:$0xff]  ;;  %v6635_v30 = vsel %vm14627_vm9, %v12558_v43, 0.0  ;;  %v5789_v10 = vld [vmem:[#allocation2 + $0x110] sm:$0xff] }
 0x414   : > { %v5791_v27 = vld [vmem:[#allocation2 + $0x111] sm:$0xff]  ;;  %v9296_v50 = vpack.i.bf16 %v5819_v54, %v12561_v62  ;;  %v5353_v22 = vld [vmem:[#allocation2 + $0x100] sm:$0xff]  ;;  %v5790_v57 = vld [vmem:[#allocation2 + $0x109] sm:$0xff]  ;;  %v12581_v29 = vpack.i.bf16 %v6635_v30, %v12561_v62 }
 0x415   : > { %v12570_v4 = vld [vmem:[#allocation2 + $0xf9] sm:$0xff]  ;;  %v12572_v26 = vld [vmem:[#allocation2 + $0x101] sm:$0xff]  ;;  %v12574_v45 = vpack.i.bf16 %v5353_v22, %v5352_v48  ;;  %v5823_v47 = vsel %vm14638_vm13, %v5791_v27, 0.0 }
 0x416   : > { %9297 = vrot.lane.b32.xlu1 %v9296_v50, %s9594_s28  ;;  %v5821_v40 = vsel %vm14634_vm8, %v12572_v26, 0.0  ;;  %14635 = vst [vmem:[#allocation40_spill] sm:$0xff] %v12581_v29  ;;  %v6637_v54 = vsel %vm14631_vm14, %v12572_v26, 0.0  ;;  %v5788_v48 = vld [vmem:[#allocation2 + $0x108] sm:$0xff]  ;;  %v6639_v50 = vsel %vm14634_vm8, %v5791_v27, 0.0  ;;  %v5393_v27 = vsel %vm14580_vm5, %v12279_v33, 0.0 }
 0x417   : > { %14632 = vst [vmem:[#allocation39_spill] sm:$0xff] %v12574_v45  ;;  %9307 = vrot.lane.b32.xlu0 %v12574_v45, %s9593_s27  ;;  %v12589_v22 = vpack.i.bf16 %v6637_v54, %v12570_v4  ;;  %v12593_v16 = vpack.i.bf16 %v5789_v10, %v5788_v48  ;;  %v12595_v30 = vpack.i.bf16 %v6639_v50, %v5790_v57  ;;  %v5355_v45 = vld [vmem:[#allocation2 + $0x11] sm:$0xff]  ;;  %v5417_v20 = vsel %vm14638_vm13, %v12572_v26, 0.0 }
 0x418   : > { %v9311_v29 = vpack.i.bf16 %v5821_v40, %v12570_v4  ;;  %v9321_v54 = vpack.i.bf16 %v5323_v5, %v5322_v56  ;;  %v5387_v10 = vsel %vm14570_vm3, %v5355_v45, 0.0  ;;  %v9341_v56 = vpack.i.bf16 %v5393_v27, %v12287_v25  ;;  %v14639_v26 = vld [vmem:[#allocation48_spill] sm:$0xff] }
 0x419   : > { %14636 = vst [vmem:[#allocation41_spill] sm:$0xff] %v12589_v22  ;;  %v9316_v22 = vpack.i.bf16 %v5823_v47, %v5790_v57  ;;  %v9326_v40 = vpack.i.bf16 %v5387_v10, %v5354_v63  ;;  %v9371_v5 = vpack.i.bf16 %v5405_v28, %v12435_v58  ;;  %v9376_v63 = vpack.i.bf16 %v5407_v13, %v12471_v61  ;;  %v12693_v57 = vld [vmem:[#allocation2 + $0x27] sm:$0xff]  ;;  %v14646_v61 = vld [vmem:[#allocation51_spill] sm:$0xff] }
 0x41a   : > { %9302 = vrot.lane.b32.xlu1 %v12593_v16, %s9593_s27  ;;  %v9381_v47 = vpack.i.bf16 %v5409_v59, %v12485_v34  ;;  %v5411_v58 = vsel %vm14627_vm9, %v12517_v49, 0.0  ;;  %v5415_v34 = vsel %vm14634_vm8, %v12558_v43, 0.0  ;;  %vm14643_vm8 = vcmask 64512   ;;  %v12723_v50 = vld [vmem:[#allocation2 + $0x37] sm:$0xff] }
 0x41b   : > { %9312 = vrot.lane.b32.xlu0 %v9311_v29, %s9594_s28  ;;  %v5395_v29 = vsel %vm14585_vm2, %v12317_v7, 0.0  ;;  %vm14647_vm7 = vmmov %vm14643_vm8  ;;  %v5758_v10 = vsel %vm14645_vm6, %v12693_v57, 0.0  ;;  %vm14662_vm14 = vcmask 195584  }
 0x41c   : > { %v9346_v33 = vpack.i.bf16 %v5395_v29, %v12321_v46  ;;  %v5403_v46 = vsel %vm14607_vm11, %v12417_v60, 0.0  ;;  %v5294_v60 = vsel %vm14471_vm15, %v12693_v57, 0.0  ;;  %vm14651_vm5 = vmmov %vm14647_vm7 }
 0x41d   : > { %v9366_v36 = vpack.i.bf16 %v5403_v46, %v12421_v53  ;;  %v14642_v53 = vld [vmem:[#allocation52_spill] sm:$0xff]  ;;  %vm14652_vm2 = vmmov %vm14651_vm5  ;;  %v5296_v46 = vsel %vm14229_vm0, %v12723_v50, 0.0 }
 0x41e   : > { %9317 = vrot.lane.b32.xlu1 %v9316_v22, %s9594_s28  ;;  %vm14657_vm11 = vmmov %vm14652_vm2 }
 0x41f   : > { %9322 = vrot.lane.b32.xlu0 %v9321_v54, %s9593_s27  ;;  %v12725_v54 = vld [vmem:[#allocation2 + $0x2f] sm:$0xff] }
 0x422   : > { %9327 = vrot.lane.b32.xlu1 %v9326_v40, %s9594_s28 }
 0x423   : > { %9332 = vrot.lane.b32.xlu0 %v12257_v55, %s9594_s28  ;;  %v5399_v55 = vsel %vm14596_vm1, %v12367_v24, 0.0  ;;  %v9386_v24 = vpack.i.bf16 %v5411_v58, %v12521_v42  ;;  %v14648_v42 = vld [vmem:[#allocation19_spill] sm:$0xff]  ;;  %vm14655_vm1 = vmmov %vm14654_vm10  ;;  %v5760_v58 = vsel %vm14471_vm15, %v12723_v50, 0.0 }
 0x424   : > { %v9356_v25 = vpack.i.bf16 %v5399_v55, %v12371_v9  ;;  %v9391_v9 = vpack.i.bf16 %v5413_v41, %v12531_v3  ;;  %vm14649_vm3 = vnez %v14648_v42  ;;  %v5261_v3 = vld [vmem:[#allocation2 + $0x1f] sm:$0xff]  ;;  %vm14659_vm12 = vmmov %vm14655_vm1 }
 0x425   : > { %v5756_v31 = vsel %vm14649_vm3, %v5260_v51, 0.0  ;;  %v14658_v55 = vld [vmem:[#allocation53_spill] sm:$0xff]  ;;  %vm14660_vm9 = vmmov %vm14655_vm1 }
 0x426   : > { %9337 = vrot.lane.b32.xlu1 %v12281_v15, %s9594_s28  ;;  %v5401_v15 = vsel %vm14602_vm4, %v12379_v12, 0.0  ;;  %v9396_v12 = vpack.i.bf16 %v5415_v34, %v12561_v62  ;;  %vm14656_vm4 = vmmov %vm14652_vm2 }
 0x427   : > { %9342 = vrot.lane.b32.xlu0 %v9341_v56, %s9594_s28  ;;  %v9361_v7 = vpack.i.bf16 %v5401_v15, %v12385_v17  ;;  %v9406_v17 = vpack.i.bf16 %v5417_v20, %v12570_v4  ;;  %v14650_v4 = vld [vmem:[#allocation56_spill] sm:$0xff]  ;;  %v14665_v20 = vld [vmem:[#allocation23_spill] sm:$0xff] }
 0x42a   : > { %9347 = vrot.lane.b32.xlu1 %v9346_v33, %s9594_s28 }
 0x42b   : > { %9352 = vrot.lane.b32.xlu0 %v9351_v6, %s9594_s28 }
 0x42e   : > { %9357 = vrot.lane.b32.xlu1 %v9356_v25, %s9594_s28 }
 0x42f   : > { %9362 = vrot.lane.b32.xlu0 %v9361_v7, %s9594_s28 }
 0x432   : > { %9367 = vrot.lane.b32.xlu1 %v9366_v36, %s9594_s28  ;;  %v14663_v36 = vld [vmem:[#allocation44_spill] sm:$0xff] }
 0x433   : > { %9372 = vrot.lane.b32.xlu0 %v9371_v5, %s9594_s28  ;;  %v12746_v5 = vld [vmem:[#allocation2 + $0x47] sm:$0xff] }
 0x436   : > { %9377 = vrot.lane.b32.xlu1 %v9376_v63, %s9594_s28 }
 0x437   : > { %9382 = vrot.lane.b32.xlu0 %v9381_v47, %s9594_s28  ;;  %v9581_v47 = vld [vmem:[%s13524_s2 + $0x50] ss:$0 sps:$4 sm:$0xff]  }
 0x43a   : > { %9387 = vrot.lane.b32.xlu1 %v9386_v24, %s9594_s28 }
 0x43b   : > { %9392 = vrot.lane.b32.xlu0 %v9391_v9, %s9594_s28  ;;  %v12757_v9 = vld [vmem:[#allocation2 + $0x3f] sm:$0xff] }
 0x43e   : > { %9397 = vrot.lane.b32.xlu1 %v9396_v12, %s9594_s28 }
 0x43f   : > { %9407 = vrot.lane.b32.xlu0 %v9406_v17, %s9594_s28 }
 0x442   : > { %9402 = vrot.lane.b32.xlu1 %v12245_v38, %s9593_s27  ;;  %v14640_v38 = vld [vmem:[#allocation50_spill] sm:$0xff] }
 0x443   : > { %9412 = vrot.lane.b32.xlu0 %v12285_v44, %s9593_s27 }
 0x446   : > { %9417 = vrot.lane.b32.xlu1 %v12307_v19, %s9594_s28 }
 0x447   : > { %9422 = vrot.lane.b32.xlu0 %v12310_v1, %s9594_s28 }
 0x44a   : > { %9427 = vrot.lane.b32.xlu1 %v12292_v39, %s9593_s27 }
 0x44b   : > { %9432 = vrot.lane.b32.xlu0 %v12333_v11, %s9593_s27 }
 0x44e   : > { %9437 = vrot.lane.b32.xlu1 %v14639_v26, %s9594_s28 }
 0x44f   : > { %9442 = vrot.lane.b32.xlu0 %v14640_v38, %s9594_s28  ;;  %v14668_v38 = vld [vmem:[#allocation38_spill] sm:$0xff] }
 0x450   : > { %v9163_v44 = vpop.permute.xlu1 %9162 }
 0x451   : > { %v9164_v19 = vunpack.i.l.bf16 %v9163_v44  ;;  %v9168_v23 = vpop.permute.xlu0 %9167  ;;  %v9165_v49 = vunpack.i.h.bf16 %v9163_v44 }
 0x452   : > { %v9169_v39 = vunpack.i.l.bf16 %v9168_v23  ;;  %9447 = vrot.lane.b32.xlu1 %v14642_v53, %s9593_s27  ;;  %v9170_v14 = vunpack.i.h.bf16 %v9168_v23  ;;  %v14671_v23 = vld [vmem:[#allocation49_spill] sm:$0xff] }
 0x453   : > { %v12701_v11 = vsel %vm14643_vm8, %v5294_v60, %v9164_v19  ;;  %9452 = vrot.lane.b32.xlu0 %v14646_v61, %s9593_s27  ;;  %v12732_v0 = vsel %vm14656_vm4, %v12725_v54, %v9165_v49  ;;  %v5962_v33 = vsel %vm14657_vm11, %v5758_v10, %v9164_v19  ;;  %vm14664_vm8 = vmmov %vm14652_vm2  ;;  %v14672_v60 = vld [vmem:[#allocation47_spill] sm:$0xff] }
 0x454   : > { %v12708_v52 = vsel %vm14647_vm7, %v5292_v2, %v9169_v39  ;;  %v12715_v43 = vsel %vm14651_vm5, %v5261_v3, %v9170_v14  ;;  %v5960_v62 = vsel %vm14652_vm2, %v5756_v31, %v9169_v39  ;;  %vm14666_vm7 = vnez %v14665_v20  ;;  %vm14667_vm5 = vmmov %vm14662_vm14  ;;  %v12782_v61 = vld [vmem:[#allocation2 + $0x57] sm:$0xff] }
 0x455   : > { %v9173_v8 = vpop.permute.xlu0 %9172  ;;  %v5298_v12 = vsel %vm14666_vm7, %v12746_v5, 0.0  ;;  %v5762_v39 = vsel %vm14229_vm0, %v12746_v5, 0.0  ;;  %vm14673_vm4 = vmmov %vm14660_vm9 }
 0x456   : > { %v9175_v35 = vunpack.i.h.bf16 %v9173_v8  ;;  %v9174_v21 = vunpack.i.l.bf16 %v9173_v8  ;;  %9457 = vrot.lane.b32.xlu1 %v14650_v4, %s9594_s28  ;;  %vm14674_vm11 = vmmov %vm14673_vm4  ;;  %v12785_v8 = vld [vmem:[#allocation2 + $0x4f] sm:$0xff]  ;;  %v12791_v4 = vld [vmem:[%s13524_s2 + $0x60] sm:$0xff]  }
 0x457   : > { %9462 = vrot.lane.b32.xlu0 %v14653_v18, %s9594_s28 }
 0x458   : > { %v5992_v45 = vsel %vm14654_vm10, %v5960_v62, %v9174_v21  ;;  %v5993_v48 = vsel %vm14655_vm1, %v12715_v43, %v9175_v35  ;;  %v9178_v22 = vpop.permute.xlu1 %9177  ;;  %vm14669_vm10 = vmmov %vm14652_vm2 }
 0x459   : > { %v6024_v40 = vpack.c.bf16 %v5993_v48, %v5992_v45  ;;  %v9180_v27 = vunpack.i.h.bf16 %v9178_v22  ;;  %v9179_v56 = vunpack.i.l.bf16 %v9178_v22  ;;  %v9188_v29 = vpop.permute.xlu0 %9187  ;;  %vm14670_vm1 = vmmov %vm14652_vm2  ;;  %v14679_v48 = vld [vmem:[#allocation45_spill] sm:$0xff] }
 0x45a   : > { %v9189_v6 = vunpack.i.l.bf16 %v9188_v29  ;;  %9467 = vrot.lane.b32.xlu1 %v14658_v55, %s9593_s27  ;;  %v9190_v28 = vunpack.i.h.bf16 %v9188_v29  ;;  %v14685_v29 = vld [vmem:[#allocation55_spill] sm:$0xff] }
 0x45b   : > { %v5995_v15 = vsel %vm14659_vm12, %v12732_v0, %v9180_v27  ;;  %v5994_v25 = vsel %vm14660_vm9, %v5962_v33, %v9179_v56  ;;  %8030 = vmatprep.mubr.msk.bf16.mxu0 %vm14662_vm14, %v6024_v40  ;;  %9472 = vrot.lane.b32.xlu0 %v14663_v36, %s9593_s27  ;;  %vm14675_vm12 = vcmask 1043456   ;;  %vm14677_vm14 = vmmov %vm14670_vm1  ;;  %v14682_v40 = vld [vmem:[#allocation24_spill] sm:$0xff]  ;;  %v12809_v33 = vld [vmem:[#allocation2 + $0x67] sm:$0xff] }
 0x45c   : > { %v6025_v13 = vpack.c.bf16 %v5995_v15, %v5994_v25  ;;  %v12749_v59 = vsel %vm14664_vm8, %v5296_v46, %v9189_v6  ;;  %v9183_v63 = vpop.permute.xlu1 %9182  ;;  %v12767_v44 = vsel %vm14652_vm2, %v12757_v9, %v9190_v28  ;;  %v5964_v51 = vsel %vm14669_vm10, %v5760_v58, %v9189_v6  ;;  %vm14676_vm9 = vmmov %vm14675_vm12  ;;  %14686 = vst [vmem:[#allocation42_spill] sm:$0xff] %v12809_v33  ;;  %v12818_v36 = vld [vmem:[#allocation2 + $0x5f] sm:$0xff] }
 0x45d   : > { %v9184_v41 = vunpack.i.l.bf16 %v9183_v63  ;;  %v9193_v24 = vpop.permute.xlu0 %9192  ;;  %v9185_v34 = vunpack.i.h.bf16 %v9183_v63  ;;  %v6319_v21 = vsel %vm14676_vm9, %v9581_v47, 0  ;;  %vm14678_vm8 = vmmov %vm14670_vm1  ;;  %vm14683_vm10 = vnez %v14682_v40  ;;  %14688 = vst [vmem:[#allocation43_spill] sm:$0xff] %v12818_v36  ;;  %v14689_v63 = vld [vmem:[#allocation25_spill] sm:$0xff] }
 0x45e   : > { %v9195_v17 = vunpack.i.h.bf16 %v9193_v24  ;;  %v9194_v26 = vunpack.i.l.bf16 %v9193_v24  ;;  %8031 = vmatmul.mubr.msk.bf16.vlgmr.msra.gmra.mrb[32].mxu0 %vm14667_vm5, %v6025_v13  ;;  %9477 = vrot.lane.b32.xlu1 %v14668_v38, %s9594_s28  ;;  %vm14680_vm5 = vmmov %vm14673_vm4  ;;  %v5300_v27 = vsel %vm14683_vm10, %v12782_v61, 0.0  ;;  %v5764_v25 = vsel %vm14666_vm7, %v12782_v61, 0.0  ;;  %v14692_v24 = vld [vmem:[#allocation58_spill] sm:$0xff] }
 0x45f   : > { %v12771_v19 = vsel %vm14670_vm1, %v5298_v12, %v9184_v41  ;;  %8063 = vmatpush3.bf16.msra.mxu0 %v14671_v23  ;;  %9482 = vrot.lane.b32.xlu0 %v14672_v60, %s9594_s28  ;;  %v12795_v62 = vsel %vm14677_vm14, %v12785_v8, %v9185_v34  ;;  %v5966_v18 = vsel %vm14678_vm8, %v5762_v39, %v9184_v41  ;;  %vm14681_vm2 = vmmov %vm14673_vm4  ;;  %vm14684_vm1 = vcmask 195584   ;;  %v12839_v60 = vld [vmem:[#allocation2 + $0x77] sm:$0xff]  ;;  %v12841_v39 = vld [vmem:[#allocation2 + $0x6f] sm:$0xff] }
 0x460   : > { %v5996_v53 = vsel %vm14673_vm4, %v5964_v51, %v9194_v26  ;;  %v5997_v2 = vsel %vm14674_vm11, %v12767_v44, %v9195_v17  ;;  %v9198_v14 = vpop.permute.xlu1 %9197  ;;  %8338 = vmatprep.subr.msk.bf16.mxu0 %vm14675_vm12, %v9581_v47  ;;  %vm14687_vm4 = vmmov %vm14678_vm8  ;;  %vm14690_vm11 = vnez %v14689_v63  ;;  %v14696_v26 = vld [vmem:[#allocation59_spill] sm:$0xff]  ;;  %14698 = vst [vmem:[#allocation46_spill] sm:$0xff] %v12839_v60 }
 0x461   : > { %v6026_v49 = vpack.c.bf16 %v5997_v2, %v5996_v53  ;;  %v9200_v31 = vunpack.i.h.bf16 %v9198_v14  ;;  %v9199_v3 = vunpack.i.l.bf16 %v9198_v14  ;;  %v9208_v35 = vpop.permute.xlu0 %9207  ;;  %v5302_v47 = vsel %vm14690_vm11, %v12809_v33, 0.0  ;;  %vm14691_vm12 = vmmov %vm14684_vm1  ;;  %14699 = vst [vmem:[#allocation57_spill] sm:$0xff] %v12841_v39 }
 0x462   : > { %v9209_v45 = vunpack.i.l.bf16 %v9208_v35  ;;  %9487 = vrot.lane.b32.xlu1 %v14679_v48, %s9593_s27  ;;  %v9210_v56 = vunpack.i.h.bf16 %v9208_v35  ;;  %vm14693_vm9 = vmmov %vm14687_vm4  ;;  %v5766_v53 = vsel %vm14683_vm10, %v12809_v33, 0.0  ;;  %v5259_v33 = vld [vmem:[#allocation2 + $0xf] sm:$0xff] }
 0x463   : > { %v5999_v22 = vsel %vm14680_vm5, %v12795_v62, %v9200_v31  ;;  %v5998_v10 = vsel %vm14681_vm2, %v5966_v18, %v9199_v3  ;;  %8034 = vmatprep.mubr.msk.bf16.mxu0 %vm14684_vm1, %v6026_v49  ;;  %9492 = vrot.lane.b32.xlu0 %v14685_v29, %s9593_s27  ;;  %vm14694_vm14 = vmmov %vm14687_vm4  ;;  %v14702_v18 = vld [vmem:[#allocation60_spill] sm:$0xff]  ;;  %v12862_v29 = vld [vmem:[#allocation2 + $0x87] sm:$0xff] }
 0x464   : > { %v6027_v6 = vpack.c.bf16 %v5999_v22, %v5998_v10  ;;  %v12812_v55 = vsel %vm14687_vm4, %v5300_v27, %v9209_v45  ;;  %v9203_v15 = vpop.permute.xlu1 %9202  ;;  %8065 = vmatpush3.bf16.msra.mxu0 %v6319_v21  ;;  %v12828_v34 = vsel %vm14693_vm9, %v12818_v36, %v9210_v56  ;;  %v5968_v12 = vsel %vm14694_vm14, %v5764_v25, %v9209_v45  ;;  %vm14695_vm8 = vmmov %vm14687_vm4  ;;  %v14705_v22 = vld [vmem:[#allocation26_spill] sm:$0xff] }
 0x465   : > { %v9204_v46 = vunpack.i.l.bf16 %v9203_v15  ;;  %v9213_v28 = vpop.permute.xlu0 %9212  ;;  %8098 = vmatprep.subr.bf16.mxu0 %v12791_v4  ;;  %v9205_v13 = vunpack.i.h.bf16 %v9203_v15  ;;  %vm14697_vm5 = vmmov %vm14681_vm2  ;;  %vm14706_vm14 = vnez %v14705_v22  ;;  %v14708_v56 = vld [vmem:[#allocation54_spill] sm:$0xff]  ;;  %14709 = vst [vmem:[#allocation62_spill] sm:$0xff] %v12862_v29 }
 0x466   : > { %v9215_v58 = vunpack.i.h.bf16 %v9213_v28  ;;  %v9214_v41 = vunpack.i.l.bf16 %v9213_v28  ;;  %8035 = vmatmul.mubr.msk.bf16.gmra.mrb[36].mxu0 %vm14691_vm12, %v6027_v6  ;;  %9497 = vrot.lane.b32.xlu1 %v14692_v24, %s9594_s28  ;;  %vm14700_vm1 = vmmov %vm14687_vm4  ;;  %v5304_v10 = vsel %vm14706_vm14, %v12839_v60, 0.0 }
 0x467   : > { %v12832_v17 = vsel %vm14695_vm8, %v5302_v47, %v9204_v46  ;;  %9502 = vrot.lane.b32.xlu0 %v14696_v26, %s9594_s28  ;;  %v12848_v3 = vsel %vm14700_vm1, %v12841_v39, %v9205_v13  ;;  %vm14701_vm4 = vmmov %vm14700_vm1  ;;  %vm14707_vm8 = vcmask 195584   ;;  %v12870_v47 = vld [vmem:[#allocation2 + $0x7f] sm:$0xff] }
 0x468   : > { %v6000_v38 = vsel %vm14697_vm5, %v5968_v12, %v9214_v41  ;;  %v6001_v51 = vsel %vm14681_vm2, %v12828_v34, %v9215_v58  ;;  %v9218_v23 = vpop.permute.xlu1 %9217  ;;  %v5970_v35 = vsel %vm14701_vm4, %v5766_v53, %v9204_v46  ;;  %vm14703_vm12 = vmmov %vm14681_vm2  ;;  %v5768_v46 = vsel %vm14690_vm11, %v12839_v60, 0.0  ;;  %14711 = vst [vmem:[#allocation61_spill] sm:$0xff] %v12870_v47  ;;  %v14712_v41 = vld [vmem:[#allocation27_spill] sm:$0xff]  ;;  %v14786_v60 = vld [vmem:[#allocation34_spill] sm:$0xff] }
 0x469   : > { %v6028_v2 = vpack.c.bf16 %v6001_v51, %v6000_v38  ;;  %v9220_v14 = vunpack.i.h.bf16 %v9218_v23  ;;  %v9219_v49 = vunpack.i.l.bf16 %v9218_v23  ;;  %v9228_v31 = vpop.permute.xlu0 %9227  ;;  %vm14704_vm9 = vmmov %vm14681_vm2  ;;  %vm14713_vm2 = vnez %v14712_v41  ;;  %v14715_v38 = vld [vmem:[#allocation63_spill] sm:$0xff] }
 0x46a   : > { %v9229_v21 = vunpack.i.l.bf16 %v9228_v31  ;;  %9507 = vrot.lane.b32.xlu1 %v14702_v18, %s9593_s27  ;;  %v9230_v27 = vunpack.i.h.bf16 %v9228_v31  ;;  %vm14710_vm5 = vmmov %vm14700_vm1  ;;  %v5306_v24 = vsel %vm14713_vm2, %v12862_v29, 0.0  ;;  %v12893_v18 = vld [vmem:[#allocation2 + $0x8f] sm:$0xff] }
 0x46b   : > { %v6003_v45 = vsel %vm14703_vm12, %v12848_v3, %v9220_v14  ;;  %v6002_v48 = vsel %vm14704_vm9, %v5970_v35, %v9219_v49  ;;  %8038 = vmatprep.mubr.msk.bf16.mxu0 %vm14707_vm8, %v6028_v2  ;;  %9512 = vrot.lane.b32.xlu0 %v14708_v56, %s9593_s27  ;;  %vm14714_vm1 = vmmov %vm14707_vm8  ;;  %v14718_v2 = vld [vmem:[#allocation35_spill] sm:$0xff]  ;;  %vm14719_vm8 = vcmask 130048   ;;  %14722 = vst [vmem:[#allocation4_spill] sm:$0xff] %v12893_v18 }
 0x46c   : > { %v6029_v6 = vpack.c.bf16 %v6003_v45, %v6002_v48  ;;  %v12865_v15 = vsel %vm14710_vm5, %v5304_v10, %v9229_v21  ;;  %v9223_v25 = vpop.permute.xlu1 %9222  ;;  %v12880_v51 = vsel %vm14701_vm4, %v12870_v47, %v9230_v27  ;;  %vm14716_vm12 = vmmov %vm14701_vm4  ;;  %v12891_v35 = vld [vmem:[#allocation2 + $0x97] sm:$0xff] }
 0x46d   : > { %v9224_v28 = vunpack.i.l.bf16 %v9223_v25  ;;  %v9233_v13 = vpop.permute.xlu0 %9232  ;;  %v9225_v58 = vunpack.i.h.bf16 %v9223_v25  ;;  %v5972_v23 = vsel %vm14716_vm12, %v5768_v46, %v9229_v21  ;;  %vm14717_vm9 = vmmov %vm14701_vm4  ;;  %14721 = vst [vmem:[#allocation64_spill] sm:$0xff] %v12891_v35  ;;  %v5770_v21 = vsel %vm14706_vm14, %v12862_v29, 0.0  ;;  %v14725_v46 = vld [vmem:[#allocation37_spill] sm:$0xff]  ;;  %v13039_v47 = vld [vmem:[#allocation2 + $0xf7] sm:$0xff] }
 0x46e   : > { %v9235_v12 = vunpack.i.h.bf16 %v9233_v13  ;;  %v9234_v26 = vunpack.i.l.bf16 %v9233_v13  ;;  %8039 = vmatmul.mubr.msk.bf16.gmra.mrb[40].mxu0 %vm14714_vm1, %v6029_v6  ;;  %9517 = vrot.lane.b32.xlu1 %v14715_v38, %s9594_s28  ;;  %vm14720_vm5 = vmmov %vm14719_vm8  ;;  %v6608_v29 = vld [vmem:[#allocation2 + $0x119] sm:$0xff]  ;;  %14781 = vst [vmem:[#allocation14_spill] sm:$0xff] %v13039_v47 }
 0x46f   : > { %v12884_v53 = vsel %vm14717_vm9, %v5306_v24, %v9224_v28  ;;  %9522 = vrot.lane.b32.xlu0 %v14718_v2, %s9594_s28  ;;  %vm14723_vm1 = vmmov %vm14701_vm4 }
 0x470   : > { %v6004_v14 = vsel %vm14719_vm8, %v5972_v23, %v9234_v26  ;;  %v6005_v49 = vsel %vm14720_vm5, %v12880_v51, %v9235_v12  ;;  %v9238_v31 = vpop.permute.xlu1 %9237  ;;  %v12900_v56 = vsel %vm14723_vm1, %v12893_v18, %v9225_v58  ;;  %vm14724_vm4 = vmmov %vm14723_vm1  ;;  %v14728_v12 = vld [vmem:[#allocation28_spill] sm:$0xff]  ;;  %v14731_v58 = vld [vmem:[#allocation39_spill] sm:$0xff] }
 0x471   : > { %v6030_v45 = vpack.c.bf16 %v6005_v49, %v6004_v14  ;;  %v9240_v48 = vunpack.i.h.bf16 %v9238_v31  ;;  %v9239_v10 = vunpack.i.l.bf16 %v9238_v31  ;;  %v9248_v27 = vpop.permute.xlu0 %9247  ;;  %v5974_v6 = vsel %vm14724_vm4, %v5770_v21, %v9224_v28  ;;  %vm14726_vm12 = vmmov %vm14720_vm5  ;;  %v12914_v28 = vld [vmem:[#allocation2 + $0xa7] sm:$0xff]  ;;  %v6576_v49 = vld [vmem:[#allocation2 + $0x118] sm:$0xff] }
 0x472   : > { %v9249_v25 = vunpack.i.l.bf16 %v9248_v27  ;;  %9527 = vrot.lane.b32.xlu1 %v14725_v46, %s9593_s27  ;;  %vm14727_vm9 = vmmov %vm14720_vm5  ;;  %vm14729_vm8 = vnez %v14728_v12  ;;  %v9250_v38 = vunpack.i.h.bf16 %v9248_v27  ;;  %vm14730_vm5 = vcmask 195584   ;;  %14732 = vst [vmem:[#allocation3_spill] sm:$0xff] %v12914_v28  ;;  %v6577_v31 = vld [vmem:[#allocation2 + $0x120] sm:$0xff]  ;;  %v12940_v18 = vld [vmem:[#allocation2 + $0xb7] sm:$0xff] }
 0x473   : > { %v6007_v13 = vsel %vm14726_vm12, %v12900_v56, %v9240_v48  ;;  %v6006_v24 = vsel %vm14727_vm9, %v5974_v6, %v9239_v10  ;;  %v5308_v26 = vsel %vm14729_vm8, %v12891_v35, 0.0  ;;  %8042 = vmatprep.mubr.msk.bf16.mxu0 %vm14730_vm5, %v6030_v45  ;;  %9532 = vrot.lane.b32.xlu0 %v14731_v58, %s9593_s27  ;;  %v5772_v21 = vsel %vm14713_vm2, %v12891_v35, 0.0  ;;  %v6609_v27 = vld [vmem:[#allocation2 + $0x121] sm:$0xff]  ;;  %vm14736_vm12 = vmmov %vm14730_vm5  ;;  %v14737_v58 = vld [vmem:[#allocation40_spill] sm:$0xff]  ;;  %14741 = vst [vmem:[#allocation6_spill] sm:$0xff] %v12940_v18 }
 0x474   : > { %v6031_v23 = vpack.c.bf16 %v6007_v13, %v6006_v24  ;;  %v12917_v2 = vsel %vm14723_vm1, %v5308_v26, %v9249_v25  ;;  %v9243_v14 = vpop.permute.xlu1 %9242  ;;  %v12922_v45 = vld [vmem:[#allocation2 + $0x9f] sm:$0xff]  ;;  %vm14738_vm9 = vmmov %vm14723_vm1  ;;  %vm14742_vm2 = vcmask 130048  }
 0x475   : > { %v9244_v48 = vunpack.i.l.bf16 %v9243_v14  ;;  %v9253_v10 = vpop.permute.xlu0 %9252  ;;  %14733 = vst [vmem:[#allocation5_spill] sm:$0xff] %v12922_v45  ;;  %v9245_v6 = vunpack.i.h.bf16 %v9243_v14  ;;  %v14734_v46 = vld [vmem:[#allocation29_spill] sm:$0xff]  ;;  %v12932_v41 = vsel %vm14738_vm9, %v12922_v45, %v9250_v38  ;;  %vm14739_vm5 = vmmov %vm14723_vm1  ;;  %v6641_v38 = vsel %vm14638_vm13, %v6609_v27, 0.0 }
 0x476   : > { %vm14735_vm4 = vnez %v14734_v46  ;;  %v9255_v24 = vunpack.i.h.bf16 %v9253_v10  ;;  %v9254_v26 = vunpack.i.l.bf16 %v9253_v10  ;;  %8043 = vmatmul.mubr.msk.bf16.gmra.mrb[44].mxu0 %vm14736_vm12, %v6031_v23  ;;  %9537 = vrot.lane.b32.xlu1 %v14737_v58, %s9594_s28  ;;  %v5976_v22 = vsel %vm14739_vm5, %v5772_v21, %v9249_v25  ;;  %v14740_v14 = vld [vmem:[#allocation41_spill] sm:$0xff]  ;;  %vm14743_vm12 = vmmov %vm14742_vm2  ;;  %v12947_v25 = vld [vmem:[#allocation2 + $0xaf] sm:$0xff] }
 0x477   : > { %v5310_v13 = vsel %vm14735_vm4, %v12914_v28, 0.0  ;;  %9547 = vrot.lane.b32.xlu0 %v14740_v14, %s9594_s28  ;;  %v9551_v10 = vpack.i.bf16 %v6577_v31, %v6576_v49  ;;  %14744 = vst [vmem:[#allocation7_spill] sm:$0xff] %v12947_v25  ;;  %v5774_v21 = vsel %vm14729_vm8, %v12914_v28, 0.0  ;;  %vm14746_vm9 = vmmov %vm14723_vm1 }
 0x478   : > { %v12936_v35 = vsel %vm14723_vm1, %v5310_v13, %v9244_v48  ;;  %v6008_v23 = vsel %vm14742_vm2, %v5976_v22, %v9254_v26  ;;  %v6009_v58 = vsel %vm14743_vm12, %v12932_v41, %v9255_v24  ;;  %v9258_v63 = vpop.permute.xlu1 %9257  ;;  %vm14745_vm2 = vmmov %vm14723_vm1  ;;  %v5978_v31 = vsel %vm14746_vm9, %v5774_v21, %v9244_v48  ;;  %v14747_v24 = vld [vmem:[#allocation30_spill] sm:$0xff] }
 0x479   : > { %v6032_v13 = vpack.c.bf16 %v6009_v58, %v6008_v23  ;;  %v9260_v14 = vunpack.i.h.bf16 %v9258_v63  ;;  %v9259_v45 = vunpack.i.l.bf16 %v9258_v63  ;;  %v9268_v49 = vpop.permute.xlu0 %9267  ;;  %v12954_v22 = vsel %vm14745_vm2, %v12947_v25, %v9245_v6  ;;  %vm14749_vm13 = vmmov %vm14743_vm12  ;;  %v12967_v6 = vld [vmem:[#allocation2 + $0xc7] sm:$0xff] }
 0x47a   : > { %vm14748_vm5 = vnez %v14747_v24  ;;  %v9269_v27 = vunpack.i.l.bf16 %v9268_v49  ;;  %9542 = vrot.lane.b32.xlu1 %v12593_v16, %s9593_s27  ;;  %vm14750_vm1 = vmmov %vm14743_vm12  ;;  %v9270_v23 = vunpack.i.h.bf16 %v9268_v49  ;;  %vm14751_vm12 = vcmask 195584   ;;  %14752 = vst [vmem:[#allocation8_spill] sm:$0xff] %v12967_v6 }
 0x47b   : > { %v5312_v37 = vsel %vm14748_vm5, %v12940_v18, 0.0  ;;  %v6011_v26 = vsel %vm14749_vm13, %v12954_v22, %v9260_v14  ;;  %v6010_v63 = vsel %vm14750_vm1, %v5978_v31, %v9259_v45  ;;  %8046 = vmatprep.mubr.msk.bf16.mxu0 %vm14751_vm12, %v6032_v13  ;;  %9552 = vrot.lane.b32.xlu0 %v9551_v10, %s9593_s27  ;;  %v9561_v48 = vpack.i.bf16 %v6641_v38, %v6608_v29  ;;  %v12975_v45 = vld [vmem:[#allocation2 + $0xbf] sm:$0xff]  ;;  %v14754_v13 = vld [vmem:[#allocation31_spill] sm:$0xff]  ;;  %vm14756_vm13 = vmmov %vm14751_vm12 }
 0x47c   : > { %v6033_v58 = vpack.c.bf16 %v6011_v26, %v6010_v63  ;;  %v12970_v21 = vsel %vm14745_vm2, %v5312_v37, %v9269_v27  ;;  %v9263_v12 = vpop.permute.xlu1 %9262  ;;  %v5776_v16 = vsel %vm14735_vm4, %v12940_v18, 0.0  ;;  %14753 = vst [vmem:[#allocation9_spill] sm:$0xff] %v12975_v45  ;;  %vm14755_vm9 = vnez %v14754_v13  ;;  %vm14757_vm1 = vmmov %vm14745_vm2  ;;  %v14767_v18 = vld [vmem:[#allocation32_spill] sm:$0xff] }
 0x47d   : > { %v9264_v14 = vunpack.i.l.bf16 %v9263_v12  ;;  %v9273_v25 = vpop.permute.xlu0 %9272  ;;  %v9265_v49 = vunpack.i.h.bf16 %v9263_v12  ;;  %v5314_v10 = vsel %vm14755_vm9, %v12967_v6, 0.0  ;;  %v12985_v38 = vsel %vm14757_vm1, %v12975_v45, %v9270_v23  ;;  %vm14758_vm12 = vmmov %vm14757_vm1 }
 0x47e   : > { %v9275_v31 = vunpack.i.h.bf16 %v9273_v25  ;;  %v9274_v29 = vunpack.i.l.bf16 %v9273_v25  ;;  %8047 = vmatmul.mubr.msk.bf16.gmra.mrb[48].mxu0 %vm14756_vm13, %v6033_v58  ;;  %9557 = vrot.lane.b32.xlu1 %v12595_v30, %s9594_s28  ;;  %v5980_v37 = vsel %vm14758_vm12, %v5776_v16, %v9269_v27  ;;  %vm14759_vm2 = vmmov %vm14757_vm1  ;;  %vm14760_vm4 = vcmask 130048   ;;  %v12995_v58 = vld [vmem:[#allocation2 + $0xd7] sm:$0xff]  ;;  %v12997_v30 = vld [vmem:[#allocation2 + $0xcf] sm:$0xff] }
 0x47f   : > { %v12989_v26 = vsel %vm14759_vm2, %v5314_v10, %v9264_v14  ;;  %9562 = vrot.lane.b32.xlu0 %v9561_v48, %s9594_s28  ;;  %vm14761_vm8 = vmmov %vm14760_vm4  ;;  %14762 = vst [vmem:[#allocation10_spill] sm:$0xff] %v12995_v58  ;;  %v5778_v23 = vsel %vm14748_vm5, %v12967_v6, 0.0  ;;  %vm14768_vm12 = vnez %v14767_v18  ;;  %vm14769_vm2 = vcmask 195584  }
 0x480   : > { %v6012_v12 = vsel %vm14760_vm4, %v5980_v37, %v9274_v29  ;;  %v6013_v25 = vsel %vm14761_vm8, %v12985_v38, %v9275_v31  ;;  %v9278_v63 = vpop.permute.xlu1 %9277  ;;  %14763 = vst [vmem:[#allocation11_spill] sm:$0xff] %v12997_v30  ;;  %vm14764_vm13 = vmmov %vm14757_vm1  ;;  %v5316_v24 = vsel %vm14768_vm12, %v12995_v58, 0.0 }
 0x481   : > { %v6034_v27 = vpack.c.bf16 %v6013_v25, %v6012_v12  ;;  %v9280_v16 = vunpack.i.h.bf16 %v9278_v63  ;;  %v9279_v10 = vunpack.i.l.bf16 %v9278_v63  ;;  %v9288_v46 = vpop.permute.xlu0 %9287  ;;  %v13004_v48 = vsel %vm14764_vm13, %v12997_v30, %v9265_v49  ;;  %vm14765_vm4 = vmmov %vm14757_vm1  ;;  %v13014_v25 = vld [vmem:[#allocation2 + $0xe7] sm:$0xff] }
 0x482   : > { %v5982_v29 = vsel %vm14765_vm4, %v5778_v23, %v9264_v14  ;;  %v9289_v31 = vunpack.i.l.bf16 %v9288_v46  ;;  %vm14766_vm1 = vmmov %vm14761_vm8  ;;  %v9290_v12 = vunpack.i.h.bf16 %v9288_v46  ;;  %14770 = vst [vmem:[#allocation12_spill] sm:$0xff] %v13014_v25  ;;  %v5780_v23 = vsel %vm14755_vm9, %v12995_v58, 0.0  ;;  %v14773_v46 = vld [vmem:[#allocation33_spill] sm:$0xff] }
 0x483   : > { %v6015_v37 = vsel %vm14761_vm8, %v13004_v48, %v9280_v16  ;;  %v6014_v45 = vsel %vm14766_vm1, %v5982_v29, %v9279_v10  ;;  %8050 = vmatprep.mubr.msk.bf16.mxu0 %vm14769_vm2, %v6034_v27  ;;  %vm14771_vm13 = vmmov %vm14765_vm4  ;;  %v13022_v29 = vld [vmem:[#allocation2 + $0xdf] sm:$0xff]  ;;  %vm14774_vm4 = vnez %v14773_v46  ;;  %vm14779_vm9 = vcmask 130048  }
 0x484   : > { %v6035_v63 = vpack.c.bf16 %v6015_v37, %v6014_v45  ;;  %v13017_v49 = vsel %vm14771_vm13, %v5316_v24, %v9289_v31  ;;  %v9283_v14 = vpop.permute.xlu1 %9282  ;;  %14772 = vst [vmem:[#allocation13_spill] sm:$0xff] %v13022_v29  ;;  %v5318_v27 = vsel %vm14774_vm4, %v13014_v25, 0.0  ;;  %vm14775_vm8 = vmmov %vm14769_vm2 }
 0x485   : > { %v9284_v16 = vunpack.i.l.bf16 %v9283_v14  ;;  %v9293_v10 = vpop.permute.xlu0 %9292  ;;  %v9285_v30 = vunpack.i.h.bf16 %v9283_v14  ;;  %vm14776_vm1 = vmmov %vm14771_vm13 }
 0x486   : > { %v9295_v6 = vunpack.i.h.bf16 %v9293_v10  ;;  %v9294_v28 = vunpack.i.l.bf16 %v9293_v10  ;;  %8051 = vmatmul.mubr.msk.bf16.gmra.mrb[52].mxu0 %vm14775_vm8, %v6035_v63  ;;  %v13030_v24 = vsel %vm14776_vm1, %v13022_v29, %v9290_v12  ;;  %vm14777_vm2 = vmmov %vm14776_vm1  ;;  %v13041_v10 = vld [vmem:[#allocation2 + $0xef] sm:$0xff]  ;;  %v5782_v12 = vsel %vm14768_vm12, %v13014_v25, 0.0 }
 0x487   : > { %v5984_v45 = vsel %vm14777_vm2, %v5780_v23, %v9289_v31  ;;  %vm14778_vm13 = vmmov %vm14776_vm1  ;;  %14782 = vst [vmem:[#allocation15_spill] sm:$0xff] %v13041_v10  ;;  %vm14787_vm2 = vnez %v14786_v60 }
 0x488   : > { %v13034_v37 = vsel %vm14778_vm13, %v5318_v27, %v9284_v16  ;;  %v6016_v13 = vsel %vm14779_vm9, %v5984_v45, %v9294_v28  ;;  %vm14780_vm5 = vmmov %vm14779_vm9  ;;  %v9298_v58 = vpop.permute.xlu1 %9297  ;;  %v5320_v18 = vsel %vm14787_vm2, %v13039_v47, 0.0  ;;  %vm14788_vm13 = vcmask 195584  }
 0x489   : > { %v6017_v14 = vsel %vm14780_vm5, %v13030_v24, %v9295_v6  ;;  %v9300_v29 = vunpack.i.h.bf16 %v9298_v58  ;;  %v9299_v31 = vunpack.i.l.bf16 %v9298_v58  ;;  %v9308_v23 = vpop.permute.xlu0 %9307  ;;  %vm14783_vm8 = vmmov %vm14776_vm1 }
 0x48a   : > { %v6036_v63 = vpack.c.bf16 %v6017_v14, %v6016_v13  ;;  %v13048_v27 = vsel %vm14783_vm8, %v13041_v10, %v9285_v30  ;;  %vm14784_vm9 = vmmov %vm14776_vm1  ;;  %v9309_v6 = vunpack.i.l.bf16 %v9308_v23  ;;  %v9310_v13 = vunpack.i.h.bf16 %v9308_v23 }
 0x48b   : > { %v5986_v28 = vsel %vm14784_vm9, %v5782_v12, %v9284_v16  ;;  %v6019_v45 = vsel %vm14780_vm5, %v13048_v27, %v9300_v29  ;;  %vm14785_vm1 = vmmov %vm14780_vm5  ;;  %v5784_v16 = vsel %vm14774_vm4, %v13039_v47, 0.0  ;;  %v13064_v12 = vld [vmem:[#allocation2 + $0x107] sm:$0xff] }
 0x48c   : > { %v6018_v40 = vsel %vm14785_vm1, %v5986_v28, %v9299_v31  ;;  %8054 = vmatprep.mubr.msk.bf16.mxu0 %vm14788_vm13, %v6036_v63  ;;  %vm14789_vm12 = vmmov %vm14783_vm8  ;;  %v9303_v30 = vpop.permute.xlu1 %9302  ;;  %14790 = vst [vmem:[#allocation16_spill] sm:$0xff] %v13064_v12  ;;  %v13066_v31 = vld [vmem:[#allocation2 + $0xff] sm:$0xff]  ;;  %v5988_v63 = vsel %vm14784_vm9, %v5784_v16, %v9309_v6 }
 0x48d   : > { %v6037_v58 = vpack.c.bf16 %v6019_v45, %v6018_v40  ;;  %v13059_v14 = vsel %vm14789_vm12, %v5320_v18, %v9309_v6  ;;  %v9313_v29 = vpop.permute.xlu0 %9312  ;;  %14791 = vst [vmem:[#allocation17_spill] sm:$0xff] %v13066_v31  ;;  %v9305_v28 = vunpack.i.h.bf16 %v9303_v30  ;;  %v9304_v10 = vunpack.i.l.bf16 %v9303_v30  ;;  %vm14792_vm8 = vmmov %vm14788_vm13  ;;  %v5258_v40 = vld [vmem:[#allocation2 + $0x7] sm:$0xff] }
 0x48e   : > { %v9315_v25 = vunpack.i.h.bf16 %v9313_v29  ;;  %v9314_v23 = vunpack.i.l.bf16 %v9313_v29  ;;  %vm14793_vm12 = vmmov %vm14784_vm9  ;;  %v5786_v45 = vsel %vm14787_vm2, %v13064_v12, 0.0  ;;  %v13080_v29 = vld [vmem:[#allocation2 + $0x10f] sm:$0xff] }
 0x48f   : > { %8055 = vmatmul.mubr.msk.bf16.gmra.mrb[56].mxu0 %vm14792_vm8, %v6037_v58  ;;  %v13071_v18 = vsel %vm14793_vm12, %v13066_v31, %v9310_v13  ;;  %vm14794_vm5 = vmmov %vm14785_vm1  ;;  %v5290_v13 = vsel %vm14649_vm3, %v5258_v40, 0.0 }
 0x490   : > { %v6020_v46 = vsel %vm14794_vm5, %v5988_v63, %v9314_v23  ;;  %v6021_v30 = vsel %vm14785_vm1, %v13071_v18, %v9315_v25  ;;  %v9318_v47 = vpop.permute.xlu1 %9317  ;;  %vm14795_vm13 = vmmov %vm14784_vm9  ;;  %vm14799_vm5 = vcmask 195584  }
 0x491   : > { %v6038_v58 = vpack.c.bf16 %v6021_v30, %v6020_v46  ;;  %v9320_v39 = vunpack.i.h.bf16 %v9318_v47  ;;  %v9319_v20 = vunpack.i.l.bf16 %v9318_v47  ;;  %v9323_v6 = vpop.permute.xlu0 %9322  ;;  %v5990_v16 = vsel %vm14795_vm13, %v5786_v45, %v9304_v10  ;;  %vm14796_vm8 = vmmov %vm14784_vm9 }
 0x492   : > { %v5991_v60 = vsel %vm14796_vm8, %v13080_v29, %v9305_v28  ;;  %v9325_v23 = vunpack.i.h.bf16 %v9323_v6  ;;  %v9324_v63 = vunpack.i.l.bf16 %v9323_v6  ;;  %vm14797_vm12 = vmmov %vm14785_vm1 }
 0x493   : > { %v6022_v25 = vsel %vm14797_vm12, %v5990_v16, %v9319_v20  ;;  %vm14798_vm9 = vmmov %vm14785_vm1  ;;  %8058 = vmatprep.mubr.msk.bf16.mxu0 %vm14799_vm5, %v6038_v58 }
 0x494   : > { %v6023_v12 = vsel %vm14798_vm9, %v5991_v60, %v9320_v39  ;;  %vm14800_vm1 = vmmov %vm14796_vm8  ;;  %v9328_v40 = vpop.permute.xlu1 %9327 }
 0x495   : > { %v6039_v46 = vpack.c.bf16 %v6023_v12, %v6022_v25  ;;  %v5675_v47 = vsel %vm14800_vm1, %v5259_v33, %v9325_v23  ;;  %vm14801_vm2 = vmmov %vm14800_vm1  ;;  %v9330_v31 = vunpack.i.h.bf16 %v9328_v40  ;;  %v9329_v36 = vunpack.i.l.bf16 %v9328_v40  ;;  %v9333_v10 = vpop.permute.xlu0 %9332 }
 0x496   : > { %v5674_v30 = vsel %vm14801_vm2, %v5290_v13, %v9324_v63  ;;  %v9335_v45 = vunpack.i.h.bf16 %v9333_v10  ;;  %v9334_v7 = vunpack.i.l.bf16 %v9333_v10  ;;  %vm14802_vm13 = vmmov %vm14799_vm5 }
 0x497   : > { %8059 = vmatmul.mubr.msk.bf16.gmra.mrb[60].mxu0 %vm14802_vm13, %v6039_v46  ;;  %vm14803_vm8 = vmmov %vm14798_vm9  ;;  %v9583_v46 = vld [vmem:[%s13524_s2 + $0x68] ss:$0 sps:$4 sm:$0xff]  }
 0x498   : > { %v5706_v28 = vsel %vm14803_vm8, %v5674_v30, %v9329_v36  ;;  %vm14804_vm12 = vmmov %vm14803_vm8  ;;  %v9338_v12 = vpop.permute.xlu1 %9337 }
 0x499   : > { %v5707_v20 = vsel %vm14804_vm12, %v5675_v47, %v9330_v31  ;;  %vm14805_vm9 = vmmov %vm14803_vm8  ;;  %v9340_v13 = vunpack.i.h.bf16 %v9338_v12  ;;  %v9339_v6 = vunpack.i.l.bf16 %v9338_v12  ;;  %v9343_v16 = vpop.permute.xlu0 %9342 }
 0x49a   : > { %v5738_v60 = vpack.c.bf16 %v5707_v20, %v5706_v28  ;;  %v5709_v39 = vsel %vm14805_vm9, %v12715_v43, %v9335_v45  ;;  %vm14806_vm5 = vmmov %vm14803_vm8  ;;  %v9345_v23 = vunpack.i.h.bf16 %v9343_v16  ;;  %v9344_v63 = vunpack.i.l.bf16 %v9343_v16 }
 0x49b   : > { %v5708_v33 = vsel %vm14806_vm5, %v12708_v52, %v9334_v7  ;;  %vm14807_vm2 = vmmov %vm14802_vm13 }
 0x49c   : > { %v5739_v58 = vpack.c.bf16 %v5709_v39, %v5708_v33  ;;  %8066 = vmatprep.mubr.msk.bf16.mxu0 %vm14807_vm2, %v5738_v60  ;;  %vm14808_vm1 = vmmov %vm14806_vm5  ;;  %v9348_v7 = vpop.permute.xlu1 %9347 }
 0x49d   : > { %v5711_v36 = vsel %vm14808_vm1, %v12732_v0, %v9340_v13  ;;  %vm14809_vm13 = vmmov %vm14808_vm1  ;;  %v9350_v30 = vunpack.i.h.bf16 %v9348_v7  ;;  %v9349_v40 = vunpack.i.l.bf16 %v9348_v7  ;;  %v9353_v10 = vpop.permute.xlu0 %9352 }
 0x49e   : > { %v5710_v31 = vsel %vm14809_vm13, %v12701_v11, %v9339_v6  ;;  %vm14810_vm8 = vmmov %vm14808_vm1  ;;  %v9355_v0 = vunpack.i.h.bf16 %v9353_v10  ;;  %v9354_v45 = vunpack.i.l.bf16 %v9353_v10 }
 0x49f   : > { %v5740_v25 = vpack.c.bf16 %v5711_v36, %v5710_v31  ;;  %v5713_v43 = vsel %vm14810_vm8, %v12767_v44, %v9345_v23  ;;  %vm14811_vm12 = vmmov %vm14808_vm1 }
 0x4a0   : > { %v5712_v52 = vsel %vm14811_vm12, %v12749_v59, %v9344_v63  ;;  %vm14812_vm9 = vmmov %vm14807_vm2  ;;  %v9358_v60 = vpop.permute.xlu1 %9357  ;;  %vm14818_vm12 = vcmask 1043456  }
 0x4a1   : > { %v5741_v47 = vpack.c.bf16 %v5713_v43, %v5712_v52  ;;  %8067 = vmatmul.mubr.msk.bf16.vlgmr.msra.gmra.mrb[32].mxu0 %vm14812_vm9, %v5739_v58  ;;  %vm14813_vm5 = vmmov %vm14808_vm1  ;;  %v9360_v33 = vunpack.i.h.bf16 %v9358_v60  ;;  %v9359_v12 = vunpack.i.l.bf16 %v9358_v60 }
 0x4a2   : > { %v5715_v11 = vsel %vm14813_vm5, %v12795_v62, %v9350_v30  ;;  %vm14814_vm2 = vmmov %vm14808_vm1  ;;  %8099 = vmatpush3.bf16.msra.mxu0 %v12791_v4 }
 0x4a3   : > { %v5714_v44 = vsel %vm14814_vm2, %v12771_v19, %v9349_v40  ;;  %vm14815_vm1 = vmmov %vm14812_vm9  ;;  %8339 = vmatprep.subr.msk.bf16.mxu0 %vm14818_vm12, %v9583_v46  ;;  %v9363_v19 = vpop.permute.xlu0 %9362 }
 0x4a4   : > { %8070 = vmatprep.mubr.msk.bf16.mxu0 %vm14815_vm1, %v5740_v25  ;;  %v5742_v59 = vpack.c.bf16 %v5715_v11, %v5714_v44  ;;  %vm14816_vm13 = vmmov %vm14814_vm2  ;;  %v9365_v58 = vunpack.i.h.bf16 %v9363_v19  ;;  %v9364_v4 = vunpack.i.l.bf16 %v9363_v19  ;;  %v9368_v23 = vpop.permute.xlu1 %9367 }
 0x4a5   : > { %v5717_v28 = vsel %vm14816_vm13, %v12828_v34, %v9355_v0  ;;  %vm14817_vm8 = vmmov %vm14814_vm2  ;;  %v5718_v34 = vsel %vm14814_vm2, %v12832_v17, %v9359_v12  ;;  %v9370_v36 = vunpack.i.h.bf16 %v9368_v23  ;;  %v9369_v31 = vunpack.i.l.bf16 %v9368_v23 }
 0x4a6   : > { %v5716_v20 = vsel %vm14817_vm8, %v12812_v55, %v9354_v45  ;;  %vm14819_vm9 = vmmov %vm14818_vm12  ;;  %vm14823_vm8 = vcmask 195584  }
 0x4a7   : > { %v7036_v39 = vsel %vm14819_vm9, %v9583_v46, 0  ;;  %v5743_v62 = vpack.c.bf16 %v5717_v28, %v5716_v20  ;;  %vm14820_vm5 = vmmov %vm14814_vm2  ;;  %v9373_v25 = vpop.permute.xlu0 %9372 }
 0x4a8   : > { %v5719_v13 = vsel %vm14820_vm5, %v12848_v3, %v9360_v33  ;;  %8101 = vmatpush3.bf16.msra.mxu0 %v7036_v39  ;;  %vm14821_vm1 = vmmov %vm14814_vm2  ;;  %v9375_v43 = vunpack.i.h.bf16 %v9373_v25  ;;  %v9374_v52 = vunpack.i.l.bf16 %v9373_v25  ;;  %v9378_v46 = vpop.permute.xlu1 %9377 }
 0x4a9   : > { %v5744_v6 = vpack.c.bf16 %v5719_v13, %v5718_v34  ;;  %v5721_v55 = vsel %vm14821_vm1, %v12880_v51, %v9365_v58  ;;  %vm14822_vm13 = vmmov %vm14821_vm1  ;;  %8071 = vmatmul.mubr.msk.bf16.gmra.mrb[36].mxu0 %vm14823_vm8, %v5741_v47  ;;  %v9380_v40 = vunpack.i.h.bf16 %v9378_v46  ;;  %v9379_v10 = vunpack.i.l.bf16 %v9378_v46 }
 0x4aa   : > { %v5720_v16 = vsel %vm14822_vm13, %v12865_v15, %v9364_v4  ;;  %vm14824_vm12 = vmmov %vm14821_vm1  ;;  %v5724_v7 = vsel %vm14821_vm1, %v12917_v2, %v9374_v52 }
 0x4ab   : > { %v5745_v63 = vpack.c.bf16 %v5721_v55, %v5720_v16  ;;  %v5723_v17 = vsel %vm14824_vm12, %v12900_v56, %v9370_v36  ;;  %vm14825_vm9 = vmmov %vm14821_vm1  ;;  %v9383_v47 = vpop.permute.xlu0 %9382 }
 0x4ac   : > { %v5722_v3 = vsel %vm14825_vm9, %v12884_v53, %v9369_v31  ;;  %vm14826_vm5 = vmmov %vm14823_vm8  ;;  %v9385_v0 = vunpack.i.h.bf16 %v9383_v47  ;;  %v9384_v45 = vunpack.i.l.bf16 %v9383_v47  ;;  %v9388_v44 = vpop.permute.xlu1 %9387 }
 0x4ad   : > { %8074 = vmatprep.mubr.msk.bf16.mxu0 %vm14826_vm5, %v5742_v59  ;;  %v5746_v51 = vpack.c.bf16 %v5723_v17, %v5722_v3  ;;  %vm14827_vm2 = vmmov %vm14821_vm1  ;;  %v9390_v28 = vunpack.i.h.bf16 %v9388_v44  ;;  %v9389_v20 = vunpack.i.l.bf16 %v9388_v44 }
 0x4ae   : > { %v5725_v15 = vsel %vm14827_vm2, %v12932_v41, %v9375_v43  ;;  %vm14828_vm13 = vmmov %vm14821_vm1 }
 0x4af   : > { %v5747_v30 = vpack.c.bf16 %v5725_v15, %v5724_v7  ;;  %v5727_v56 = vsel %vm14828_vm13, %v12954_v22, %v9380_v40  ;;  %vm14829_vm8 = vmmov %vm14821_vm1  ;;  %v9393_v60 = vpop.permute.xlu0 %9392 }
 0x4b0   : > { %v5726_v53 = vsel %vm14829_vm8, %v12936_v35, %v9379_v10  ;;  %vm14830_vm12 = vmmov %vm14821_vm1  ;;  %v9395_v39 = vunpack.i.h.bf16 %v9393_v60  ;;  %v9394_v33 = vunpack.i.l.bf16 %v9393_v60  ;;  %v5730_v35 = vsel %vm14821_vm1, %v12989_v26, %v9389_v20  ;;  %v9398_v19 = vpop.permute.xlu1 %9397 }
 0x4b1   : > { %v5748_v11 = vpack.c.bf16 %v5727_v56, %v5726_v53  ;;  %v5729_v41 = vsel %vm14830_vm12, %v12985_v38, %v9385_v0  ;;  %vm14831_vm9 = vmmov %vm14821_vm1  ;;  %8075 = vmatmul.mubr.msk.bf16.gmra.mrb[40].mxu0 %vm14826_vm5, %v5743_v62  ;;  %v9400_v4 = vunpack.i.h.bf16 %v9398_v19  ;;  %v9399_v13 = vunpack.i.l.bf16 %v9398_v19 }
 0x4b2   : > { %v5728_v2 = vsel %vm14831_vm9, %v12970_v21, %v9384_v45  ;;  %vm14832_vm2 = vmmov %vm14821_vm1 }
 0x4b3   : > { %v5749_v59 = vpack.c.bf16 %v5729_v41, %v5728_v2  ;;  %v5731_v22 = vsel %vm14832_vm2, %v13004_v48, %v9390_v28  ;;  %vm14833_vm13 = vmmov %vm14826_vm5  ;;  %v9408_v62 = vpop.permute.xlu0 %9407 }
 0x4b4   : > { %8078 = vmatprep.mubr.msk.bf16.mxu0 %vm14833_vm13, %v5744_v6  ;;  %v5750_v38 = vpack.c.bf16 %v5731_v22, %v5730_v35  ;;  %vm14834_vm8 = vmmov %vm14821_vm1  ;;  %v9410_v34 = vunpack.i.h.bf16 %v9408_v62  ;;  %v9409_v55 = vunpack.i.l.bf16 %v9408_v62  ;;  %v9403_v16 = vpop.permute.xlu1 %9402 }
 0x4b5   : > { %v5733_v21 = vsel %vm14834_vm8, %v13030_v24, %v9395_v39  ;;  %vm14835_vm12 = vmmov %vm14821_vm1  ;;  %v9405_v17 = vunpack.i.h.bf16 %v9403_v16  ;;  %v9404_v3 = vunpack.i.l.bf16 %v9403_v16  ;;  %v6518_v39 = vsel %vm14471_vm15, %v12746_v5, 0.0  ;;  %v14864_v16 = vld [vmem:[#allocation42_spill] sm:$0xff] }
 0x4b6   : > { %v5732_v12 = vsel %vm14835_vm12, %v13017_v49, %v9394_v33  ;;  %vm14836_vm9 = vmmov %vm14821_vm1  ;;  %v5737_v49 = vsel %vm14821_vm1, %v13071_v18, %v9410_v34 }
 0x4b7   : > { %v5751_v58 = vpack.c.bf16 %v5733_v21, %v5732_v12  ;;  %v5735_v48 = vsel %vm14836_vm9, %v13048_v27, %v9400_v4  ;;  %vm14837_vm5 = vmmov %vm14821_vm1  ;;  %v9413_v36 = vpop.permute.xlu0 %9412 }
 0x4b8   : > { %v5734_v26 = vsel %vm14837_vm5, %v13034_v37, %v9399_v13  ;;  %vm14838_vm2 = vmmov %vm14821_vm1  ;;  %v9418_v31 = vpop.permute.xlu1 %9417  ;;  %v9415_v56 = vunpack.i.h.bf16 %v9413_v36  ;;  %v9414_v53 = vunpack.i.l.bf16 %v9413_v36  ;;  %v6522_v36 = vsel %vm14666_vm7, %v14864_v16, 0.0 }
 0x4b9   : > { %v5752_v6 = vpack.c.bf16 %v5735_v48, %v5734_v26  ;;  %v5736_v24 = vsel %vm14838_vm2, %v13059_v14, %v9409_v55  ;;  %8079 = vmatmul.mubr.msk.bf16.gmra.mrb[44].mxu0 %vm14833_vm13, %v5745_v63  ;;  %vm14839_vm8 = vmmov %vm14833_vm13  ;;  %v9420_v15 = vunpack.i.h.bf16 %v9418_v31  ;;  %v9419_v7 = vunpack.i.l.bf16 %v9418_v31 }
 0x4ba   : > { %v5753_v23 = vpack.c.bf16 %v5737_v49, %v5736_v24  ;;  %8082 = vmatprep.mubr.msk.bf16.mxu0 %vm14839_vm8, %v5746_v51  ;;  %vm14840_vm12 = vmmov %vm14839_vm8  ;;  %v6520_v48 = vsel %vm14229_vm0, %v12782_v61, 0.0 }
 0x4bb   : > { %v9423_v25 = vpop.permute.xlu0 %9422  ;;  %vm14841_vm9 = vmmov %vm14839_vm8 }
 0x4bc   : > { %v9428_v27 = vpop.permute.xlu1 %9427  ;;  %vm14842_vm5 = vmmov %vm14839_vm8  ;;  %vm14846_vm8 = vcmask 64512   ;;  %v9424_v44 = vunpack.i.l.bf16 %v9423_v25 }
 0x4bd   : > { %vm14843_vm2 = vmmov %vm14842_vm5  ;;  %v6899_v40 = vsel %vm14846_vm8, %v12725_v54, %v9405_v17  ;;  %v9430_v42 = vunpack.i.h.bf16 %v9428_v27  ;;  %v6516_v54 = vsel %vm14645_vm6, %v12723_v50, 0.0 }
 0x4be   : > { %vm14844_vm1 = vmmov %vm14843_vm2 }
 0x4bf   : > { %v13170_v43 = vpop.permute.xlu0 %9432  ;;  %vm14845_vm13 = vmmov %vm14844_vm1 }
 0x4c0   : > { %v9438_v37 = vpop.permute.xlu1 %9437  ;;  %v9435_v1 = vunpack.i.h.bf16 %v13170_v43  ;;  %v9434_v5 = vunpack.i.l.bf16 %v13170_v43  ;;  %v14868_v43 = vld [vmem:[#allocation57_spill] sm:$0xff] }
 0x4c1   : > { %8083 = vmatmul.mubr.msk.bf16.gmra.mrb[48].mxu0 %vm14840_vm12, %v5747_v30  ;;  %v6514_v30 = vsel %vm14649_vm3, %v12693_v57, 0.0  ;;  %vm14847_vm12 = vmmov %vm14846_vm8  ;;  %v9429_v57 = vunpack.i.l.bf16 %v9428_v27  ;;  %v9439_v28 = vunpack.i.l.bf16 %v9438_v37 }
 0x4c2   : > { %8086 = vmatprep.mubr.msk.bf16.mxu0 %vm14841_vm9, %v5748_v11  ;;  %v6898_v10 = vsel %vm14847_vm12, %v6514_v30, %v9404_v3  ;;  %vm14848_vm9 = vcmask 130048   ;;  %v9425_v11 = vunpack.i.h.bf16 %v9423_v25  ;;  %vm14850_vm3 = vmmov %vm14844_vm1 }
 0x4c3   : > { %v13174_v14 = vpop.permute.xlu0 %9442  ;;  %v6930_v47 = vsel %vm14848_vm9, %v6898_v10, %v9419_v7 }
 0x4c4   : > { %v13176_v18 = vpop.permute.xlu1 %9447  ;;  %v9445_v19 = vunpack.i.h.bf16 %v13174_v14 }
 0x4c5   : > { %v9450_v4 = vunpack.i.h.bf16 %v13176_v18  ;;  %v9449_v13 = vunpack.i.l.bf16 %v13176_v18 }
 0x4c7   : > { %v13180_v63 = vpop.permute.xlu0 %9452 }
 0x4c8   : > { %v13182_v52 = vpop.permute.xlu1 %9457  ;;  %v9455_v17 = vunpack.i.h.bf16 %v13180_v63  ;;  %v9454_v3 = vunpack.i.l.bf16 %v13180_v63  ;;  %v14913_v63 = vld [vmem:[#allocation8_spill] sm:$0xff] }
 0x4c9   : > { %8087 = vmatmul.mubr.msk.bf16.gmra.mrb[52].mxu0 %vm14842_vm5, %v5749_v59  ;;  %vm14849_vm5 = vmmov %vm14848_vm9  ;;  %v9440_v59 = vunpack.i.h.bf16 %v9438_v37  ;;  %v9460_v62 = vunpack.i.h.bf16 %v13182_v52  ;;  %v9459_v34 = vunpack.i.l.bf16 %v13182_v52 }
 0x4ca   : > { %8090 = vmatprep.mubr.msk.bf16.mxu0 %vm14843_vm2, %v5750_v38  ;;  %v6931_v0 = vsel %vm14849_vm5, %v6899_v40, %v9420_v15  ;;  %vm14851_vm2 = vmmov %vm14844_vm1 }
 0x4cb   : > { %v13186_v46 = vpop.permute.xlu0 %9462  ;;  %v6962_v2 = vpack.c.bf16 %v6931_v0, %v6930_v47  ;;  %vm14855_vm12 = vmmov %vm14849_vm5 }
 0x4cc   : > { %v13184_v51 = vpop.permute.xlu1 %9467  ;;  %vm14860_vm15 = vmmov %vm14851_vm2  ;;  %v9465_v15 = vunpack.i.h.bf16 %v13186_v46  ;;  %v9464_v30 = vunpack.i.l.bf16 %v13186_v46  ;;  %v14877_v46 = vld [vmem:[#allocation61_spill] sm:$0xff] }
 0x4cd   : > { %v9470_v40 = vunpack.i.h.bf16 %v13184_v51  ;;  %v9469_v10 = vunpack.i.l.bf16 %v13184_v51  ;;  %vm14873_vm7 = vmmov %vm14851_vm2 }
 0x4cf   : > { %v13200_v41 = vpop.permute.xlu0 %9472 }
 0x4d0   : > { %v13198_v45 = vpop.permute.xlu1 %9477 }
 0x4d1   : > { %8091 = vmatmul.mubr.msk.bf16.gmra.mrb[56].mxu0 %vm14844_vm1, %v5751_v58  ;;  %vm14852_vm1 = vmmov %vm14846_vm8  ;;  %v9480_v0 = vunpack.i.h.bf16 %v13198_v45 }
 0x4d2   : > { %8094 = vmatprep.mubr.msk.bf16.mxu0 %vm14845_vm13, %v5752_v6  ;;  %v6901_v20 = vsel %vm14852_vm1, %v12757_v9, %v9415_v56  ;;  %vm14853_vm13 = vmmov %vm14852_vm1  ;;  %v14862_v6 = vld [vmem:[#allocation43_spill] sm:$0xff]  ;;  %v9479_v56 = vunpack.i.l.bf16 %v13198_v45 }
 0x4d3   : > { %v6900_v60 = vsel %vm14853_vm13, %v6516_v54, %v9414_v53  ;;  %vm14854_vm8 = vmmov %vm14849_vm5  ;;  %v6933_v22 = vsel %vm14855_vm12, %v6901_v20, %v9425_v11  ;;  %v13222_v21 = vpop.permute.xlu0 %9482  ;;  %v6905_v24 = vsel %vm14852_vm1, %v14862_v6, %v9435_v1  ;;  %v14874_v11 = vld [vmem:[#allocation46_spill] sm:$0xff]  ;;  %v14884_v54 = vld [vmem:[#allocation4_spill] sm:$0xff] }
 0x4d4   : > { %v6932_v33 = vsel %vm14854_vm8, %v6900_v60, %v9424_v44  ;;  %vm14856_vm9 = vmmov %vm14852_vm1  ;;  %v13218_v50 = vpop.permute.xlu1 %9487  ;;  %v14897_v6 = vld [vmem:[#allocation27_spill] sm:$0xff] }
 0x4d5   : > { %v6903_v35 = vsel %vm14856_vm9, %v12785_v8, %v9430_v42  ;;  %vm14857_vm5 = vmmov %vm14852_vm1  ;;  %v6963_v12 = vpack.c.bf16 %v6933_v22, %v6932_v33  ;;  %v9444_v8 = vunpack.i.l.bf16 %v13174_v14  ;;  %v14880_v42 = vld [vmem:[#allocation62_spill] sm:$0xff] }
 0x4d6   : > { %v6902_v32 = vsel %vm14857_vm5, %v6518_v39, %v9429_v57  ;;  %vm14858_vm6 = vmmov %vm14854_vm8 }
 0x4d7   : > { %v6934_v38 = vsel %vm14858_vm6, %v6902_v32, %v9439_v28  ;;  %vm14863_vm13 = vmmov %vm14852_vm1  ;;  %v13243_v31 = vpop.permute.xlu0 %9492  ;;  %v9475_v32 = vunpack.i.h.bf16 %v13200_v41 }
 0x4d8   : > { %v9498_v26 = vpop.permute.xlu1 %9497  ;;  %v6904_v49 = vsel %vm14863_vm13, %v6520_v48, %v9434_v5  ;;  %vm14869_vm0 = vmmov %vm14852_vm1  ;;  %v9484_v5 = vunpack.i.l.bf16 %v13222_v21 }
 0x4d9   : > { %8095 = vmatmul.mubr.msk.bf16.gmra.mrb[60].mxu0 %vm14850_vm3, %v5753_v23  ;;  %vm14859_vm3 = vmmov %vm14858_vm6  ;;  %v6907_v61 = vsel %vm14869_vm0, %v14868_v43, %v9450_v4  ;;  %v9499_v4 = vunpack.i.l.bf16 %v9498_v26 }
 0x4da   : > { %8102 = vmatprep.mubr.msk.bf16.mxu0 %vm14851_vm2, %v6962_v2  ;;  %v6935_v9 = vsel %vm14859_vm3, %v6903_v35, %v9440_v59  ;;  %vm14866_vm8 = vmmov %vm14859_vm3  ;;  %v6524_v2 = vsel %vm14683_vm10, %v14874_v11, 0.0  ;;  %v6526_v59 = vsel %vm14690_vm11, %v14880_v42, 0.0  ;;  %v14910_v11 = vld [vmem:[#allocation9_spill] sm:$0xff]  ;;  %v14918_v42 = vld [vmem:[#allocation11_spill] sm:$0xff] }
 0x4db   : > { %v6964_v58 = vpack.c.bf16 %v6935_v9, %v6934_v38  ;;  %v6936_v25 = vsel %vm14866_vm8, %v6904_v49, %v9444_v8  ;;  %vm14867_vm12 = vmmov %vm14859_vm3  ;;  %v9503_v53 = vpop.permute.xlu0 %9502  ;;  %v9474_v38 = vunpack.i.l.bf16 %v13200_v41  ;;  %v9485_v9 = vunpack.i.h.bf16 %v13222_v21  ;;  %v14893_v41 = vld [vmem:[#allocation5_spill] sm:$0xff]  ;;  %v14896_v21 = vld [vmem:[#allocation3_spill] sm:$0xff] }
 0x4dc   : > { %v6937_v27 = vsel %vm14867_vm12, %v6905_v24, %v9445_v19  ;;  %vm14870_vm9 = vmmov %vm14869_vm0  ;;  %v13258_v47 = vpop.permute.xlu1 %9507  ;;  %v9490_v19 = vunpack.i.h.bf16 %v13218_v50  ;;  %v9500_v8 = vunpack.i.h.bf16 %v9498_v26  ;;  %v14901_v49 = vld [vmem:[#allocation7_spill] sm:$0xff] }
 0x4dd   : > { %v6906_v37 = vsel %vm14870_vm9, %v6522_v36, %v9449_v13  ;;  %vm14871_vm5 = vmmov %vm14859_vm3  ;;  %v6965_v52 = vpack.c.bf16 %v6937_v27, %v6936_v25  ;;  %v14890_v13 = vld [vmem:[#allocation64_spill] sm:$0xff] }
 0x4de   : > { %v6938_v14 = vsel %vm14871_vm5, %v6906_v37, %v9459_v34  ;;  %vm14872_vm6 = vmmov %vm14859_vm3  ;;  %v6528_v34 = vsel %vm14706_vm14, %v14890_v13, 0.0  ;;  %v9495_v37 = vunpack.i.h.bf16 %v13243_v31 }
 0x4df   : > { %v6939_v18 = vsel %vm14872_vm6, %v6907_v61, %v9460_v62  ;;  %vm14876_vm3 = vmmov %vm14851_vm2  ;;  %v14931_v62 = vld [vmem:[#allocation12_spill] sm:$0xff] }
 0x4e0   : > { %v6966_v7 = vpack.c.bf16 %v6939_v18, %v6938_v14  ;;  %vm14882_vm1 = vmmov %vm14871_vm5  ;;  %v9518_v22 = vpop.permute.xlu1 %9517  ;;  %v9494_v14 = vunpack.i.l.bf16 %v13243_v31  ;;  %v9505_v18 = vunpack.i.h.bf16 %v9503_v53 }
 0x4e1   : > { %8103 = vmatmul.mubr.msk.bf16.vlgmr.msra.gmra.mrb[32].mxu0 %vm14860_vm15, %v6963_v12  ;;  %vm14878_vm15 = vmmov %vm14869_vm0  ;;  %v13283_v12 = vpop.permute.xlu0 %9512 }
 0x4e2   : > { %8106 = vmatprep.mubr.msk.bf16.mxu0 %vm14851_vm2, %v6964_v58  ;;  %v6909_v44 = vsel %vm14878_vm15, %v14877_v46, %v9455_v17  ;;  %vm14879_vm2 = vmmov %vm14869_vm0  ;;  %v9489_v58 = vunpack.i.l.bf16 %v13218_v50  ;;  %v9504_v17 = vunpack.i.l.bf16 %v9503_v53 }
 0x4e3   : > { %v6908_v51 = vsel %vm14879_vm2, %v6524_v2, %v9454_v3  ;;  %vm14883_vm13 = vmmov %vm14882_vm1  ;;  %v6915_v16 = vsel %vm14879_vm2, %v14901_v49, %v9490_v19  ;;  %v9510_v3 = vunpack.i.h.bf16 %v13258_v47  ;;  %v14914_v2 = vld [vmem:[#allocation29_spill] sm:$0xff]  ;;  %v14924_v19 = vld [vmem:[#allocation10_spill] sm:$0xff] }
 0x4e4   : > { %v6940_v45 = vsel %vm14882_vm1, %v6908_v51, %v9464_v30  ;;  %v6941_v28 = vsel %vm14883_vm13, %v6909_v44, %v9465_v15  ;;  %vm14885_vm8 = vmmov %vm14869_vm0  ;;  %v9528_v36 = vpop.permute.xlu1 %9527  ;;  %v9509_v15 = vunpack.i.l.bf16 %v13258_v47  ;;  %v9519_v30 = vunpack.i.l.bf16 %v9518_v22 }
 0x4e5   : > { %v6911_v20 = vsel %vm14885_vm8, %v14884_v54, %v9470_v40  ;;  %vm14886_vm12 = vmmov %vm14869_vm0  ;;  %v6967_v35 = vpack.c.bf16 %v6941_v28, %v6940_v45  ;;  %v9523_v43 = vpop.permute.xlu0 %9522  ;;  %v14906_v40 = vld [vmem:[#allocation6_spill] sm:$0xff] }
 0x4e6   : > { %v6910_v60 = vsel %vm14886_vm12, %v6526_v59, %v9469_v10  ;;  %vm14887_vm10 = vmmov %vm14882_vm1  ;;  %v14907_v10 = vld [vmem:[#allocation28_spill] sm:$0xff] }
 0x4e7   : > { %v6942_v39 = vsel %vm14887_vm10, %v6910_v60, %v9479_v56  ;;  %vm14888_vm0 = vmmov %vm14882_vm1  ;;  %vm14908_vm12 = vnez %v14907_v10  ;;  %v9514_v60 = vunpack.i.l.bf16 %v13283_v12  ;;  %v14949_v10 = vld [vmem:[#allocation16_spill] sm:$0xff] }
 0x4e8   : > { %v6943_v33 = vsel %vm14888_vm0, %v6911_v20, %v9480_v0  ;;  %vm14889_vm11 = vmmov %vm14876_vm3  ;;  %v6532_v0 = vsel %vm14908_vm12, %v14906_v40, 0.0  ;;  %v9538_v56 = vpop.permute.xlu1 %9537  ;;  %v9515_v20 = vunpack.i.h.bf16 %v13283_v12 }
 0x4e9   : > { %8107 = vmatmul.mubr.msk.bf16.gmra.mrb[36].mxu0 %vm14873_vm7, %v6965_v52  ;;  %v6968_v1 = vpack.c.bf16 %v6943_v33, %v6942_v39  ;;  %vm14892_vm9 = vmmov %vm14876_vm3  ;;  %vm14898_vm7 = vnez %v14897_v6  ;;  %v9533_v46 = vpop.permute.xlu0 %9532  ;;  %v9525_v39 = vunpack.i.h.bf16 %v9523_v43 }
 0x4ea   : > { %8110 = vmatprep.mubr.msk.bf16.mxu0 %vm14876_vm3, %v6966_v7  ;;  %vm14894_vm5 = vmmov %vm14879_vm2  ;;  %v6530_v24 = vsel %vm14898_vm7, %v14896_v21, 0.0  ;;  %v9520_v7 = vunpack.i.h.bf16 %v9518_v22  ;;  %v9524_v22 = vunpack.i.l.bf16 %v9523_v43  ;;  %v14936_v21 = vld [vmem:[#allocation15_spill] sm:$0xff] }
 0x4eb   : > { %v6913_v55 = vsel %vm14894_vm5, %v14893_v41, %v9475_v32  ;;  %vm14895_vm6 = vmmov %vm14879_vm2  ;;  %v9529_v32 = vunpack.i.l.bf16 %v9528_v36 }
 0x4ec   : > { %v6912_v48 = vsel %vm14895_vm6, %v6528_v34, %v9474_v38  ;;  %vm14899_vm3 = vmmov %vm14888_vm0  ;;  %v9543_v38 = vpop.permute.xlu1 %9542  ;;  %v14932_v34 = vld [vmem:[#allocation31_spill] sm:$0xff] }
 0x4ed   : > { %v6944_v50 = vsel %vm14899_vm3, %v6912_v48, %v9484_v5  ;;  %vm14900_vm15 = vmmov %vm14888_vm0  ;;  %v9548_v5 = vpop.permute.xlu0 %9547 }
 0x4ee   : > { %v6945_v26 = vsel %vm14900_vm15, %v6913_v55, %v9485_v9  ;;  %vm14902_vm1 = vmmov %vm14879_vm2  ;;  %v9540_v9 = vunpack.i.h.bf16 %v9538_v56 }
 0x4ef   : > { %v6914_v23 = vsel %vm14902_vm1, %v6530_v24, %v9489_v58  ;;  %vm14903_vm14 = vmmov %vm14888_vm0  ;;  %v6969_v61 = vpack.c.bf16 %v6945_v26, %v6944_v50  ;;  %v14925_v58 = vld [vmem:[#allocation30_spill] sm:$0xff] }
 0x4f0   : > { %v6946_v25 = vsel %vm14903_vm14, %v6914_v23, %v9499_v4  ;;  %vm14904_vm13 = vmmov %vm14888_vm0  ;;  %vm14926_vm14 = vnez %v14925_v58  ;;  %v14928_v4 = vld [vmem:[#allocation13_spill] sm:$0xff]  ;;  %v9558_v49 = vpop.permute.xlu1 %9557  ;;  %v9535_v23 = vunpack.i.h.bf16 %v9533_v46 }
 0x4f1   : > { %8111 = vmatmul.mubr.msk.bf16.gmra.mrb[40].mxu0 %vm14889_vm11, %v6967_v35  ;;  %v6947_v27 = vsel %vm14904_vm13, %v6915_v16, %v9500_v8  ;;  %vm14905_vm8 = vmmov %vm14892_vm9  ;;  %v9530_v35 = vunpack.i.h.bf16 %v9528_v36  ;;  %v6536_v8 = vsel %vm14926_vm14, %v14924_v19, 0.0  ;;  %v9534_v36 = vunpack.i.l.bf16 %v9533_v46 }
 0x4f2   : > { %8114 = vmatprep.mubr.msk.bf16.mxu0 %vm14892_vm9, %v6968_v1  ;;  %v6970_v52 = vpack.c.bf16 %v6947_v27, %v6946_v25  ;;  %vm14909_vm10 = vmmov %vm14905_vm8  ;;  %vm14915_vm9 = vnez %v14914_v2  ;;  %v9539_v1 = vunpack.i.l.bf16 %v9538_v56  ;;  %v9550_v25 = vunpack.i.h.bf16 %v9548_v5  ;;  %v9553_v27 = vpop.permute.xlu0 %9552 }
 0x4f3   : > { %vm14911_vm0 = vmmov %vm14902_vm1  ;;  %v6534_v47 = vsel %vm14915_vm9, %v14913_v63, 0.0  ;;  %v6542_v56 = vsel %vm14774_vm4, %v14949_v10, 0.0  ;;  %v9555_v2 = vunpack.i.h.bf16 %v9553_v27 }
 0x4f4   : > { %v6917_v31 = vsel %vm14911_vm0, %v14910_v11, %v9495_v37  ;;  %vm14912_vm11 = vmmov %vm14911_vm0  ;;  %v9545_v37 = vunpack.i.h.bf16 %v9543_v38 }
 0x4f5   : > { %v6916_v53 = vsel %vm14912_vm11, %v6532_v0, %v9494_v14  ;;  %vm14916_vm5 = vmmov %vm14899_vm3  ;;  %v9544_v14 = vunpack.i.l.bf16 %v9543_v38 }
 0x4f6   : > { %v6948_v44 = vsel %vm14916_vm5, %v6916_v53, %v9504_v17  ;;  %vm14917_vm6 = vmmov %vm14899_vm3  ;;  %v14942_v17 = vld [vmem:[#allocation14_spill] sm:$0xff] }
 0x4f7   : > { %v6949_v51 = vsel %vm14917_vm6, %v6917_v31, %v9505_v18  ;;  %vm14919_vm7 = vmmov %vm14911_vm0  ;;  %v9560_v18 = vunpack.i.h.bf16 %v9558_v49 }
 0x4f8   : > { %v6919_v57 = vsel %vm14919_vm7, %v14918_v42, %v9510_v3  ;;  %vm14920_vm3 = vmmov %vm14911_vm0  ;;  %v6971_v54 = vpack.c.bf16 %v6949_v51, %v6948_v44  ;;  %v14943_v3 = vld [vmem:[#allocation32_spill] sm:$0xff]  ;;  %v9563_v44 = vpop.permute.xlu0 %9562 }
 0x4f9   : > { %8115 = vmatmul.mubr.msk.bf16.gmra.mrb[44].mxu0 %vm14905_vm8, %v6969_v61  ;;  %v6918_v59 = vsel %vm14920_vm3, %v6534_v47, %v9509_v15  ;;  %vm14921_vm15 = vmmov %vm14916_vm5  ;;  %v9549_v61 = vunpack.i.l.bf16 %v9548_v5  ;;  %v6513_v51 = vld [vmem:[#allocation2 + $0x11f] sm:$0xff] }
 0x4fa   : > { %8118 = vmatprep.mubr.msk.bf16.mxu0 %vm14909_vm10, %v6970_v52  ;;  %v6950_v45 = vsel %vm14921_vm15, %v6918_v59, %v9519_v30  ;;  %vm14922_vm2 = vmmov %vm14916_vm5  ;;  %vm14933_vm10 = vnez %v14932_v34  ;;  %v9559_v52 = vunpack.i.l.bf16 %v9558_v49  ;;  %vm14944_vm15 = vnez %v14943_v3 }
 0x4fb   : > { %v6951_v28 = vsel %vm14922_vm2, %v6919_v57, %v9520_v7  ;;  %vm14923_vm1 = vmmov %vm14905_vm8  ;;  %v6538_v41 = vsel %vm14933_vm10, %v14931_v62, 0.0  ;;  %v6540_v15 = vsel %vm14944_vm15, %v14942_v17, 0.0  ;;  %v14946_v7 = vld [vmem:[#allocation17_spill] sm:$0xff]  ;;  %v6512_v57 = vld [vmem:[#allocation2 + $0x117] sm:$0xff]  ;;  %v9554_v59 = vunpack.i.l.bf16 %v9553_v27 }
 0x4fc   : > { %v6972_v33 = vpack.c.bf16 %v6951_v28, %v6950_v45  ;;  %vm14927_vm13 = vmmov %vm14923_vm1  ;;  %v9565_v28 = vunpack.i.h.bf16 %v9563_v44 }
 0x4fd   : > { %vm14929_vm8 = vmmov %vm14911_vm0 }
 0x4fe   : > { %v6921_v12 = vsel %vm14929_vm8, %v14928_v4, %v9515_v20  ;;  %vm14930_vm12 = vmmov %vm14911_vm0 }
 0x4ff   : > { %v6920_v13 = vsel %vm14930_vm12, %v6536_v8, %v9514_v60  ;;  %vm14934_vm0 = vmmov %vm14922_vm2 }
 0x500   : > { %v6952_v55 = vsel %vm14934_vm0, %v6920_v13, %v9524_v22  ;;  %vm14935_vm11 = vmmov %vm14934_vm0 }
 0x501   : > { %8119 = vmatmul.mubr.msk.bf16.gmra.mrb[48].mxu0 %vm14923_vm1, %v6971_v54  ;;  %v6953_v48 = vsel %vm14935_vm11, %v6921_v12, %v9525_v39  ;;  %vm14937_vm9 = vmmov %vm14920_vm3  ;;  %v9564_v54 = vunpack.i.l.bf16 %v9563_v44 }
 0x502   : > { %8122 = vmatprep.mubr.msk.bf16.mxu0 %vm14927_vm13, %v6972_v33  ;;  %v6923_v6 = vsel %vm14937_vm9, %v14936_v21, %v9530_v35  ;;  %vm14938_vm5 = vmmov %vm14920_vm3  ;;  %v6973_v16 = vpack.c.bf16 %v6953_v48, %v6952_v55 }
 0x503   : > { %v6922_v24 = vsel %vm14938_vm5, %v6538_v41, %v9529_v32  ;;  %vm14939_vm6 = vmmov %vm14934_vm0  ;;  %v13378_v32 = vld [vmem:[%s13525_s3 + $0x2] ss:$0 sm:$0xff] }
 0x504   : > { %v6954_v50 = vsel %vm14939_vm6, %v6922_v24, %v9539_v1  ;;  %vm14940_vm7 = vmmov %vm14934_vm0 }
 0x505   : > { %v6955_v26 = vsel %vm14940_vm7, %v6923_v6, %v9540_v9  ;;  %vm14941_vm3 = vmmov %vm14923_vm1  ;;  %v13383_v9 = vld [vmem:[%s13526_s4 + $0x2] ss:$0 sm:$0xff] }
 0x506   : > { %v6974_v43 = vpack.c.bf16 %v6955_v26, %v6954_v50  ;;  %vm14945_vm2 = vmmov %vm14923_vm1 }
 0x507   : > { %vm14947_vm1 = vmmov %vm14938_vm5 }
 0x508   : > { %v6925_v30 = vsel %vm14947_vm1, %v14946_v7, %v9535_v23  ;;  %vm14948_vm14 = vmmov %vm14947_vm1 }
 0x509   : > { %8123 = vmatmul.mubr.msk.bf16.gmra.mrb[52].mxu0 %vm14941_vm3, %v6973_v16  ;;  %v6924_v40 = vsel %vm14948_vm14, %v6540_v15, %v9534_v36  ;;  %vm14951_vm13 = vmmov %vm14934_vm0 }
 0x50a   : > { %8126 = vmatprep.mubr.msk.bf16.mxu0 %vm14945_vm2, %v6974_v43  ;;  %v6956_v11 = vsel %vm14951_vm13, %v6924_v40, %v9549_v61  ;;  %vm14952_vm8 = vmmov %vm14934_vm0 }
 0x50b   : > { %v6957_v31 = vsel %vm14952_vm8, %v6925_v30, %v9550_v25  ;;  %vm14953_vm12 = vmmov %vm14947_vm1 }
 0x50c   : > { %v6927_v53 = vsel %vm14953_vm12, %v13080_v29, %v9545_v37  ;;  %vm14954_vm10 = vmmov %vm14947_vm1  ;;  %v6975_v42 = vpack.c.bf16 %v6957_v31, %v6956_v11  ;;  %v14958_v29 = vld [vmem:[#allocation34_spill] sm:$0xff] }
 0x50d   : > { %v6926_v63 = vsel %vm14954_vm10, %v6542_v56, %v9544_v14  ;;  %vm14955_vm11 = vmmov %vm14934_vm0  ;;  %vm14959_vm5 = vnez %v14958_v29 }
 0x50e   : > { %v6958_v47 = vsel %vm14934_vm0, %v6926_v63, %v9559_v52  ;;  %v6959_v46 = vsel %vm14955_vm11, %v6927_v53, %v9560_v18  ;;  %vm14956_vm4 = vmmov %vm14947_vm1  ;;  %v6544_v60 = vsel %vm14959_vm5, %v6512_v57, 0.0 }
 0x50f   : > { %v6976_v45 = vpack.c.bf16 %v6959_v46, %v6958_v47  ;;  %v6929_v20 = vsel %vm14956_vm4, %v6513_v51, %v9555_v2  ;;  %vm14957_vm9 = vmmov %vm14945_vm2 }
 0x510   : > { %vm14960_vm6 = vmmov %vm14945_vm2 }
 0x511   : > { %8127 = vmatmul.mubr.msk.bf16.gmra.mrb[56].mxu0 %vm14957_vm9, %v6975_v42  ;;  %vm14961_vm7 = vmmov %vm14947_vm1 }
 0x512   : > { %8130 = vmatprep.mubr.msk.bf16.mxu0 %vm14960_vm6, %v6976_v45  ;;  %v6928_v39 = vsel %vm14961_vm7, %v6544_v60, %v9554_v59  ;;  %vm14962_vm3 = vmmov %vm14934_vm0 }
 0x513   : > { %v6960_v33 = vsel %vm14962_vm3, %v6928_v39, %v9564_v54  ;;  %vm14963_vm15 = vmmov %vm14934_vm0 }
 0x514   : > { %v6961_v22 = vsel %vm14963_vm15, %v6929_v20, %v9565_v28  ;;  %vm14964_vm14 = vmmov %vm14947_vm1 }
 0x515   : > { %v6977_v35 = vpack.c.bf16 %v6961_v22, %v6960_v33  ;;  %vm14965_vm13 = vmmov %vm14947_vm1 }
 0x516   : > { %vm14966_vm8 = vmmov %vm14947_vm1 }
 0x517   : > { %vm14967_vm12 = vmmov %vm14947_vm1 }
 0x518   : > { %vm14968_vm10 = vmmov %vm14947_vm1 }
 0x519   : > { %8131 = vmatmul.mubr.msk.bf16.gmra.mrb[60].mxu0 %vm14945_vm2, %v6977_v35  ;;  %vm14969_vm0 = vmmov %vm14947_vm1 }
 0x51a   : > { %vm14970_vm11 = vmmov %vm14969_vm0 }
 0x51b   : > { %vm14971_vm4 = vmmov %vm14969_vm0 }
 0x51c   : > { %vm14972_vm9 = vmmov %vm14969_vm0 }
 0x51d   : > { %vm14973_vm5 = vmmov %vm14969_vm0 }
 0x51e   : > { %vm14974_vm6 = vmmov %vm14969_vm0 }
 0x51f   : > { %vm14975_vm7 = vmmov %vm14969_vm0 }
 0x520   : > { %vm14976_vm3 = vmmov %vm14969_vm0 }
 0x521   : > { %vm14977_vm15 = vmmov %vm14969_vm0 }
 0x522   : > { %vm14978_vm2 = vmmov %vm14969_vm0 }
 0x5b4   : > { %v8104_v38 = vpop.f32.mrb[32].mxu0 }
 0x5b5   : > { %v7241_v1 = vmul.f32 %v8104_v38, %v13378_v32  ;;  %v7072_v5 = vpop.f32.mrb[33].mxu0 }
 0x5b6   : > { %v7239_v19 = vmul.f32 %v13378_v32, %v7072_v5  ;;  %v8105_v58 = vpop.f32.mrb[34].mxu0 }
 0x5b7   : > { %v7281_v8 = vadd.f32 %v13383_v9, %v7241_v1  ;;  %v7242_v4 = vmul.f32 %v8105_v58, %v13378_v32  ;;  %v7075_v12 = vpop.f32.mrb[35].mxu0 }
 0x5b8   : > { %v7279_v13 = vadd.f32 %v13383_v9, %v7239_v19  ;;  %v7240_v62 = vmul.f32 %v13378_v32, %v7075_v12 }
 0x5b9   : > { %v7313_v34 = vmax.f32 %v7281_v8, 0.0  ;;  %v7282_v41 = vadd.f32 %v13383_v9, %v7242_v4 }
 0x5ba   : > { %v7311_v55 = vmax.f32 %v7279_v13, 0.0  ;;  %v7280_v48 = vadd.f32 %v13383_v9, %v7240_v62 }
 0x5bb   : > { %7345 = vst.msk [vmem:[%s13393_s11 + $0x10] sm:$0xff] %vm14947_vm1, %v7313_v34  ;;  %v7314_v21 = vmax.f32 %v7282_v41, 0.0  ;;  %vm14979_vm1 = vmmov %vm14969_vm0 }
 0x5bc   : > { %7343 = vst.msk [vmem:[%s13393_s11] sm:$0xff] %vm14964_vm14, %v7311_v55  ;;  %v7312_v6 = vmax.f32 %v7280_v48, 0.0  ;;  %v8108_v24 = vpop.f32.mrb[36].mxu0  ;;  %vm14980_vm14 = vmmov %vm14969_vm0 }
 0x5bd   : > { %7346 = vst.msk [vmem:[%s13393_s11 + $0x18] sm:$0xff] %vm14965_vm13, %v7314_v21  ;;  %v7245_v50 = vmul.f32 %v8108_v24, %v13378_v32  ;;  %v7088_v26 = vpop.f32.mrb[37].mxu0  ;;  %vm14981_vm13 = vmmov %vm14969_vm0 }
 0x5be   : > { %7344 = vst.msk [vmem:[%s13393_s11 + $0x8] sm:$0xff] %vm14966_vm8, %v7312_v6  ;;  %v7243_v49 = vmul.f32 %v13378_v32, %v7088_v26  ;;  %v8109_v16 = vpop.f32.mrb[38].mxu0  ;;  %vm14982_vm8 = vmmov %vm14969_vm0 }
 0x5bf   : > { %v7285_v23 = vadd.f32 %v13383_v9, %v7245_v50  ;;  %v7246_v36 = vmul.f32 %v8109_v16, %v13378_v32  ;;  %v7091_v25 = vpop.f32.mrb[39].mxu0 }
 0x5c0   : > { %v7283_v27 = vadd.f32 %v13383_v9, %v7243_v49  ;;  %v7244_v43 = vmul.f32 %v13378_v32, %v7091_v25 }
 0x5c1   : > { %v7317_v61 = vmax.f32 %v7285_v23, 0.0  ;;  %v7286_v37 = vadd.f32 %v13383_v9, %v7246_v36 }
 0x5c2   : > { %v7315_v14 = vmax.f32 %v7283_v27, 0.0  ;;  %v7284_v18 = vadd.f32 %v13383_v9, %v7244_v43 }
 0x5c3   : > { %7349 = vst.msk [vmem:[%s13393_s11 + $0x30] sm:$0xff] %vm14967_vm12, %v7317_v61  ;;  %v7318_v52 = vmax.f32 %v7286_v37, 0.0  ;;  %vm14983_vm12 = vmmov %vm14969_vm0 }
 0x5c4   : > { %7347 = vst.msk [vmem:[%s13393_s11 + $0x20] sm:$0xff] %vm14968_vm10, %v7315_v14  ;;  %v7316_v17 = vmax.f32 %v7284_v18, 0.0  ;;  %v8112_v3 = vpop.f32.mrb[40].mxu0  ;;  %vm14984_vm10 = vmmov %vm14969_vm0 }
 0x5c5   : > { %7350 = vst.msk [vmem:[%s13393_s11 + $0x38] sm:$0xff] %vm14969_vm0, %v7318_v52  ;;  %v7249_v15 = vmul.f32 %v8112_v3, %v13378_v32  ;;  %v7104_v7 = vpop.f32.mrb[41].mxu0 }
 0x5c6   : > { %7348 = vst.msk [vmem:[%s13393_s11 + $0x28] sm:$0xff] %vm14970_vm11, %v7316_v17  ;;  %v7247_v30 = vmul.f32 %v13378_v32, %v7104_v7  ;;  %v8113_v40 = vpop.f32.mrb[42].mxu0  ;;  %vm14985_vm11 = vmmov %vm14969_vm0 }
 0x5c7   : > { %v7289_v10 = vadd.f32 %v13383_v9, %v7249_v15  ;;  %v7250_v0 = vmul.f32 %v8113_v40, %v13378_v32  ;;  %v7107_v56 = vpop.f32.mrb[43].mxu0 }
 0x5c8   : > { %v7287_v11 = vadd.f32 %v13383_v9, %v7247_v30  ;;  %v7248_v31 = vmul.f32 %v13378_v32, %v7107_v56 }
 0x5c9   : > { %v7321_v53 = vmax.f32 %v7289_v10, 0.0  ;;  %v7290_v63 = vadd.f32 %v13383_v9, %v7250_v0 }
 0x5ca   : > { %v7319_v2 = vmax.f32 %v7287_v11, 0.0  ;;  %v7288_v47 = vadd.f32 %v13383_v9, %v7248_v31 }
 0x5cb   : > { %7353 = vst.msk [vmem:[%s13393_s11 + $0x50] sm:$0xff] %vm14971_vm4, %v7321_v53  ;;  %v7322_v46 = vmax.f32 %v7290_v63, 0.0  ;;  %vm14986_vm4 = vmmov %vm14969_vm0 }
 0x5cc   : > { %7351 = vst.msk [vmem:[%s13393_s11 + $0x40] sm:$0xff] %vm14972_vm9, %v7319_v2  ;;  %v7320_v44 = vmax.f32 %v7288_v47, 0.0  ;;  %v8116_v51 = vpop.f32.mrb[44].mxu0  ;;  %vm14987_vm9 = vmmov %vm14969_vm0 }
 0x5cd   : > { %7354 = vst.msk [vmem:[%s13393_s11 + $0x58] sm:$0xff] %vm14973_vm5, %v7322_v46  ;;  %v7253_v42 = vmul.f32 %v8116_v51, %v13378_v32  ;;  %v7120_v57 = vpop.f32.mrb[45].mxu0  ;;  %vm14988_vm5 = vmmov %vm14969_vm0 }
 0x5ce   : > { %7352 = vst.msk [vmem:[%s13393_s11 + $0x48] sm:$0xff] %vm14974_vm6, %v7320_v44  ;;  %v7251_v59 = vmul.f32 %v13378_v32, %v7120_v57  ;;  %v8117_v45 = vpop.f32.mrb[46].mxu0  ;;  %vm14989_vm6 = vmmov %vm14969_vm0 }
 0x5cf   : > { %v7293_v28 = vadd.f32 %v13383_v9, %v7253_v42  ;;  %v7254_v54 = vmul.f32 %v8117_v45, %v13378_v32  ;;  %v7123_v20 = vpop.f32.mrb[47].mxu0 }
 0x5d0   : > { %v7291_v29 = vadd.f32 %v13383_v9, %v7251_v59  ;;  %v7252_v60 = vmul.f32 %v13378_v32, %v7123_v20 }
 0x5d1   : > { %v7325_v39 = vmax.f32 %v7293_v28, 0.0  ;;  %v7294_v33 = vadd.f32 %v13383_v9, %v7254_v54 }
 0x5d2   : > { %v7323_v22 = vmax.f32 %v7291_v29, 0.0  ;;  %v7292_v35 = vadd.f32 %v13383_v9, %v7252_v60 }
 0x5d3   : > { %7357 = vst.msk [vmem:[%s13393_s11 + $0x70] sm:$0xff] %vm14975_vm7, %v7325_v39  ;;  %v7326_v38 = vmax.f32 %v7294_v33, 0.0  ;;  %vm14990_vm7 = vmmov %vm14969_vm0 }
 0x5d4   : > { %7355 = vst.msk [vmem:[%s13393_s11 + $0x60] sm:$0xff] %vm14976_vm3, %v7323_v22  ;;  %v7324_v1 = vmax.f32 %v7292_v35, 0.0  ;;  %v8120_v5 = vpop.f32.mrb[48].mxu0  ;;  %vm14991_vm3 = vmmov %vm14969_vm0 }
 0x5d5   : > { %7358 = vst.msk [vmem:[%s13393_s11 + $0x78] sm:$0xff] %vm14977_vm15, %v7326_v38  ;;  %v7257_v19 = vmul.f32 %v8120_v5, %v13378_v32  ;;  %v7136_v58 = vpop.f32.mrb[49].mxu0  ;;  %vm14992_vm15 = vmmov %vm14969_vm0 }
 0x5d6   : > { %7356 = vst.msk [vmem:[%s13393_s11 + $0x68] sm:$0xff] %vm14978_vm2, %v7324_v1  ;;  %v7255_v8 = vmul.f32 %v13378_v32, %v7136_v58  ;;  %v8121_v4 = vpop.f32.mrb[50].mxu0  ;;  %vm14993_vm2 = vmmov %vm14969_vm0 }
 0x5d7   : > { %v7297_v12 = vadd.f32 %v13383_v9, %v7257_v19  ;;  %v7258_v13 = vmul.f32 %v8121_v4, %v13378_v32  ;;  %v7139_v62 = vpop.f32.mrb[51].mxu0 }
 0x5d8   : > { %v7295_v34 = vadd.f32 %v13383_v9, %v7255_v8  ;;  %v7256_v41 = vmul.f32 %v13378_v32, %v7139_v62 }
 0x5d9   : > { %v7329_v55 = vmax.f32 %v7297_v12, 0.0  ;;  %v7298_v48 = vadd.f32 %v13383_v9, %v7258_v13 }
 0x5da   : > { %v7327_v21 = vmax.f32 %v7295_v34, 0.0  ;;  %v7296_v6 = vadd.f32 %v13383_v9, %v7256_v41 }
 0x5db   : > { %7361 = vst.msk [vmem:[%s13393_s11 + $0x90] sm:$0xff] %vm14979_vm1, %v7329_v55  ;;  %v7330_v24 = vmax.f32 %v7298_v48, 0.0 }
 0x5dc   : > { %7359 = vst.msk [vmem:[%s13393_s11 + $0x80] sm:$0xff] %vm14980_vm14, %v7327_v21  ;;  %v7328_v50 = vmax.f32 %v7296_v6, 0.0  ;;  %v8124_v26 = vpop.f32.mrb[52].mxu0 }
 0x5dd   : > { %7362 = vst.msk [vmem:[%s13393_s11 + $0x98] sm:$0xff] %vm14981_vm13, %v7330_v24  ;;  %v7261_v49 = vmul.f32 %v8124_v26, %v13378_v32  ;;  %v7152_v16 = vpop.f32.mrb[53].mxu0 }
 0x5de   : > { %7360 = vst.msk [vmem:[%s13393_s11 + $0x88] sm:$0xff] %vm14982_vm8, %v7328_v50  ;;  %v7259_v23 = vmul.f32 %v13378_v32, %v7152_v16  ;;  %v8125_v36 = vpop.f32.mrb[54].mxu0 }
 0x5df   : > { %v7301_v25 = vadd.f32 %v13383_v9, %v7261_v49  ;;  %v7262_v27 = vmul.f32 %v8125_v36, %v13378_v32  ;;  %v7155_v43 = vpop.f32.mrb[55].mxu0 }
 0x5e0   : > { %v7299_v61 = vadd.f32 %v13383_v9, %v7259_v23  ;;  %v7260_v37 = vmul.f32 %v13378_v32, %v7155_v43 }
 0x5e1   : > { %v7333_v14 = vmax.f32 %v7301_v25, 0.0  ;;  %v7302_v18 = vadd.f32 %v13383_v9, %v7262_v27 }
 0x5e2   : > { %v7331_v52 = vmax.f32 %v7299_v61, 0.0  ;;  %v7300_v17 = vadd.f32 %v13383_v9, %v7260_v37 }
 0x5e3   : > { %7365 = vst.msk [vmem:[%s13393_s11 + $0xb0] sm:$0xff] %vm14983_vm12, %v7333_v14  ;;  %v7334_v3 = vmax.f32 %v7302_v18, 0.0 }
 0x5e4   : > { %7363 = vst.msk [vmem:[%s13393_s11 + $0xa0] sm:$0xff] %vm14984_vm10, %v7331_v52  ;;  %v7332_v15 = vmax.f32 %v7300_v17, 0.0  ;;  %v8128_v7 = vpop.f32.mrb[56].mxu0 }
 0x5e5   : > { %7366 = vst.msk [vmem:[%s13393_s11 + $0xb8] sm:$0xff] %vm14969_vm0, %v7334_v3  ;;  %v7265_v30 = vmul.f32 %v8128_v7, %v13378_v32  ;;  %v7168_v40 = vpop.f32.mrb[57].mxu0 }
 0x5e6   : > { %7364 = vst.msk [vmem:[%s13393_s11 + $0xa8] sm:$0xff] %vm14985_vm11, %v7332_v15  ;;  %v7263_v10 = vmul.f32 %v13378_v32, %v7168_v40  ;;  %v8129_v0 = vpop.f32.mrb[58].mxu0 }
 0x5e7   : > { %v7305_v56 = vadd.f32 %v13383_v9, %v7265_v30  ;;  %v7266_v11 = vmul.f32 %v8129_v0, %v13378_v32  ;;  %v7171_v31 = vpop.f32.mrb[59].mxu0 }
 0x5e8   : > { %v7303_v53 = vadd.f32 %v13383_v9, %v7263_v10  ;;  %v7264_v63 = vmul.f32 %v13378_v32, %v7171_v31 }
 0x5e9   : > { %v7337_v2 = vmax.f32 %v7305_v56, 0.0  ;;  %v7306_v47 = vadd.f32 %v13383_v9, %v7266_v11 }
 0x5ea   : > { %v7335_v46 = vmax.f32 %v7303_v53, 0.0  ;;  %v7304_v44 = vadd.f32 %v13383_v9, %v7264_v63 }
 0x5eb   : > { %7369 = vst.msk [vmem:[%s13393_s11 + $0xd0] sm:$0xff] %vm14986_vm4, %v7337_v2  ;;  %v7338_v51 = vmax.f32 %v7306_v47, 0.0 }
 0x5ec   : > { %7367 = vst.msk [vmem:[%s13393_s11 + $0xc0] sm:$0xff] %vm14987_vm9, %v7335_v46  ;;  %v7336_v42 = vmax.f32 %v7304_v44, 0.0  ;;  %v8132_v57 = vpop.f32.mrb[60].mxu0 }
 0x5ed   : > { %7370 = vst.msk [vmem:[%s13393_s11 + $0xd8] sm:$0xff] %vm14988_vm5, %v7338_v51  ;;  %v7269_v59 = vmul.f32 %v8132_v57, %v13378_v32  ;;  %v7184_v45 = vpop.f32.mrb[61].mxu0 }
 0x5ee   : > { %7368 = vst.msk [vmem:[%s13393_s11 + $0xc8] sm:$0xff] %vm14989_vm6, %v7336_v42  ;;  %v7267_v28 = vmul.f32 %v13378_v32, %v7184_v45  ;;  %v8133_v54 = vpop.f32.mrb[62].mxu0 }
 0x5ef   : > { %v7309_v20 = vadd.f32 %v13383_v9, %v7269_v59  ;;  %v7270_v29 = vmul.f32 %v8133_v54, %v13378_v32  ;;  %v7187_v60 = vpop.f32.mrb[63].mxu0 }
 0x5f0   : > { %v7307_v39 = vadd.f32 %v13383_v9, %v7267_v28  ;;  %v7268_v33 = vmul.f32 %v13378_v32, %v7187_v60 }
 0x5f1   : > { %v7341_v22 = vmax.f32 %v7309_v20, 0.0  ;;  %v7310_v35 = vadd.f32 %v13383_v9, %v7270_v29 }
 0x5f2   : > { %v7339_v38 = vmax.f32 %v7307_v39, 0.0  ;;  %v7308_v1 = vadd.f32 %v13383_v9, %v7268_v33 }
 0x5f3   : > { %7373 = vst.msk [vmem:[%s13393_s11 + $0xf0] sm:$0xff] %vm14990_vm7, %v7341_v22  ;;  %v7342_v5 = vmax.f32 %v7310_v35, 0.0 }
 0x5f4   : > { %7371 = vst.msk [vmem:[%s13393_s11 + $0xe0] sm:$0xff] %vm14991_vm3, %v7339_v38  ;;  %v7340_v19 = vmax.f32 %v7308_v1, 0.0 }
 0x5f5   : > { %7374 = vst.msk [vmem:[%s13393_s11 + $0xf8] sm:$0xff] %vm14992_vm15, %v7342_v5 }
 0x5f6   : > { %7372 = vst.msk [vmem:[%s13393_s11 + $0xe8] sm:$0xff] %vm14993_vm2, %v7340_v19 }
 0x5f7 PF: > { %s15_s18 = sadd.s32 1, %s9590_s18  }
 0x5f8   : > { %p12_p4 = scmp.ge.s32.totalorder %s15_s18, 4  }
 0x5fa   :  { %14 = sbr.rel (!%p12_p4) target bundleno = 1 (0x1), region = 79 }

</bundles_post_ra>
